<compile_context>
chip_gen: v6e
topology: v6e:2x2x1
jax: 0.10.0
libtpu: 0.0.40
codegen_flags: <defaults>
</compile_context>

<pallas_src>
import jax
import jax.numpy as jnp
from jax.experimental import pallas as pl
from jax.experimental.pallas import tpu as pltpu

_VMEM_LIMIT = 48 * 1024 * 1024  # explicit scoped-VMEM budget (feedback item)


# ----------------------------------------------------------------------------
# Pallas kernels
# ----------------------------------------------------------------------------
def _conv1_pool_relu_kernel(p_ref, w_ref, b_ref, o_ref):
    """conv1-as-GEMM + bias + 2x2 maxpool + ReLU for one batch tile.

    p_ref: (4, TB, 144, 32) bf16  im2col patches, leading axis = 2x2 pool slot
    w_ref: (32, 128)        bf16  conv1 weight (K 25->32, Cout 10->128 zero-pad)
    b_ref: (1, 128)         f32   bias (zero-padded)
    o_ref: (TB, 144, 16)    bf16  relu(maxpool2x2(conv1)); channels padded 10->16
    """
    tb = o_ref.shape[0]
    # Single MXU push over all 4 pool slots and all samples in the tile.
    p = p_ref[...].reshape(4 * tb * 144, 32)
    c = jnp.dot(p, w_ref[...], preferred_element_type=jnp.float32)
    c = c.reshape(4, tb, 144, 128)
    pooled = jnp.maximum(jnp.maximum(c[0], c[1]), jnp.maximum(c[2], c[3]))
    act = jnp.maximum(pooled + b_ref[...], 0.0)
    o_ref[...] = act[:, :, :16].astype(jnp.bfloat16)


def _conv2_fc_head_kernel(p_ref, w2_ref, b2_ref, w1_ref, b1_ref,
                          w3_ref, b3_ref, o_ref):
    """conv2-GEMM + bias + 2x2 maxpool + ReLU + fc1 + ReLU + fc2 + log_softmax.

    p_ref:  (4, 16, TB, 256) bf16  conv2 im2col patches (slot, pooled-pixel, sample, K)
    w2_ref: (256, 128) bf16        conv2 weight (K 250->256, Cout 20->128 zero-pad)
    b2_ref: (1, 128)   f32
    w1_ref: (16, 128, 128) bf16    fc1 weight as per-pixel blocks (pixel, in-ch, out)
    b1_ref: (1, 128)   f32
    w3_ref: (128, 128) bf16        fc2 weight (in 50->128, out 10->128 zero-pad)
    b3_ref: (1, 128)   f32         fc2 bias; padded logit columns set to -1e30
    o_ref:  (TB, 128)  f32         log_softmax; real classes live in columns 0..9
    """
    tb = o_ref.shape[0]
    # conv2: one MXU dot over (4 slots * 16 pooled pixels * TB samples) rows.
    # NOTE: requires TB % 16 == 0 so the leading-dim merge is tile-aligned.
    p = p_ref[...].reshape(4 * 16 * tb, 256)
    c = jnp.dot(p, w2_ref[...], preferred_element_type=jnp.float32)
    c = c.reshape(4, 16, tb, 128)
    pooled = jnp.maximum(jnp.maximum(c[0], c[1]), jnp.maximum(c[2], c[3]))  # (16,TB,128)
    act = jnp.maximum(pooled + b2_ref[...], 0.0).astype(jnp.bfloat16)

    # fc1: contraction over (pixel, channel) as 16 leading-axis GEMMs, f32 acc.
    h = jnp.zeros((tb, 128), jnp.float32)
    for px in range(16):
        h = h + jnp.dot(act[px], w1_ref[px], preferred_element_type=jnp.float32)
    h = jnp.maximum(h + b1_ref[...], 0.0)     # relu(fc1); dropout = identity (eval)

    # fc2 + log_softmax; 128 lane-dense logits (padded cols ~ -1e30 -> ignored).
    logits = jnp.dot(h.astype(jnp.bfloat16), w3_ref[...],
                     preferred_element_type=jnp.float32) + b3_ref[...]
    m = jnp.max(logits, axis=-1, keepdims=True)
    s = logits - m
    o_ref[...] = s - jnp.log(jnp.sum(jnp.exp(s), axis=-1, keepdims=True))


# ----------------------------------------------------------------------------
# pallas_call wrappers
# ----------------------------------------------------------------------------
def _conv1_call(patches, kp, tb):
    npad = patches.shape[1]
    return pl.pallas_call(
        _conv1_pool_relu_kernel,
        out_shape=jax.ShapeDtypeStruct((npad, 144, 16), jnp.bfloat16),
        grid=(npad // tb,),
        in_specs=[
            pl.BlockSpec((4, tb, 144, 32), lambda i: (0, i, 0, 0)),
            pl.BlockSpec((32, 128), lambda i: (0, 0)),
            pl.BlockSpec((1, 128), lambda i: (0, 0)),
        ],
        out_specs=pl.BlockSpec((tb, 144, 16), lambda i: (i, 0, 0)),
        compiler_params=pltpu.CompilerParams(
            dimension_semantics=("parallel",),
            vmem_limit_bytes=_VMEM_LIMIT),
    )(patches, kp["c1_w"], kp["c1_b"])


def _head_call(patches, kp, tb):
    assert tb % 16 == 0
    npad = patches.shape[2]
    return pl.pallas_call(
        _conv2_fc_head_kernel,
        out_shape=jax.ShapeDtypeStruct((npad, 128), jnp.float32),
        grid=(npad // tb,),
        in_specs=[
            pl.BlockSpec((4, 16, tb, 256), lambda i: (0, 0, i, 0)),
            pl.BlockSpec((256, 128), lambda i: (0, 0)),
            pl.BlockSpec((1, 128), lambda i: (0, 0)),
            pl.BlockSpec((16, 128, 128), lambda i: (0, 0, 0)),
            pl.BlockSpec((1, 128), lambda i: (0, 0)),
            pl.BlockSpec((128, 128), lambda i: (0, 0)),
            pl.BlockSpec((1, 128), lambda i: (0, 0)),
        ],
        out_specs=pl.BlockSpec((tb, 128), lambda i: (i, 0)),
        compiler_params=pltpu.CompilerParams(
            dimension_semantics=("parallel",),
            vmem_limit_bytes=_VMEM_LIMIT),
    )(patches, kp["c2_w"], kp["c2_b"], kp["f1_w"], kp["f1_b"],
      kp["f2_w"], kp["f2_b"])


# ----------------------------------------------------------------------------
# XLA glue: im2col grouped by 2x2 pool-window slot
# ----------------------------------------------------------------------------
def _pooled_patches(x_nhwc, ksize, k_pad):
    """Return (4, N, Hp*Wp, k_pad) bf16 im2col patches grouped by pool slot."""
    n, h, w, cin = x_nhwc.shape
    ho, wo = h - ksize + 1, w - ksize + 1
    hp, wp = ho // 2, wo // 2
    k = cin * ksize * ksize
    xb = x_nhwc.astype(jnp.bfloat16)
    # K ordered (cin, kh, kw) to match torch weight.reshape(Cout, -1).
    cols = [xb[:, i:i + ho, j:j + wo, :] for i in range(ksize) for j in range(ksize)]
    pat = jnp.stack(cols, axis=-1).reshape(n, ho, wo, k)
    pat = jnp.stack([pat[:, 0::2, 0::2], pat[:, 0::2, 1::2],
                     pat[:, 1::2, 0::2], pat[:, 1::2, 1::2]], axis=0)
    pat = pat.reshape(4, n, hp * wp, k)
    if k_pad > k:
        pat = jnp.pad(pat, ((0, 0), (0, 0), (0, 0), (0, k_pad - k)))
    return pat


# ----------------------------------------------------------------------------
# Parameters (torch layout) and kernel-ready preparation
# ----------------------------------------------------------------------------
def init_params(key):
    ks = jax.random.split(key, 8)

    def rnd(k, shape, fan_in):
        bound = 1.0 / jnp.sqrt(fan_in)
        return jax.random.uniform(k, shape, jnp.float32, -bound, bound)

    return {
        "conv1_w": rnd(ks[0], (10, 1, 5, 5), 1 * 5 * 5),
        "conv1_b": rnd(ks[1], (10,), 1 * 5 * 5),
        "conv2_w": rnd(ks[2], (20, 10, 5, 5), 10 * 5 * 5),
        "conv2_b": rnd(ks[3], (20,), 10 * 5 * 5),
        "fc1_w":   rnd(ks[4], (50, 320), 320),
        "fc1_b":   rnd(ks[5], (50,), 320),
        "fc2_w":   rnd(ks[6], (10, 50), 50),
        "fc2_b":   rnd(ks[7], (10,), 50),
    }


def prepare_params(p):
    """One-time: transpose / permute / zero-pad / bf16-cast all weights."""
    # conv1: (10,1,5,5) -> (25,10) -> pad K 25->32, Cout 10->128
    c1 = p["conv1_w"].reshape(10, -1).T
    c1 = jnp.pad(c1, ((0, 32 - 25), (0, 128 - 10))).astype(jnp.bfloat16)
    c1b = jnp.pad(p["conv1_b"], (0, 128 - 10))[None, :].astype(jnp.float32)
    # conv2: (20,10,5,5) -> (250,20) -> pad K 250->256, Cout 20->128
    c2 = p["conv2_w"].reshape(20, -1).T
    c2 = jnp.pad(c2, ((0, 256 - 250), (0, 128 - 20))).astype(jnp.bfloat16)
    c2b = jnp.pad(p["conv2_b"], (0, 128 - 20))[None, :].astype(jnp.float32)
    # fc1: (50, 320) with 320 = NCHW flatten (c=20, h=4, w=4) -> per-pixel blocks
    # W1[p][c, o] = fc1_w[o, c*16 + p], padded to (16, 128, 128).
    f1 = p["fc1_w"].reshape(50, 20, 16).transpose(2, 1, 0)          # (16, 20, 50)
    f1 = jnp.pad(f1, ((0, 0), (0, 128 - 20), (0, 128 - 50))).astype(jnp.bfloat16)
    f1b = jnp.pad(p["fc1_b"], (0, 128 - 50))[None, :].astype(jnp.float32)
    # fc2: (10,50) -> (50,10) -> (128,128); padded logit columns get -1e30 bias
    # so the in-kernel 128-wide log_softmax ignores them (lane-dense store).
    f2 = jnp.pad(p["fc2_w"].T, ((0, 128 - 50), (0, 128 - 10))).astype(jnp.bfloat16)
    f2b = jnp.concatenate(
        [p["fc2_b"], jnp.full((128 - 10,), -1e30, jnp.float32)])[None, :]
    return {
        "c1_w": c1, "c1_b": c1b,
        "c2_w": c2, "c2_b": c2b,
        "f1_w": f1, "f1_b": f1b,
        "f2_w": f2, "f2_b": f2b.astype(jnp.float32),
    }


# ----------------------------------------------------------------------------
# Full forward pass (mirrors Net.forward, eval mode)
# ----------------------------------------------------------------------------
def net_forward(x, kp):
    n = x.shape[0]
    tb = 16 if n <= 16 else 32          # batch tile (multiple of 16 for bf16 tiles)
    npad = -(-n // tb) * tb
    if npad != n:
        x = jnp.pad(x, ((0, npad - n), (0, 0), (0, 0), (0, 0)))
    xh = x.transpose(0, 2, 3, 1)                                   # NCHW -> NHWC
    # x = relu(max_pool2d(conv1(x), 2))            -> fused kernel 1
    p1 = _pooled_patches(xh, 5, 32)                                # (4, npad, 144, 32)
    y1 = _conv1_call(p1, kp, tb)                                   # (npad, 144, 16) bf16
    # x = relu(max_pool2d(conv2_drop(conv2(x)), 2)); x = x.view(-1, 320);
    # x = relu(fc1(x)); x = dropout(x); x = fc2(x); log_softmax  -> fused kernel 2
    y1m = y1[:, :, :10].reshape(npad, 12, 12, 10)
    p2 = _pooled_patches(y1m, 5, 256)                              # (4, npad, 16, 256)
    p2 = p2.transpose(0, 2, 1, 3)                                  # (4, 16, npad, 256)
    out = _head_call(p2, kp, tb)                                   # (npad, 128) f32
    return out[:n, :10]


if __name__ == "__main__":
    key = jax.random.PRNGKey(0)
    k_in, k_par = jax.random.split(key)
    # MNIST-shaped input: the 320-feature flatten in forward() implies 1x28x28.
    x = jax.random.normal(k_in, (2, 1, 28, 28), dtype=jnp.float32)
    params = init_params(k_par)
    kparams = prepare_params(params)

    out = jax.jit(net_forward)(x, kparams)
    out = jax.block_until_ready(out)

    assert out.shape == (2, 10) and out.dtype == jnp.float32
    # log_softmax rows should (approximately) sum to 1 in prob space.
    assert bool(jnp.all(jnp.abs(jnp.sum(jnp.exp(out), axis=1) - 1.0) < 1e-4))
    print("KERNEL_OK")
</pallas_src>

<mosaic_0001>
module attributes {stable_mosaic.version = 11 : i64} {
  func.func @_conv1_pool_relu_kernel(%arg0: i32, %arg1: memref<4x16x144x32xbf16, #tpu.memory_space<vmem>>, %arg2: memref<32x128xbf16, #tpu.memory_space<vmem>>, %arg3: memref<1x128xf32, #tpu.memory_space<vmem>>, %arg4: memref<16x144x16xbf16, #tpu.memory_space<vmem>>) attributes {dimension_semantics = [#tpu.dimension_semantics<parallel>], iteration_bounds = array<i64: 1>, scalar_prefetch = 0 : i64, scratch_operands = 0 : i64, tpu.core_type = #tpu.core_type<tc>, window_params = [{transform_indices = @transform_0, window_bounds = array<i64: 4, 16, 144, 32>}, {pipeline_mode = #tpu.pipeline_mode<synchronous>, transform_indices = @transform_1, window_bounds = array<i64: 32, 128>}, {pipeline_mode = #tpu.pipeline_mode<synchronous>, transform_indices = @transform_2, window_bounds = array<i64: 1, 128>}, {transform_indices = @transform_3, window_bounds = array<i64: 16, 144, 16>}]} {
    %c0 = arith.constant 0 : index
    %c0_0 = arith.constant 0 : index
    %c0_1 = arith.constant 0 : index
    %c0_2 = arith.constant 0 : index
    %0 = vector.load %arg1[%c0, %c0_0, %c0_1, %c0_2] : memref<4x16x144x32xbf16, #tpu.memory_space<vmem>>, vector<4x16x144x32xbf16>
    %1 = vector.shape_cast %0 : vector<4x16x144x32xbf16> to vector<9216x32xbf16>
    %c0_3 = arith.constant 0 : index
    %c0_4 = arith.constant 0 : index
    %2 = vector.load %arg2[%c0_3, %c0_4] : memref<32x128xbf16, #tpu.memory_space<vmem>>, vector<32x128xbf16>
    %cst = arith.constant dense<0.000000e+00> : vector<9216x128xf32>
    %3 = tpu.matmul %1, %2, %cst {dimension_numbers = #tpu.dot_dimension_numbers<[1], [0], [0], [1], [0, 0, 1, 1], [], []>} : vector<9216x32xbf16>, vector<32x128xbf16>, vector<9216x128xf32> -> vector<9216x128xf32>
    %4 = vector.shape_cast %3 : vector<9216x128xf32> to vector<4x16x144x128xf32>
    %5 = vector.extract_strided_slice %4 {offsets = [0, 0, 0, 0], sizes = [1, 16, 144, 128], strides = [1, 1, 1, 1]} : vector<4x16x144x128xf32> to vector<1x16x144x128xf32>
    %6 = vector.shape_cast %5 : vector<1x16x144x128xf32> to vector<16x144x128xf32>
    %7 = vector.extract_strided_slice %4 {offsets = [1, 0, 0, 0], sizes = [1, 16, 144, 128], strides = [1, 1, 1, 1]} : vector<4x16x144x128xf32> to vector<1x16x144x128xf32>
    %8 = vector.shape_cast %7 : vector<1x16x144x128xf32> to vector<16x144x128xf32>
    %9 = arith.maximumf %6, %8 : vector<16x144x128xf32>
    %10 = vector.extract_strided_slice %4 {offsets = [2, 0, 0, 0], sizes = [1, 16, 144, 128], strides = [1, 1, 1, 1]} : vector<4x16x144x128xf32> to vector<1x16x144x128xf32>
    %11 = vector.shape_cast %10 : vector<1x16x144x128xf32> to vector<16x144x128xf32>
    %12 = vector.extract_strided_slice %4 {offsets = [3, 0, 0, 0], sizes = [1, 16, 144, 128], strides = [1, 1, 1, 1]} : vector<4x16x144x128xf32> to vector<1x16x144x128xf32>
    %13 = vector.shape_cast %12 : vector<1x16x144x128xf32> to vector<16x144x128xf32>
    %14 = arith.maximumf %11, %13 : vector<16x144x128xf32>
    %15 = arith.maximumf %9, %14 : vector<16x144x128xf32>
    %c0_5 = arith.constant 0 : index
    %c0_6 = arith.constant 0 : index
    %16 = vector.load %arg3[%c0_5, %c0_6] : memref<1x128xf32, #tpu.memory_space<vmem>>, vector<1x128xf32>
    %17 = vector.shape_cast %16 : vector<1x128xf32> to vector<1x1x128xf32>
    %18 = vector.broadcast %17 : vector<1x1x128xf32> to vector<16x144x128xf32>
    %19 = arith.addf %15, %18 : vector<16x144x128xf32>
    %cst_7 = arith.constant 0.000000e+00 : f32
    %20 = vector.broadcast %cst_7 : f32 to vector<16x144x128xf32>
    %21 = arith.maximumf %19, %20 : vector<16x144x128xf32>
    %22 = vector.extract_strided_slice %21 {offsets = [0, 0, 0], sizes = [16, 144, 16], strides = [1, 1, 1]} : vector<16x144x128xf32> to vector<16x144x16xf32>
    %23 = arith.truncf %22 : vector<16x144x16xf32> to vector<16x144x16xbf16>
    %c0_8 = arith.constant 0 : index
    %c0_9 = arith.constant 0 : index
    %c0_10 = arith.constant 0 : index
    %24 = vector.load %arg4[%c0_8, %c0_9, %c0_10] : memref<16x144x16xbf16, #tpu.memory_space<vmem>>, vector<16x144x16xbf16>
    tpu.vector_store %arg4[%c0_8, %c0_9, %c0_10], %23 {strides = array<i32>} : memref<16x144x16xbf16, #tpu.memory_space<vmem>>, vector<16x144x16xbf16>,
    return
  }
  func.func @transform_0(%arg0: i32) -> (i32, i32, i32, i32) {
    %c0_i32 = arith.constant 0 : i32
    %c0_i32_0 = arith.constant 0 : i32
    %c0_i32_1 = arith.constant 0 : i32
    %c0_i32_2 = arith.constant 0 : i32
    return %c0_i32, %arg0, %c0_i32_0, %c0_i32_1 : i32, i32, i32, i32
  }
  func.func @transform_1(%arg0: i32) -> (i32, i32) {
    %c0_i32 = arith.constant 0 : i32
    %c0_i32_0 = arith.constant 0 : i32
    %c0_i32_1 = arith.constant 0 : i32
    return %c0_i32, %c0_i32_0 : i32, i32
  }
  func.func @transform_2(%arg0: i32) -> (i32, i32) {
    %c0_i32 = arith.constant 0 : i32
    %c0_i32_0 = arith.constant 0 : i32
    %c0_i32_1 = arith.constant 0 : i32
    return %c0_i32, %c0_i32_0 : i32, i32
  }
  func.func @transform_3(%arg0: i32) -> (i32, i32, i32) {
    %c0_i32 = arith.constant 0 : i32
    %c0_i32_0 = arith.constant 0 : i32
    %c0_i32_1 = arith.constant 0 : i32
    return %arg0, %c0_i32, %c0_i32_0 : i32, i32, i32
  }
}

module attributes {stable_mosaic.version = 11 : i64} {
  func.func @_conv2_fc_head_kernel(%arg0: i32, %arg1: memref<4x16x16x256xbf16, #tpu.memory_space<vmem>>, %arg2: memref<256x128xbf16, #tpu.memory_space<vmem>>, %arg3: memref<1x128xf32, #tpu.memory_space<vmem>>, %arg4: memref<16x128x128xbf16, #tpu.memory_space<vmem>>, %arg5: memref<1x128xf32, #tpu.memory_space<vmem>>, %arg6: memref<128x128xbf16, #tpu.memory_space<vmem>>, %arg7: memref<1x128xf32, #tpu.memory_space<vmem>>, %arg8: memref<16x128xf32, #tpu.memory_space<vmem>>) attributes {dimension_semantics = [#tpu.dimension_semantics<parallel>], iteration_bounds = array<i64: 1>, scalar_prefetch = 0 : i64, scratch_operands = 0 : i64, tpu.core_type = #tpu.core_type<tc>, window_params = [{transform_indices = @transform_0, window_bounds = array<i64: 4, 16, 16, 256>}, {pipeline_mode = #tpu.pipeline_mode<synchronous>, transform_indices = @transform_1, window_bounds = array<i64: 256, 128>}, {pipeline_mode = #tpu.pipeline_mode<synchronous>, transform_indices = @transform_2, window_bounds = array<i64: 1, 128>}, {pipeline_mode = #tpu.pipeline_mode<synchronous>, transform_indices = @transform_3, window_bounds = array<i64: 16, 128, 128>}, {pipeline_mode = #tpu.pipeline_mode<synchronous>, transform_indices = @transform_4, window_bounds = array<i64: 1, 128>}, {pipeline_mode = #tpu.pipeline_mode<synchronous>, transform_indices = @transform_5, window_bounds = array<i64: 128, 128>}, {pipeline_mode = #tpu.pipeline_mode<synchronous>, transform_indices = @transform_6, window_bounds = array<i64: 1, 128>}, {transform_indices = @transform_7, window_bounds = array<i64: 16, 128>}]} {
    %c0 = arith.constant 0 : index
    %c0_0 = arith.constant 0 : index
    %c0_1 = arith.constant 0 : index
    %c0_2 = arith.constant 0 : index
    %0 = vector.load %arg1[%c0, %c0_0, %c0_1, %c0_2] : memref<4x16x16x256xbf16, #tpu.memory_space<vmem>>, vector<4x16x16x256xbf16>
    %1 = vector.shape_cast %0 : vector<4x16x16x256xbf16> to vector<1024x256xbf16>
    %c0_3 = arith.constant 0 : index
    %c0_4 = arith.constant 0 : index
    %2 = vector.load %arg2[%c0_3, %c0_4] : memref<256x128xbf16, #tpu.memory_space<vmem>>, vector<256x128xbf16>
    %cst = arith.constant dense<0.000000e+00> : vector<1024x128xf32>
    %3 = tpu.matmul %1, %2, %cst {dimension_numbers = #tpu.dot_dimension_numbers<[1], [0], [0], [1], [0, 0, 1, 1], [], []>} : vector<1024x256xbf16>, vector<256x128xbf16>, vector<1024x128xf32> -> vector<1024x128xf32>
    %4 = vector.shape_cast %3 : vector<1024x128xf32> to vector<4x16x16x128xf32>
    %5 = vector.extract_strided_slice %4 {offsets = [0, 0, 0, 0], sizes = [1, 16, 16, 128], strides = [1, 1, 1, 1]} : vector<4x16x16x128xf32> to vector<1x16x16x128xf32>
    %6 = vector.shape_cast %5 : vector<1x16x16x128xf32> to vector<16x16x128xf32>
    %7 = vector.extract_strided_slice %4 {offsets = [1, 0, 0, 0], sizes = [1, 16, 16, 128], strides = [1, 1, 1, 1]} : vector<4x16x16x128xf32> to vector<1x16x16x128xf32>
    %8 = vector.shape_cast %7 : vector<1x16x16x128xf32> to vector<16x16x128xf32>
    %9 = arith.maximumf %6, %8 : vector<16x16x128xf32>
    %10 = vector.extract_strided_slice %4 {offsets = [2, 0, 0, 0], sizes = [1, 16, 16, 128], strides = [1, 1, 1, 1]} : vector<4x16x16x128xf32> to vector<1x16x16x128xf32>
    %11 = vector.shape_cast %10 : vector<1x16x16x128xf32> to vector<16x16x128xf32>
    %12 = vector.extract_strided_slice %4 {offsets = [3, 0, 0, 0], sizes = [1, 16, 16, 128], strides = [1, 1, 1, 1]} : vector<4x16x16x128xf32> to vector<1x16x16x128xf32>
    %13 = vector.shape_cast %12 : vector<1x16x16x128xf32> to vector<16x16x128xf32>
    %14 = arith.maximumf %11, %13 : vector<16x16x128xf32>
    %15 = arith.maximumf %9, %14 : vector<16x16x128xf32>
    %c0_5 = arith.constant 0 : index
    %c0_6 = arith.constant 0 : index
    %16 = vector.load %arg3[%c0_5, %c0_6] : memref<1x128xf32, #tpu.memory_space<vmem>>, vector<1x128xf32>
    %17 = vector.shape_cast %16 : vector<1x128xf32> to vector<1x1x128xf32>
    %18 = vector.broadcast %17 : vector<1x1x128xf32> to vector<16x16x128xf32>
    %19 = arith.addf %15, %18 : vector<16x16x128xf32>
    %cst_7 = arith.constant 0.000000e+00 : f32
    %20 = vector.broadcast %cst_7 : f32 to vector<16x16x128xf32>
    %21 = arith.maximumf %19, %20 : vector<16x16x128xf32>
    %22 = arith.truncf %21 : vector<16x16x128xf32> to vector<16x16x128xbf16>
    %cst_8 = arith.constant 0.000000e+00 : f32
    %23 = vector.broadcast %cst_8 : f32 to vector<16x128xf32>
    %24 = vector.extract_strided_slice %22 {offsets = [0, 0, 0], sizes = [1, 16, 128], strides = [1, 1, 1]} : vector<16x16x128xbf16> to vector<1x16x128xbf16>
    %25 = vector.shape_cast %24 : vector<1x16x128xbf16> to vector<16x128xbf16>
    %c0_9 = arith.constant 0 : index
    %c0_10 = arith.constant 0 : index
    %c0_11 = arith.constant 0 : index
    %26 = vector.load %arg4[%c0_9, %c0_10, %c0_11] : memref<16x128x128xbf16, #tpu.memory_space<vmem>>, vector<1x128x128xbf16>
    %27 = vector.shape_cast %26 : vector<1x128x128xbf16> to vector<128x128xbf16>
    %cst_12 = arith.constant dense<0.000000e+00> : vector<16x128xf32>
    %28 = tpu.matmul %25, %27, %cst_12 {dimension_numbers = #tpu.dot_dimension_numbers<[1], [0], [0], [1], [0, 0, 1, 1], [], []>} : vector<16x128xbf16>, vector<128x128xbf16>, vector<16x128xf32> -> vector<16x128xf32>
    %29 = arith.addf %23, %28 : vector<16x128xf32>
    %30 = vector.extract_strided_slice %22 {offsets = [1, 0, 0], sizes = [1, 16, 128], strides = [1, 1, 1]} : vector<16x16x128xbf16> to vector<1x16x128xbf16>
    %31 = vector.shape_cast %30 : vector<1x16x128xbf16> to vector<16x128xbf16>
    %c1 = arith.constant 1 : index
    %c0_13 = arith.constant 0 : index
    %c0_14 = arith.constant 0 : index
    %32 = vector.load %arg4[%c1, %c0_13, %c0_14] : memref<16x128x128xbf16, #tpu.memory_space<vmem>>, vector<1x128x128xbf16>
    %33 = vector.shape_cast %32 : vector<1x128x128xbf16> to vector<128x128xbf16>
    %cst_15 = arith.constant dense<0.000000e+00> : vector<16x128xf32>
    %34 = tpu.matmul %31, %33, %cst_15 {dimension_numbers = #tpu.dot_dimension_numbers<[1], [0], [0], [1], [0, 0, 1, 1], [], []>} : vector<16x128xbf16>, vector<128x128xbf16>, vector<16x128xf32> -> vector<16x128xf32>
    %35 = arith.addf %29, %34 : vector<16x128xf32>
    %36 = vector.extract_strided_slice %22 {offsets = [2, 0, 0], sizes = [1, 16, 128], strides = [1, 1, 1]} : vector<16x16x128xbf16> to vector<1x16x128xbf16>
    %37 = vector.shape_cast %36 : vector<1x16x128xbf16> to vector<16x128xbf16>
    %c2 = arith.constant 2 : index
    %c0_16 = arith.constant 0 : index
    %c0_17 = arith.constant 0 : index
    %38 = vector.load %arg4[%c2, %c0_16, %c0_17] : memref<16x128x128xbf16, #tpu.memory_space<vmem>>, vector<1x128x128xbf16>
    %39 = vector.shape_cast %38 : vector<1x128x128xbf16> to vector<128x128xbf16>
    %cst_18 = arith.constant dense<0.000000e+00> : vector<16x128xf32>
    %40 = tpu.matmul %37, %39, %cst_18 {dimension_numbers = #tpu.dot_dimension_numbers<[1], [0], [0], [1], [0, 0, 1, 1], [], []>} : vector<16x128xbf16>, vector<128x128xbf16>, vector<16x128xf32> -> vector<16x128xf32>
    %41 = arith.addf %35, %40 : vector<16x128xf32>
    %42 = vector.extract_strided_slice %22 {offsets = [3, 0, 0], sizes = [1, 16, 128], strides = [1, 1, 1]} : vector<16x16x128xbf16> to vector<1x16x128xbf16>
    %43 = vector.shape_cast %42 : vector<1x16x128xbf16> to vector<16x128xbf16>
    %c3 = arith.constant 3 : index
    %c0_19 = arith.constant 0 : index
    %c0_20 = arith.constant 0 : index
    %44 = vector.load %arg4[%c3, %c0_19, %c0_20] : memref<16x128x128xbf16, #tpu.memory_space<vmem>>, vector<1x128x128xbf16>
    %45 = vector.shape_cast %44 : vector<1x128x128xbf16> to vector<128x128xbf16>
    %cst_21 = arith.constant dense<0.000000e+00> : vector<16x128xf32>
    %46 = tpu.matmul %43, %45, %cst_21 {dimension_numbers = #tpu.dot_dimension_numbers<[1], [0], [0], [1], [0, 0, 1, 1], [], []>} : vector<16x128xbf16>, vector<128x128xbf16>, vector<16x128xf32> -> vector<16x128xf32>
    %47 = arith.addf %41, %46 : vector<16x128xf32>
    %48 = vector.extract_strided_slice %22 {offsets = [4, 0, 0], sizes = [1, 16, 128], strides = [1, 1, 1]} : vector<16x16x128xbf16> to vector<1x16x128xbf16>
    %49 = vector.shape_cast %48 : vector<1x16x128xbf16> to vector<16x128xbf16>
    %c4 = arith.constant 4 : index
    %c0_22 = arith.constant 0 : index
    %c0_23 = arith.constant 0 : index
    %50 = vector.load %arg4[%c4, %c0_22, %c0_23] : memref<16x128x128xbf16, #tpu.memory_space<vmem>>, vector<1x128x128xbf16>
    %51 = vector.shape_cast %50 : vector<1x128x128xbf16> to vector<128x128xbf16>
    %cst_24 = arith.constant dense<0.000000e+00> : vector<16x128xf32>
    %52 = tpu.matmul %49, %51, %cst_24 {dimension_numbers = #tpu.dot_dimension_numbers<[1], [0], [0], [1], [0, 0, 1, 1], [], []>} : vector<16x128xbf16>, vector<128x128xbf16>, vector<16x128xf32> -> vector<16x128xf32>
    %53 = arith.addf %47, %52 : vector<16x128xf32>
    %54 = vector.extract_strided_slice %22 {offsets = [5, 0, 0], sizes = [1, 16, 128], strides = [1, 1, 1]} : vector<16x16x128xbf16> to vector<1x16x128xbf16>
    %55 = vector.shape_cast %54 : vector<1x16x128xbf16> to vector<16x128xbf16>
    %c5 = arith.constant 5 : index
    %c0_25 = arith.constant 0 : index
    %c0_26 = arith.constant 0 : index
    %56 = vector.load %arg4[%c5, %c0_25, %c0_26] : memref<16x128x128xbf16, #tpu.memory_space<vmem>>, vector<1x128x128xbf16>
    %57 = vector.shape_cast %56 : vector<1x128x128xbf16> to vector<128x128xbf16>
    %cst_27 = arith.constant dense<0.000000e+00> : vector<16x128xf32>
    %58 = tpu.matmul %55, %57, %cst_27 {dimension_numbers = #tpu.dot_dimension_numbers<[1], [0], [0], [1], [0, 0, 1, 1], [], []>} : vector<16x128xbf16>, vector<128x128xbf16>, vector<16x128xf32> -> vector<16x128xf32>
    %59 = arith.addf %53, %58 : vector<16x128xf32>
    %60 = vector.extract_strided_slice %22 {offsets = [6, 0, 0], sizes = [1, 16, 128], strides = [1, 1, 1]} : vector<16x16x128xbf16> to vector<1x16x128xbf16>
    %61 = vector.shape_cast %60 : vector<1x16x128xbf16> to vector<16x128xbf16>
    %c6 = arith.constant 6 : index
    %c0_28 = arith.constant 0 : index
    %c0_29 = arith.constant 0 : index
    %62 = vector.load %arg4[%c6, %c0_28, %c0_29] : memref<16x128x128xbf16, #tpu.memory_space<vmem>>, vector<1x128x128xbf16>
    %63 = vector.shape_cast %62 : vector<1x128x128xbf16> to vector<128x128xbf16>
    %cst_30 = arith.constant dense<0.000000e+00> : vector<16x128xf32>
    %64 = tpu.matmul %61, %63, %cst_30 {dimension_numbers = #tpu.dot_dimension_numbers<[1], [0], [0], [1], [0, 0, 1, 1], [], []>} : vector<16x128xbf16>, vector<128x128xbf16>, vector<16x128xf32> -> vector<16x128xf32>
    %65 = arith.addf %59, %64 : vector<16x128xf32>
    %66 = vector.extract_strided_slice %22 {offsets = [7, 0, 0], sizes = [1, 16, 128], strides = [1, 1, 1]} : vector<16x16x128xbf16> to vector<1x16x128xbf16>
    %67 = vector.shape_cast %66 : vector<1x16x128xbf16> to vector<16x128xbf16>
    %c7 = arith.constant 7 : index
    %c0_31 = arith.constant 0 : index
    %c0_32 = arith.constant 0 : index
    %68 = vector.load %arg4[%c7, %c0_31, %c0_32] : memref<16x128x128xbf16, #tpu.memory_space<vmem>>, vector<1x128x128xbf16>
    %69 = vector.shape_cast %68 : vector<1x128x128xbf16> to vector<128x128xbf16>
    %cst_33 = arith.constant dense<0.000000e+00> : vector<16x128xf32>
    %70 = tpu.matmul %67, %69, %cst_33 {dimension_numbers = #tpu.dot_dimension_numbers<[1], [0], [0], [1], [0, 0, 1, 1], [], []>} : vector<16x128xbf16>, vector<128x128xbf16>, vector<16x128xf32> -> vector<16x128xf32>
    %71 = arith.addf %65, %70 : vector<16x128xf32>
    %72 = vector.extract_strided_slice %22 {offsets = [8, 0, 0], sizes = [1, 16, 128], strides = [1, 1, 1]} : vector<16x16x128xbf16> to vector<1x16x128xbf16>
    %73 = vector.shape_cast %72 : vector<1x16x128xbf16> to vector<16x128xbf16>
    %c8 = arith.constant 8 : index
    %c0_34 = arith.constant 0 : index
    %c0_35 = arith.constant 0 : index
    %74 = vector.load %arg4[%c8, %c0_34, %c0_35] : memref<16x128x128xbf16, #tpu.memory_space<vmem>>, vector<1x128x128xbf16>
    %75 = vector.shape_cast %74 : vector<1x128x128xbf16> to vector<128x128xbf16>
    %cst_36 = arith.constant dense<0.000000e+00> : vector<16x128xf32>
    %76 = tpu.matmul %73, %75, %cst_36 {dimension_numbers = #tpu.dot_dimension_numbers<[1], [0], [0], [1], [0, 0, 1, 1], [], []>} : vector<16x128xbf16>, vector<128x128xbf16>, vector<16x128xf32> -> vector<16x128xf32>
    %77 = arith.addf %71, %76 : vector<16x128xf32>
    %78 = vector.extract_strided_slice %22 {offsets = [9, 0, 0], sizes = [1, 16, 128], strides = [1, 1, 1]} : vector<16x16x128xbf16> to vector<1x16x128xbf16>
    %79 = vector.shape_cast %78 : vector<1x16x128xbf16> to vector<16x128xbf16>
    %c9 = arith.constant 9 : index
    %c0_37 = arith.constant 0 : index
    %c0_38 = arith.constant 0 : index
    %80 = vector.load %arg4[%c9, %c0_37, %c0_38] : memref<16x128x128xbf16, #tpu.memory_space<vmem>>, vector<1x128x128xbf16>
    %81 = vector.shape_cast %80 : vector<1x128x128xbf16> to vector<128x128xbf16>
    %cst_39 = arith.constant dense<0.000000e+00> : vector<16x128xf32>
    %82 = tpu.matmul %79, %81, %cst_39 {dimension_numbers = #tpu.dot_dimension_numbers<[1], [0], [0], [1], [0, 0, 1, 1], [], []>} : vector<16x128xbf16>, vector<128x128xbf16>, vector<16x128xf32> -> vector<16x128xf32>
    %83 = arith.addf %77, %82 : vector<16x128xf32>
    %84 = vector.extract_strided_slice %22 {offsets = [10, 0, 0], sizes = [1, 16, 128], strides = [1, 1, 1]} : vector<16x16x128xbf16> to vector<1x16x128xbf16>
    %85 = vector.shape_cast %84 : vector<1x16x128xbf16> to vector<16x128xbf16>
    %c10 = arith.constant 10 : index
    %c0_40 = arith.constant 0 : index
    %c0_41 = arith.constant 0 : index
    %86 = vector.load %arg4[%c10, %c0_40, %c0_41] : memref<16x128x128xbf16, #tpu.memory_space<vmem>>, vector<1x128x128xbf16>
    %87 = vector.shape_cast %86 : vector<1x128x128xbf16> to vector<128x128xbf16>
    %cst_42 = arith.constant dense<0.000000e+00> : vector<16x128xf32>
    %88 = tpu.matmul %85, %87, %cst_42 {dimension_numbers = #tpu.dot_dimension_numbers<[1], [0], [0], [1], [0, 0, 1, 1], [], []>} : vector<16x128xbf16>, vector<128x128xbf16>, vector<16x128xf32> -> vector<16x128xf32>
    %89 = arith.addf %83, %88 : vector<16x128xf32>
    %90 = vector.extract_strided_slice %22 {offsets = [11, 0, 0], sizes = [1, 16, 128], strides = [1, 1, 1]} : vector<16x16x128xbf16> to vector<1x16x128xbf16>
    %91 = vector.shape_cast %90 : vector<1x16x128xbf16> to vector<16x128xbf16>
    %c11 = arith.constant 11 : index
    %c0_43 = arith.constant 0 : index
    %c0_44 = arith.constant 0 : index
    %92 = vector.load %arg4[%c11, %c0_43, %c0_44] : memref<16x128x128xbf16, #tpu.memory_space<vmem>>, vector<1x128x128xbf16>
    %93 = vector.shape_cast %92 : vector<1x128x128xbf16> to vector<128x128xbf16>
    %cst_45 = arith.constant dense<0.000000e+00> : vector<16x128xf32>
    %94 = tpu.matmul %91, %93, %cst_45 {dimension_numbers = #tpu.dot_dimension_numbers<[1], [0], [0], [1], [0, 0, 1, 1], [], []>} : vector<16x128xbf16>, vector<128x128xbf16>, vector<16x128xf32> -> vector<16x128xf32>
    %95 = arith.addf %89, %94 : vector<16x128xf32>
    %96 = vector.extract_strided_slice %22 {offsets = [12, 0, 0], sizes = [1, 16, 128], strides = [1, 1, 1]} : vector<16x16x128xbf16> to vector<1x16x128xbf16>
    %97 = vector.shape_cast %96 : vector<1x16x128xbf16> to vector<16x128xbf16>
    %c12 = arith.constant 12 : index
    %c0_46 = arith.constant 0 : index
    %c0_47 = arith.constant 0 : index
    %98 = vector.load %arg4[%c12, %c0_46, %c0_47] : memref<16x128x128xbf16, #tpu.memory_space<vmem>>, vector<1x128x128xbf16>
    %99 = vector.shape_cast %98 : vector<1x128x128xbf16> to vector<128x128xbf16>
    %cst_48 = arith.constant dense<0.000000e+00> : vector<16x128xf32>
    %100 = tpu.matmul %97, %99, %cst_48 {dimension_numbers = #tpu.dot_dimension_numbers<[1], [0], [0], [1], [0, 0, 1, 1], [], []>} : vector<16x128xbf16>, vector<128x128xbf16>, vector<16x128xf32> -> vector<16x128xf32>
    %101 = arith.addf %95, %100 : vector<16x128xf32>
    %102 = vector.extract_strided_slice %22 {offsets = [13, 0, 0], sizes = [1, 16, 128], strides = [1, 1, 1]} : vector<16x16x128xbf16> to vector<1x16x128xbf16>
    %103 = vector.shape_cast %102 : vector<1x16x128xbf16> to vector<16x128xbf16>
    %c13 = arith.constant 13 : index
    %c0_49 = arith.constant 0 : index
    %c0_50 = arith.constant 0 : index
    %104 = vector.load %arg4[%c13, %c0_49, %c0_50] : memref<16x128x128xbf16, #tpu.memory_space<vmem>>, vector<1x128x128xbf16>
    %105 = vector.shape_cast %104 : vector<1x128x128xbf16> to vector<128x128xbf16>
    %cst_51 = arith.constant dense<0.000000e+00> : vector<16x128xf32>
    %106 = tpu.matmul %103, %105, %cst_51 {dimension_numbers = #tpu.dot_dimension_numbers<[1], [0], [0], [1], [0, 0, 1, 1], [], []>} : vector<16x128xbf16>, vector<128x128xbf16>, vector<16x128xf32> -> vector<16x128xf32>
    %107 = arith.addf %101, %106 : vector<16x128xf32>
    %108 = vector.extract_strided_slice %22 {offsets = [14, 0, 0], sizes = [1, 16, 128], strides = [1, 1, 1]} : vector<16x16x128xbf16> to vector<1x16x128xbf16>
    %109 = vector.shape_cast %108 : vector<1x16x128xbf16> to vector<16x128xbf16>
    %c14 = arith.constant 14 : index
    %c0_52 = arith.constant 0 : index
    %c0_53 = arith.constant 0 : index
    %110 = vector.load %arg4[%c14, %c0_52, %c0_53] : memref<16x128x128xbf16, #tpu.memory_space<vmem>>, vector<1x128x128xbf16>
    %111 = vector.shape_cast %110 : vector<1x128x128xbf16> to vector<128x128xbf16>
    %cst_54 = arith.constant dense<0.000000e+00> : vector<16x128xf32>
    %112 = tpu.matmul %109, %111, %cst_54 {dimension_numbers = #tpu.dot_dimension_numbers<[1], [0], [0], [1], [0, 0, 1, 1], [], []>} : vector<16x128xbf16>, vector<128x128xbf16>, vector<16x128xf32> -> vector<16x128xf32>
    %113 = arith.addf %107, %112 : vector<16x128xf32>
    %114 = vector.extract_strided_slice %22 {offsets = [15, 0, 0], sizes = [1, 16, 128], strides = [1, 1, 1]} : vector<16x16x128xbf16> to vector<1x16x128xbf16>
    %115 = vector.shape_cast %114 : vector<1x16x128xbf16> to vector<16x128xbf16>
    %c15 = arith.constant 15 : index
    %c0_55 = arith.constant 0 : index
    %c0_56 = arith.constant 0 : index
    %116 = vector.load %arg4[%c15, %c0_55, %c0_56] : memref<16x128x128xbf16, #tpu.memory_space<vmem>>, vector<1x128x128xbf16>
    %117 = vector.shape_cast %116 : vector<1x128x128xbf16> to vector<128x128xbf16>
    %cst_57 = arith.constant dense<0.000000e+00> : vector<16x128xf32>
    %118 = tpu.matmul %115, %117, %cst_57 {dimension_numbers = #tpu.dot_dimension_numbers<[1], [0], [0], [1], [0, 0, 1, 1], [], []>} : vector<16x128xbf16>, vector<128x128xbf16>, vector<16x128xf32> -> vector<16x128xf32>
    %119 = arith.addf %113, %118 : vector<16x128xf32>
    %c0_58 = arith.constant 0 : index
    %c0_59 = arith.constant 0 : index
    %120 = vector.load %arg5[%c0_58, %c0_59] : memref<1x128xf32, #tpu.memory_space<vmem>>, vector<1x128xf32>
    %121 = vector.broadcast %120 : vector<1x128xf32> to vector<16x128xf32>
    %122 = arith.addf %119, %121 : vector<16x128xf32>
    %cst_60 = arith.constant 0.000000e+00 : f32
    %123 = vector.broadcast %cst_60 : f32 to vector<16x128xf32>
    %124 = arith.maximumf %122, %123 : vector<16x128xf32>
    %125 = arith.truncf %124 : vector<16x128xf32> to vector<16x128xbf16>
    %c0_61 = arith.constant 0 : index
    %c0_62 = arith.constant 0 : index
    %126 = vector.load %arg6[%c0_61, %c0_62] : memref<128x128xbf16, #tpu.memory_space<vmem>>, vector<128x128xbf16>
    %cst_63 = arith.constant dense<0.000000e+00> : vector<16x128xf32>
    %127 = tpu.matmul %125, %126, %cst_63 {dimension_numbers = #tpu.dot_dimension_numbers<[1], [0], [0], [1], [0, 0, 1, 1], [], []>} : vector<16x128xbf16>, vector<128x128xbf16>, vector<16x128xf32> -> vector<16x128xf32>
    %c0_64 = arith.constant 0 : index
    %c0_65 = arith.constant 0 : index
    %128 = vector.load %arg7[%c0_64, %c0_65] : memref<1x128xf32, #tpu.memory_space<vmem>>, vector<1x128xf32>
    %129 = vector.broadcast %128 : vector<1x128xf32> to vector<16x128xf32>
    %130 = arith.addf %127, %129 : vector<16x128xf32>
    %cst_66 = arith.constant dense<0xFF800000> : vector<16xf32>
    %131 = vector.multi_reduction <maximumf>, %130, %cst_66 [1] : vector<16x128xf32> to vector<16xf32>
    %132 = vector.shape_cast %131 : vector<16xf32> to vector<16x1xf32>
    %133 = vector.broadcast %132 : vector<16x1xf32> to vector<16x128xf32>
    %134 = arith.subf %130, %133 : vector<16x128xf32>
    %135 = math.exp %134 : vector<16x128xf32>
    %cst_67 = arith.constant dense<0.000000e+00> : vector<16xf32>
    %136 = vector.multi_reduction <add>, %135, %cst_67 [1] : vector<16x128xf32> to vector<16xf32>
    %137 = vector.shape_cast %136 : vector<16xf32> to vector<16x1xf32>
    %138 = math.log %137 : vector<16x1xf32>
    %139 = vector.broadcast %138 : vector<16x1xf32> to vector<16x128xf32>
    %140 = arith.subf %134, %139 : vector<16x128xf32>
    %c0_68 = arith.constant 0 : index
    %c0_69 = arith.constant 0 : index
    %141 = vector.load %arg8[%c0_68, %c0_69] : memref<16x128xf32, #tpu.memory_space<vmem>>, vector<16x128xf32>
    tpu.vector_store %arg8[%c0_68, %c0_69], %140 {strides = array<i32>} : memref<16x128xf32, #tpu.memory_space<vmem>>, vector<16x128xf32>,
    return
  }
  func.func @transform_0(%arg0: i32) -> (i32, i32, i32, i32) {
    %c0_i32 = arith.constant 0 : i32
    %c0_i32_0 = arith.constant 0 : i32
    %c0_i32_1 = arith.constant 0 : i32
    %c0_i32_2 = arith.constant 0 : i32
    return %c0_i32, %c0_i32_0, %arg0, %c0_i32_1 : i32, i32, i32, i32
  }
  func.func @transform_1(%arg0: i32) -> (i32, i32) {
    %c0_i32 = arith.constant 0 : i32
    %c0_i32_0 = arith.constant 0 : i32
    %c0_i32_1 = arith.constant 0 : i32
    return %c0_i32, %c0_i32_0 : i32, i32
  }
  func.func @transform_2(%arg0: i32) -> (i32, i32) {
    %c0_i32 = arith.constant 0 : i32
    %c0_i32_0 = arith.constant 0 : i32
    %c0_i32_1 = arith.constant 0 : i32
    return %c0_i32, %c0_i32_0 : i32, i32
  }
  func.func @transform_3(%arg0: i32) -> (i32, i32, i32) {
    %c0_i32 = arith.constant 0 : i32
    %c0_i32_0 = arith.constant 0 : i32
    %c0_i32_1 = arith.constant 0 : i32
    %c0_i32_2 = arith.constant 0 : i32
    return %c0_i32, %c0_i32_0, %c0_i32_1 : i32, i32, i32
  }
  func.func @transform_4(%arg0: i32) -> (i32, i32) {
    %c0_i32 = arith.constant 0 : i32
    %c0_i32_0 = arith.constant 0 : i32
    %c0_i32_1 = arith.constant 0 : i32
    return %c0_i32, %c0_i32_0 : i32, i32
  }
  func.func @transform_5(%arg0: i32) -> (i32, i32) {
    %c0_i32 = arith.constant 0 : i32
    %c0_i32_0 = arith.constant 0 : i32
    %c0_i32_1 = arith.constant 0 : i32
    return %c0_i32, %c0_i32_0 : i32, i32
  }
  func.func @transform_6(%arg0: i32) -> (i32, i32) {
    %c0_i32 = arith.constant 0 : i32
    %c0_i32_0 = arith.constant 0 : i32
    %c0_i32_1 = arith.constant 0 : i32
    return %c0_i32, %c0_i32_0 : i32, i32
  }
  func.func @transform_7(%arg0: i32) -> (i32, i32) {
    %c0_i32 = arith.constant 0 : i32
    %c0_i32_0 = arith.constant 0 : i32
    return %arg0, %c0_i32 : i32, i32
  }
}

</mosaic_0001>

<bundles_post_ra>
// kernel: net_forward.2
= control target key start
LH: loop header
LB: loop body
LE: loop exit
PB: predicated region body
PF: predicated region fallthrough
CT: control target
= control target key end

     0   :  { %vm4063_vm0 = vcmask 261120   ;;  %vm13032_vm1 = vcmask 125952   ;;  %s22905_s1 = inlined_call_operand.vmem [shape: bf16[32,128], index: 1, kind: input, shape index: {}]   ;;  %s22906_s0 = inlined_call_operand.vmem [shape: bf16[4,16,144,32], index: 0, kind: input, shape index: {}]   ;;  %s22907_s2 = inlined_call_operand.vmem [shape: f32[1,128], index: 2, kind: input, shape index: {}]   ;;  %s22908_s3 = inlined_call_operand.vmem [shape: bf16[16,144,16], index: 3, kind: output, shape index: {}]  }
   0x1   :  { %v16794_v0 = vld [vmem:[%s22905_s1 + $0x8] sm:$0xff]   ;;  %v16795_v1 = vld [vmem:[%s22905_s1] sm:$0xff]   ;;  %v16800_v6 = vld [vmem:[%s22906_s0 + $0x10] sm:$0xff]  }
   0x2   :  { %15634 = vmatprep.subr.bf16.mxu0 %v16794_v0  ;;  %16790 = vmatprep.subr.bf16.mxu1 %v16794_v0  ;;  %v16796_v2 = vld [vmem:[%s22906_s0] sm:$0xff]   ;;  %v16798_v4 = vld [vmem:[%s22906_s0 + $0x8] sm:$0xff]   ;;  %v16801_v7 = vld [vmem:[%s22906_s0 + $0x910] sm:$0xff]  }
   0x3   :  { %15635 = vmatpush3.bf16.msra.mxu0 %v16794_v0  ;;  %16792 = vmatpush3.bf16.msra.mxu1 %v16794_v0  ;;  %v16797_v3 = vld [vmem:[%s22906_s0 + $0x900] sm:$0xff]   ;;  %v16799_v5 = vld [vmem:[%s22906_s0 + $0x908] sm:$0xff]   ;;  %v16802_v8 = vld [vmem:[%s22906_s0 + $0x18] sm:$0xff]  }
   0x4   :  { %15636 = vmatprep.subr.bf16.mxu0 %v16795_v1  ;;  %16791 = vmatprep.subr.bf16.mxu1 %v16795_v1  ;;  %v16803_v9 = vld [vmem:[%s22906_s0 + $0x918] sm:$0xff]   ;;  %v16804_v10 = vld [vmem:[%s22906_s0 + $0x20] sm:$0xff]   ;;  %v16806_v12 = vld [vmem:[%s22906_s0 + $0x28] sm:$0xff]  }
   0x5   :  { %15638 = vmatprep.mubr.msk.bf16.mxu0 %vm4063_vm0, %v16796_v2  ;;  %16214 = vmatprep.mubr.msk.bf16.mxu1 %vm4063_vm0, %v16797_v3  ;;  %v16805_v11 = vld [vmem:[%s22906_s0 + $0x920] sm:$0xff]   ;;  %v16807_v13 = vld [vmem:[%s22906_s0 + $0x928] sm:$0xff]   ;;  %v16808_v14 = vld [vmem:[%s22906_s0 + $0x30] sm:$0xff]  }
   0x6   :  { %v16809_v15 = vld [vmem:[%s22906_s0 + $0x930] sm:$0xff]   ;;  %v16810_v16 = vld [vmem:[%s22906_s0 + $0x38] sm:$0xff]   ;;  %v16812_v18 = vld [vmem:[%s22906_s0 + $0x40] sm:$0xff]  }
   0x7   :  { %15637 = vmatpush3.bf16.msra.mxu0 %v16795_v1  ;;  %16793 = vmatpush3.bf16.msra.mxu1 %v16795_v1  ;;  %v16811_v17 = vld [vmem:[%s22906_s0 + $0x938] sm:$0xff]   ;;  %v16813_v19 = vld [vmem:[%s22906_s0 + $0x940] sm:$0xff]   ;;  %v16814_v20 = vld [vmem:[%s22906_s0 + $0x48] sm:$0xff]  }
   0x8   :  { %v16815_v21 = vld [vmem:[%s22906_s0 + $0x948] sm:$0xff]   ;;  %v16816_v22 = vld [vmem:[%s22906_s0 + $0x50] sm:$0xff]   ;;  %v16818_v24 = vld [vmem:[%s22906_s0 + $0x58] sm:$0xff]  }
   0x9   :  { %v16817_v23 = vld [vmem:[%s22906_s0 + $0x950] sm:$0xff]   ;;  %v16819_v25 = vld [vmem:[%s22906_s0 + $0x958] sm:$0xff]   ;;  %v16820_v26 = vld [vmem:[%s22906_s0 + $0x60] sm:$0xff]  }
   0xa   :  { %15639 = vmatmul.mubr.msk.bf16.vlgmr.msra.gmra.mxu0 %vm4063_vm0, %v16798_v4  ;;  %16215 = vmatmul.mubr.msk.bf16.vlgmr.msra.gmra.mxu1 %vm4063_vm0, %v16799_v5  ;;  %v16821_v27 = vld [vmem:[%s22906_s0 + $0x960] sm:$0xff]   ;;  %v16822_v28 = vld [vmem:[%s22906_s0 + $0x68] sm:$0xff]   ;;  %v16824_v30 = vld [vmem:[%s22906_s0 + $0x70] sm:$0xff]  }
   0xb   :  { %15642 = vmatprep.mubr.msk.bf16.mxu0 %vm4063_vm0, %v16800_v6  ;;  %16218 = vmatprep.mubr.msk.bf16.mxu1 %vm4063_vm0, %v16801_v7  ;;  %v16823_v29 = vld [vmem:[%s22906_s0 + $0x968] sm:$0xff]   ;;  %v16825_v31 = vld [vmem:[%s22906_s0 + $0x970] sm:$0xff]   ;;  %v16826_v32 = vld [vmem:[%s22906_s0 + $0x78] sm:$0xff]  }
   0xc   :  { %v16827_v33 = vld [vmem:[%s22906_s0 + $0x978] sm:$0xff]   ;;  %v16828_v34 = vld [vmem:[%s22906_s0 + $0x80] sm:$0xff]   ;;  %v16830_v36 = vld [vmem:[%s22906_s0 + $0x88] sm:$0xff]  }
   0xd   :  { %v16829_v35 = vld [vmem:[%s22906_s0 + $0x980] sm:$0xff]   ;;  %v16831_v37 = vld [vmem:[%s22906_s0 + $0x988] sm:$0xff]   ;;  %v16832_v38 = vld [vmem:[%s22906_s0 + $0x90] sm:$0xff]  }
   0xe   :  { %v16833_v39 = vld [vmem:[%s22906_s0 + $0x990] sm:$0xff]   ;;  %v16834_v40 = vld [vmem:[%s22906_s0 + $0x98] sm:$0xff]   ;;  %v16836_v42 = vld [vmem:[%s22906_s0 + $0xa0] sm:$0xff]  }
   0xf   :  { %v16835_v41 = vld [vmem:[%s22906_s0 + $0x998] sm:$0xff]   ;;  %v16837_v43 = vld [vmem:[%s22906_s0 + $0x9a0] sm:$0xff]   ;;  %v16838_v44 = vld [vmem:[%s22906_s0 + $0xa8] sm:$0xff]  }
  0x10   :  { %v16839_v45 = vld [vmem:[%s22906_s0 + $0x9a8] sm:$0xff]   ;;  %v16840_v46 = vld [vmem:[%s22906_s0 + $0xb0] sm:$0xff]   ;;  %v16842_v48 = vld [vmem:[%s22906_s0 + $0xb8] sm:$0xff]  }
  0x11   :  { %v16841_v47 = vld [vmem:[%s22906_s0 + $0x9b0] sm:$0xff]   ;;  %v16843_v49 = vld [vmem:[%s22906_s0 + $0x9b8] sm:$0xff]   ;;  %v16844_v50 = vld [vmem:[%s22906_s0 + $0xc0] sm:$0xff]  }
  0x12   :  { %15643 = vmatmul.mubr.msk.bf16.gmra.mxu0 %vm4063_vm0, %v16802_v8  ;;  %16219 = vmatmul.mubr.msk.bf16.gmra.mxu1 %vm4063_vm0, %v16803_v9  ;;  %v16845_v51 = vld [vmem:[%s22906_s0 + $0x9c0] sm:$0xff]   ;;  %v16846_v52 = vld [vmem:[%s22906_s0 + $0xc8] sm:$0xff]   ;;  %v16848_v54 = vld [vmem:[%s22906_s0 + $0xd0] sm:$0xff]  }
  0x13   :  { %15646 = vmatprep.mubr.msk.bf16.mxu0 %vm4063_vm0, %v16804_v10  ;;  %16222 = vmatprep.mubr.msk.bf16.mxu1 %vm4063_vm0, %v16805_v11  ;;  %v16847_v53 = vld [vmem:[%s22906_s0 + $0x9c8] sm:$0xff]   ;;  %v16849_v55 = vld [vmem:[%s22906_s0 + $0x9d0] sm:$0xff]   ;;  %v16850_v56 = vld [vmem:[%s22906_s0 + $0xd8] sm:$0xff]  }
  0x14   :  { %v16851_v57 = vld [vmem:[%s22906_s0 + $0x9d8] sm:$0xff]   ;;  %v16852_v58 = vld [vmem:[%s22906_s0 + $0xe0] sm:$0xff]   ;;  %v16854_v60 = vld [vmem:[%s22906_s0 + $0xe8] sm:$0xff]  }
  0x15   :  { %v16853_v59 = vld [vmem:[%s22906_s0 + $0x9e0] sm:$0xff]   ;;  %v16855_v61 = vld [vmem:[%s22906_s0 + $0x9e8] sm:$0xff]   ;;  %v16856_v62 = vld [vmem:[%s22906_s0 + $0xf0] sm:$0xff]  }
  0x16   :  { %v16857_v63 = vld [vmem:[%s22906_s0 + $0x9f0] sm:$0xff]   ;;  %v16858_v0 = vld [vmem:[%s22906_s0 + $0xf8] sm:$0xff]   ;;  %v16860_v2 = vld [vmem:[%s22906_s0 + $0x100] sm:$0xff]  }
  0x17   :  { %v16859_v1 = vld [vmem:[%s22906_s0 + $0x9f8] sm:$0xff]   ;;  %v16861_v3 = vld [vmem:[%s22906_s0 + $0xa00] sm:$0xff]   ;;  %v16862_v4 = vld [vmem:[%s22906_s0 + $0x108] sm:$0xff]  }
  0x18   :  { %v16863_v5 = vld [vmem:[%s22906_s0 + $0xa08] sm:$0xff]   ;;  %v16864_v6 = vld [vmem:[%s22906_s0 + $0x110] sm:$0xff]   ;;  %v16866_v8 = vld [vmem:[%s22906_s0 + $0x118] sm:$0xff]  }
  0x19   :  { %v16865_v7 = vld [vmem:[%s22906_s0 + $0xa10] sm:$0xff]   ;;  %v16867_v9 = vld [vmem:[%s22906_s0 + $0xa18] sm:$0xff]   ;;  %v16868_v10 = vld [vmem:[%s22906_s0 + $0x120] sm:$0xff]  }
  0x1a   :  { %15647 = vmatmul.mubr.msk.bf16.gmra.mxu0 %vm4063_vm0, %v16806_v12  ;;  %16223 = vmatmul.mubr.msk.bf16.gmra.mxu1 %vm4063_vm0, %v16807_v13  ;;  %v16869_v11 = vld [vmem:[%s22906_s0 + $0xa20] sm:$0xff]   ;;  %v16870_v12 = vld [vmem:[%s22906_s0 + $0x128] sm:$0xff]  }
  0x1b   :  { %15650 = vmatprep.mubr.msk.bf16.mxu0 %vm4063_vm0, %v16808_v14  ;;  %16226 = vmatprep.mubr.msk.bf16.mxu1 %vm4063_vm0, %v16809_v15  ;;  %v16871_v13 = vld [vmem:[%s22906_s0 + $0xa28] sm:$0xff]   ;;  %v16872_v14 = vld [vmem:[%s22906_s0 + $0x130] sm:$0xff]  }
  0x1c   :  { %v16873_v15 = vld [vmem:[%s22906_s0 + $0xa30] sm:$0xff]  }
  0x22   :  { %15651 = vmatmul.mubr.msk.bf16.gmra.mxu0 %vm4063_vm0, %v16810_v16  ;;  %16227 = vmatmul.mubr.msk.bf16.gmra.mxu1 %vm4063_vm0, %v16811_v17  ;;  %v16874_v16 = vld [vmem:[%s22906_s0 + $0x138] sm:$0xff]  }
  0x23   :  { %15654 = vmatprep.mubr.msk.bf16.mxu0 %vm4063_vm0, %v16812_v18  ;;  %16230 = vmatprep.mubr.msk.bf16.mxu1 %vm4063_vm0, %v16813_v19  ;;  %v16875_v17 = vld [vmem:[%s22906_s0 + $0xa38] sm:$0xff]   ;;  %v16876_v18 = vld [vmem:[%s22906_s0 + $0x140] sm:$0xff]  }
  0x24   :  { %v16877_v19 = vld [vmem:[%s22906_s0 + $0xa40] sm:$0xff]  }
  0x2a   :  { %15655 = vmatmul.mubr.msk.bf16.gmra.mxu0 %vm4063_vm0, %v16814_v20  ;;  %16231 = vmatmul.mubr.msk.bf16.gmra.mxu1 %vm4063_vm0, %v16815_v21  ;;  %v16878_v20 = vld [vmem:[%s22906_s0 + $0x148] sm:$0xff]  }
  0x2b   :  { %15658 = vmatprep.mubr.msk.bf16.mxu0 %vm4063_vm0, %v16816_v22  ;;  %16234 = vmatprep.mubr.msk.bf16.mxu1 %vm4063_vm0, %v16817_v23  ;;  %v16879_v21 = vld [vmem:[%s22906_s0 + $0xa48] sm:$0xff]   ;;  %v16880_v22 = vld [vmem:[%s22906_s0 + $0x150] sm:$0xff]  }
  0x2c   :  { %v16881_v23 = vld [vmem:[%s22906_s0 + $0xa50] sm:$0xff]  }
  0x32   :  { %15659 = vmatmul.mubr.msk.bf16.gmra.mxu0 %vm4063_vm0, %v16818_v24  ;;  %16235 = vmatmul.mubr.msk.bf16.gmra.mxu1 %vm4063_vm0, %v16819_v25  ;;  %v16882_v24 = vld [vmem:[%s22906_s0 + $0x158] sm:$0xff]  }
  0x33   :  { %15662 = vmatprep.mubr.msk.bf16.mxu0 %vm4063_vm0, %v16820_v26  ;;  %16238 = vmatprep.mubr.msk.bf16.mxu1 %vm4063_vm0, %v16821_v27  ;;  %v16883_v25 = vld [vmem:[%s22906_s0 + $0xa58] sm:$0xff]   ;;  %v16884_v26 = vld [vmem:[%s22906_s0 + $0x160] sm:$0xff]  }
  0x34   :  { %v16885_v27 = vld [vmem:[%s22906_s0 + $0xa60] sm:$0xff]  }
  0x3a   :  { %15663 = vmatmul.mubr.msk.bf16.gmra.mxu0 %vm4063_vm0, %v16822_v28  ;;  %16239 = vmatmul.mubr.msk.bf16.gmra.mxu1 %vm4063_vm0, %v16823_v29  ;;  %v16886_v28 = vld [vmem:[%s22906_s0 + $0x168] sm:$0xff]  }
  0x3b   :  { %15666 = vmatprep.mubr.msk.bf16.mxu0 %vm4063_vm0, %v16824_v30  ;;  %16242 = vmatprep.mubr.msk.bf16.mxu1 %vm4063_vm0, %v16825_v31  ;;  %v16887_v29 = vld [vmem:[%s22906_s0 + $0xa68] sm:$0xff]   ;;  %v16888_v30 = vld [vmem:[%s22906_s0 + $0x170] sm:$0xff]  }
  0x3c   :  { %v16889_v31 = vld [vmem:[%s22906_s0 + $0xa70] sm:$0xff]  }
  0x42   :  { %15667 = vmatmul.mubr.msk.bf16.gmra.mxu0 %vm4063_vm0, %v16826_v32  ;;  %16243 = vmatmul.mubr.msk.bf16.gmra.mxu1 %vm4063_vm0, %v16827_v33  ;;  %v16890_v32 = vld [vmem:[%s22906_s0 + $0x178] sm:$0xff]  }
  0x43   :  { %15670 = vmatprep.mubr.msk.bf16.mxu0 %vm4063_vm0, %v16828_v34  ;;  %16246 = vmatprep.mubr.msk.bf16.mxu1 %vm4063_vm0, %v16829_v35  ;;  %v16891_v33 = vld [vmem:[%s22906_s0 + $0xa78] sm:$0xff]   ;;  %v16892_v34 = vld [vmem:[%s22906_s0 + $0x180] sm:$0xff]  }
  0x44   :  { %v16893_v35 = vld [vmem:[%s22906_s0 + $0xa80] sm:$0xff]  }
  0x4a   :  { %15671 = vmatmul.mubr.msk.bf16.gmra.mxu0 %vm4063_vm0, %v16830_v36  ;;  %16247 = vmatmul.mubr.msk.bf16.gmra.mxu1 %vm4063_vm0, %v16831_v37  ;;  %v16894_v36 = vld [vmem:[%s22906_s0 + $0x188] sm:$0xff]  }
  0x4b   :  { %15674 = vmatprep.mubr.msk.bf16.mxu0 %vm4063_vm0, %v16832_v38  ;;  %16250 = vmatprep.mubr.msk.bf16.mxu1 %vm4063_vm0, %v16833_v39  ;;  %v16895_v37 = vld [vmem:[%s22906_s0 + $0xa88] sm:$0xff]   ;;  %v16896_v38 = vld [vmem:[%s22906_s0 + $0x190] sm:$0xff]  }
  0x4c   :  { %v16897_v39 = vld [vmem:[%s22906_s0 + $0xa90] sm:$0xff]  }
  0x52   :  { %15675 = vmatmul.mubr.msk.bf16.gmra.mxu0 %vm4063_vm0, %v16834_v40  ;;  %16251 = vmatmul.mubr.msk.bf16.gmra.mxu1 %vm4063_vm0, %v16835_v41 }
  0x53   :  { %15678 = vmatprep.mubr.msk.bf16.mxu0 %vm4063_vm0, %v16836_v42  ;;  %16254 = vmatprep.mubr.msk.bf16.mxu1 %vm4063_vm0, %v16837_v43 }
  0x5a   :  { %15679 = vmatmul.mubr.msk.bf16.gmra.mxu0 %vm4063_vm0, %v16838_v44  ;;  %16255 = vmatmul.mubr.msk.bf16.gmra.mxu1 %vm4063_vm0, %v16839_v45  ;;  %v16898_v44 = vld [vmem:[%s22906_s0 + $0x198] sm:$0xff]  }
  0x5b   :  { %15682 = vmatprep.mubr.msk.bf16.mxu0 %vm4063_vm0, %v16840_v46  ;;  %16258 = vmatprep.mubr.msk.bf16.mxu1 %vm4063_vm0, %v16841_v47  ;;  %v16899_v45 = vld [vmem:[%s22906_s0 + $0xa98] sm:$0xff]  }
  0x62   :  { %15683 = vmatmul.mubr.msk.bf16.gmra.mxu0 %vm4063_vm0, %v16842_v48  ;;  %16259 = vmatmul.mubr.msk.bf16.gmra.mxu1 %vm4063_vm0, %v16843_v49  ;;  %v16900_v48 = vld [vmem:[%s22906_s0 + $0x1a0] sm:$0xff]  }
  0x63   :  { %15686 = vmatprep.mubr.msk.bf16.mxu0 %vm4063_vm0, %v16844_v50  ;;  %16262 = vmatprep.mubr.msk.bf16.mxu1 %vm4063_vm0, %v16845_v51  ;;  %v16901_v49 = vld [vmem:[%s22906_s0 + $0xaa0] sm:$0xff]  }
  0x6a   :  { %15687 = vmatmul.mubr.msk.bf16.gmra.mxu0 %vm4063_vm0, %v16846_v52  ;;  %16263 = vmatmul.mubr.msk.bf16.gmra.mxu1 %vm4063_vm0, %v16847_v53 }
  0x6b   :  { %15690 = vmatprep.mubr.msk.bf16.mxu0 %vm4063_vm0, %v16848_v54  ;;  %16266 = vmatprep.mubr.msk.bf16.mxu1 %vm4063_vm0, %v16849_v55 }
  0x72   :  { %15691 = vmatmul.mubr.msk.bf16.gmra.mxu0 %vm4063_vm0, %v16850_v56  ;;  %16267 = vmatmul.mubr.msk.bf16.gmra.mxu1 %vm4063_vm0, %v16851_v57  ;;  %v16902_v56 = vld [vmem:[%s22906_s0 + $0x1a8] sm:$0xff]  }
  0x73   :  { %15694 = vmatprep.mubr.msk.bf16.mxu0 %vm4063_vm0, %v16852_v58  ;;  %16270 = vmatprep.mubr.msk.bf16.mxu1 %vm4063_vm0, %v16853_v59  ;;  %v16903_v57 = vld [vmem:[%s22906_s0 + $0xaa8] sm:$0xff]  }
  0x7a   :  { %15695 = vmatmul.mubr.msk.bf16.gmra.mxu0 %vm4063_vm0, %v16854_v60  ;;  %16271 = vmatmul.mubr.msk.bf16.gmra.mxu1 %vm4063_vm0, %v16855_v61  ;;  %v16904_v60 = vld [vmem:[%s22906_s0 + $0x1b0] sm:$0xff]  }
  0x7b   :  { %15698 = vmatprep.mubr.msk.bf16.mxu0 %vm4063_vm0, %v16856_v62  ;;  %16274 = vmatprep.mubr.msk.bf16.mxu1 %vm4063_vm0, %v16857_v63  ;;  %v16905_v61 = vld [vmem:[%s22906_s0 + $0xab0] sm:$0xff]  }
  0x82   :  { %15699 = vmatmul.mubr.msk.bf16.gmra.mxu0 %vm4063_vm0, %v16858_v0  ;;  %16275 = vmatmul.mubr.msk.bf16.gmra.mxu1 %vm4063_vm0, %v16859_v1 }
  0x83   :  { %15702 = vmatprep.mubr.msk.bf16.mxu0 %vm4063_vm0, %v16860_v2  ;;  %16278 = vmatprep.mubr.msk.bf16.mxu1 %vm4063_vm0, %v16861_v3 }
  0x8a   :  { %15703 = vmatmul.mubr.msk.bf16.gmra.mxu0 %vm4063_vm0, %v16862_v4  ;;  %16279 = vmatmul.mubr.msk.bf16.gmra.mxu1 %vm4063_vm0, %v16863_v5  ;;  %v16906_v4 = vld [vmem:[%s22906_s0 + $0x1b8] sm:$0xff]  }
  0x8b   :  { %15706 = vmatprep.mubr.msk.bf16.mxu0 %vm4063_vm0, %v16864_v6  ;;  %16282 = vmatprep.mubr.msk.bf16.mxu1 %vm4063_vm0, %v16865_v7  ;;  %v16907_v5 = vld [vmem:[%s22906_s0 + $0xab8] sm:$0xff]  }
  0x92   :  { %15707 = vmatmul.mubr.msk.bf16.gmra.mxu0 %vm4063_vm0, %v16866_v8  ;;  %16283 = vmatmul.mubr.msk.bf16.gmra.mxu1 %vm4063_vm0, %v16867_v9  ;;  %v16908_v8 = vld [vmem:[%s22906_s0 + $0x1c0] sm:$0xff]  }
  0x93   :  { %15710 = vmatprep.mubr.msk.bf16.mxu0 %vm4063_vm0, %v16868_v10  ;;  %16286 = vmatprep.mubr.msk.bf16.mxu1 %vm4063_vm0, %v16869_v11  ;;  %v16909_v9 = vld [vmem:[%s22906_s0 + $0xac0] sm:$0xff]  }
  0x9a   :  { %15711 = vmatmul.mubr.msk.bf16.gmra.mxu0 %vm4063_vm0, %v16870_v12  ;;  %16287 = vmatmul.mubr.msk.bf16.gmra.mxu1 %vm4063_vm0, %v16871_v13 }
  0x9b   :  { %15714 = vmatprep.mubr.msk.bf16.mxu0 %vm4063_vm0, %v16872_v14  ;;  %16290 = vmatprep.mubr.msk.bf16.mxu1 %vm4063_vm0, %v16873_v15 }
  0xa2   :  { %15715 = vmatmul.mubr.msk.bf16.gmra.mxu0 %vm4063_vm0, %v16874_v16  ;;  %16291 = vmatmul.mubr.msk.bf16.gmra.mxu1 %vm4063_vm0, %v16875_v17  ;;  %v16910_v16 = vld [vmem:[%s22906_s0 + $0x1c8] sm:$0xff]  }
  0xa3   :  { %15718 = vmatprep.mubr.msk.bf16.mxu0 %vm4063_vm0, %v16876_v18  ;;  %16294 = vmatprep.mubr.msk.bf16.mxu1 %vm4063_vm0, %v16877_v19  ;;  %v16911_v17 = vld [vmem:[%s22906_s0 + $0xac8] sm:$0xff]  }
  0xaa   :  { %15719 = vmatmul.mubr.msk.bf16.gmra.mxu0 %vm4063_vm0, %v16878_v20  ;;  %16295 = vmatmul.mubr.msk.bf16.gmra.mxu1 %vm4063_vm0, %v16879_v21  ;;  %v16912_v20 = vld [vmem:[%s22906_s0 + $0x1d0] sm:$0xff]  }
  0xab   :  { %15722 = vmatprep.mubr.msk.bf16.mxu0 %vm4063_vm0, %v16880_v22  ;;  %16298 = vmatprep.mubr.msk.bf16.mxu1 %vm4063_vm0, %v16881_v23  ;;  %v16913_v21 = vld [vmem:[%s22906_s0 + $0xad0] sm:$0xff]  }
  0xb2   :  { %15723 = vmatmul.mubr.msk.bf16.gmra.mxu0 %vm4063_vm0, %v16882_v24  ;;  %16299 = vmatmul.mubr.msk.bf16.gmra.mxu1 %vm4063_vm0, %v16883_v25 }
  0xb3   :  { %15726 = vmatprep.mubr.msk.bf16.mxu0 %vm4063_vm0, %v16884_v26  ;;  %16302 = vmatprep.mubr.msk.bf16.mxu1 %vm4063_vm0, %v16885_v27 }
  0xba   :  { %15727 = vmatmul.mubr.msk.bf16.gmra.mxu0 %vm4063_vm0, %v16886_v28  ;;  %16303 = vmatmul.mubr.msk.bf16.gmra.mxu1 %vm4063_vm0, %v16887_v29  ;;  %v16914_v28 = vld [vmem:[%s22906_s0 + $0x1d8] sm:$0xff]  }
  0xbb   :  { %15730 = vmatprep.mubr.msk.bf16.mxu0 %vm4063_vm0, %v16888_v30  ;;  %16306 = vmatprep.mubr.msk.bf16.mxu1 %vm4063_vm0, %v16889_v31  ;;  %v16915_v29 = vld [vmem:[%s22906_s0 + $0xad8] sm:$0xff]  }
  0xc2   :  { %15731 = vmatmul.mubr.msk.bf16.gmra.mxu0 %vm4063_vm0, %v16890_v32  ;;  %16307 = vmatmul.mubr.msk.bf16.gmra.mxu1 %vm4063_vm0, %v16891_v33  ;;  %v16916_v32 = vld [vmem:[%s22906_s0 + $0x1e0] sm:$0xff]  }
  0xc3   :  { %15734 = vmatprep.mubr.msk.bf16.mxu0 %vm4063_vm0, %v16892_v34  ;;  %16310 = vmatprep.mubr.msk.bf16.mxu1 %vm4063_vm0, %v16893_v35  ;;  %v16917_v33 = vld [vmem:[%s22906_s0 + $0xae0] sm:$0xff]  }
  0xca   :  { %v17807_v40 = vpop.f32.mrf.mxu0  ;;  %15735 = vmatmul.mubr.msk.bf16.gmra.mxu0 %vm4063_vm0, %v16894_v36  ;;  %v17810_v41 = vpop.f32.mrf.mxu1  ;;  %16311 = vmatmul.mubr.msk.bf16.gmra.mxu1 %vm4063_vm0, %v16895_v37 }
  0xcb   :  { %15738 = vmatprep.mubr.msk.bf16.mxu0 %vm4063_vm0, %v16896_v38  ;;  %16314 = vmatprep.mubr.msk.bf16.mxu1 %vm4063_vm0, %v16897_v39 }
  0xcc   :  { %v17815_v42 = vpop.f32.mrf.mxu0  ;;  %v17817_v43 = vpop.f32.mrf.mxu1 }
  0xce   :  { %v17825_v46 = vpop.f32.mrf.mxu0  ;;  %v17827_v47 = vpop.f32.mrf.mxu1 }
  0xd0   :  { %v17835_v50 = vpop.f32.mrf.mxu0  ;;  %v17837_v51 = vpop.f32.mrf.mxu1 }
  0xd2   :  { %v17839_v52 = vpop.f32.mrf.mxu0  ;;  %15739 = vmatmul.mubr.msk.bf16.gmra.mxu0 %vm4063_vm0, %v16898_v44  ;;  %v17842_v53 = vpop.f32.mrf.mxu1  ;;  %16315 = vmatmul.mubr.msk.bf16.gmra.mxu1 %vm4063_vm0, %v16899_v45  ;;  %v16918_v44 = vld [vmem:[%s22906_s0 + $0x1e8] sm:$0xff]  }
  0xd3   :  { %15742 = vmatprep.mubr.msk.bf16.mxu0 %vm4063_vm0, %v16900_v48  ;;  %16318 = vmatprep.mubr.msk.bf16.mxu1 %vm4063_vm0, %v16901_v49  ;;  %v16919_v45 = vld [vmem:[%s22906_s0 + $0xae8] sm:$0xff]  }
  0xd4   :  { %v17847_v54 = vpop.f32.mrf.mxu0  ;;  %v17849_v55 = vpop.f32.mrf.mxu1 }
  0xd6   :  { %v17857_v58 = vpop.f32.mrf.mxu0  ;;  %v17859_v59 = vpop.f32.mrf.mxu1 }
  0xd8   :  { %v17867_v62 = vpop.f32.mrf.mxu0  ;;  %v17869_v63 = vpop.f32.mrf.mxu1 }
  0xda   :  { %v17871_v0 = vpop.f32.mrf.mxu0  ;;  %15743 = vmatmul.mubr.msk.bf16.gmra.mxu0 %vm4063_vm0, %v16902_v56  ;;  %v17874_v1 = vpop.f32.mrf.mxu1  ;;  %16319 = vmatmul.mubr.msk.bf16.gmra.mxu1 %vm4063_vm0, %v16903_v57  ;;  %v16920_v56 = vld [vmem:[%s22906_s0 + $0x1f0] sm:$0xff]  }
  0xdb   :  { %15746 = vmatprep.mubr.msk.bf16.mxu0 %vm4063_vm0, %v16904_v60  ;;  %16322 = vmatprep.mubr.msk.bf16.mxu1 %vm4063_vm0, %v16905_v61  ;;  %v16921_v57 = vld [vmem:[%s22906_s0 + $0xaf0] sm:$0xff]  }
  0xdc   :  { %v17879_v2 = vpop.f32.mrf.mxu0  ;;  %v17881_v3 = vpop.f32.mrf.mxu1 }
  0xde   :  { %v17889_v6 = vpop.f32.mrf.mxu0  ;;  %v17891_v7 = vpop.f32.mrf.mxu1 }
  0xe0   :  { %v17899_v10 = vpop.f32.mrf.mxu0  ;;  %v17901_v11 = vpop.f32.mrf.mxu1 }
  0xe2   :  { %v17903_v12 = vpop.f32.mrf.mxu0  ;;  %15747 = vmatmul.mubr.msk.bf16.gmra.mxu0 %vm4063_vm0, %v16906_v4  ;;  %v17906_v13 = vpop.f32.mrf.mxu1  ;;  %16323 = vmatmul.mubr.msk.bf16.gmra.mxu1 %vm4063_vm0, %v16907_v5 }
  0xe3   :  { %15750 = vmatprep.mubr.msk.bf16.mxu0 %vm4063_vm0, %v16908_v8  ;;  %16326 = vmatprep.mubr.msk.bf16.mxu1 %vm4063_vm0, %v16909_v9 }
  0xe4   :  { %v17911_v14 = vpop.f32.mrf.mxu0  ;;  %v17913_v15 = vpop.f32.mrf.mxu1 }
  0xe6   :  { %v17921_v18 = vpop.f32.mrf.mxu0  ;;  %v17923_v19 = vpop.f32.mrf.mxu1 }
  0xe8   :  { %v17931_v22 = vpop.f32.mrf.mxu0  ;;  %v17933_v23 = vpop.f32.mrf.mxu1 }
  0xea   :  { %v17935_v24 = vpop.f32.mrf.mxu0  ;;  %15751 = vmatmul.mubr.msk.bf16.gmra.mxu0 %vm4063_vm0, %v16910_v16  ;;  %v17938_v25 = vpop.f32.mrf.mxu1  ;;  %16327 = vmatmul.mubr.msk.bf16.gmra.mxu1 %vm4063_vm0, %v16911_v17  ;;  %v16922_v16 = vld [vmem:[%s22906_s0 + $0x1f8] sm:$0xff]  }
  0xeb   :  { %15754 = vmatprep.mubr.msk.bf16.mxu0 %vm4063_vm0, %v16912_v20  ;;  %16330 = vmatprep.mubr.msk.bf16.mxu1 %vm4063_vm0, %v16913_v21  ;;  %v16923_v17 = vld [vmem:[%s22906_s0 + $0xaf8] sm:$0xff]  }
  0xec   :  { %v17943_v26 = vpop.f32.mrf.mxu0  ;;  %v17945_v27 = vpop.f32.mrf.mxu1 }
  0xee   :  { %v17953_v30 = vpop.f32.mrf.mxu0  ;;  %v17955_v31 = vpop.f32.mrf.mxu1 }
  0xf0   :  { %v17963_v34 = vpop.f32.mrf.mxu0  ;;  %v17965_v35 = vpop.f32.mrf.mxu1 }
  0xf2   :  { %v17967_v36 = vpop.f32.mrf.mxu0  ;;  %15755 = vmatmul.mubr.msk.bf16.gmra.mxu0 %vm4063_vm0, %v16914_v28  ;;  %v17970_v37 = vpop.f32.mrf.mxu1  ;;  %16331 = vmatmul.mubr.msk.bf16.gmra.mxu1 %vm4063_vm0, %v16915_v29  ;;  %v16924_v28 = vld [vmem:[%s22906_s0 + $0x200] sm:$0xff]  }
  0xf3   :  { %15758 = vmatprep.mubr.msk.bf16.mxu0 %vm4063_vm0, %v16916_v32  ;;  %16334 = vmatprep.mubr.msk.bf16.mxu1 %vm4063_vm0, %v16917_v33  ;;  %v16925_v29 = vld [vmem:[%s22906_s0 + $0xb00] sm:$0xff]  }
  0xf4   :  { %v17975_v38 = vpop.f32.mrf.mxu0  ;;  %v17977_v39 = vpop.f32.mrf.mxu1 }
  0xf6   :  { %v17985_v48 = vpop.f32.mrf.mxu0  ;;  %v17987_v49 = vpop.f32.mrf.mxu1 }
  0xf8   :  { %v17995_v60 = vpop.f32.mrf.mxu0  ;;  %v17997_v61 = vpop.f32.mrf.mxu1 }
  0xfa   :  { %v17999_v4 = vpop.f32.mrf.mxu0  ;;  %15759 = vmatmul.mubr.msk.bf16.gmra.mxu0 %vm4063_vm0, %v16918_v44  ;;  %v18002_v5 = vpop.f32.mrf.mxu1  ;;  %16335 = vmatmul.mubr.msk.bf16.gmra.mxu1 %vm4063_vm0, %v16919_v45 }
  0xfb   :  { %22909 = vst [vmem:[#allocation2_spill] sm:$0xff] %v18002_v5  ;;  %15762 = vmatprep.mubr.msk.bf16.mxu0 %vm4063_vm0, %v16920_v56  ;;  %16338 = vmatprep.mubr.msk.bf16.mxu1 %vm4063_vm0, %v16921_v57 }
  0xfc   :  { %v18007_v8 = vpop.f32.mrf.mxu0  ;;  %v18009_v9 = vpop.f32.mrf.mxu1 }
  0xfd   :  { %22910 = vst [vmem:[#allocation3_spill] sm:$0xff] %v18007_v8  ;;  %22911 = vst [vmem:[#allocation4_spill] sm:$0xff] %v18009_v9 }
  0xfe   :  { %v18017_v20 = vpop.f32.mrf.mxu0  ;;  %v18019_v21 = vpop.f32.mrf.mxu1 }
  0xff   :  { %22912 = vst [vmem:[#allocation5_spill] sm:$0xff] %v18017_v20  ;;  %22913 = vst [vmem:[#allocation6_spill] sm:$0xff] %v18019_v21 }
 0x100   :  { %v18027_v32 = vpop.f32.mrf.mxu0  ;;  %v18029_v33 = vpop.f32.mrf.mxu1 }
 0x101   :  { %22914 = vst [vmem:[#allocation7_spill] sm:$0xff] %v18027_v32  ;;  %22915 = vst [vmem:[#allocation8_spill] sm:$0xff] %v18029_v33  ;;  %v16926_v33 = vld [vmem:[%s22906_s0 + $0x208] sm:$0xff]  }
 0x102   :  { %v18031_v44 = vpop.f32.mrf.mxu0  ;;  %15763 = vmatmul.mubr.msk.bf16.gmra.mxu0 %vm4063_vm0, %v16922_v16  ;;  %v18034_v45 = vpop.f32.mrf.mxu1  ;;  %16339 = vmatmul.mubr.msk.bf16.gmra.mxu1 %vm4063_vm0, %v16923_v17  ;;  %v16927_v16 = vld [vmem:[%s22906_s0 + $0xb08] sm:$0xff]   ;;  %v16928_v17 = vld [vmem:[%s22906_s0 + $0x210] sm:$0xff]  }
 0x103   :  { %22916 = vst [vmem:[#allocation9_spill] sm:$0xff] %v18031_v44  ;;  %22917 = vst [vmem:[#allocation10_spill] sm:$0xff] %v18034_v45  ;;  %15766 = vmatprep.mubr.msk.bf16.mxu0 %vm4063_vm0, %v16924_v28  ;;  %16342 = vmatprep.mubr.msk.bf16.mxu1 %vm4063_vm0, %v16925_v29  ;;  %v16929_v28 = vld [vmem:[%s22906_s0 + $0xb10] sm:$0xff]  }
 0x104   :  { %v18039_v56 = vpop.f32.mrf.mxu0  ;;  %v18041_v57 = vpop.f32.mrf.mxu1 }
 0x105   :  { %22918 = vst [vmem:[#allocation11_spill] sm:$0xff] %v18039_v56  ;;  %22919 = vst [vmem:[#allocation12_spill] sm:$0xff] %v18041_v57 }
 0x106   :  { %v18049_v44 = vpop.f32.mrf.mxu0  ;;  %v18051_v45 = vpop.f32.mrf.mxu1 }
 0x107   :  { %22920 = vst [vmem:[#allocation13_spill] sm:$0xff] %v18049_v44  ;;  %22921 = vst [vmem:[#allocation14_spill] sm:$0xff] %v18051_v45 }
 0x108   :  { %v18059_v29 = vpop.f32.mrf.mxu0  ;;  %v18061_v57 = vpop.f32.mrf.mxu1 }
 0x109   :  { %22922 = vst [vmem:[#allocation15_spill] sm:$0xff] %v18059_v29  ;;  %22923 = vst [vmem:[#allocation16_spill] sm:$0xff] %v18061_v57  ;;  %v16930_v57 = vld [vmem:[%s22906_s0 + $0x218] sm:$0xff]  }
 0x10a   :  { %v18063_v56 = vpop.f32.mrf.mxu0  ;;  %15767 = vmatmul.mubr.msk.bf16.gmra.mxu0 %vm4063_vm0, %v16926_v33  ;;  %v18066_v32 = vpop.f32.mrf.mxu1  ;;  %16343 = vmatmul.mubr.msk.bf16.gmra.mxu1 %vm4063_vm0, %v16927_v16  ;;  %v16931_v33 = vld [vmem:[%s22906_s0 + $0xb18] sm:$0xff]   ;;  %v16932_v16 = vld [vmem:[%s22906_s0 + $0x220] sm:$0xff]  }
 0x10b   :  { %22924 = vst [vmem:[#allocation17_spill] sm:$0xff] %v18063_v56  ;;  %22925 = vst [vmem:[#allocation18_spill] sm:$0xff] %v18066_v32  ;;  %15770 = vmatprep.mubr.msk.bf16.mxu0 %vm4063_vm0, %v16928_v17  ;;  %16346 = vmatprep.mubr.msk.bf16.mxu1 %vm4063_vm0, %v16929_v28  ;;  %v16933_v17 = vld [vmem:[%s22906_s0 + $0xb20] sm:$0xff]  }
 0x10c   :  { %v18071_v45 = vpop.f32.mrf.mxu0  ;;  %v18073_v44 = vpop.f32.mrf.mxu1 }
 0x10d   :  { %22926 = vst [vmem:[#allocation19_spill] sm:$0xff] %v18071_v45  ;;  %22927 = vst [vmem:[#allocation20_spill] sm:$0xff] %v18073_v44 }
 0x10e   :  { %v18081_v56 = vpop.f32.mrf.mxu0  ;;  %v18083_v32 = vpop.f32.mrf.mxu1 }
 0x10f   :  { %22928 = vst [vmem:[#allocation21_spill] sm:$0xff] %v18081_v56  ;;  %22929 = vst [vmem:[#allocation22_spill] sm:$0xff] %v18083_v32 }
 0x110   :  { %v18091_v28 = vpop.f32.mrf.mxu0  ;;  %v18093_v44 = vpop.f32.mrf.mxu1 }
 0x111   :  { %22930 = vst [vmem:[#allocation23_spill] sm:$0xff] %v18091_v28  ;;  %22931 = vst [vmem:[#allocation24_spill] sm:$0xff] %v18093_v44  ;;  %v16934_v44 = vld [vmem:[%s22906_s0 + $0x228] sm:$0xff]  }
 0x112   :  { %v18095_v45 = vpop.f32.mrf.mxu0  ;;  %15771 = vmatmul.mubr.msk.bf16.gmra.mxu0 %vm4063_vm0, %v16930_v57  ;;  %v18098_v29 = vpop.f32.mrf.mxu1  ;;  %16347 = vmatmul.mubr.msk.bf16.gmra.mxu1 %vm4063_vm0, %v16931_v33  ;;  %v16935_v57 = vld [vmem:[%s22906_s0 + $0xb28] sm:$0xff]   ;;  %v16936_v33 = vld [vmem:[%s22906_s0 + $0x230] sm:$0xff]  }
 0x113   :  { %22932 = vst [vmem:[#allocation25_spill] sm:$0xff] %v18095_v45  ;;  %22933 = vst [vmem:[#allocation26_spill] sm:$0xff] %v18098_v29  ;;  %15774 = vmatprep.mubr.msk.bf16.mxu0 %vm4063_vm0, %v16932_v16  ;;  %16350 = vmatprep.mubr.msk.bf16.mxu1 %vm4063_vm0, %v16933_v17  ;;  %v16937_v16 = vld [vmem:[%s22906_s0 + $0xb30] sm:$0xff]  }
 0x114   :  { %v18103_v32 = vpop.f32.mrf.mxu0  ;;  %v18105_v56 = vpop.f32.mrf.mxu1 }
 0x115   :  { %22934 = vst [vmem:[#allocation27_spill] sm:$0xff] %v18103_v32  ;;  %22935 = vst [vmem:[#allocation28_spill] sm:$0xff] %v18105_v56 }
 0x116   :  { %v18113_v45 = vpop.f32.mrf.mxu0  ;;  %v18115_v29 = vpop.f32.mrf.mxu1 }
 0x117   :  { %22936 = vst [vmem:[#allocation29_spill] sm:$0xff] %v18113_v45  ;;  %22937 = vst [vmem:[#allocation30_spill] sm:$0xff] %v18115_v29 }
 0x118   :  { %v18123_v17 = vpop.f32.mrf.mxu0  ;;  %v18125_v56 = vpop.f32.mrf.mxu1 }
 0x119   :  { %22938 = vst [vmem:[#allocation31_spill] sm:$0xff] %v18123_v17  ;;  %22939 = vst [vmem:[#allocation32_spill] sm:$0xff] %v18125_v56  ;;  %v16938_v56 = vld [vmem:[%s22906_s0 + $0x238] sm:$0xff]  }
 0x11a   :  { %v18127_v32 = vpop.f32.mrf.mxu0  ;;  %15775 = vmatmul.mubr.msk.bf16.gmra.mxu0 %vm4063_vm0, %v16934_v44  ;;  %v18130_v28 = vpop.f32.mrf.mxu1  ;;  %16351 = vmatmul.mubr.msk.bf16.gmra.mxu1 %vm4063_vm0, %v16935_v57  ;;  %v16939_v44 = vld [vmem:[%s22906_s0 + $0xb38] sm:$0xff]   ;;  %v16940_v57 = vld [vmem:[%s22906_s0 + $0x240] sm:$0xff]  }
 0x11b   :  { %22940 = vst [vmem:[#allocation33_spill] sm:$0xff] %v18127_v32  ;;  %22941 = vst [vmem:[#allocation34_spill] sm:$0xff] %v18130_v28  ;;  %15778 = vmatprep.mubr.msk.bf16.mxu0 %vm4063_vm0, %v16936_v33  ;;  %16354 = vmatprep.mubr.msk.bf16.mxu1 %vm4063_vm0, %v16937_v16  ;;  %v16941_v33 = vld [vmem:[%s22906_s0 + $0xb40] sm:$0xff]  }
 0x11c   :  { %v18135_v29 = vpop.f32.mrf.mxu0  ;;  %v18137_v45 = vpop.f32.mrf.mxu1 }
 0x11d   :  { %22942 = vst [vmem:[#allocation35_spill] sm:$0xff] %v18135_v29  ;;  %22943 = vst [vmem:[#allocation36_spill] sm:$0xff] %v18137_v45 }
 0x11e   :  { %v18145_v32 = vpop.f32.mrf.mxu0  ;;  %v18147_v28 = vpop.f32.mrf.mxu1 }
 0x11f   :  { %22944 = vst [vmem:[#allocation37_spill] sm:$0xff] %v18145_v32  ;;  %22945 = vst [vmem:[#allocation38_spill] sm:$0xff] %v18147_v28 }
 0x120   :  { %v18155_v16 = vpop.f32.mrf.mxu0  ;;  %v18157_v45 = vpop.f32.mrf.mxu1 }
 0x121   :  { %22946 = vst [vmem:[#allocation39_spill] sm:$0xff] %v18155_v16  ;;  %22947 = vst [vmem:[#allocation40_spill] sm:$0xff] %v18157_v45  ;;  %v16942_v45 = vld [vmem:[%s22906_s0 + $0x248] sm:$0xff]  }
 0x122   :  { %v18159_v29 = vpop.f32.mrf.mxu0  ;;  %15779 = vmatmul.mubr.msk.bf16.gmra.mxu0 %vm4063_vm0, %v16938_v56  ;;  %v18162_v17 = vpop.f32.mrf.mxu1  ;;  %16355 = vmatmul.mubr.msk.bf16.gmra.mxu1 %vm4063_vm0, %v16939_v44  ;;  %v16943_v56 = vld [vmem:[%s22906_s0 + $0xb48] sm:$0xff]   ;;  %v16944_v44 = vld [vmem:[%s22906_s0 + $0x250] sm:$0xff]  }
 0x123   :  { %22948 = vst [vmem:[#allocation41_spill] sm:$0xff] %v18159_v29  ;;  %22949 = vst [vmem:[#allocation42_spill] sm:$0xff] %v18162_v17  ;;  %15782 = vmatprep.mubr.msk.bf16.mxu0 %vm4063_vm0, %v16940_v57  ;;  %16358 = vmatprep.mubr.msk.bf16.mxu1 %vm4063_vm0, %v16941_v33  ;;  %v16945_v57 = vld [vmem:[%s22906_s0 + $0xb50] sm:$0xff]  }
 0x124   :  { %v18167_v28 = vpop.f32.mrf.mxu0  ;;  %v18169_v32 = vpop.f32.mrf.mxu1 }
 0x125   :  { %22950 = vst [vmem:[#allocation43_spill] sm:$0xff] %v18167_v28  ;;  %22951 = vst [vmem:[#allocation44_spill] sm:$0xff] %v18169_v32 }
 0x126   :  { %v18177_v29 = vpop.f32.mrf.mxu0  ;;  %v18179_v17 = vpop.f32.mrf.mxu1 }
 0x127   :  { %22952 = vst [vmem:[#allocation45_spill] sm:$0xff] %v18177_v29  ;;  %22953 = vst [vmem:[#allocation46_spill] sm:$0xff] %v18179_v17 }
 0x128   :  { %v18187_v33 = vpop.f32.mrf.mxu0  ;;  %v18189_v32 = vpop.f32.mrf.mxu1 }
 0x129   :  { %22954 = vst [vmem:[#allocation47_spill] sm:$0xff] %v18187_v33  ;;  %22955 = vst [vmem:[#allocation48_spill] sm:$0xff] %v18189_v32  ;;  %v16946_v32 = vld [vmem:[%s22906_s0 + $0x258] sm:$0xff]  }
 0x12a   :  { %v18191_v28 = vpop.f32.mrf.mxu0  ;;  %15783 = vmatmul.mubr.msk.bf16.gmra.mxu0 %vm4063_vm0, %v16942_v45  ;;  %v18194_v16 = vpop.f32.mrf.mxu1  ;;  %16359 = vmatmul.mubr.msk.bf16.gmra.mxu1 %vm4063_vm0, %v16943_v56  ;;  %v16947_v45 = vld [vmem:[%s22906_s0 + $0xb58] sm:$0xff]   ;;  %v16948_v56 = vld [vmem:[%s22906_s0 + $0x260] sm:$0xff]  }
 0x12b   :  { %22956 = vst [vmem:[#allocation49_spill] sm:$0xff] %v18191_v28  ;;  %22957 = vst [vmem:[#allocation50_spill] sm:$0xff] %v18194_v16  ;;  %15786 = vmatprep.mubr.msk.bf16.mxu0 %vm4063_vm0, %v16944_v44  ;;  %16362 = vmatprep.mubr.msk.bf16.mxu1 %vm4063_vm0, %v16945_v57  ;;  %v16949_v44 = vld [vmem:[%s22906_s0 + $0xb60] sm:$0xff]  }
 0x12c   :  { %v18199_v17 = vpop.f32.mrf.mxu0  ;;  %v18201_v29 = vpop.f32.mrf.mxu1 }
 0x12d   :  { %22958 = vst [vmem:[#allocation51_spill] sm:$0xff] %v18199_v17  ;;  %22959 = vst [vmem:[#allocation52_spill] sm:$0xff] %v18201_v29 }
 0x12e   :  { %v18209_v28 = vpop.f32.mrf.mxu0  ;;  %v18211_v16 = vpop.f32.mrf.mxu1 }
 0x12f   :  { %22960 = vst [vmem:[#allocation53_spill] sm:$0xff] %v18209_v28  ;;  %22961 = vst [vmem:[#allocation54_spill] sm:$0xff] %v18211_v16 }
 0x130   :  { %v18219_v57 = vpop.f32.mrf.mxu0  ;;  %v18221_v29 = vpop.f32.mrf.mxu1 }
 0x131   :  { %22962 = vst [vmem:[#allocation55_spill] sm:$0xff] %v18219_v57  ;;  %22963 = vst [vmem:[#allocation56_spill] sm:$0xff] %v18221_v29  ;;  %v16950_v29 = vld [vmem:[%s22906_s0 + $0x268] sm:$0xff]  }
 0x132   :  { %v18223_v17 = vpop.f32.mrf.mxu0  ;;  %15787 = vmatmul.mubr.msk.bf16.gmra.mxu0 %vm4063_vm0, %v16946_v32  ;;  %v18226_v33 = vpop.f32.mrf.mxu1  ;;  %16363 = vmatmul.mubr.msk.bf16.gmra.mxu1 %vm4063_vm0, %v16947_v45  ;;  %v16951_v32 = vld [vmem:[%s22906_s0 + $0xb68] sm:$0xff]   ;;  %v16952_v45 = vld [vmem:[%s22906_s0 + $0x270] sm:$0xff]  }
 0x133   :  { %22964 = vst [vmem:[#allocation57_spill] sm:$0xff] %v18223_v17  ;;  %22965 = vst [vmem:[#allocation58_spill] sm:$0xff] %v18226_v33  ;;  %15790 = vmatprep.mubr.msk.bf16.mxu0 %vm4063_vm0, %v16948_v56  ;;  %16366 = vmatprep.mubr.msk.bf16.mxu1 %vm4063_vm0, %v16949_v44  ;;  %v16953_v56 = vld [vmem:[%s22906_s0 + $0xb70] sm:$0xff]  }
 0x134   :  { %v18231_v16 = vpop.f32.mrf.mxu0  ;;  %v18233_v28 = vpop.f32.mrf.mxu1 }
 0x135   :  { %22966 = vst [vmem:[#allocation59_spill] sm:$0xff] %v18231_v16  ;;  %22967 = vst [vmem:[#allocation60_spill] sm:$0xff] %v18233_v28 }
 0x136   :  { %v18241_v17 = vpop.f32.mrf.mxu0  ;;  %v18243_v33 = vpop.f32.mrf.mxu1 }
 0x137   :  { %22968 = vst [vmem:[#allocation61_spill] sm:$0xff] %v18241_v17  ;;  %22969 = vst [vmem:[#allocation62_spill] sm:$0xff] %v18243_v33 }
 0x138   :  { %v18251_v44 = vpop.f32.mrf.mxu0  ;;  %v18253_v28 = vpop.f32.mrf.mxu1 }
 0x139   :  { %22970 = vst [vmem:[#allocation63_spill] sm:$0xff] %v18251_v44  ;;  %22971 = vst [vmem:[#allocation64_spill] sm:$0xff] %v18253_v28  ;;  %v16954_v28 = vld [vmem:[%s22906_s0 + $0x278] sm:$0xff]  }
 0x13a   :  { %v18255_v16 = vpop.f32.mrf.mxu0  ;;  %15791 = vmatmul.mubr.msk.bf16.gmra.mxu0 %vm4063_vm0, %v16950_v29  ;;  %v18258_v57 = vpop.f32.mrf.mxu1  ;;  %16367 = vmatmul.mubr.msk.bf16.gmra.mxu1 %vm4063_vm0, %v16951_v32  ;;  %v16955_v29 = vld [vmem:[%s22906_s0 + $0xb78] sm:$0xff]   ;;  %v16956_v32 = vld [vmem:[%s22906_s0 + $0x280] sm:$0xff]  }
 0x13b   :  { %22972 = vst [vmem:[#allocation65_spill] sm:$0xff] %v18255_v16  ;;  %22973 = vst [vmem:[#allocation66_spill] sm:$0xff] %v18258_v57  ;;  %15794 = vmatprep.mubr.msk.bf16.mxu0 %vm4063_vm0, %v16952_v45  ;;  %16370 = vmatprep.mubr.msk.bf16.mxu1 %vm4063_vm0, %v16953_v56  ;;  %v16957_v45 = vld [vmem:[%s22906_s0 + $0xb80] sm:$0xff]  }
 0x13c   :  { %v18263_v33 = vpop.f32.mrf.mxu0  ;;  %v18265_v17 = vpop.f32.mrf.mxu1 }
 0x13d   :  { %22974 = vst [vmem:[#allocation67_spill] sm:$0xff] %v18263_v33  ;;  %22975 = vst [vmem:[#allocation68_spill] sm:$0xff] %v18265_v17 }
 0x13e   :  { %v18273_v16 = vpop.f32.mrf.mxu0  ;;  %v18275_v57 = vpop.f32.mrf.mxu1 }
 0x13f   :  { %22976 = vst [vmem:[#allocation69_spill] sm:$0xff] %v18273_v16  ;;  %22977 = vst [vmem:[#allocation70_spill] sm:$0xff] %v18275_v57 }
 0x140   :  { %v18283_v56 = vpop.f32.mrf.mxu0  ;;  %v18285_v17 = vpop.f32.mrf.mxu1 }
 0x141   :  { %22978 = vst [vmem:[#allocation71_spill] sm:$0xff] %v18283_v56  ;;  %22979 = vst [vmem:[#allocation72_spill] sm:$0xff] %v18285_v17  ;;  %v16958_v17 = vld [vmem:[%s22906_s0 + $0x288] sm:$0xff]  }
 0x142   :  { %v18287_v33 = vpop.f32.mrf.mxu0  ;;  %15795 = vmatmul.mubr.msk.bf16.gmra.mxu0 %vm4063_vm0, %v16954_v28  ;;  %v18290_v44 = vpop.f32.mrf.mxu1  ;;  %16371 = vmatmul.mubr.msk.bf16.gmra.mxu1 %vm4063_vm0, %v16955_v29  ;;  %v16959_v28 = vld [vmem:[%s22906_s0 + $0xb88] sm:$0xff]   ;;  %v16960_v29 = vld [vmem:[%s22906_s0 + $0x290] sm:$0xff]  }
 0x143   :  { %22980 = vst [vmem:[#allocation73_spill] sm:$0xff] %v18287_v33  ;;  %22981 = vst [vmem:[#allocation74_spill] sm:$0xff] %v18290_v44  ;;  %15798 = vmatprep.mubr.msk.bf16.mxu0 %vm4063_vm0, %v16956_v32  ;;  %16374 = vmatprep.mubr.msk.bf16.mxu1 %vm4063_vm0, %v16957_v45  ;;  %v16961_v32 = vld [vmem:[%s22906_s0 + $0xb90] sm:$0xff]  }
 0x144   :  { %v18295_v57 = vpop.f32.mrf.mxu0  ;;  %v18297_v16 = vpop.f32.mrf.mxu1 }
 0x145   :  { %22982 = vst [vmem:[#allocation75_spill] sm:$0xff] %v18295_v57  ;;  %22983 = vst [vmem:[#allocation76_spill] sm:$0xff] %v18297_v16 }
 0x146   :  { %v18305_v33 = vpop.f32.mrf.mxu0  ;;  %v18307_v44 = vpop.f32.mrf.mxu1 }
 0x147   :  { %22984 = vst [vmem:[#allocation77_spill] sm:$0xff] %v18305_v33  ;;  %22985 = vst [vmem:[#allocation78_spill] sm:$0xff] %v18307_v44 }
 0x148   :  { %v18315_v45 = vpop.f32.mrf.mxu0  ;;  %v18317_v16 = vpop.f32.mrf.mxu1 }
 0x149   :  { %22986 = vst [vmem:[#allocation79_spill] sm:$0xff] %v18315_v45  ;;  %22987 = vst [vmem:[#allocation80_spill] sm:$0xff] %v18317_v16  ;;  %v16962_v16 = vld [vmem:[%s22906_s0 + $0x298] sm:$0xff]  }
 0x14a   :  { %v18319_v57 = vpop.f32.mrf.mxu0  ;;  %15799 = vmatmul.mubr.msk.bf16.gmra.mxu0 %vm4063_vm0, %v16958_v17  ;;  %v18322_v56 = vpop.f32.mrf.mxu1  ;;  %16375 = vmatmul.mubr.msk.bf16.gmra.mxu1 %vm4063_vm0, %v16959_v28  ;;  %v16963_v17 = vld [vmem:[%s22906_s0 + $0xb98] sm:$0xff]   ;;  %v16964_v28 = vld [vmem:[%s22906_s0 + $0x2a0] sm:$0xff]  }
 0x14b   :  { %22988 = vst [vmem:[#allocation81_spill] sm:$0xff] %v18319_v57  ;;  %22989 = vst [vmem:[#allocation82_spill] sm:$0xff] %v18322_v56  ;;  %15802 = vmatprep.mubr.msk.bf16.mxu0 %vm4063_vm0, %v16960_v29  ;;  %16378 = vmatprep.mubr.msk.bf16.mxu1 %vm4063_vm0, %v16961_v32  ;;  %v16965_v29 = vld [vmem:[%s22906_s0 + $0xba0] sm:$0xff]  }
 0x14c   :  { %v18327_v44 = vpop.f32.mrf.mxu0  ;;  %v18329_v33 = vpop.f32.mrf.mxu1 }
 0x14d   :  { %22990 = vst [vmem:[#allocation83_spill] sm:$0xff] %v18327_v44  ;;  %22991 = vst [vmem:[#allocation84_spill] sm:$0xff] %v18329_v33 }
 0x14e   :  { %v18337_v57 = vpop.f32.mrf.mxu0  ;;  %v18339_v56 = vpop.f32.mrf.mxu1 }
 0x14f   :  { %22992 = vst [vmem:[#allocation85_spill] sm:$0xff] %v18337_v57  ;;  %22993 = vst [vmem:[#allocation86_spill] sm:$0xff] %v18339_v56 }
 0x150   :  { %v18347_v32 = vpop.f32.mrf.mxu0  ;;  %v18349_v33 = vpop.f32.mrf.mxu1 }
 0x151   :  { %22994 = vst [vmem:[#allocation87_spill] sm:$0xff] %v18347_v32  ;;  %22995 = vst [vmem:[#allocation88_spill] sm:$0xff] %v18349_v33  ;;  %v16966_v33 = vld [vmem:[%s22906_s0 + $0x2a8] sm:$0xff]  }
 0x152   :  { %v18351_v44 = vpop.f32.mrf.mxu0  ;;  %15803 = vmatmul.mubr.msk.bf16.gmra.mxu0 %vm4063_vm0, %v16962_v16  ;;  %v18354_v45 = vpop.f32.mrf.mxu1  ;;  %16379 = vmatmul.mubr.msk.bf16.gmra.mxu1 %vm4063_vm0, %v16963_v17  ;;  %v16967_v16 = vld [vmem:[%s22906_s0 + $0xba8] sm:$0xff]   ;;  %v16968_v17 = vld [vmem:[%s22906_s0 + $0x2b0] sm:$0xff]  }
 0x153   :  { %22996 = vst [vmem:[#allocation89_spill] sm:$0xff] %v18351_v44  ;;  %22997 = vst [vmem:[#allocation90_spill] sm:$0xff] %v18354_v45  ;;  %15806 = vmatprep.mubr.msk.bf16.mxu0 %vm4063_vm0, %v16964_v28  ;;  %16382 = vmatprep.mubr.msk.bf16.mxu1 %vm4063_vm0, %v16965_v29  ;;  %v16969_v28 = vld [vmem:[%s22906_s0 + $0xbb0] sm:$0xff]  }
 0x154   :  { %v18359_v56 = vpop.f32.mrf.mxu0  ;;  %v18361_v57 = vpop.f32.mrf.mxu1 }
 0x155   :  { %22998 = vst [vmem:[#allocation91_spill] sm:$0xff] %v18359_v56  ;;  %22999 = vst [vmem:[#allocation92_spill] sm:$0xff] %v18361_v57 }
 0x156   :  { %v18369_v44 = vpop.f32.mrf.mxu0  ;;  %v18371_v45 = vpop.f32.mrf.mxu1 }
 0x157   :  { %23000 = vst [vmem:[#allocation93_spill] sm:$0xff] %v18369_v44  ;;  %23001 = vst [vmem:[#allocation94_spill] sm:$0xff] %v18371_v45 }
 0x158   :  { %v18379_v29 = vpop.f32.mrf.mxu0  ;;  %v18381_v57 = vpop.f32.mrf.mxu1 }
 0x159   :  { %23002 = vst [vmem:[#allocation95_spill] sm:$0xff] %v18379_v29  ;;  %23003 = vst [vmem:[#allocation96_spill] sm:$0xff] %v18381_v57  ;;  %v16970_v57 = vld [vmem:[%s22906_s0 + $0x2b8] sm:$0xff]  }
 0x15a   :  { %v18383_v56 = vpop.f32.mrf.mxu0  ;;  %15807 = vmatmul.mubr.msk.bf16.gmra.mxu0 %vm4063_vm0, %v16966_v33  ;;  %v18386_v32 = vpop.f32.mrf.mxu1  ;;  %16383 = vmatmul.mubr.msk.bf16.gmra.mxu1 %vm4063_vm0, %v16967_v16  ;;  %v16971_v33 = vld [vmem:[%s22906_s0 + $0xbb8] sm:$0xff]   ;;  %v16972_v16 = vld [vmem:[%s22906_s0 + $0x2c0] sm:$0xff]  }
 0x15b   :  { %23004 = vst [vmem:[#allocation97_spill] sm:$0xff] %v18383_v56  ;;  %23005 = vst [vmem:[#allocation98_spill] sm:$0xff] %v18386_v32  ;;  %15810 = vmatprep.mubr.msk.bf16.mxu0 %vm4063_vm0, %v16968_v17  ;;  %16386 = vmatprep.mubr.msk.bf16.mxu1 %vm4063_vm0, %v16969_v28  ;;  %v16973_v17 = vld [vmem:[%s22906_s0 + $0xbc0] sm:$0xff]  }
 0x15c   :  { %v18391_v45 = vpop.f32.mrf.mxu0  ;;  %v18393_v44 = vpop.f32.mrf.mxu1 }
 0x15d   :  { %23006 = vst [vmem:[#allocation99_spill] sm:$0xff] %v18391_v45  ;;  %23007 = vst [vmem:[#allocation100_spill] sm:$0xff] %v18393_v44 }
 0x15e   :  { %v18401_v56 = vpop.f32.mrf.mxu0  ;;  %v18403_v32 = vpop.f32.mrf.mxu1 }
 0x15f   :  { %23008 = vst [vmem:[#allocation101_spill] sm:$0xff] %v18401_v56  ;;  %23009 = vst [vmem:[#allocation102_spill] sm:$0xff] %v18403_v32 }
 0x160   :  { %v18411_v28 = vpop.f32.mrf.mxu0  ;;  %v18413_v44 = vpop.f32.mrf.mxu1 }
 0x161   :  { %23010 = vst [vmem:[#allocation103_spill] sm:$0xff] %v18411_v28  ;;  %23011 = vst [vmem:[#allocation104_spill] sm:$0xff] %v18413_v44  ;;  %v16974_v44 = vld [vmem:[%s22906_s0 + $0x2c8] sm:$0xff]  }
 0x162   :  { %v18415_v45 = vpop.f32.mrf.mxu0  ;;  %15811 = vmatmul.mubr.msk.bf16.gmra.mxu0 %vm4063_vm0, %v16970_v57  ;;  %v18418_v29 = vpop.f32.mrf.mxu1  ;;  %16387 = vmatmul.mubr.msk.bf16.gmra.mxu1 %vm4063_vm0, %v16971_v33  ;;  %v16975_v57 = vld [vmem:[%s22906_s0 + $0xbc8] sm:$0xff]   ;;  %v16976_v33 = vld [vmem:[%s22906_s0 + $0x2d0] sm:$0xff]  }
 0x163   :  { %23012 = vst [vmem:[#allocation105_spill] sm:$0xff] %v18415_v45  ;;  %23013 = vst [vmem:[#allocation106_spill] sm:$0xff] %v18418_v29  ;;  %15814 = vmatprep.mubr.msk.bf16.mxu0 %vm4063_vm0, %v16972_v16  ;;  %16390 = vmatprep.mubr.msk.bf16.mxu1 %vm4063_vm0, %v16973_v17  ;;  %v16977_v16 = vld [vmem:[%s22906_s0 + $0xbd0] sm:$0xff]  }
 0x164   :  { %v18423_v32 = vpop.f32.mrf.mxu0  ;;  %v18425_v56 = vpop.f32.mrf.mxu1 }
 0x165   :  { %23014 = vst [vmem:[#allocation107_spill] sm:$0xff] %v18423_v32  ;;  %23015 = vst [vmem:[#allocation108_spill] sm:$0xff] %v18425_v56 }
 0x166   :  { %v18433_v45 = vpop.f32.mrf.mxu0  ;;  %v18435_v29 = vpop.f32.mrf.mxu1 }
 0x167   :  { %23016 = vst [vmem:[#allocation109_spill] sm:$0xff] %v18433_v45  ;;  %23017 = vst [vmem:[#allocation110_spill] sm:$0xff] %v18435_v29 }
 0x168   :  { %v18443_v17 = vpop.f32.mrf.mxu0  ;;  %v18445_v56 = vpop.f32.mrf.mxu1 }
 0x169   :  { %23018 = vst [vmem:[#allocation111_spill] sm:$0xff] %v18443_v17  ;;  %23019 = vst [vmem:[#allocation112_spill] sm:$0xff] %v18445_v56  ;;  %v16978_v56 = vld [vmem:[%s22906_s0 + $0x2d8] sm:$0xff]  }
 0x16a   :  { %v18447_v32 = vpop.f32.mrf.mxu0  ;;  %15815 = vmatmul.mubr.msk.bf16.gmra.mxu0 %vm4063_vm0, %v16974_v44  ;;  %v18450_v28 = vpop.f32.mrf.mxu1  ;;  %16391 = vmatmul.mubr.msk.bf16.gmra.mxu1 %vm4063_vm0, %v16975_v57  ;;  %v16979_v44 = vld [vmem:[%s22906_s0 + $0xbd8] sm:$0xff]   ;;  %v16980_v57 = vld [vmem:[%s22906_s0 + $0x2e0] sm:$0xff]  }
 0x16b   :  { %23020 = vst [vmem:[#allocation113_spill] sm:$0xff] %v18447_v32  ;;  %23021 = vst [vmem:[#allocation114_spill] sm:$0xff] %v18450_v28  ;;  %15818 = vmatprep.mubr.msk.bf16.mxu0 %vm4063_vm0, %v16976_v33  ;;  %16394 = vmatprep.mubr.msk.bf16.mxu1 %vm4063_vm0, %v16977_v16  ;;  %v16981_v33 = vld [vmem:[%s22906_s0 + $0xbe0] sm:$0xff]  }
 0x16c   :  { %v18455_v29 = vpop.f32.mrf.mxu0  ;;  %v18457_v45 = vpop.f32.mrf.mxu1 }
 0x16d   :  { %23022 = vst [vmem:[#allocation115_spill] sm:$0xff] %v18455_v29  ;;  %23023 = vst [vmem:[#allocation116_spill] sm:$0xff] %v18457_v45 }
 0x16e   :  { %v18465_v32 = vpop.f32.mrf.mxu0  ;;  %v18467_v28 = vpop.f32.mrf.mxu1 }
 0x16f   :  { %23024 = vst [vmem:[#allocation117_spill] sm:$0xff] %v18465_v32  ;;  %23025 = vst [vmem:[#allocation118_spill] sm:$0xff] %v18467_v28 }
 0x170   :  { %v18475_v16 = vpop.f32.mrf.mxu0  ;;  %v18477_v45 = vpop.f32.mrf.mxu1 }
 0x171   :  { %23026 = vst [vmem:[#allocation119_spill] sm:$0xff] %v18475_v16  ;;  %23027 = vst [vmem:[#allocation120_spill] sm:$0xff] %v18477_v45  ;;  %v16982_v45 = vld [vmem:[%s22906_s0 + $0x2e8] sm:$0xff]  }
 0x172   :  { %v18479_v29 = vpop.f32.mrf.mxu0  ;;  %15819 = vmatmul.mubr.msk.bf16.gmra.mxu0 %vm4063_vm0, %v16978_v56  ;;  %v18482_v17 = vpop.f32.mrf.mxu1  ;;  %16395 = vmatmul.mubr.msk.bf16.gmra.mxu1 %vm4063_vm0, %v16979_v44  ;;  %v16983_v56 = vld [vmem:[%s22906_s0 + $0xbe8] sm:$0xff]   ;;  %v16984_v44 = vld [vmem:[%s22906_s0 + $0x2f0] sm:$0xff]  }
 0x173   :  { %23028 = vst [vmem:[#allocation121_spill] sm:$0xff] %v18479_v29  ;;  %23029 = vst [vmem:[#allocation122_spill] sm:$0xff] %v18482_v17  ;;  %15822 = vmatprep.mubr.msk.bf16.mxu0 %vm4063_vm0, %v16980_v57  ;;  %16398 = vmatprep.mubr.msk.bf16.mxu1 %vm4063_vm0, %v16981_v33  ;;  %v16985_v57 = vld [vmem:[%s22906_s0 + $0xbf0] sm:$0xff]  }
 0x174   :  { %v18487_v28 = vpop.f32.mrf.mxu0  ;;  %v18489_v32 = vpop.f32.mrf.mxu1 }
 0x175   :  { %23030 = vst [vmem:[#allocation123_spill] sm:$0xff] %v18487_v28  ;;  %23031 = vst [vmem:[#allocation124_spill] sm:$0xff] %v18489_v32 }
 0x176   :  { %v18497_v29 = vpop.f32.mrf.mxu0  ;;  %v18499_v17 = vpop.f32.mrf.mxu1 }
 0x177   :  { %23032 = vst [vmem:[#allocation125_spill] sm:$0xff] %v18497_v29  ;;  %23033 = vst [vmem:[#allocation126_spill] sm:$0xff] %v18499_v17 }
 0x178   :  { %v18507_v33 = vpop.f32.mrf.mxu0  ;;  %v18509_v32 = vpop.f32.mrf.mxu1 }
 0x179   :  { %23034 = vst [vmem:[#allocation127_spill] sm:$0xff] %v18507_v33  ;;  %23035 = vst [vmem:[#allocation128_spill] sm:$0xff] %v18509_v32  ;;  %v16986_v32 = vld [vmem:[%s22906_s0 + $0x2f8] sm:$0xff]  }
 0x17a   :  { %v18511_v28 = vpop.f32.mrf.mxu0  ;;  %15823 = vmatmul.mubr.msk.bf16.gmra.mxu0 %vm4063_vm0, %v16982_v45  ;;  %v18514_v16 = vpop.f32.mrf.mxu1  ;;  %16399 = vmatmul.mubr.msk.bf16.gmra.mxu1 %vm4063_vm0, %v16983_v56  ;;  %v16987_v45 = vld [vmem:[%s22906_s0 + $0xbf8] sm:$0xff]   ;;  %v16988_v56 = vld [vmem:[%s22906_s0 + $0x300] sm:$0xff]  }
 0x17b   :  { %23036 = vst [vmem:[#allocation129_spill] sm:$0xff] %v18511_v28  ;;  %23037 = vst [vmem:[#allocation130_spill] sm:$0xff] %v18514_v16  ;;  %15826 = vmatprep.mubr.msk.bf16.mxu0 %vm4063_vm0, %v16984_v44  ;;  %16402 = vmatprep.mubr.msk.bf16.mxu1 %vm4063_vm0, %v16985_v57  ;;  %v16989_v44 = vld [vmem:[%s22906_s0 + $0xc00] sm:$0xff]  }
 0x17c   :  { %v18519_v17 = vpop.f32.mrf.mxu0  ;;  %v18521_v29 = vpop.f32.mrf.mxu1 }
 0x17d   :  { %23038 = vst [vmem:[#allocation131_spill] sm:$0xff] %v18519_v17  ;;  %23039 = vst [vmem:[#allocation132_spill] sm:$0xff] %v18521_v29 }
 0x17e   :  { %v18529_v28 = vpop.f32.mrf.mxu0  ;;  %v18531_v16 = vpop.f32.mrf.mxu1 }
 0x17f   :  { %23040 = vst [vmem:[#allocation133_spill] sm:$0xff] %v18529_v28  ;;  %23041 = vst [vmem:[#allocation134_spill] sm:$0xff] %v18531_v16 }
 0x180   :  { %v18539_v57 = vpop.f32.mrf.mxu0  ;;  %v18541_v29 = vpop.f32.mrf.mxu1 }
 0x181   :  { %23042 = vst [vmem:[#allocation135_spill] sm:$0xff] %v18539_v57  ;;  %23043 = vst [vmem:[#allocation136_spill] sm:$0xff] %v18541_v29  ;;  %v16990_v29 = vld [vmem:[%s22906_s0 + $0x308] sm:$0xff]  }
 0x182   :  { %v18543_v17 = vpop.f32.mrf.mxu0  ;;  %15827 = vmatmul.mubr.msk.bf16.gmra.mxu0 %vm4063_vm0, %v16986_v32  ;;  %v18546_v33 = vpop.f32.mrf.mxu1  ;;  %16403 = vmatmul.mubr.msk.bf16.gmra.mxu1 %vm4063_vm0, %v16987_v45  ;;  %v16991_v32 = vld [vmem:[%s22906_s0 + $0xc08] sm:$0xff]   ;;  %v16992_v45 = vld [vmem:[%s22906_s0 + $0x310] sm:$0xff]  }
 0x183   :  { %23044 = vst [vmem:[#allocation137_spill] sm:$0xff] %v18543_v17  ;;  %23045 = vst [vmem:[#allocation138_spill] sm:$0xff] %v18546_v33  ;;  %15830 = vmatprep.mubr.msk.bf16.mxu0 %vm4063_vm0, %v16988_v56  ;;  %16406 = vmatprep.mubr.msk.bf16.mxu1 %vm4063_vm0, %v16989_v44  ;;  %v16993_v56 = vld [vmem:[%s22906_s0 + $0xc10] sm:$0xff]  }
 0x184   :  { %v18551_v16 = vpop.f32.mrf.mxu0  ;;  %v18553_v28 = vpop.f32.mrf.mxu1 }
 0x185   :  { %23046 = vst [vmem:[#allocation139_spill] sm:$0xff] %v18551_v16  ;;  %23047 = vst [vmem:[#allocation140_spill] sm:$0xff] %v18553_v28 }
 0x186   :  { %v18561_v17 = vpop.f32.mrf.mxu0  ;;  %v18563_v33 = vpop.f32.mrf.mxu1 }
 0x187   :  { %23048 = vst [vmem:[#allocation141_spill] sm:$0xff] %v18561_v17  ;;  %23049 = vst [vmem:[#allocation142_spill] sm:$0xff] %v18563_v33 }
 0x188   :  { %v18571_v44 = vpop.f32.mrf.mxu0  ;;  %v18573_v28 = vpop.f32.mrf.mxu1 }
 0x189   :  { %23050 = vst [vmem:[#allocation143_spill] sm:$0xff] %v18571_v44  ;;  %23051 = vst [vmem:[#allocation144_spill] sm:$0xff] %v18573_v28  ;;  %v16994_v28 = vld [vmem:[%s22906_s0 + $0x318] sm:$0xff]  }
 0x18a   :  { %v18575_v16 = vpop.f32.mrf.mxu0  ;;  %15831 = vmatmul.mubr.msk.bf16.gmra.mxu0 %vm4063_vm0, %v16990_v29  ;;  %v18578_v57 = vpop.f32.mrf.mxu1  ;;  %16407 = vmatmul.mubr.msk.bf16.gmra.mxu1 %vm4063_vm0, %v16991_v32  ;;  %v16995_v29 = vld [vmem:[%s22906_s0 + $0xc18] sm:$0xff]   ;;  %v16996_v32 = vld [vmem:[%s22906_s0 + $0x320] sm:$0xff]  }
 0x18b   :  { %23052 = vst [vmem:[#allocation145_spill] sm:$0xff] %v18575_v16  ;;  %23053 = vst [vmem:[#allocation146_spill] sm:$0xff] %v18578_v57  ;;  %15834 = vmatprep.mubr.msk.bf16.mxu0 %vm4063_vm0, %v16992_v45  ;;  %16410 = vmatprep.mubr.msk.bf16.mxu1 %vm4063_vm0, %v16993_v56  ;;  %v16997_v45 = vld [vmem:[%s22906_s0 + $0xc20] sm:$0xff]  }
 0x18c   :  { %v18583_v33 = vpop.f32.mrf.mxu0  ;;  %v18585_v17 = vpop.f32.mrf.mxu1 }
 0x18d   :  { %23054 = vst [vmem:[#allocation147_spill] sm:$0xff] %v18583_v33  ;;  %23055 = vst [vmem:[#allocation148_spill] sm:$0xff] %v18585_v17 }
 0x18e   :  { %v18593_v16 = vpop.f32.mrf.mxu0  ;;  %v18595_v57 = vpop.f32.mrf.mxu1 }
 0x18f   :  { %23056 = vst [vmem:[#allocation149_spill] sm:$0xff] %v18593_v16  ;;  %23057 = vst [vmem:[#allocation150_spill] sm:$0xff] %v18595_v57 }
 0x190   :  { %v18603_v56 = vpop.f32.mrf.mxu0  ;;  %v18605_v17 = vpop.f32.mrf.mxu1 }
 0x191   :  { %23058 = vst [vmem:[#allocation151_spill] sm:$0xff] %v18603_v56  ;;  %23059 = vst [vmem:[#allocation152_spill] sm:$0xff] %v18605_v17  ;;  %v16998_v17 = vld [vmem:[%s22906_s0 + $0x328] sm:$0xff]  }
 0x192   :  { %v18607_v33 = vpop.f32.mrf.mxu0  ;;  %15835 = vmatmul.mubr.msk.bf16.gmra.mxu0 %vm4063_vm0, %v16994_v28  ;;  %v18610_v44 = vpop.f32.mrf.mxu1  ;;  %16411 = vmatmul.mubr.msk.bf16.gmra.mxu1 %vm4063_vm0, %v16995_v29  ;;  %v16999_v28 = vld [vmem:[%s22906_s0 + $0xc28] sm:$0xff]   ;;  %v17000_v29 = vld [vmem:[%s22906_s0 + $0x330] sm:$0xff]  }
 0x193   :  { %23060 = vst [vmem:[#allocation153_spill] sm:$0xff] %v18607_v33  ;;  %23061 = vst [vmem:[#allocation154_spill] sm:$0xff] %v18610_v44  ;;  %15838 = vmatprep.mubr.msk.bf16.mxu0 %vm4063_vm0, %v16996_v32  ;;  %16414 = vmatprep.mubr.msk.bf16.mxu1 %vm4063_vm0, %v16997_v45  ;;  %v17001_v32 = vld [vmem:[%s22906_s0 + $0xc30] sm:$0xff]  }
 0x194   :  { %v18615_v57 = vpop.f32.mrf.mxu0  ;;  %v18617_v16 = vpop.f32.mrf.mxu1 }
 0x195   :  { %23062 = vst [vmem:[#allocation155_spill] sm:$0xff] %v18615_v57  ;;  %23063 = vst [vmem:[#allocation156_spill] sm:$0xff] %v18617_v16 }
 0x196   :  { %v18625_v33 = vpop.f32.mrf.mxu0  ;;  %v18627_v44 = vpop.f32.mrf.mxu1 }
 0x197   :  { %23064 = vst [vmem:[#allocation157_spill] sm:$0xff] %v18625_v33  ;;  %23065 = vst [vmem:[#allocation158_spill] sm:$0xff] %v18627_v44 }
 0x198   :  { %v18635_v45 = vpop.f32.mrf.mxu0  ;;  %v18637_v16 = vpop.f32.mrf.mxu1 }
 0x199   :  { %23066 = vst [vmem:[#allocation159_spill] sm:$0xff] %v18635_v45  ;;  %23067 = vst [vmem:[#allocation160_spill] sm:$0xff] %v18637_v16  ;;  %v17002_v16 = vld [vmem:[%s22906_s0 + $0x338] sm:$0xff]  }
 0x19a   :  { %v18639_v57 = vpop.f32.mrf.mxu0  ;;  %15839 = vmatmul.mubr.msk.bf16.gmra.mxu0 %vm4063_vm0, %v16998_v17  ;;  %v18642_v56 = vpop.f32.mrf.mxu1  ;;  %16415 = vmatmul.mubr.msk.bf16.gmra.mxu1 %vm4063_vm0, %v16999_v28  ;;  %v17003_v17 = vld [vmem:[%s22906_s0 + $0xc38] sm:$0xff]   ;;  %v17004_v28 = vld [vmem:[%s22906_s0 + $0x340] sm:$0xff]  }
 0x19b   :  { %23068 = vst [vmem:[#allocation161_spill] sm:$0xff] %v18639_v57  ;;  %23069 = vst [vmem:[#allocation162_spill] sm:$0xff] %v18642_v56  ;;  %15842 = vmatprep.mubr.msk.bf16.mxu0 %vm4063_vm0, %v17000_v29  ;;  %16418 = vmatprep.mubr.msk.bf16.mxu1 %vm4063_vm0, %v17001_v32  ;;  %v17005_v29 = vld [vmem:[%s22906_s0 + $0xc40] sm:$0xff]  }
 0x19c   :  { %v18647_v44 = vpop.f32.mrf.mxu0  ;;  %v18649_v33 = vpop.f32.mrf.mxu1 }
 0x19d   :  { %23070 = vst [vmem:[#allocation163_spill] sm:$0xff] %v18647_v44  ;;  %23071 = vst [vmem:[#allocation164_spill] sm:$0xff] %v18649_v33 }
 0x19e   :  { %v18657_v57 = vpop.f32.mrf.mxu0  ;;  %v18659_v56 = vpop.f32.mrf.mxu1 }
 0x19f   :  { %23072 = vst [vmem:[#allocation165_spill] sm:$0xff] %v18657_v57  ;;  %23073 = vst [vmem:[#allocation166_spill] sm:$0xff] %v18659_v56 }
 0x1a0   :  { %v18667_v32 = vpop.f32.mrf.mxu0  ;;  %v18669_v33 = vpop.f32.mrf.mxu1 }
 0x1a1   :  { %23074 = vst [vmem:[#allocation167_spill] sm:$0xff] %v18667_v32  ;;  %23075 = vst [vmem:[#allocation168_spill] sm:$0xff] %v18669_v33  ;;  %v17006_v33 = vld [vmem:[%s22906_s0 + $0x348] sm:$0xff]  }
 0x1a2   :  { %v18671_v44 = vpop.f32.mrf.mxu0  ;;  %15843 = vmatmul.mubr.msk.bf16.gmra.mxu0 %vm4063_vm0, %v17002_v16  ;;  %v18674_v45 = vpop.f32.mrf.mxu1  ;;  %16419 = vmatmul.mubr.msk.bf16.gmra.mxu1 %vm4063_vm0, %v17003_v17  ;;  %v17007_v16 = vld [vmem:[%s22906_s0 + $0xc48] sm:$0xff]   ;;  %v17008_v17 = vld [vmem:[%s22906_s0 + $0x350] sm:$0xff]  }
 0x1a3   :  { %23076 = vst [vmem:[#allocation169_spill] sm:$0xff] %v18671_v44  ;;  %23077 = vst [vmem:[#allocation170_spill] sm:$0xff] %v18674_v45  ;;  %15846 = vmatprep.mubr.msk.bf16.mxu0 %vm4063_vm0, %v17004_v28  ;;  %16422 = vmatprep.mubr.msk.bf16.mxu1 %vm4063_vm0, %v17005_v29  ;;  %v17009_v28 = vld [vmem:[%s22906_s0 + $0xc50] sm:$0xff]  }
 0x1a4   :  { %v18679_v56 = vpop.f32.mrf.mxu0  ;;  %v18681_v57 = vpop.f32.mrf.mxu1 }
 0x1a5   :  { %23078 = vst [vmem:[#allocation171_spill] sm:$0xff] %v18679_v56  ;;  %23079 = vst [vmem:[#allocation172_spill] sm:$0xff] %v18681_v57 }
 0x1a6   :  { %v18689_v44 = vpop.f32.mrf.mxu0  ;;  %v18691_v45 = vpop.f32.mrf.mxu1 }
 0x1a7   :  { %23080 = vst [vmem:[#allocation173_spill] sm:$0xff] %v18689_v44  ;;  %23081 = vst [vmem:[#allocation174_spill] sm:$0xff] %v18691_v45 }
 0x1a8   :  { %v18699_v29 = vpop.f32.mrf.mxu0  ;;  %v18701_v57 = vpop.f32.mrf.mxu1 }
 0x1a9   :  { %23082 = vst [vmem:[#allocation175_spill] sm:$0xff] %v18699_v29  ;;  %23083 = vst [vmem:[#allocation176_spill] sm:$0xff] %v18701_v57  ;;  %v17010_v57 = vld [vmem:[%s22906_s0 + $0x358] sm:$0xff]  }
 0x1aa   :  { %v18703_v56 = vpop.f32.mrf.mxu0  ;;  %15847 = vmatmul.mubr.msk.bf16.gmra.mxu0 %vm4063_vm0, %v17006_v33  ;;  %v18706_v32 = vpop.f32.mrf.mxu1  ;;  %16423 = vmatmul.mubr.msk.bf16.gmra.mxu1 %vm4063_vm0, %v17007_v16  ;;  %v17011_v33 = vld [vmem:[%s22906_s0 + $0xc58] sm:$0xff]   ;;  %v17012_v16 = vld [vmem:[%s22906_s0 + $0x360] sm:$0xff]  }
 0x1ab   :  { %23084 = vst [vmem:[#allocation177_spill] sm:$0xff] %v18703_v56  ;;  %23085 = vst [vmem:[#allocation178_spill] sm:$0xff] %v18706_v32  ;;  %15850 = vmatprep.mubr.msk.bf16.mxu0 %vm4063_vm0, %v17008_v17  ;;  %16426 = vmatprep.mubr.msk.bf16.mxu1 %vm4063_vm0, %v17009_v28  ;;  %v17013_v17 = vld [vmem:[%s22906_s0 + $0xc60] sm:$0xff]  }
 0x1ac   :  { %v18711_v45 = vpop.f32.mrf.mxu0  ;;  %v18713_v44 = vpop.f32.mrf.mxu1 }
 0x1ad   :  { %23086 = vst [vmem:[#allocation179_spill] sm:$0xff] %v18711_v45  ;;  %23087 = vst [vmem:[#allocation180_spill] sm:$0xff] %v18713_v44 }
 0x1ae   :  { %v18721_v56 = vpop.f32.mrf.mxu0  ;;  %v18723_v32 = vpop.f32.mrf.mxu1 }
 0x1af   :  { %23088 = vst [vmem:[#allocation181_spill] sm:$0xff] %v18721_v56  ;;  %23089 = vst [vmem:[#allocation182_spill] sm:$0xff] %v18723_v32 }
 0x1b0   :  { %v18731_v28 = vpop.f32.mrf.mxu0  ;;  %v18733_v44 = vpop.f32.mrf.mxu1 }
 0x1b1   :  { %23090 = vst [vmem:[#allocation183_spill] sm:$0xff] %v18731_v28  ;;  %23091 = vst [vmem:[#allocation184_spill] sm:$0xff] %v18733_v44  ;;  %v17014_v44 = vld [vmem:[%s22906_s0 + $0x368] sm:$0xff]  }
 0x1b2   :  { %v18735_v45 = vpop.f32.mrf.mxu0  ;;  %15851 = vmatmul.mubr.msk.bf16.gmra.mxu0 %vm4063_vm0, %v17010_v57  ;;  %v18738_v29 = vpop.f32.mrf.mxu1  ;;  %16427 = vmatmul.mubr.msk.bf16.gmra.mxu1 %vm4063_vm0, %v17011_v33  ;;  %v17015_v57 = vld [vmem:[%s22906_s0 + $0xc68] sm:$0xff]   ;;  %v17016_v33 = vld [vmem:[%s22906_s0 + $0x370] sm:$0xff]  }
 0x1b3   :  { %23092 = vst [vmem:[#allocation185_spill] sm:$0xff] %v18735_v45  ;;  %23093 = vst [vmem:[#allocation186_spill] sm:$0xff] %v18738_v29  ;;  %15854 = vmatprep.mubr.msk.bf16.mxu0 %vm4063_vm0, %v17012_v16  ;;  %16430 = vmatprep.mubr.msk.bf16.mxu1 %vm4063_vm0, %v17013_v17  ;;  %v17017_v16 = vld [vmem:[%s22906_s0 + $0xc70] sm:$0xff]  }
 0x1b4   :  { %v18743_v32 = vpop.f32.mrf.mxu0  ;;  %v18745_v56 = vpop.f32.mrf.mxu1 }
 0x1b5   :  { %23094 = vst [vmem:[#allocation187_spill] sm:$0xff] %v18743_v32  ;;  %23095 = vst [vmem:[#allocation188_spill] sm:$0xff] %v18745_v56 }
 0x1b6   :  { %v18753_v45 = vpop.f32.mrf.mxu0  ;;  %v18755_v29 = vpop.f32.mrf.mxu1 }
 0x1b7   :  { %23096 = vst [vmem:[#allocation189_spill] sm:$0xff] %v18753_v45  ;;  %23097 = vst [vmem:[#allocation190_spill] sm:$0xff] %v18755_v29 }
 0x1b8   :  { %v18763_v17 = vpop.f32.mrf.mxu0  ;;  %v18765_v56 = vpop.f32.mrf.mxu1 }
 0x1b9   :  { %23098 = vst [vmem:[#allocation191_spill] sm:$0xff] %v18763_v17  ;;  %23099 = vst [vmem:[#allocation192_spill] sm:$0xff] %v18765_v56  ;;  %v17018_v56 = vld [vmem:[%s22906_s0 + $0x378] sm:$0xff]  }
 0x1ba   :  { %v18767_v32 = vpop.f32.mrf.mxu0  ;;  %15855 = vmatmul.mubr.msk.bf16.gmra.mxu0 %vm4063_vm0, %v17014_v44  ;;  %v18770_v28 = vpop.f32.mrf.mxu1  ;;  %16431 = vmatmul.mubr.msk.bf16.gmra.mxu1 %vm4063_vm0, %v17015_v57  ;;  %v17019_v44 = vld [vmem:[%s22906_s0 + $0xc78] sm:$0xff]   ;;  %v17020_v57 = vld [vmem:[%s22906_s0 + $0x380] sm:$0xff]  }
 0x1bb   :  { %23100 = vst [vmem:[#allocation193_spill] sm:$0xff] %v18767_v32  ;;  %23101 = vst [vmem:[#allocation194_spill] sm:$0xff] %v18770_v28  ;;  %15858 = vmatprep.mubr.msk.bf16.mxu0 %vm4063_vm0, %v17016_v33  ;;  %16434 = vmatprep.mubr.msk.bf16.mxu1 %vm4063_vm0, %v17017_v16  ;;  %v17021_v33 = vld [vmem:[%s22906_s0 + $0xc80] sm:$0xff]  }
 0x1bc   :  { %v18775_v29 = vpop.f32.mrf.mxu0  ;;  %v18777_v45 = vpop.f32.mrf.mxu1 }
 0x1bd   :  { %23102 = vst [vmem:[#allocation195_spill] sm:$0xff] %v18775_v29  ;;  %23103 = vst [vmem:[#allocation196_spill] sm:$0xff] %v18777_v45 }
 0x1be   :  { %v18785_v32 = vpop.f32.mrf.mxu0  ;;  %v18787_v28 = vpop.f32.mrf.mxu1 }
 0x1bf   :  { %23104 = vst [vmem:[#allocation197_spill] sm:$0xff] %v18785_v32  ;;  %23105 = vst [vmem:[#allocation198_spill] sm:$0xff] %v18787_v28 }
 0x1c0   :  { %v18795_v16 = vpop.f32.mrf.mxu0  ;;  %v18797_v45 = vpop.f32.mrf.mxu1 }
 0x1c1   :  { %23106 = vst [vmem:[#allocation199_spill] sm:$0xff] %v18795_v16  ;;  %23107 = vst [vmem:[#allocation200_spill] sm:$0xff] %v18797_v45  ;;  %v17022_v45 = vld [vmem:[%s22906_s0 + $0x388] sm:$0xff]  }
 0x1c2   :  { %v18799_v29 = vpop.f32.mrf.mxu0  ;;  %15859 = vmatmul.mubr.msk.bf16.gmra.mxu0 %vm4063_vm0, %v17018_v56  ;;  %v18802_v17 = vpop.f32.mrf.mxu1  ;;  %16435 = vmatmul.mubr.msk.bf16.gmra.mxu1 %vm4063_vm0, %v17019_v44  ;;  %v17023_v56 = vld [vmem:[%s22906_s0 + $0xc88] sm:$0xff]   ;;  %v17024_v44 = vld [vmem:[%s22906_s0 + $0x390] sm:$0xff]  }
 0x1c3   :  { %23108 = vst [vmem:[#allocation201_spill] sm:$0xff] %v18799_v29  ;;  %23109 = vst [vmem:[#allocation202_spill] sm:$0xff] %v18802_v17  ;;  %15862 = vmatprep.mubr.msk.bf16.mxu0 %vm4063_vm0, %v17020_v57  ;;  %16438 = vmatprep.mubr.msk.bf16.mxu1 %vm4063_vm0, %v17021_v33  ;;  %v17025_v57 = vld [vmem:[%s22906_s0 + $0xc90] sm:$0xff]  }
 0x1c4   :  { %v18807_v28 = vpop.f32.mrf.mxu0  ;;  %v18809_v32 = vpop.f32.mrf.mxu1 }
 0x1c5   :  { %23110 = vst [vmem:[#allocation203_spill] sm:$0xff] %v18807_v28  ;;  %23111 = vst [vmem:[#allocation204_spill] sm:$0xff] %v18809_v32 }
 0x1c6   :  { %v18817_v29 = vpop.f32.mrf.mxu0  ;;  %v18819_v17 = vpop.f32.mrf.mxu1 }
 0x1c7   :  { %23112 = vst [vmem:[#allocation205_spill] sm:$0xff] %v18817_v29  ;;  %23113 = vst [vmem:[#allocation206_spill] sm:$0xff] %v18819_v17 }
 0x1c8   :  { %v18827_v33 = vpop.f32.mrf.mxu0  ;;  %v18829_v32 = vpop.f32.mrf.mxu1 }
 0x1c9   :  { %23114 = vst [vmem:[#allocation207_spill] sm:$0xff] %v18827_v33  ;;  %23115 = vst [vmem:[#allocation208_spill] sm:$0xff] %v18829_v32  ;;  %v17026_v32 = vld [vmem:[%s22906_s0 + $0x398] sm:$0xff]  }
 0x1ca   :  { %v18831_v28 = vpop.f32.mrf.mxu0  ;;  %15863 = vmatmul.mubr.msk.bf16.gmra.mxu0 %vm4063_vm0, %v17022_v45  ;;  %v18834_v16 = vpop.f32.mrf.mxu1  ;;  %16439 = vmatmul.mubr.msk.bf16.gmra.mxu1 %vm4063_vm0, %v17023_v56  ;;  %v17027_v45 = vld [vmem:[%s22906_s0 + $0xc98] sm:$0xff]   ;;  %v17028_v56 = vld [vmem:[%s22906_s0 + $0x3a0] sm:$0xff]  }
 0x1cb   :  { %23116 = vst [vmem:[#allocation209_spill] sm:$0xff] %v18831_v28  ;;  %23117 = vst [vmem:[#allocation210_spill] sm:$0xff] %v18834_v16  ;;  %15866 = vmatprep.mubr.msk.bf16.mxu0 %vm4063_vm0, %v17024_v44  ;;  %16442 = vmatprep.mubr.msk.bf16.mxu1 %vm4063_vm0, %v17025_v57  ;;  %v17029_v44 = vld [vmem:[%s22906_s0 + $0xca0] sm:$0xff]  }
 0x1cc   :  { %v18839_v17 = vpop.f32.mrf.mxu0  ;;  %v18841_v29 = vpop.f32.mrf.mxu1 }
 0x1cd   :  { %23118 = vst [vmem:[#allocation211_spill] sm:$0xff] %v18839_v17  ;;  %23119 = vst [vmem:[#allocation212_spill] sm:$0xff] %v18841_v29 }
 0x1ce   :  { %v18849_v28 = vpop.f32.mrf.mxu0  ;;  %v18851_v16 = vpop.f32.mrf.mxu1 }
 0x1cf   :  { %23120 = vst [vmem:[#allocation213_spill] sm:$0xff] %v18849_v28  ;;  %23121 = vst [vmem:[#allocation214_spill] sm:$0xff] %v18851_v16 }
 0x1d0   :  { %v18859_v57 = vpop.f32.mrf.mxu0  ;;  %v18861_v29 = vpop.f32.mrf.mxu1 }
 0x1d1   :  { %23122 = vst [vmem:[#allocation215_spill] sm:$0xff] %v18859_v57  ;;  %23123 = vst [vmem:[#allocation216_spill] sm:$0xff] %v18861_v29  ;;  %v17030_v29 = vld [vmem:[%s22906_s0 + $0x3a8] sm:$0xff]  }
 0x1d2   :  { %v18863_v17 = vpop.f32.mrf.mxu0  ;;  %15867 = vmatmul.mubr.msk.bf16.gmra.mxu0 %vm4063_vm0, %v17026_v32  ;;  %v18866_v33 = vpop.f32.mrf.mxu1  ;;  %16443 = vmatmul.mubr.msk.bf16.gmra.mxu1 %vm4063_vm0, %v17027_v45  ;;  %v17031_v32 = vld [vmem:[%s22906_s0 + $0xca8] sm:$0xff]   ;;  %v17032_v45 = vld [vmem:[%s22906_s0 + $0x3b0] sm:$0xff]  }
 0x1d3   :  { %23124 = vst [vmem:[#allocation217_spill] sm:$0xff] %v18863_v17  ;;  %23125 = vst [vmem:[#allocation218_spill] sm:$0xff] %v18866_v33  ;;  %15870 = vmatprep.mubr.msk.bf16.mxu0 %vm4063_vm0, %v17028_v56  ;;  %16446 = vmatprep.mubr.msk.bf16.mxu1 %vm4063_vm0, %v17029_v44  ;;  %v17033_v56 = vld [vmem:[%s22906_s0 + $0xcb0] sm:$0xff]  }
 0x1d4   :  { %v18871_v16 = vpop.f32.mrf.mxu0  ;;  %v18873_v28 = vpop.f32.mrf.mxu1 }
 0x1d5   :  { %23126 = vst [vmem:[#allocation219_spill] sm:$0xff] %v18871_v16  ;;  %23127 = vst [vmem:[#allocation220_spill] sm:$0xff] %v18873_v28 }
 0x1d6   :  { %v18881_v17 = vpop.f32.mrf.mxu0  ;;  %v18883_v33 = vpop.f32.mrf.mxu1 }
 0x1d7   :  { %23128 = vst [vmem:[#allocation221_spill] sm:$0xff] %v18881_v17  ;;  %23129 = vst [vmem:[#allocation222_spill] sm:$0xff] %v18883_v33 }
 0x1d8   :  { %v18891_v44 = vpop.f32.mrf.mxu0  ;;  %v18893_v28 = vpop.f32.mrf.mxu1 }
 0x1d9   :  { %23130 = vst [vmem:[#allocation223_spill] sm:$0xff] %v18891_v44  ;;  %23131 = vst [vmem:[#allocation224_spill] sm:$0xff] %v18893_v28  ;;  %v17034_v28 = vld [vmem:[%s22906_s0 + $0x3b8] sm:$0xff]  }
 0x1da   :  { %v18895_v16 = vpop.f32.mrf.mxu0  ;;  %15871 = vmatmul.mubr.msk.bf16.gmra.mxu0 %vm4063_vm0, %v17030_v29  ;;  %v18898_v57 = vpop.f32.mrf.mxu1  ;;  %16447 = vmatmul.mubr.msk.bf16.gmra.mxu1 %vm4063_vm0, %v17031_v32  ;;  %v17035_v29 = vld [vmem:[%s22906_s0 + $0xcb8] sm:$0xff]   ;;  %v17036_v32 = vld [vmem:[%s22906_s0 + $0x3c0] sm:$0xff]  }
 0x1db   :  { %23132 = vst [vmem:[#allocation225_spill] sm:$0xff] %v18895_v16  ;;  %23133 = vst [vmem:[#allocation226_spill] sm:$0xff] %v18898_v57  ;;  %15874 = vmatprep.mubr.msk.bf16.mxu0 %vm4063_vm0, %v17032_v45  ;;  %16450 = vmatprep.mubr.msk.bf16.mxu1 %vm4063_vm0, %v17033_v56  ;;  %v17037_v45 = vld [vmem:[%s22906_s0 + $0xcc0] sm:$0xff]  }
 0x1dc   :  { %v18903_v33 = vpop.f32.mrf.mxu0  ;;  %v18905_v17 = vpop.f32.mrf.mxu1 }
 0x1dd   :  { %23134 = vst [vmem:[#allocation227_spill] sm:$0xff] %v18903_v33  ;;  %23135 = vst [vmem:[#allocation228_spill] sm:$0xff] %v18905_v17 }
 0x1de   :  { %v18913_v16 = vpop.f32.mrf.mxu0  ;;  %v18915_v57 = vpop.f32.mrf.mxu1 }
 0x1df   :  { %23136 = vst [vmem:[#allocation229_spill] sm:$0xff] %v18913_v16  ;;  %23137 = vst [vmem:[#allocation230_spill] sm:$0xff] %v18915_v57 }
 0x1e0   :  { %v18923_v56 = vpop.f32.mrf.mxu0  ;;  %v18925_v17 = vpop.f32.mrf.mxu1 }
 0x1e1   :  { %23138 = vst [vmem:[#allocation231_spill] sm:$0xff] %v18923_v56  ;;  %23139 = vst [vmem:[#allocation232_spill] sm:$0xff] %v18925_v17  ;;  %v17038_v17 = vld [vmem:[%s22906_s0 + $0x3c8] sm:$0xff]  }
 0x1e2   :  { %v18927_v33 = vpop.f32.mrf.mxu0  ;;  %15875 = vmatmul.mubr.msk.bf16.gmra.mxu0 %vm4063_vm0, %v17034_v28  ;;  %v18930_v44 = vpop.f32.mrf.mxu1  ;;  %16451 = vmatmul.mubr.msk.bf16.gmra.mxu1 %vm4063_vm0, %v17035_v29  ;;  %v17039_v28 = vld [vmem:[%s22906_s0 + $0xcc8] sm:$0xff]   ;;  %v17040_v29 = vld [vmem:[%s22906_s0 + $0x3d0] sm:$0xff]  }
 0x1e3   :  { %23140 = vst [vmem:[#allocation233_spill] sm:$0xff] %v18927_v33  ;;  %23141 = vst [vmem:[#allocation234_spill] sm:$0xff] %v18930_v44  ;;  %15878 = vmatprep.mubr.msk.bf16.mxu0 %vm4063_vm0, %v17036_v32  ;;  %16454 = vmatprep.mubr.msk.bf16.mxu1 %vm4063_vm0, %v17037_v45  ;;  %v17041_v32 = vld [vmem:[%s22906_s0 + $0xcd0] sm:$0xff]  }
 0x1e4   :  { %v18935_v57 = vpop.f32.mrf.mxu0  ;;  %v18937_v16 = vpop.f32.mrf.mxu1 }
 0x1e5   :  { %23142 = vst [vmem:[#allocation235_spill] sm:$0xff] %v18935_v57  ;;  %23143 = vst [vmem:[#allocation236_spill] sm:$0xff] %v18937_v16 }
 0x1e6   :  { %v18945_v33 = vpop.f32.mrf.mxu0  ;;  %v18947_v44 = vpop.f32.mrf.mxu1 }
 0x1e7   :  { %23144 = vst [vmem:[#allocation237_spill] sm:$0xff] %v18945_v33  ;;  %23145 = vst [vmem:[#allocation238_spill] sm:$0xff] %v18947_v44 }
 0x1e8   :  { %v18955_v45 = vpop.f32.mrf.mxu0  ;;  %v18957_v16 = vpop.f32.mrf.mxu1 }
 0x1e9   :  { %23146 = vst [vmem:[#allocation239_spill] sm:$0xff] %v18955_v45  ;;  %23147 = vst [vmem:[#allocation240_spill] sm:$0xff] %v18957_v16 }
 0x1ea   :  { %v18959_v57 = vpop.f32.mrf.mxu0  ;;  %15879 = vmatmul.mubr.msk.bf16.gmra.mxu0 %vm4063_vm0, %v17038_v17  ;;  %v18962_v56 = vpop.f32.mrf.mxu1  ;;  %16455 = vmatmul.mubr.msk.bf16.gmra.mxu1 %vm4063_vm0, %v17039_v28  ;;  %v17042_v17 = vld [vmem:[%s22906_s0 + $0x3d8] sm:$0xff]  }
 0x1eb   :  { %23148 = vst [vmem:[#allocation241_spill] sm:$0xff] %v18959_v57  ;;  %23149 = vst [vmem:[#allocation242_spill] sm:$0xff] %v18962_v56  ;;  %15882 = vmatprep.mubr.msk.bf16.mxu0 %vm4063_vm0, %v17040_v29  ;;  %16458 = vmatprep.mubr.msk.bf16.mxu1 %vm4063_vm0, %v17041_v32  ;;  %v17043_v28 = vld [vmem:[%s22906_s0 + $0xcd8] sm:$0xff]   ;;  %v17044_v29 = vld [vmem:[%s22906_s0 + $0x3e0] sm:$0xff]  }
 0x1ec   :  { %v18967_v44 = vpop.f32.mrf.mxu0  ;;  %v18969_v33 = vpop.f32.mrf.mxu1  ;;  %v17045_v32 = vld [vmem:[%s22906_s0 + $0xce0] sm:$0xff]  }
 0x1ed   :  { %23150 = vst [vmem:[#allocation243_spill] sm:$0xff] %v18967_v44  ;;  %23151 = vst [vmem:[#allocation244_spill] sm:$0xff] %v18969_v33 }
 0x1ee   :  { %v18971_v21 = vpop.f32.mrf.mxu0  ;;  %v18973_v45 = vpop.f32.mrf.mxu1 }
 0x1ef   :  { %23152 = vst [vmem:[#allocation245_spill] sm:$0xff] %v18971_v21  ;;  %23153 = vst [vmem:[#allocation246_spill] sm:$0xff] %v18973_v45 }
 0x1f0   :  { %v18987_v33 = vpop.f32.mrf.mxu0  ;;  %v18989_v21 = vpop.f32.mrf.mxu1 }
 0x1f1   :  { %23154 = vst [vmem:[#allocation247_spill] sm:$0xff] %v18987_v33  ;;  %23155 = vst [vmem:[#allocation248_spill] sm:$0xff] %v18989_v21 }
 0x1f2   :  { %v18991_v45 = vpop.f32.mrf.mxu0  ;;  %15883 = vmatmul.mubr.msk.bf16.gmra.mxu0 %vm4063_vm0, %v17042_v17  ;;  %v18994_v44 = vpop.f32.mrf.mxu1  ;;  %16459 = vmatmul.mubr.msk.bf16.gmra.mxu1 %vm4063_vm0, %v17043_v28  ;;  %v17046_v17 = vld [vmem:[%s22906_s0 + $0x3e8] sm:$0xff]  }
 0x1f3   :  { %23156 = vst [vmem:[#allocation249_spill] sm:$0xff] %v18991_v45  ;;  %23157 = vst [vmem:[#allocation250_spill] sm:$0xff] %v18994_v44  ;;  %15886 = vmatprep.mubr.msk.bf16.mxu0 %vm4063_vm0, %v17044_v29  ;;  %16462 = vmatprep.mubr.msk.bf16.mxu1 %vm4063_vm0, %v17045_v32  ;;  %v17047_v28 = vld [vmem:[%s22906_s0 + $0xce8] sm:$0xff]   ;;  %v17048_v29 = vld [vmem:[%s22906_s0 + $0x3f0] sm:$0xff]  }
 0x1f4   :  { %v18999_v56 = vpop.f32.mrf.mxu0  ;;  %v19001_v57 = vpop.f32.mrf.mxu1  ;;  %v17049_v32 = vld [vmem:[%s22906_s0 + $0xcf0] sm:$0xff]  }
 0x1f5   :  { %23158 = vst [vmem:[#allocation251_spill] sm:$0xff] %v18999_v56  ;;  %23159 = vst [vmem:[#allocation252_spill] sm:$0xff] %v19001_v57 }
 0x1f6   :  { %v19003_v16 = vpop.f32.mrf.mxu0  ;;  %v19005_v33 = vpop.f32.mrf.mxu1 }
 0x1f7   :  { %23160 = vst [vmem:[#allocation253_spill] sm:$0xff] %v19003_v16  ;;  %23161 = vst [vmem:[#allocation254_spill] sm:$0xff] %v19005_v33 }
 0x1f8   :  { %v19019_v57 = vpop.f32.mrf.mxu0  ;;  %v19021_v16 = vpop.f32.mrf.mxu1 }
 0x1f9   :  { %23162 = vst [vmem:[#allocation255_spill] sm:$0xff] %v19019_v57  ;;  %23163 = vst [vmem:[#allocation256_spill] sm:$0xff] %v19021_v16 }
 0x1fa   :  { %v19023_v33 = vpop.f32.mrf.mxu0  ;;  %15887 = vmatmul.mubr.msk.bf16.gmra.mxu0 %vm4063_vm0, %v17046_v17  ;;  %v19026_v56 = vpop.f32.mrf.mxu1  ;;  %16463 = vmatmul.mubr.msk.bf16.gmra.mxu1 %vm4063_vm0, %v17047_v28  ;;  %v17050_v17 = vld [vmem:[%s22906_s0 + $0x3f8] sm:$0xff]  }
 0x1fb   :  { %23164 = vst [vmem:[#allocation257_spill] sm:$0xff] %v19023_v33  ;;  %23165 = vst [vmem:[#allocation258_spill] sm:$0xff] %v19026_v56  ;;  %15890 = vmatprep.mubr.msk.bf16.mxu0 %vm4063_vm0, %v17048_v29  ;;  %16466 = vmatprep.mubr.msk.bf16.mxu1 %vm4063_vm0, %v17049_v32  ;;  %v17051_v28 = vld [vmem:[%s22906_s0 + $0xcf8] sm:$0xff]   ;;  %v17052_v29 = vld [vmem:[%s22906_s0 + $0x400] sm:$0xff]  }
 0x1fc   :  { %v19031_v44 = vpop.f32.mrf.mxu0  ;;  %v19033_v45 = vpop.f32.mrf.mxu1  ;;  %v17053_v32 = vld [vmem:[%s22906_s0 + $0xd00] sm:$0xff]  }
 0x1fd   :  { %23166 = vst [vmem:[#allocation259_spill] sm:$0xff] %v19031_v44  ;;  %23167 = vst [vmem:[#allocation260_spill] sm:$0xff] %v19033_v45 }
 0x1fe   :  { %v19035_v21 = vpop.f32.mrf.mxu0  ;;  %v19037_v57 = vpop.f32.mrf.mxu1 }
 0x1ff   :  { %23168 = vst [vmem:[#allocation261_spill] sm:$0xff] %v19035_v21  ;;  %23169 = vst [vmem:[#allocation262_spill] sm:$0xff] %v19037_v57 }
 0x200   :  { %v19051_v45 = vpop.f32.mrf.mxu0  ;;  %v19053_v21 = vpop.f32.mrf.mxu1 }
 0x201   :  { %23170 = vst [vmem:[#allocation263_spill] sm:$0xff] %v19051_v45  ;;  %23171 = vst [vmem:[#allocation264_spill] sm:$0xff] %v19053_v21 }
 0x202   :  { %v19055_v57 = vpop.f32.mrf.mxu0  ;;  %15891 = vmatmul.mubr.msk.bf16.gmra.mxu0 %vm4063_vm0, %v17050_v17  ;;  %v19058_v44 = vpop.f32.mrf.mxu1  ;;  %16467 = vmatmul.mubr.msk.bf16.gmra.mxu1 %vm4063_vm0, %v17051_v28  ;;  %v17054_v17 = vld [vmem:[%s22906_s0 + $0x408] sm:$0xff]  }
 0x203   :  { %23172 = vst [vmem:[#allocation265_spill] sm:$0xff] %v19055_v57  ;;  %23173 = vst [vmem:[#allocation266_spill] sm:$0xff] %v19058_v44  ;;  %15894 = vmatprep.mubr.msk.bf16.mxu0 %vm4063_vm0, %v17052_v29  ;;  %16470 = vmatprep.mubr.msk.bf16.mxu1 %vm4063_vm0, %v17053_v32  ;;  %v17055_v28 = vld [vmem:[%s22906_s0 + $0xd08] sm:$0xff]   ;;  %v17056_v29 = vld [vmem:[%s22906_s0 + $0x410] sm:$0xff]  }
 0x204   :  { %v19063_v56 = vpop.f32.mrf.mxu0  ;;  %v19065_v33 = vpop.f32.mrf.mxu1  ;;  %v17057_v32 = vld [vmem:[%s22906_s0 + $0xd10] sm:$0xff]  }
 0x205   :  { %23174 = vst [vmem:[#allocation267_spill] sm:$0xff] %v19063_v56  ;;  %23175 = vst [vmem:[#allocation268_spill] sm:$0xff] %v19065_v33 }
 0x206   :  { %v19067_v16 = vpop.f32.mrf.mxu0  ;;  %v19069_v45 = vpop.f32.mrf.mxu1 }
 0x207   :  { %23176 = vst [vmem:[#allocation269_spill] sm:$0xff] %v19067_v16  ;;  %23177 = vst [vmem:[#allocation270_spill] sm:$0xff] %v19069_v45 }
 0x208   :  { %v19083_v33 = vpop.f32.mrf.mxu0  ;;  %v19085_v16 = vpop.f32.mrf.mxu1 }
 0x209   :  { %23178 = vst [vmem:[#allocation271_spill] sm:$0xff] %v19083_v33  ;;  %23179 = vst [vmem:[#allocation272_spill] sm:$0xff] %v19085_v16 }
 0x20a   :  { %v19087_v45 = vpop.f32.mrf.mxu0  ;;  %15895 = vmatmul.mubr.msk.bf16.gmra.mxu0 %vm4063_vm0, %v17054_v17  ;;  %v19090_v56 = vpop.f32.mrf.mxu1  ;;  %16471 = vmatmul.mubr.msk.bf16.gmra.mxu1 %vm4063_vm0, %v17055_v28  ;;  %v17058_v17 = vld [vmem:[%s22906_s0 + $0x418] sm:$0xff]  }
 0x20b   :  { %23180 = vst [vmem:[#allocation273_spill] sm:$0xff] %v19087_v45  ;;  %23181 = vst [vmem:[#allocation274_spill] sm:$0xff] %v19090_v56  ;;  %15898 = vmatprep.mubr.msk.bf16.mxu0 %vm4063_vm0, %v17056_v29  ;;  %16474 = vmatprep.mubr.msk.bf16.mxu1 %vm4063_vm0, %v17057_v32  ;;  %v17059_v28 = vld [vmem:[%s22906_s0 + $0xd18] sm:$0xff]   ;;  %v17060_v29 = vld [vmem:[%s22906_s0 + $0x420] sm:$0xff]  }
 0x20c   :  { %v19095_v44 = vpop.f32.mrf.mxu0  ;;  %v19097_v57 = vpop.f32.mrf.mxu1  ;;  %v17061_v32 = vld [vmem:[%s22906_s0 + $0xd20] sm:$0xff]  }
 0x20d   :  { %23182 = vst [vmem:[#allocation275_spill] sm:$0xff] %v19095_v44  ;;  %23183 = vst [vmem:[#allocation276_spill] sm:$0xff] %v19097_v57 }
 0x20e   :  { %v19099_v21 = vpop.f32.mrf.mxu0  ;;  %v19101_v33 = vpop.f32.mrf.mxu1 }
 0x20f   :  { %23184 = vst [vmem:[#allocation277_spill] sm:$0xff] %v19099_v21  ;;  %23185 = vst [vmem:[#allocation278_spill] sm:$0xff] %v19101_v33 }
 0x210   :  { %v19115_v57 = vpop.f32.mrf.mxu0  ;;  %v19117_v21 = vpop.f32.mrf.mxu1 }
 0x211   :  { %23186 = vst [vmem:[#allocation279_spill] sm:$0xff] %v19115_v57  ;;  %23187 = vst [vmem:[#allocation280_spill] sm:$0xff] %v19117_v21 }
 0x212   :  { %v19119_v33 = vpop.f32.mrf.mxu0  ;;  %15899 = vmatmul.mubr.msk.bf16.gmra.mxu0 %vm4063_vm0, %v17058_v17  ;;  %v19122_v44 = vpop.f32.mrf.mxu1  ;;  %16475 = vmatmul.mubr.msk.bf16.gmra.mxu1 %vm4063_vm0, %v17059_v28  ;;  %v17062_v17 = vld [vmem:[%s22906_s0 + $0x428] sm:$0xff]  }
 0x213   :  { %23188 = vst [vmem:[#allocation281_spill] sm:$0xff] %v19119_v33  ;;  %23189 = vst [vmem:[#allocation282_spill] sm:$0xff] %v19122_v44  ;;  %15902 = vmatprep.mubr.msk.bf16.mxu0 %vm4063_vm0, %v17060_v29  ;;  %16478 = vmatprep.mubr.msk.bf16.mxu1 %vm4063_vm0, %v17061_v32  ;;  %v17063_v28 = vld [vmem:[%s22906_s0 + $0xd28] sm:$0xff]   ;;  %v17064_v29 = vld [vmem:[%s22906_s0 + $0x430] sm:$0xff]  }
 0x214   :  { %v19127_v56 = vpop.f32.mrf.mxu0  ;;  %v19129_v45 = vpop.f32.mrf.mxu1  ;;  %v17065_v32 = vld [vmem:[%s22906_s0 + $0xd30] sm:$0xff]  }
 0x215   :  { %23190 = vst [vmem:[#allocation283_spill] sm:$0xff] %v19127_v56  ;;  %23191 = vst [vmem:[#allocation284_spill] sm:$0xff] %v19129_v45 }
 0x216   :  { %v19131_v16 = vpop.f32.mrf.mxu0  ;;  %v19133_v57 = vpop.f32.mrf.mxu1 }
 0x217   :  { %23192 = vst [vmem:[#allocation285_spill] sm:$0xff] %v19131_v16  ;;  %23193 = vst [vmem:[#allocation286_spill] sm:$0xff] %v19133_v57 }
 0x218   :  { %v19147_v45 = vpop.f32.mrf.mxu0  ;;  %v19149_v16 = vpop.f32.mrf.mxu1 }
 0x219   :  { %23194 = vst [vmem:[#allocation287_spill] sm:$0xff] %v19147_v45  ;;  %23195 = vst [vmem:[#allocation288_spill] sm:$0xff] %v19149_v16 }
 0x21a   :  { %v19151_v57 = vpop.f32.mrf.mxu0  ;;  %15903 = vmatmul.mubr.msk.bf16.gmra.mxu0 %vm4063_vm0, %v17062_v17  ;;  %v19154_v56 = vpop.f32.mrf.mxu1  ;;  %16479 = vmatmul.mubr.msk.bf16.gmra.mxu1 %vm4063_vm0, %v17063_v28  ;;  %v17066_v17 = vld [vmem:[%s22906_s0 + $0x438] sm:$0xff]  }
 0x21b   :  { %23196 = vst [vmem:[#allocation289_spill] sm:$0xff] %v19151_v57  ;;  %23197 = vst [vmem:[#allocation290_spill] sm:$0xff] %v19154_v56  ;;  %15906 = vmatprep.mubr.msk.bf16.mxu0 %vm4063_vm0, %v17064_v29  ;;  %16482 = vmatprep.mubr.msk.bf16.mxu1 %vm4063_vm0, %v17065_v32  ;;  %v17067_v28 = vld [vmem:[%s22906_s0 + $0xd38] sm:$0xff]   ;;  %v17068_v29 = vld [vmem:[%s22906_s0 + $0x440] sm:$0xff]  }
 0x21c   :  { %v19159_v44 = vpop.f32.mrf.mxu0  ;;  %v19161_v33 = vpop.f32.mrf.mxu1  ;;  %v17069_v32 = vld [vmem:[%s22906_s0 + $0xd40] sm:$0xff]  }
 0x21d   :  { %23198 = vst [vmem:[#allocation291_spill] sm:$0xff] %v19159_v44  ;;  %23199 = vst [vmem:[#allocation292_spill] sm:$0xff] %v19161_v33 }
 0x21e   :  { %v19163_v21 = vpop.f32.mrf.mxu0  ;;  %v19165_v45 = vpop.f32.mrf.mxu1 }
 0x21f   :  { %23200 = vst [vmem:[#allocation293_spill] sm:$0xff] %v19163_v21  ;;  %23201 = vst [vmem:[#allocation294_spill] sm:$0xff] %v19165_v45 }
 0x220   :  { %v19179_v33 = vpop.f32.mrf.mxu0  ;;  %v19181_v21 = vpop.f32.mrf.mxu1 }
 0x221   :  { %23202 = vst [vmem:[#allocation295_spill] sm:$0xff] %v19179_v33  ;;  %23203 = vst [vmem:[#allocation296_spill] sm:$0xff] %v19181_v21 }
 0x222   :  { %v19183_v45 = vpop.f32.mrf.mxu0  ;;  %15907 = vmatmul.mubr.msk.bf16.gmra.mxu0 %vm4063_vm0, %v17066_v17  ;;  %v19186_v44 = vpop.f32.mrf.mxu1  ;;  %16483 = vmatmul.mubr.msk.bf16.gmra.mxu1 %vm4063_vm0, %v17067_v28  ;;  %v17070_v17 = vld [vmem:[%s22906_s0 + $0x448] sm:$0xff]  }
 0x223   :  { %23204 = vst [vmem:[#allocation297_spill] sm:$0xff] %v19183_v45  ;;  %23205 = vst [vmem:[#allocation298_spill] sm:$0xff] %v19186_v44  ;;  %15910 = vmatprep.mubr.msk.bf16.mxu0 %vm4063_vm0, %v17068_v29  ;;  %16486 = vmatprep.mubr.msk.bf16.mxu1 %vm4063_vm0, %v17069_v32  ;;  %v17071_v28 = vld [vmem:[%s22906_s0 + $0xd48] sm:$0xff]   ;;  %v17072_v29 = vld [vmem:[%s22906_s0 + $0x450] sm:$0xff]  }
 0x224   :  { %v19191_v56 = vpop.f32.mrf.mxu0  ;;  %v19193_v57 = vpop.f32.mrf.mxu1  ;;  %v17073_v32 = vld [vmem:[%s22906_s0 + $0xd50] sm:$0xff]  }
 0x225   :  { %23206 = vst [vmem:[#allocation299_spill] sm:$0xff] %v19191_v56  ;;  %23207 = vst [vmem:[#allocation300_spill] sm:$0xff] %v19193_v57 }
 0x226   :  { %v19195_v16 = vpop.f32.mrf.mxu0  ;;  %v19197_v33 = vpop.f32.mrf.mxu1 }
 0x227   :  { %23208 = vst [vmem:[#allocation301_spill] sm:$0xff] %v19195_v16  ;;  %23209 = vst [vmem:[#allocation302_spill] sm:$0xff] %v19197_v33 }
 0x228   :  { %v19211_v57 = vpop.f32.mrf.mxu0  ;;  %v19213_v16 = vpop.f32.mrf.mxu1 }
 0x229   :  { %23210 = vst [vmem:[#allocation303_spill] sm:$0xff] %v19211_v57  ;;  %23211 = vst [vmem:[#allocation304_spill] sm:$0xff] %v19213_v16 }
 0x22a   :  { %v19215_v33 = vpop.f32.mrf.mxu0  ;;  %15911 = vmatmul.mubr.msk.bf16.gmra.mxu0 %vm4063_vm0, %v17070_v17  ;;  %v19218_v56 = vpop.f32.mrf.mxu1  ;;  %16487 = vmatmul.mubr.msk.bf16.gmra.mxu1 %vm4063_vm0, %v17071_v28  ;;  %v17074_v17 = vld [vmem:[%s22906_s0 + $0x458] sm:$0xff]  }
 0x22b   :  { %23212 = vst [vmem:[#allocation305_spill] sm:$0xff] %v19215_v33  ;;  %23213 = vst [vmem:[#allocation306_spill] sm:$0xff] %v19218_v56  ;;  %15914 = vmatprep.mubr.msk.bf16.mxu0 %vm4063_vm0, %v17072_v29  ;;  %16490 = vmatprep.mubr.msk.bf16.mxu1 %vm4063_vm0, %v17073_v32  ;;  %v17075_v28 = vld [vmem:[%s22906_s0 + $0xd58] sm:$0xff]   ;;  %v17076_v29 = vld [vmem:[%s22906_s0 + $0x460] sm:$0xff]  }
 0x22c   :  { %v19223_v44 = vpop.f32.mrf.mxu0  ;;  %v19225_v45 = vpop.f32.mrf.mxu1  ;;  %v17077_v32 = vld [vmem:[%s22906_s0 + $0xd60] sm:$0xff]  }
 0x22d   :  { %23214 = vst [vmem:[#allocation307_spill] sm:$0xff] %v19223_v44  ;;  %23215 = vst [vmem:[#allocation308_spill] sm:$0xff] %v19225_v45 }
 0x22e   :  { %v19227_v21 = vpop.f32.mrf.mxu0  ;;  %v19229_v57 = vpop.f32.mrf.mxu1 }
 0x22f   :  { %23216 = vst [vmem:[#allocation309_spill] sm:$0xff] %v19227_v21  ;;  %23217 = vst [vmem:[#allocation310_spill] sm:$0xff] %v19229_v57 }
 0x230   :  { %v19243_v45 = vpop.f32.mrf.mxu0  ;;  %v19245_v21 = vpop.f32.mrf.mxu1 }
 0x231   :  { %23218 = vst [vmem:[#allocation311_spill] sm:$0xff] %v19243_v45  ;;  %23219 = vst [vmem:[#allocation312_spill] sm:$0xff] %v19245_v21 }
 0x232   :  { %v19247_v57 = vpop.f32.mrf.mxu0  ;;  %15915 = vmatmul.mubr.msk.bf16.gmra.mxu0 %vm4063_vm0, %v17074_v17  ;;  %v19250_v44 = vpop.f32.mrf.mxu1  ;;  %16491 = vmatmul.mubr.msk.bf16.gmra.mxu1 %vm4063_vm0, %v17075_v28  ;;  %v17078_v17 = vld [vmem:[%s22906_s0 + $0x468] sm:$0xff]  }
 0x233   :  { %23220 = vst [vmem:[#allocation313_spill] sm:$0xff] %v19247_v57  ;;  %23221 = vst [vmem:[#allocation314_spill] sm:$0xff] %v19250_v44  ;;  %15918 = vmatprep.mubr.msk.bf16.mxu0 %vm4063_vm0, %v17076_v29  ;;  %16494 = vmatprep.mubr.msk.bf16.mxu1 %vm4063_vm0, %v17077_v32  ;;  %v17079_v28 = vld [vmem:[%s22906_s0 + $0xd68] sm:$0xff]   ;;  %v17080_v29 = vld [vmem:[%s22906_s0 + $0x470] sm:$0xff]  }
 0x234   :  { %v19255_v56 = vpop.f32.mrf.mxu0  ;;  %v19257_v33 = vpop.f32.mrf.mxu1  ;;  %v17081_v32 = vld [vmem:[%s22906_s0 + $0xd70] sm:$0xff]  }
 0x235   :  { %23222 = vst [vmem:[#allocation315_spill] sm:$0xff] %v19255_v56  ;;  %23223 = vst [vmem:[#allocation316_spill] sm:$0xff] %v19257_v33 }
 0x236   :  { %v19259_v16 = vpop.f32.mrf.mxu0  ;;  %v19261_v45 = vpop.f32.mrf.mxu1 }
 0x237   :  { %23224 = vst [vmem:[#allocation317_spill] sm:$0xff] %v19259_v16  ;;  %23225 = vst [vmem:[#allocation318_spill] sm:$0xff] %v19261_v45 }
 0x238   :  { %v19275_v33 = vpop.f32.mrf.mxu0  ;;  %v19277_v16 = vpop.f32.mrf.mxu1 }
 0x239   :  { %23226 = vst [vmem:[#allocation319_spill] sm:$0xff] %v19275_v33  ;;  %23227 = vst [vmem:[#allocation320_spill] sm:$0xff] %v19277_v16 }
 0x23a   :  { %v19279_v45 = vpop.f32.mrf.mxu0  ;;  %15919 = vmatmul.mubr.msk.bf16.gmra.mxu0 %vm4063_vm0, %v17078_v17  ;;  %v19282_v56 = vpop.f32.mrf.mxu1  ;;  %16495 = vmatmul.mubr.msk.bf16.gmra.mxu1 %vm4063_vm0, %v17079_v28  ;;  %v17082_v17 = vld [vmem:[%s22906_s0 + $0x478] sm:$0xff]  }
 0x23b   :  { %23228 = vst [vmem:[#allocation321_spill] sm:$0xff] %v19279_v45  ;;  %23229 = vst [vmem:[#allocation322_spill] sm:$0xff] %v19282_v56  ;;  %15922 = vmatprep.mubr.msk.bf16.mxu0 %vm4063_vm0, %v17080_v29  ;;  %16498 = vmatprep.mubr.msk.bf16.mxu1 %vm4063_vm0, %v17081_v32  ;;  %v17083_v28 = vld [vmem:[%s22906_s0 + $0xd78] sm:$0xff]   ;;  %v17084_v29 = vld [vmem:[%s22906_s0 + $0x480] sm:$0xff]  }
 0x23c   :  { %v19287_v44 = vpop.f32.mrf.mxu0  ;;  %v19289_v57 = vpop.f32.mrf.mxu1  ;;  %v17085_v32 = vld [vmem:[%s22906_s0 + $0xd80] sm:$0xff]  }
 0x23d   :  { %23230 = vst [vmem:[#allocation323_spill] sm:$0xff] %v19287_v44  ;;  %23231 = vst [vmem:[#allocation324_spill] sm:$0xff] %v19289_v57 }
 0x23e   :  { %v19291_v21 = vpop.f32.mrf.mxu0  ;;  %v19293_v33 = vpop.f32.mrf.mxu1 }
 0x23f   :  { %23232 = vst [vmem:[#allocation325_spill] sm:$0xff] %v19291_v21  ;;  %23233 = vst [vmem:[#allocation326_spill] sm:$0xff] %v19293_v33 }
 0x240   :  { %v19307_v57 = vpop.f32.mrf.mxu0  ;;  %v19309_v21 = vpop.f32.mrf.mxu1 }
 0x241   :  { %23234 = vst [vmem:[#allocation327_spill] sm:$0xff] %v19307_v57  ;;  %23235 = vst [vmem:[#allocation328_spill] sm:$0xff] %v19309_v21 }
 0x242   :  { %v19311_v33 = vpop.f32.mrf.mxu0  ;;  %15923 = vmatmul.mubr.msk.bf16.gmra.mxu0 %vm4063_vm0, %v17082_v17  ;;  %v19314_v44 = vpop.f32.mrf.mxu1  ;;  %16499 = vmatmul.mubr.msk.bf16.gmra.mxu1 %vm4063_vm0, %v17083_v28  ;;  %v17086_v17 = vld [vmem:[%s22906_s0 + $0x488] sm:$0xff]  }
 0x243   :  { %23236 = vst [vmem:[#allocation329_spill] sm:$0xff] %v19311_v33  ;;  %23237 = vst [vmem:[#allocation330_spill] sm:$0xff] %v19314_v44  ;;  %15926 = vmatprep.mubr.msk.bf16.mxu0 %vm4063_vm0, %v17084_v29  ;;  %16502 = vmatprep.mubr.msk.bf16.mxu1 %vm4063_vm0, %v17085_v32  ;;  %v17087_v28 = vld [vmem:[%s22906_s0 + $0xd88] sm:$0xff]   ;;  %v17088_v29 = vld [vmem:[%s22906_s0 + $0x490] sm:$0xff]  }
 0x244   :  { %v19319_v56 = vpop.f32.mrf.mxu0  ;;  %v19321_v45 = vpop.f32.mrf.mxu1  ;;  %v17089_v32 = vld [vmem:[%s22906_s0 + $0xd90] sm:$0xff]  }
 0x245   :  { %23238 = vst [vmem:[#allocation331_spill] sm:$0xff] %v19319_v56  ;;  %23239 = vst [vmem:[#allocation332_spill] sm:$0xff] %v19321_v45 }
 0x246   :  { %v19323_v16 = vpop.f32.mrf.mxu0  ;;  %v19325_v57 = vpop.f32.mrf.mxu1 }
 0x247   :  { %23240 = vst [vmem:[#allocation333_spill] sm:$0xff] %v19323_v16  ;;  %23241 = vst [vmem:[#allocation334_spill] sm:$0xff] %v19325_v57 }
 0x248   :  { %v19339_v45 = vpop.f32.mrf.mxu0  ;;  %v19341_v16 = vpop.f32.mrf.mxu1 }
 0x249   :  { %23242 = vst [vmem:[#allocation335_spill] sm:$0xff] %v19339_v45  ;;  %23243 = vst [vmem:[#allocation336_spill] sm:$0xff] %v19341_v16 }
 0x24a   :  { %v19343_v57 = vpop.f32.mrf.mxu0  ;;  %15927 = vmatmul.mubr.msk.bf16.gmra.mxu0 %vm4063_vm0, %v17086_v17  ;;  %v19346_v56 = vpop.f32.mrf.mxu1  ;;  %16503 = vmatmul.mubr.msk.bf16.gmra.mxu1 %vm4063_vm0, %v17087_v28  ;;  %v17090_v17 = vld [vmem:[%s22906_s0 + $0x498] sm:$0xff]  }
 0x24b   :  { %23244 = vst [vmem:[#allocation337_spill] sm:$0xff] %v19343_v57  ;;  %23245 = vst [vmem:[#allocation338_spill] sm:$0xff] %v19346_v56  ;;  %15930 = vmatprep.mubr.msk.bf16.mxu0 %vm4063_vm0, %v17088_v29  ;;  %16506 = vmatprep.mubr.msk.bf16.mxu1 %vm4063_vm0, %v17089_v32  ;;  %v17091_v28 = vld [vmem:[%s22906_s0 + $0xd98] sm:$0xff]   ;;  %v17092_v29 = vld [vmem:[%s22906_s0 + $0x4a0] sm:$0xff]  }
 0x24c   :  { %v19351_v44 = vpop.f32.mrf.mxu0  ;;  %v19353_v33 = vpop.f32.mrf.mxu1  ;;  %v17093_v32 = vld [vmem:[%s22906_s0 + $0xda0] sm:$0xff]  }
 0x24d   :  { %23246 = vst [vmem:[#allocation339_spill] sm:$0xff] %v19351_v44  ;;  %23247 = vst [vmem:[#allocation340_spill] sm:$0xff] %v19353_v33 }
 0x24e   :  { %v19355_v21 = vpop.f32.mrf.mxu0  ;;  %v19357_v45 = vpop.f32.mrf.mxu1 }
 0x24f   :  { %23248 = vst [vmem:[#allocation341_spill] sm:$0xff] %v19355_v21  ;;  %23249 = vst [vmem:[#allocation342_spill] sm:$0xff] %v19357_v45 }
 0x250   :  { %v19371_v33 = vpop.f32.mrf.mxu0  ;;  %v19373_v21 = vpop.f32.mrf.mxu1 }
 0x251   :  { %23250 = vst [vmem:[#allocation343_spill] sm:$0xff] %v19371_v33  ;;  %23251 = vst [vmem:[#allocation344_spill] sm:$0xff] %v19373_v21 }
 0x252   :  { %v19375_v45 = vpop.f32.mrf.mxu0  ;;  %15931 = vmatmul.mubr.msk.bf16.gmra.mxu0 %vm4063_vm0, %v17090_v17  ;;  %v19378_v44 = vpop.f32.mrf.mxu1  ;;  %16507 = vmatmul.mubr.msk.bf16.gmra.mxu1 %vm4063_vm0, %v17091_v28  ;;  %v17094_v17 = vld [vmem:[%s22906_s0 + $0x4a8] sm:$0xff]  }
 0x253   :  { %23252 = vst [vmem:[#allocation345_spill] sm:$0xff] %v19375_v45  ;;  %23253 = vst [vmem:[#allocation346_spill] sm:$0xff] %v19378_v44  ;;  %15934 = vmatprep.mubr.msk.bf16.mxu0 %vm4063_vm0, %v17092_v29  ;;  %16510 = vmatprep.mubr.msk.bf16.mxu1 %vm4063_vm0, %v17093_v32  ;;  %v17095_v28 = vld [vmem:[%s22906_s0 + $0xda8] sm:$0xff]   ;;  %v17096_v29 = vld [vmem:[%s22906_s0 + $0x4b0] sm:$0xff]  }
 0x254   :  { %v19383_v56 = vpop.f32.mrf.mxu0  ;;  %v19385_v57 = vpop.f32.mrf.mxu1  ;;  %v17097_v32 = vld [vmem:[%s22906_s0 + $0xdb0] sm:$0xff]  }
 0x255   :  { %23254 = vst [vmem:[#allocation347_spill] sm:$0xff] %v19383_v56  ;;  %23255 = vst [vmem:[#allocation348_spill] sm:$0xff] %v19385_v57 }
 0x256   :  { %v19387_v16 = vpop.f32.mrf.mxu0  ;;  %v19389_v33 = vpop.f32.mrf.mxu1 }
 0x257   :  { %23256 = vst [vmem:[#allocation349_spill] sm:$0xff] %v19387_v16  ;;  %23257 = vst [vmem:[#allocation350_spill] sm:$0xff] %v19389_v33 }
 0x258   :  { %v19403_v57 = vpop.f32.mrf.mxu0  ;;  %v19405_v16 = vpop.f32.mrf.mxu1 }
 0x259   :  { %23258 = vst [vmem:[#allocation351_spill] sm:$0xff] %v19403_v57  ;;  %23259 = vst [vmem:[#allocation352_spill] sm:$0xff] %v19405_v16 }
 0x25a   :  { %v19407_v33 = vpop.f32.mrf.mxu0  ;;  %15935 = vmatmul.mubr.msk.bf16.gmra.mxu0 %vm4063_vm0, %v17094_v17  ;;  %v19410_v56 = vpop.f32.mrf.mxu1  ;;  %16511 = vmatmul.mubr.msk.bf16.gmra.mxu1 %vm4063_vm0, %v17095_v28  ;;  %v17098_v17 = vld [vmem:[%s22906_s0 + $0x4b8] sm:$0xff]  }
 0x25b   :  { %23260 = vst [vmem:[#allocation353_spill] sm:$0xff] %v19407_v33  ;;  %23261 = vst [vmem:[#allocation354_spill] sm:$0xff] %v19410_v56  ;;  %15938 = vmatprep.mubr.msk.bf16.mxu0 %vm4063_vm0, %v17096_v29  ;;  %16514 = vmatprep.mubr.msk.bf16.mxu1 %vm4063_vm0, %v17097_v32  ;;  %v17099_v28 = vld [vmem:[%s22906_s0 + $0xdb8] sm:$0xff]   ;;  %v17100_v29 = vld [vmem:[%s22906_s0 + $0x4c0] sm:$0xff]  }
 0x25c   :  { %v19415_v44 = vpop.f32.mrf.mxu0  ;;  %v19417_v45 = vpop.f32.mrf.mxu1  ;;  %v17101_v32 = vld [vmem:[%s22906_s0 + $0xdc0] sm:$0xff]  }
 0x25d   :  { %23262 = vst [vmem:[#allocation355_spill] sm:$0xff] %v19415_v44  ;;  %23263 = vst [vmem:[#allocation356_spill] sm:$0xff] %v19417_v45 }
 0x25e   :  { %v19419_v21 = vpop.f32.mrf.mxu0  ;;  %v19421_v57 = vpop.f32.mrf.mxu1 }
 0x25f   :  { %23264 = vst [vmem:[#allocation357_spill] sm:$0xff] %v19419_v21  ;;  %23265 = vst [vmem:[#allocation358_spill] sm:$0xff] %v19421_v57 }
 0x260   :  { %v19435_v45 = vpop.f32.mrf.mxu0  ;;  %v19437_v21 = vpop.f32.mrf.mxu1 }
 0x261   :  { %23266 = vst [vmem:[#allocation359_spill] sm:$0xff] %v19435_v45  ;;  %23267 = vst [vmem:[#allocation360_spill] sm:$0xff] %v19437_v21 }
 0x262   :  { %v19439_v57 = vpop.f32.mrf.mxu0  ;;  %15939 = vmatmul.mubr.msk.bf16.gmra.mxu0 %vm4063_vm0, %v17098_v17  ;;  %v19442_v44 = vpop.f32.mrf.mxu1  ;;  %16515 = vmatmul.mubr.msk.bf16.gmra.mxu1 %vm4063_vm0, %v17099_v28  ;;  %v17102_v17 = vld [vmem:[%s22906_s0 + $0x4c8] sm:$0xff]  }
 0x263   :  { %23268 = vst [vmem:[#allocation361_spill] sm:$0xff] %v19439_v57  ;;  %23269 = vst [vmem:[#allocation362_spill] sm:$0xff] %v19442_v44  ;;  %15942 = vmatprep.mubr.msk.bf16.mxu0 %vm4063_vm0, %v17100_v29  ;;  %16518 = vmatprep.mubr.msk.bf16.mxu1 %vm4063_vm0, %v17101_v32  ;;  %v17103_v28 = vld [vmem:[%s22906_s0 + $0xdc8] sm:$0xff]   ;;  %v17104_v29 = vld [vmem:[%s22906_s0 + $0x4d0] sm:$0xff]  }
 0x264   :  { %v19447_v56 = vpop.f32.mrf.mxu0  ;;  %v19449_v33 = vpop.f32.mrf.mxu1  ;;  %v17105_v32 = vld [vmem:[%s22906_s0 + $0xdd0] sm:$0xff]  }
 0x265   :  { %23270 = vst [vmem:[#allocation363_spill] sm:$0xff] %v19447_v56  ;;  %23271 = vst [vmem:[#allocation364_spill] sm:$0xff] %v19449_v33 }
 0x266   :  { %v19451_v16 = vpop.f32.mrf.mxu0  ;;  %v19453_v45 = vpop.f32.mrf.mxu1 }
 0x267   :  { %23272 = vst [vmem:[#allocation365_spill] sm:$0xff] %v19451_v16  ;;  %23273 = vst [vmem:[#allocation366_spill] sm:$0xff] %v19453_v45 }
 0x268   :  { %v19467_v33 = vpop.f32.mrf.mxu0  ;;  %v19469_v16 = vpop.f32.mrf.mxu1 }
 0x269   :  { %23274 = vst [vmem:[#allocation367_spill] sm:$0xff] %v19467_v33  ;;  %23275 = vst [vmem:[#allocation368_spill] sm:$0xff] %v19469_v16 }
 0x26a   :  { %v19471_v45 = vpop.f32.mrf.mxu0  ;;  %15943 = vmatmul.mubr.msk.bf16.gmra.mxu0 %vm4063_vm0, %v17102_v17  ;;  %v19474_v56 = vpop.f32.mrf.mxu1  ;;  %16519 = vmatmul.mubr.msk.bf16.gmra.mxu1 %vm4063_vm0, %v17103_v28  ;;  %v17106_v17 = vld [vmem:[%s22906_s0 + $0x4d8] sm:$0xff]  }
 0x26b   :  { %23276 = vst [vmem:[#allocation369_spill] sm:$0xff] %v19471_v45  ;;  %23277 = vst [vmem:[#allocation370_spill] sm:$0xff] %v19474_v56  ;;  %15946 = vmatprep.mubr.msk.bf16.mxu0 %vm4063_vm0, %v17104_v29  ;;  %16522 = vmatprep.mubr.msk.bf16.mxu1 %vm4063_vm0, %v17105_v32  ;;  %v17107_v28 = vld [vmem:[%s22906_s0 + $0xdd8] sm:$0xff]   ;;  %v17108_v29 = vld [vmem:[%s22906_s0 + $0x4e0] sm:$0xff]  }
 0x26c   :  { %v19479_v44 = vpop.f32.mrf.mxu0  ;;  %v19481_v57 = vpop.f32.mrf.mxu1  ;;  %v17109_v32 = vld [vmem:[%s22906_s0 + $0xde0] sm:$0xff]  }
 0x26d   :  { %23278 = vst [vmem:[#allocation371_spill] sm:$0xff] %v19479_v44  ;;  %23279 = vst [vmem:[#allocation372_spill] sm:$0xff] %v19481_v57 }
 0x26e   :  { %v19483_v21 = vpop.f32.mrf.mxu0  ;;  %v19485_v33 = vpop.f32.mrf.mxu1 }
 0x26f   :  { %23280 = vst [vmem:[#allocation373_spill] sm:$0xff] %v19483_v21  ;;  %23281 = vst [vmem:[#allocation374_spill] sm:$0xff] %v19485_v33 }
 0x270   :  { %v19499_v57 = vpop.f32.mrf.mxu0  ;;  %v19501_v21 = vpop.f32.mrf.mxu1 }
 0x271   :  { %23282 = vst [vmem:[#allocation375_spill] sm:$0xff] %v19499_v57  ;;  %23283 = vst [vmem:[#allocation376_spill] sm:$0xff] %v19501_v21 }
 0x272   :  { %v19503_v33 = vpop.f32.mrf.mxu0  ;;  %15947 = vmatmul.mubr.msk.bf16.gmra.mxu0 %vm4063_vm0, %v17106_v17  ;;  %v19506_v44 = vpop.f32.mrf.mxu1  ;;  %16523 = vmatmul.mubr.msk.bf16.gmra.mxu1 %vm4063_vm0, %v17107_v28  ;;  %v17110_v17 = vld [vmem:[%s22906_s0 + $0x4e8] sm:$0xff]  }
 0x273   :  { %23284 = vst [vmem:[#allocation377_spill] sm:$0xff] %v19503_v33  ;;  %23285 = vst [vmem:[#allocation378_spill] sm:$0xff] %v19506_v44  ;;  %15950 = vmatprep.mubr.msk.bf16.mxu0 %vm4063_vm0, %v17108_v29  ;;  %16526 = vmatprep.mubr.msk.bf16.mxu1 %vm4063_vm0, %v17109_v32  ;;  %v17111_v28 = vld [vmem:[%s22906_s0 + $0xde8] sm:$0xff]   ;;  %v17112_v29 = vld [vmem:[%s22906_s0 + $0x4f0] sm:$0xff]  }
 0x274   :  { %v19511_v56 = vpop.f32.mrf.mxu0  ;;  %v19513_v45 = vpop.f32.mrf.mxu1  ;;  %v17113_v32 = vld [vmem:[%s22906_s0 + $0xdf0] sm:$0xff]  }
 0x275   :  { %23286 = vst [vmem:[#allocation379_spill] sm:$0xff] %v19511_v56  ;;  %23287 = vst [vmem:[#allocation380_spill] sm:$0xff] %v19513_v45 }
 0x276   :  { %v19515_v16 = vpop.f32.mrf.mxu0  ;;  %v19517_v57 = vpop.f32.mrf.mxu1 }
 0x277   :  { %23288 = vst [vmem:[#allocation381_spill] sm:$0xff] %v19515_v16  ;;  %23289 = vst [vmem:[#allocation382_spill] sm:$0xff] %v19517_v57 }
 0x278   :  { %v19531_v45 = vpop.f32.mrf.mxu0  ;;  %v19533_v16 = vpop.f32.mrf.mxu1 }
 0x279   :  { %23290 = vst [vmem:[#allocation383_spill] sm:$0xff] %v19531_v45  ;;  %23291 = vst [vmem:[#allocation384_spill] sm:$0xff] %v19533_v16 }
 0x27a   :  { %v19535_v57 = vpop.f32.mrf.mxu0  ;;  %15951 = vmatmul.mubr.msk.bf16.gmra.mxu0 %vm4063_vm0, %v17110_v17  ;;  %v19538_v56 = vpop.f32.mrf.mxu1  ;;  %16527 = vmatmul.mubr.msk.bf16.gmra.mxu1 %vm4063_vm0, %v17111_v28  ;;  %v17114_v17 = vld [vmem:[%s22906_s0 + $0x4f8] sm:$0xff]  }
 0x27b   :  { %23292 = vst [vmem:[#allocation385_spill] sm:$0xff] %v19535_v57  ;;  %23293 = vst [vmem:[#allocation386_spill] sm:$0xff] %v19538_v56  ;;  %15954 = vmatprep.mubr.msk.bf16.mxu0 %vm4063_vm0, %v17112_v29  ;;  %16530 = vmatprep.mubr.msk.bf16.mxu1 %vm4063_vm0, %v17113_v32  ;;  %v17115_v28 = vld [vmem:[%s22906_s0 + $0xdf8] sm:$0xff]   ;;  %v17116_v29 = vld [vmem:[%s22906_s0 + $0x500] sm:$0xff]  }
 0x27c   :  { %v19543_v44 = vpop.f32.mrf.mxu0  ;;  %v19545_v33 = vpop.f32.mrf.mxu1  ;;  %v17117_v32 = vld [vmem:[%s22906_s0 + $0xe00] sm:$0xff]  }
 0x27d   :  { %23294 = vst [vmem:[#allocation387_spill] sm:$0xff] %v19543_v44  ;;  %23295 = vst [vmem:[#allocation388_spill] sm:$0xff] %v19545_v33 }
 0x27e   :  { %v19547_v21 = vpop.f32.mrf.mxu0  ;;  %v19549_v45 = vpop.f32.mrf.mxu1 }
 0x27f   :  { %23296 = vst [vmem:[#allocation389_spill] sm:$0xff] %v19547_v21  ;;  %23297 = vst [vmem:[#allocation390_spill] sm:$0xff] %v19549_v45 }
 0x280   :  { %v19563_v33 = vpop.f32.mrf.mxu0  ;;  %v19565_v21 = vpop.f32.mrf.mxu1 }
 0x281   :  { %23298 = vst [vmem:[#allocation391_spill] sm:$0xff] %v19563_v33  ;;  %23299 = vst [vmem:[#allocation392_spill] sm:$0xff] %v19565_v21 }
 0x282   :  { %v19567_v45 = vpop.f32.mrf.mxu0  ;;  %15955 = vmatmul.mubr.msk.bf16.gmra.mxu0 %vm4063_vm0, %v17114_v17  ;;  %v19570_v44 = vpop.f32.mrf.mxu1  ;;  %16531 = vmatmul.mubr.msk.bf16.gmra.mxu1 %vm4063_vm0, %v17115_v28  ;;  %v17118_v17 = vld [vmem:[%s22906_s0 + $0x508] sm:$0xff]  }
 0x283   :  { %23300 = vst [vmem:[#allocation393_spill] sm:$0xff] %v19567_v45  ;;  %23301 = vst [vmem:[#allocation394_spill] sm:$0xff] %v19570_v44  ;;  %15958 = vmatprep.mubr.msk.bf16.mxu0 %vm4063_vm0, %v17116_v29  ;;  %16534 = vmatprep.mubr.msk.bf16.mxu1 %vm4063_vm0, %v17117_v32  ;;  %v17119_v28 = vld [vmem:[%s22906_s0 + $0xe08] sm:$0xff]   ;;  %v17120_v29 = vld [vmem:[%s22906_s0 + $0x510] sm:$0xff]  }
 0x284   :  { %v19575_v56 = vpop.f32.mrf.mxu0  ;;  %v19577_v57 = vpop.f32.mrf.mxu1  ;;  %v17121_v32 = vld [vmem:[%s22906_s0 + $0xe10] sm:$0xff]  }
 0x285   :  { %23302 = vst [vmem:[#allocation395_spill] sm:$0xff] %v19575_v56  ;;  %23303 = vst [vmem:[#allocation396_spill] sm:$0xff] %v19577_v57 }
 0x286   :  { %v19579_v16 = vpop.f32.mrf.mxu0  ;;  %v19581_v33 = vpop.f32.mrf.mxu1 }
 0x287   :  { %23304 = vst [vmem:[#allocation397_spill] sm:$0xff] %v19579_v16  ;;  %23305 = vst [vmem:[#allocation398_spill] sm:$0xff] %v19581_v33 }
 0x288   :  { %v19595_v57 = vpop.f32.mrf.mxu0  ;;  %v19597_v16 = vpop.f32.mrf.mxu1 }
 0x289   :  { %23306 = vst [vmem:[#allocation399_spill] sm:$0xff] %v19595_v57  ;;  %23307 = vst [vmem:[#allocation400_spill] sm:$0xff] %v19597_v16 }
 0x28a   :  { %v19599_v33 = vpop.f32.mrf.mxu0  ;;  %15959 = vmatmul.mubr.msk.bf16.gmra.mxu0 %vm4063_vm0, %v17118_v17  ;;  %v19602_v56 = vpop.f32.mrf.mxu1  ;;  %16535 = vmatmul.mubr.msk.bf16.gmra.mxu1 %vm4063_vm0, %v17119_v28  ;;  %v17122_v17 = vld [vmem:[%s22906_s0 + $0x518] sm:$0xff]  }
 0x28b   :  { %23308 = vst [vmem:[#allocation401_spill] sm:$0xff] %v19599_v33  ;;  %23309 = vst [vmem:[#allocation402_spill] sm:$0xff] %v19602_v56  ;;  %15962 = vmatprep.mubr.msk.bf16.mxu0 %vm4063_vm0, %v17120_v29  ;;  %16538 = vmatprep.mubr.msk.bf16.mxu1 %vm4063_vm0, %v17121_v32  ;;  %v17123_v28 = vld [vmem:[%s22906_s0 + $0xe18] sm:$0xff]   ;;  %v17124_v29 = vld [vmem:[%s22906_s0 + $0x520] sm:$0xff]  }
 0x28c   :  { %v19607_v44 = vpop.f32.mrf.mxu0  ;;  %v19609_v45 = vpop.f32.mrf.mxu1  ;;  %v17125_v32 = vld [vmem:[%s22906_s0 + $0xe20] sm:$0xff]  }
 0x28d   :  { %23310 = vst [vmem:[#allocation403_spill] sm:$0xff] %v19607_v44  ;;  %23311 = vst [vmem:[#allocation404_spill] sm:$0xff] %v19609_v45 }
 0x28e   :  { %v19611_v21 = vpop.f32.mrf.mxu0  ;;  %v19613_v57 = vpop.f32.mrf.mxu1 }
 0x28f   :  { %23312 = vst [vmem:[#allocation405_spill] sm:$0xff] %v19611_v21  ;;  %23313 = vst [vmem:[#allocation406_spill] sm:$0xff] %v19613_v57 }
 0x290   :  { %v19627_v45 = vpop.f32.mrf.mxu0  ;;  %v19629_v21 = vpop.f32.mrf.mxu1 }
 0x291   :  { %23314 = vst [vmem:[#allocation407_spill] sm:$0xff] %v19627_v45  ;;  %23315 = vst [vmem:[#allocation408_spill] sm:$0xff] %v19629_v21 }
 0x292   :  { %v19631_v57 = vpop.f32.mrf.mxu0  ;;  %15963 = vmatmul.mubr.msk.bf16.gmra.mxu0 %vm4063_vm0, %v17122_v17  ;;  %v19634_v44 = vpop.f32.mrf.mxu1  ;;  %16539 = vmatmul.mubr.msk.bf16.gmra.mxu1 %vm4063_vm0, %v17123_v28  ;;  %v17126_v17 = vld [vmem:[%s22906_s0 + $0x528] sm:$0xff]  }
 0x293   :  { %23316 = vst [vmem:[#allocation409_spill] sm:$0xff] %v19631_v57  ;;  %23317 = vst [vmem:[#allocation410_spill] sm:$0xff] %v19634_v44  ;;  %15966 = vmatprep.mubr.msk.bf16.mxu0 %vm4063_vm0, %v17124_v29  ;;  %16542 = vmatprep.mubr.msk.bf16.mxu1 %vm4063_vm0, %v17125_v32  ;;  %v17127_v28 = vld [vmem:[%s22906_s0 + $0xe28] sm:$0xff]   ;;  %v17128_v29 = vld [vmem:[%s22906_s0 + $0x530] sm:$0xff]  }
 0x294   :  { %v19639_v56 = vpop.f32.mrf.mxu0  ;;  %v19641_v33 = vpop.f32.mrf.mxu1  ;;  %v17129_v32 = vld [vmem:[%s22906_s0 + $0xe30] sm:$0xff]  }
 0x295   :  { %23318 = vst [vmem:[#allocation411_spill] sm:$0xff] %v19639_v56  ;;  %23319 = vst [vmem:[#allocation412_spill] sm:$0xff] %v19641_v33 }
 0x296   :  { %v19643_v16 = vpop.f32.mrf.mxu0  ;;  %v19645_v45 = vpop.f32.mrf.mxu1 }
 0x297   :  { %23320 = vst [vmem:[#allocation413_spill] sm:$0xff] %v19643_v16  ;;  %23321 = vst [vmem:[#allocation414_spill] sm:$0xff] %v19645_v45 }
 0x298   :  { %v19659_v33 = vpop.f32.mrf.mxu0  ;;  %v19661_v16 = vpop.f32.mrf.mxu1 }
 0x299   :  { %23322 = vst [vmem:[#allocation415_spill] sm:$0xff] %v19659_v33  ;;  %23323 = vst [vmem:[#allocation416_spill] sm:$0xff] %v19661_v16 }
 0x29a   :  { %v19663_v45 = vpop.f32.mrf.mxu0  ;;  %15967 = vmatmul.mubr.msk.bf16.gmra.mxu0 %vm4063_vm0, %v17126_v17  ;;  %v19666_v56 = vpop.f32.mrf.mxu1  ;;  %16543 = vmatmul.mubr.msk.bf16.gmra.mxu1 %vm4063_vm0, %v17127_v28  ;;  %v17130_v17 = vld [vmem:[%s22906_s0 + $0x538] sm:$0xff]  }
 0x29b   :  { %23324 = vst [vmem:[#allocation417_spill] sm:$0xff] %v19663_v45  ;;  %23325 = vst [vmem:[#allocation418_spill] sm:$0xff] %v19666_v56  ;;  %15970 = vmatprep.mubr.msk.bf16.mxu0 %vm4063_vm0, %v17128_v29  ;;  %16546 = vmatprep.mubr.msk.bf16.mxu1 %vm4063_vm0, %v17129_v32  ;;  %v17131_v28 = vld [vmem:[%s22906_s0 + $0xe38] sm:$0xff]   ;;  %v17132_v29 = vld [vmem:[%s22906_s0 + $0x540] sm:$0xff]  }
 0x29c   :  { %v19671_v44 = vpop.f32.mrf.mxu0  ;;  %v19673_v57 = vpop.f32.mrf.mxu1  ;;  %v17133_v32 = vld [vmem:[%s22906_s0 + $0xe40] sm:$0xff]  }
 0x29d   :  { %23326 = vst [vmem:[#allocation419_spill] sm:$0xff] %v19671_v44  ;;  %23327 = vst [vmem:[#allocation420_spill] sm:$0xff] %v19673_v57 }
 0x29e   :  { %v19675_v21 = vpop.f32.mrf.mxu0  ;;  %v19677_v33 = vpop.f32.mrf.mxu1 }
 0x29f   :  { %23328 = vst [vmem:[#allocation421_spill] sm:$0xff] %v19675_v21  ;;  %23329 = vst [vmem:[#allocation422_spill] sm:$0xff] %v19677_v33 }
 0x2a0   :  { %v19691_v57 = vpop.f32.mrf.mxu0  ;;  %v19693_v21 = vpop.f32.mrf.mxu1 }
 0x2a1   :  { %23330 = vst [vmem:[#allocation423_spill] sm:$0xff] %v19691_v57  ;;  %23331 = vst [vmem:[#allocation424_spill] sm:$0xff] %v19693_v21 }
 0x2a2   :  { %v19695_v33 = vpop.f32.mrf.mxu0  ;;  %15971 = vmatmul.mubr.msk.bf16.gmra.mxu0 %vm4063_vm0, %v17130_v17  ;;  %v19698_v44 = vpop.f32.mrf.mxu1  ;;  %16547 = vmatmul.mubr.msk.bf16.gmra.mxu1 %vm4063_vm0, %v17131_v28  ;;  %v17134_v17 = vld [vmem:[%s22906_s0 + $0x548] sm:$0xff]  }
 0x2a3   :  { %23332 = vst [vmem:[#allocation425_spill] sm:$0xff] %v19695_v33  ;;  %23333 = vst [vmem:[#allocation426_spill] sm:$0xff] %v19698_v44  ;;  %15974 = vmatprep.mubr.msk.bf16.mxu0 %vm4063_vm0, %v17132_v29  ;;  %16550 = vmatprep.mubr.msk.bf16.mxu1 %vm4063_vm0, %v17133_v32  ;;  %v17135_v28 = vld [vmem:[%s22906_s0 + $0xe48] sm:$0xff]   ;;  %v17136_v29 = vld [vmem:[%s22906_s0 + $0x550] sm:$0xff]  }
 0x2a4   :  { %v19703_v56 = vpop.f32.mrf.mxu0  ;;  %v19705_v45 = vpop.f32.mrf.mxu1  ;;  %v17137_v32 = vld [vmem:[%s22906_s0 + $0xe50] sm:$0xff]  }
 0x2a5   :  { %23334 = vst [vmem:[#allocation427_spill] sm:$0xff] %v19703_v56  ;;  %23335 = vst [vmem:[#allocation428_spill] sm:$0xff] %v19705_v45 }
 0x2a6   :  { %v19707_v16 = vpop.f32.mrf.mxu0  ;;  %v19709_v57 = vpop.f32.mrf.mxu1 }
 0x2a7   :  { %23336 = vst [vmem:[#allocation429_spill] sm:$0xff] %v19707_v16  ;;  %23337 = vst [vmem:[#allocation430_spill] sm:$0xff] %v19709_v57 }
 0x2a8   :  { %v19723_v45 = vpop.f32.mrf.mxu0  ;;  %v19725_v16 = vpop.f32.mrf.mxu1 }
 0x2a9   :  { %23338 = vst [vmem:[#allocation431_spill] sm:$0xff] %v19723_v45  ;;  %23339 = vst [vmem:[#allocation432_spill] sm:$0xff] %v19725_v16 }
 0x2aa   :  { %v19727_v57 = vpop.f32.mrf.mxu0  ;;  %15975 = vmatmul.mubr.msk.bf16.gmra.mxu0 %vm4063_vm0, %v17134_v17  ;;  %v19730_v56 = vpop.f32.mrf.mxu1  ;;  %16551 = vmatmul.mubr.msk.bf16.gmra.mxu1 %vm4063_vm0, %v17135_v28  ;;  %v17138_v17 = vld [vmem:[%s22906_s0 + $0x558] sm:$0xff]  }
 0x2ab   :  { %23340 = vst [vmem:[#allocation433_spill] sm:$0xff] %v19727_v57  ;;  %23341 = vst [vmem:[#allocation434_spill] sm:$0xff] %v19730_v56  ;;  %15978 = vmatprep.mubr.msk.bf16.mxu0 %vm4063_vm0, %v17136_v29  ;;  %16554 = vmatprep.mubr.msk.bf16.mxu1 %vm4063_vm0, %v17137_v32  ;;  %v17139_v28 = vld [vmem:[%s22906_s0 + $0xe58] sm:$0xff]   ;;  %v17140_v29 = vld [vmem:[%s22906_s0 + $0x560] sm:$0xff]  }
 0x2ac   :  { %v19735_v44 = vpop.f32.mrf.mxu0  ;;  %v19737_v33 = vpop.f32.mrf.mxu1  ;;  %v17141_v32 = vld [vmem:[%s22906_s0 + $0xe60] sm:$0xff]  }
 0x2ad   :  { %23342 = vst [vmem:[#allocation435_spill] sm:$0xff] %v19735_v44  ;;  %23343 = vst [vmem:[#allocation436_spill] sm:$0xff] %v19737_v33 }
 0x2ae   :  { %v19739_v21 = vpop.f32.mrf.mxu0  ;;  %v19741_v45 = vpop.f32.mrf.mxu1 }
 0x2af   :  { %23344 = vst [vmem:[#allocation437_spill] sm:$0xff] %v19739_v21  ;;  %23345 = vst [vmem:[#allocation438_spill] sm:$0xff] %v19741_v45 }
 0x2b0   :  { %v19755_v33 = vpop.f32.mrf.mxu0  ;;  %v19757_v21 = vpop.f32.mrf.mxu1 }
 0x2b1   :  { %23346 = vst [vmem:[#allocation439_spill] sm:$0xff] %v19755_v33  ;;  %23347 = vst [vmem:[#allocation440_spill] sm:$0xff] %v19757_v21 }
 0x2b2   :  { %v19759_v45 = vpop.f32.mrf.mxu0  ;;  %15979 = vmatmul.mubr.msk.bf16.gmra.mxu0 %vm4063_vm0, %v17138_v17  ;;  %v19762_v44 = vpop.f32.mrf.mxu1  ;;  %16555 = vmatmul.mubr.msk.bf16.gmra.mxu1 %vm4063_vm0, %v17139_v28  ;;  %v17142_v17 = vld [vmem:[%s22906_s0 + $0x568] sm:$0xff]  }
 0x2b3   :  { %23348 = vst [vmem:[#allocation441_spill] sm:$0xff] %v19759_v45  ;;  %23349 = vst [vmem:[#allocation442_spill] sm:$0xff] %v19762_v44  ;;  %15982 = vmatprep.mubr.msk.bf16.mxu0 %vm4063_vm0, %v17140_v29  ;;  %16558 = vmatprep.mubr.msk.bf16.mxu1 %vm4063_vm0, %v17141_v32  ;;  %v17143_v28 = vld [vmem:[%s22906_s0 + $0xe68] sm:$0xff]   ;;  %v17144_v29 = vld [vmem:[%s22906_s0 + $0x570] sm:$0xff]  }
 0x2b4   :  { %v19767_v56 = vpop.f32.mrf.mxu0  ;;  %v19769_v57 = vpop.f32.mrf.mxu1  ;;  %v17145_v32 = vld [vmem:[%s22906_s0 + $0xe70] sm:$0xff]  }
 0x2b5   :  { %23350 = vst [vmem:[#allocation443_spill] sm:$0xff] %v19767_v56  ;;  %23351 = vst [vmem:[#allocation444_spill] sm:$0xff] %v19769_v57 }
 0x2b6   :  { %v19771_v16 = vpop.f32.mrf.mxu0  ;;  %v19773_v33 = vpop.f32.mrf.mxu1 }
 0x2b7   :  { %23352 = vst [vmem:[#allocation445_spill] sm:$0xff] %v19771_v16  ;;  %23353 = vst [vmem:[#allocation446_spill] sm:$0xff] %v19773_v33 }
 0x2b8   :  { %v19787_v57 = vpop.f32.mrf.mxu0  ;;  %v19789_v16 = vpop.f32.mrf.mxu1 }
 0x2b9   :  { %23354 = vst [vmem:[#allocation447_spill] sm:$0xff] %v19787_v57  ;;  %23355 = vst [vmem:[#allocation448_spill] sm:$0xff] %v19789_v16 }
 0x2ba   :  { %v19791_v33 = vpop.f32.mrf.mxu0  ;;  %15983 = vmatmul.mubr.msk.bf16.gmra.mxu0 %vm4063_vm0, %v17142_v17  ;;  %v19794_v56 = vpop.f32.mrf.mxu1  ;;  %16559 = vmatmul.mubr.msk.bf16.gmra.mxu1 %vm4063_vm0, %v17143_v28  ;;  %v17146_v17 = vld [vmem:[%s22906_s0 + $0x578] sm:$0xff]  }
 0x2bb   :  { %23356 = vst [vmem:[#allocation449_spill] sm:$0xff] %v19791_v33  ;;  %23357 = vst [vmem:[#allocation450_spill] sm:$0xff] %v19794_v56  ;;  %15986 = vmatprep.mubr.msk.bf16.mxu0 %vm4063_vm0, %v17144_v29  ;;  %16562 = vmatprep.mubr.msk.bf16.mxu1 %vm4063_vm0, %v17145_v32  ;;  %v17147_v28 = vld [vmem:[%s22906_s0 + $0xe78] sm:$0xff]   ;;  %v17148_v29 = vld [vmem:[%s22906_s0 + $0x580] sm:$0xff]  }
 0x2bc   :  { %v19799_v44 = vpop.f32.mrf.mxu0  ;;  %v19801_v45 = vpop.f32.mrf.mxu1  ;;  %v17149_v32 = vld [vmem:[%s22906_s0 + $0xe80] sm:$0xff]  }
 0x2bd   :  { %23358 = vst [vmem:[#allocation451_spill] sm:$0xff] %v19799_v44  ;;  %23359 = vst [vmem:[#allocation452_spill] sm:$0xff] %v19801_v45 }
 0x2be   :  { %v19803_v21 = vpop.f32.mrf.mxu0  ;;  %v19805_v57 = vpop.f32.mrf.mxu1 }
 0x2bf   :  { %23360 = vst [vmem:[#allocation453_spill] sm:$0xff] %v19803_v21  ;;  %23361 = vst [vmem:[#allocation454_spill] sm:$0xff] %v19805_v57 }
 0x2c0   :  { %v19819_v45 = vpop.f32.mrf.mxu0  ;;  %v19821_v21 = vpop.f32.mrf.mxu1 }
 0x2c1   :  { %23362 = vst [vmem:[#allocation455_spill] sm:$0xff] %v19819_v45  ;;  %23363 = vst [vmem:[#allocation456_spill] sm:$0xff] %v19821_v21 }
 0x2c2   :  { %v19823_v57 = vpop.f32.mrf.mxu0  ;;  %15987 = vmatmul.mubr.msk.bf16.gmra.mxu0 %vm4063_vm0, %v17146_v17  ;;  %v19826_v44 = vpop.f32.mrf.mxu1  ;;  %16563 = vmatmul.mubr.msk.bf16.gmra.mxu1 %vm4063_vm0, %v17147_v28  ;;  %v17150_v17 = vld [vmem:[%s22906_s0 + $0x588] sm:$0xff]  }
 0x2c3   :  { %23364 = vst [vmem:[#allocation457_spill] sm:$0xff] %v19823_v57  ;;  %23365 = vst [vmem:[#allocation458_spill] sm:$0xff] %v19826_v44  ;;  %15990 = vmatprep.mubr.msk.bf16.mxu0 %vm4063_vm0, %v17148_v29  ;;  %16566 = vmatprep.mubr.msk.bf16.mxu1 %vm4063_vm0, %v17149_v32  ;;  %v17151_v28 = vld [vmem:[%s22906_s0 + $0xe88] sm:$0xff]   ;;  %v17152_v29 = vld [vmem:[%s22906_s0 + $0x590] sm:$0xff]  }
 0x2c4   :  { %v19831_v56 = vpop.f32.mrf.mxu0  ;;  %v19833_v33 = vpop.f32.mrf.mxu1  ;;  %v17153_v32 = vld [vmem:[%s22906_s0 + $0xe90] sm:$0xff]  }
 0x2c5   :  { %23366 = vst [vmem:[#allocation459_spill] sm:$0xff] %v19831_v56  ;;  %23367 = vst [vmem:[#allocation460_spill] sm:$0xff] %v19833_v33 }
 0x2c6   :  { %v19835_v16 = vpop.f32.mrf.mxu0  ;;  %v19837_v45 = vpop.f32.mrf.mxu1 }
 0x2c7   :  { %23368 = vst [vmem:[#allocation461_spill] sm:$0xff] %v19835_v16  ;;  %23369 = vst [vmem:[#allocation462_spill] sm:$0xff] %v19837_v45 }
 0x2c8   :  { %v19851_v33 = vpop.f32.mrf.mxu0  ;;  %v19853_v16 = vpop.f32.mrf.mxu1 }
 0x2c9   :  { %23370 = vst [vmem:[#allocation463_spill] sm:$0xff] %v19851_v33  ;;  %23371 = vst [vmem:[#allocation464_spill] sm:$0xff] %v19853_v16 }
 0x2ca   :  { %v19855_v45 = vpop.f32.mrf.mxu0  ;;  %15991 = vmatmul.mubr.msk.bf16.gmra.mxu0 %vm4063_vm0, %v17150_v17  ;;  %v19858_v56 = vpop.f32.mrf.mxu1  ;;  %16567 = vmatmul.mubr.msk.bf16.gmra.mxu1 %vm4063_vm0, %v17151_v28  ;;  %v17154_v17 = vld [vmem:[%s22906_s0 + $0x598] sm:$0xff]  }
 0x2cb   :  { %23372 = vst [vmem:[#allocation465_spill] sm:$0xff] %v19855_v45  ;;  %23373 = vst [vmem:[#allocation466_spill] sm:$0xff] %v19858_v56  ;;  %15994 = vmatprep.mubr.msk.bf16.mxu0 %vm4063_vm0, %v17152_v29  ;;  %16570 = vmatprep.mubr.msk.bf16.mxu1 %vm4063_vm0, %v17153_v32  ;;  %v17155_v28 = vld [vmem:[%s22906_s0 + $0xe98] sm:$0xff]   ;;  %v17156_v29 = vld [vmem:[%s22906_s0 + $0x5a0] sm:$0xff]  }
 0x2cc   :  { %v19863_v44 = vpop.f32.mrf.mxu0  ;;  %v19865_v57 = vpop.f32.mrf.mxu1  ;;  %v17157_v32 = vld [vmem:[%s22906_s0 + $0xea0] sm:$0xff]  }
 0x2cd   :  { %23374 = vst [vmem:[#allocation467_spill] sm:$0xff] %v19863_v44  ;;  %23375 = vst [vmem:[#allocation468_spill] sm:$0xff] %v19865_v57 }
 0x2ce   :  { %v19867_v21 = vpop.f32.mrf.mxu0  ;;  %v19869_v33 = vpop.f32.mrf.mxu1 }
 0x2cf   :  { %23376 = vst [vmem:[#allocation469_spill] sm:$0xff] %v19867_v21  ;;  %23377 = vst [vmem:[#allocation470_spill] sm:$0xff] %v19869_v33 }
 0x2d0   :  { %v19883_v57 = vpop.f32.mrf.mxu0  ;;  %v19885_v21 = vpop.f32.mrf.mxu1 }
 0x2d1   :  { %23378 = vst [vmem:[#allocation471_spill] sm:$0xff] %v19883_v57  ;;  %23379 = vst [vmem:[#allocation472_spill] sm:$0xff] %v19885_v21 }
 0x2d2   :  { %v19887_v33 = vpop.f32.mrf.mxu0  ;;  %15995 = vmatmul.mubr.msk.bf16.gmra.mxu0 %vm4063_vm0, %v17154_v17  ;;  %v19890_v44 = vpop.f32.mrf.mxu1  ;;  %16571 = vmatmul.mubr.msk.bf16.gmra.mxu1 %vm4063_vm0, %v17155_v28  ;;  %v17158_v17 = vld [vmem:[%s22906_s0 + $0x5a8] sm:$0xff]  }
 0x2d3   :  { %23380 = vst [vmem:[#allocation473_spill] sm:$0xff] %v19887_v33  ;;  %23381 = vst [vmem:[#allocation474_spill] sm:$0xff] %v19890_v44  ;;  %15998 = vmatprep.mubr.msk.bf16.mxu0 %vm4063_vm0, %v17156_v29  ;;  %16574 = vmatprep.mubr.msk.bf16.mxu1 %vm4063_vm0, %v17157_v32  ;;  %v17159_v28 = vld [vmem:[%s22906_s0 + $0xea8] sm:$0xff]   ;;  %v17160_v29 = vld [vmem:[%s22906_s0 + $0x5b0] sm:$0xff]  }
 0x2d4   :  { %v19895_v56 = vpop.f32.mrf.mxu0  ;;  %v19897_v45 = vpop.f32.mrf.mxu1  ;;  %v17161_v32 = vld [vmem:[%s22906_s0 + $0xeb0] sm:$0xff]  }
 0x2d5   :  { %23382 = vst [vmem:[#allocation475_spill] sm:$0xff] %v19895_v56  ;;  %23383 = vst [vmem:[#allocation476_spill] sm:$0xff] %v19897_v45 }
 0x2d6   :  { %v19899_v16 = vpop.f32.mrf.mxu0  ;;  %v19901_v57 = vpop.f32.mrf.mxu1 }
 0x2d7   :  { %23384 = vst [vmem:[#allocation477_spill] sm:$0xff] %v19899_v16  ;;  %23385 = vst [vmem:[#allocation478_spill] sm:$0xff] %v19901_v57 }
 0x2d8   :  { %v19915_v45 = vpop.f32.mrf.mxu0  ;;  %v19917_v16 = vpop.f32.mrf.mxu1 }
 0x2d9   :  { %23386 = vst [vmem:[#allocation479_spill] sm:$0xff] %v19915_v45  ;;  %23387 = vst [vmem:[#allocation480_spill] sm:$0xff] %v19917_v16 }
 0x2da   :  { %v19919_v57 = vpop.f32.mrf.mxu0  ;;  %15999 = vmatmul.mubr.msk.bf16.gmra.mxu0 %vm4063_vm0, %v17158_v17  ;;  %v19922_v56 = vpop.f32.mrf.mxu1  ;;  %16575 = vmatmul.mubr.msk.bf16.gmra.mxu1 %vm4063_vm0, %v17159_v28  ;;  %v17162_v17 = vld [vmem:[%s22906_s0 + $0x5b8] sm:$0xff]  }
 0x2db   :  { %23388 = vst [vmem:[#allocation481_spill] sm:$0xff] %v19919_v57  ;;  %23389 = vst [vmem:[#allocation482_spill] sm:$0xff] %v19922_v56  ;;  %16002 = vmatprep.mubr.msk.bf16.mxu0 %vm4063_vm0, %v17160_v29  ;;  %16578 = vmatprep.mubr.msk.bf16.mxu1 %vm4063_vm0, %v17161_v32  ;;  %v17163_v28 = vld [vmem:[%s22906_s0 + $0xeb8] sm:$0xff]   ;;  %v17164_v29 = vld [vmem:[%s22906_s0 + $0x5c0] sm:$0xff]  }
 0x2dc   :  { %v19927_v44 = vpop.f32.mrf.mxu0  ;;  %v19929_v33 = vpop.f32.mrf.mxu1  ;;  %v17165_v32 = vld [vmem:[%s22906_s0 + $0xec0] sm:$0xff]  }
 0x2dd   :  { %23390 = vst [vmem:[#allocation483_spill] sm:$0xff] %v19927_v44  ;;  %23391 = vst [vmem:[#allocation484_spill] sm:$0xff] %v19929_v33 }
 0x2de   :  { %v19931_v21 = vpop.f32.mrf.mxu0  ;;  %v19933_v45 = vpop.f32.mrf.mxu1 }
 0x2df   :  { %23392 = vst [vmem:[#allocation485_spill] sm:$0xff] %v19931_v21  ;;  %23393 = vst [vmem:[#allocation486_spill] sm:$0xff] %v19933_v45 }
 0x2e0   :  { %v19947_v33 = vpop.f32.mrf.mxu0  ;;  %v19949_v21 = vpop.f32.mrf.mxu1 }
 0x2e1   :  { %23394 = vst [vmem:[#allocation487_spill] sm:$0xff] %v19947_v33  ;;  %23395 = vst [vmem:[#allocation488_spill] sm:$0xff] %v19949_v21 }
 0x2e2   :  { %v19951_v45 = vpop.f32.mrf.mxu0  ;;  %16003 = vmatmul.mubr.msk.bf16.gmra.mxu0 %vm4063_vm0, %v17162_v17  ;;  %v19954_v44 = vpop.f32.mrf.mxu1  ;;  %16579 = vmatmul.mubr.msk.bf16.gmra.mxu1 %vm4063_vm0, %v17163_v28  ;;  %v17166_v17 = vld [vmem:[%s22906_s0 + $0x5c8] sm:$0xff]  }
 0x2e3   :  { %23396 = vst [vmem:[#allocation489_spill] sm:$0xff] %v19951_v45  ;;  %23397 = vst [vmem:[#allocation490_spill] sm:$0xff] %v19954_v44  ;;  %16006 = vmatprep.mubr.msk.bf16.mxu0 %vm4063_vm0, %v17164_v29  ;;  %16582 = vmatprep.mubr.msk.bf16.mxu1 %vm4063_vm0, %v17165_v32  ;;  %v17167_v28 = vld [vmem:[%s22906_s0 + $0xec8] sm:$0xff]   ;;  %v17168_v29 = vld [vmem:[%s22906_s0 + $0x5d0] sm:$0xff]  }
 0x2e4   :  { %v19959_v56 = vpop.f32.mrf.mxu0  ;;  %v19961_v57 = vpop.f32.mrf.mxu1  ;;  %v17169_v32 = vld [vmem:[%s22906_s0 + $0xed0] sm:$0xff]  }
 0x2e5   :  { %23398 = vst [vmem:[#allocation491_spill] sm:$0xff] %v19959_v56  ;;  %23399 = vst [vmem:[#allocation492_spill] sm:$0xff] %v19961_v57 }
 0x2e6   :  { %v19963_v16 = vpop.f32.mrf.mxu0  ;;  %v19965_v33 = vpop.f32.mrf.mxu1 }
 0x2e7   :  { %23400 = vst [vmem:[#allocation493_spill] sm:$0xff] %v19963_v16  ;;  %23401 = vst [vmem:[#allocation494_spill] sm:$0xff] %v19965_v33 }
 0x2e8   :  { %v19979_v57 = vpop.f32.mrf.mxu0  ;;  %v19981_v16 = vpop.f32.mrf.mxu1 }
 0x2e9   :  { %23402 = vst [vmem:[#allocation495_spill] sm:$0xff] %v19979_v57  ;;  %23403 = vst [vmem:[#allocation496_spill] sm:$0xff] %v19981_v16 }
 0x2ea   :  { %v19983_v33 = vpop.f32.mrf.mxu0  ;;  %16007 = vmatmul.mubr.msk.bf16.gmra.mxu0 %vm4063_vm0, %v17166_v17  ;;  %v19986_v56 = vpop.f32.mrf.mxu1  ;;  %16583 = vmatmul.mubr.msk.bf16.gmra.mxu1 %vm4063_vm0, %v17167_v28  ;;  %v17170_v17 = vld [vmem:[%s22906_s0 + $0x5d8] sm:$0xff]  }
 0x2eb   :  { %23404 = vst [vmem:[#allocation497_spill] sm:$0xff] %v19983_v33  ;;  %23405 = vst [vmem:[#allocation498_spill] sm:$0xff] %v19986_v56  ;;  %16010 = vmatprep.mubr.msk.bf16.mxu0 %vm4063_vm0, %v17168_v29  ;;  %16586 = vmatprep.mubr.msk.bf16.mxu1 %vm4063_vm0, %v17169_v32  ;;  %v17171_v28 = vld [vmem:[%s22906_s0 + $0xed8] sm:$0xff]   ;;  %v17172_v29 = vld [vmem:[%s22906_s0 + $0x5e0] sm:$0xff]  }
 0x2ec   :  { %v19991_v44 = vpop.f32.mrf.mxu0  ;;  %v19993_v45 = vpop.f32.mrf.mxu1  ;;  %v17173_v32 = vld [vmem:[%s22906_s0 + $0xee0] sm:$0xff]  }
 0x2ed   :  { %23406 = vst [vmem:[#allocation499_spill] sm:$0xff] %v19991_v44  ;;  %23407 = vst [vmem:[#allocation500_spill] sm:$0xff] %v19993_v45 }
 0x2ee   :  { %v19995_v21 = vpop.f32.mrf.mxu0  ;;  %v19997_v57 = vpop.f32.mrf.mxu1 }
 0x2ef   :  { %23408 = vst [vmem:[#allocation501_spill] sm:$0xff] %v19995_v21  ;;  %23409 = vst [vmem:[#allocation502_spill] sm:$0xff] %v19997_v57 }
 0x2f0   :  { %v20011_v45 = vpop.f32.mrf.mxu0  ;;  %v20013_v21 = vpop.f32.mrf.mxu1 }
 0x2f1   :  { %23410 = vst [vmem:[#allocation503_spill] sm:$0xff] %v20011_v45  ;;  %23411 = vst [vmem:[#allocation504_spill] sm:$0xff] %v20013_v21 }
 0x2f2   :  { %v20015_v57 = vpop.f32.mrf.mxu0  ;;  %16011 = vmatmul.mubr.msk.bf16.gmra.mxu0 %vm4063_vm0, %v17170_v17  ;;  %v20018_v44 = vpop.f32.mrf.mxu1  ;;  %16587 = vmatmul.mubr.msk.bf16.gmra.mxu1 %vm4063_vm0, %v17171_v28  ;;  %v17174_v17 = vld [vmem:[%s22906_s0 + $0x5e8] sm:$0xff]  }
 0x2f3   :  { %23412 = vst [vmem:[#allocation505_spill] sm:$0xff] %v20015_v57  ;;  %23413 = vst [vmem:[#allocation506_spill] sm:$0xff] %v20018_v44  ;;  %16014 = vmatprep.mubr.msk.bf16.mxu0 %vm4063_vm0, %v17172_v29  ;;  %16590 = vmatprep.mubr.msk.bf16.mxu1 %vm4063_vm0, %v17173_v32  ;;  %v17175_v28 = vld [vmem:[%s22906_s0 + $0xee8] sm:$0xff]   ;;  %v17176_v29 = vld [vmem:[%s22906_s0 + $0x5f0] sm:$0xff]  }
 0x2f4   :  { %v20023_v56 = vpop.f32.mrf.mxu0  ;;  %v20025_v33 = vpop.f32.mrf.mxu1  ;;  %v17177_v32 = vld [vmem:[%s22906_s0 + $0xef0] sm:$0xff]  }
 0x2f5   :  { %23414 = vst [vmem:[#allocation507_spill] sm:$0xff] %v20023_v56  ;;  %23415 = vst [vmem:[#allocation508_spill] sm:$0xff] %v20025_v33 }
 0x2f6   :  { %v20027_v16 = vpop.f32.mrf.mxu0  ;;  %v20029_v45 = vpop.f32.mrf.mxu1 }
 0x2f7   :  { %23416 = vst [vmem:[#allocation509_spill] sm:$0xff] %v20027_v16  ;;  %23417 = vst [vmem:[#allocation510_spill] sm:$0xff] %v20029_v45 }
 0x2f8   :  { %v20043_v33 = vpop.f32.mrf.mxu0  ;;  %v20045_v16 = vpop.f32.mrf.mxu1 }
 0x2f9   :  { %23418 = vst [vmem:[#allocation511_spill] sm:$0xff] %v20043_v33  ;;  %23419 = vst [vmem:[#allocation512_spill] sm:$0xff] %v20045_v16 }
 0x2fa   :  { %v20047_v45 = vpop.f32.mrf.mxu0  ;;  %16015 = vmatmul.mubr.msk.bf16.gmra.mxu0 %vm4063_vm0, %v17174_v17  ;;  %v20050_v56 = vpop.f32.mrf.mxu1  ;;  %16591 = vmatmul.mubr.msk.bf16.gmra.mxu1 %vm4063_vm0, %v17175_v28  ;;  %v17178_v17 = vld [vmem:[%s22906_s0 + $0x5f8] sm:$0xff]  }
 0x2fb   :  { %23420 = vst [vmem:[#allocation513_spill] sm:$0xff] %v20047_v45  ;;  %23421 = vst [vmem:[#allocation514_spill] sm:$0xff] %v20050_v56  ;;  %16018 = vmatprep.mubr.msk.bf16.mxu0 %vm4063_vm0, %v17176_v29  ;;  %16594 = vmatprep.mubr.msk.bf16.mxu1 %vm4063_vm0, %v17177_v32  ;;  %v17179_v28 = vld [vmem:[%s22906_s0 + $0xef8] sm:$0xff]   ;;  %v17180_v29 = vld [vmem:[%s22906_s0 + $0x600] sm:$0xff]  }
 0x2fc   :  { %v20055_v44 = vpop.f32.mrf.mxu0  ;;  %v20057_v57 = vpop.f32.mrf.mxu1  ;;  %v17181_v32 = vld [vmem:[%s22906_s0 + $0xf00] sm:$0xff]  }
 0x2fd   :  { %23422 = vst [vmem:[#allocation515_spill] sm:$0xff] %v20055_v44  ;;  %23423 = vst [vmem:[#allocation516_spill] sm:$0xff] %v20057_v57 }
 0x2fe   :  { %v20059_v21 = vpop.f32.mrf.mxu0  ;;  %v20061_v33 = vpop.f32.mrf.mxu1 }
 0x2ff   :  { %23424 = vst [vmem:[#allocation517_spill] sm:$0xff] %v20059_v21  ;;  %23425 = vst [vmem:[#allocation518_spill] sm:$0xff] %v20061_v33 }
 0x300   :  { %v20075_v57 = vpop.f32.mrf.mxu0  ;;  %v20077_v21 = vpop.f32.mrf.mxu1 }
 0x301   :  { %23426 = vst [vmem:[#allocation519_spill] sm:$0xff] %v20075_v57  ;;  %23427 = vst [vmem:[#allocation520_spill] sm:$0xff] %v20077_v21 }
 0x302   :  { %v20079_v33 = vpop.f32.mrf.mxu0  ;;  %16019 = vmatmul.mubr.msk.bf16.gmra.mxu0 %vm4063_vm0, %v17178_v17  ;;  %v20082_v44 = vpop.f32.mrf.mxu1  ;;  %16595 = vmatmul.mubr.msk.bf16.gmra.mxu1 %vm4063_vm0, %v17179_v28  ;;  %v17182_v17 = vld [vmem:[%s22906_s0 + $0x608] sm:$0xff]  }
 0x303   :  { %23428 = vst [vmem:[#allocation521_spill] sm:$0xff] %v20079_v33  ;;  %23429 = vst [vmem:[#allocation522_spill] sm:$0xff] %v20082_v44  ;;  %16022 = vmatprep.mubr.msk.bf16.mxu0 %vm4063_vm0, %v17180_v29  ;;  %16598 = vmatprep.mubr.msk.bf16.mxu1 %vm4063_vm0, %v17181_v32  ;;  %v17183_v28 = vld [vmem:[%s22906_s0 + $0xf08] sm:$0xff]   ;;  %v17184_v29 = vld [vmem:[%s22906_s0 + $0x610] sm:$0xff]  }
 0x304   :  { %v20087_v56 = vpop.f32.mrf.mxu0  ;;  %v20089_v45 = vpop.f32.mrf.mxu1  ;;  %v17185_v32 = vld [vmem:[%s22906_s0 + $0xf10] sm:$0xff]  }
 0x305   :  { %23430 = vst [vmem:[#allocation523_spill] sm:$0xff] %v20087_v56  ;;  %23431 = vst [vmem:[#allocation524_spill] sm:$0xff] %v20089_v45 }
 0x306   :  { %v20091_v16 = vpop.f32.mrf.mxu0  ;;  %v20093_v57 = vpop.f32.mrf.mxu1 }
 0x307   :  { %23432 = vst [vmem:[#allocation525_spill] sm:$0xff] %v20091_v16  ;;  %23433 = vst [vmem:[#allocation526_spill] sm:$0xff] %v20093_v57 }
 0x308   :  { %v20107_v45 = vpop.f32.mrf.mxu0  ;;  %v20109_v16 = vpop.f32.mrf.mxu1 }
 0x309   :  { %23434 = vst [vmem:[#allocation527_spill] sm:$0xff] %v20107_v45  ;;  %23435 = vst [vmem:[#allocation528_spill] sm:$0xff] %v20109_v16  ;;  %v20120_v45 = vld [vmem:[%s22907_s2] ss:$0 sm:$0xff] }
 0x30a   :  { %v15928_v57 = vpop.f32.mrf.mxu0  ;;  %16023 = vmatmul.mubr.msk.bf16.gmra.mxu0 %vm4063_vm0, %v17182_v17  ;;  %v16504_v56 = vpop.f32.mrf.mxu1  ;;  %16599 = vmatmul.mubr.msk.bf16.gmra.mxu1 %vm4063_vm0, %v17183_v28 }
 0x30b   :  { %v10435_v44 = vmax.f32 %v17807_v40, %v15928_v57  ;;  %v10723_v33 = vmax.f32 %v17810_v41, %v16504_v56  ;;  %16026 = vmatprep.mubr.msk.bf16.mxu0 %vm4063_vm0, %v17184_v29  ;;  %16602 = vmatprep.mubr.msk.bf16.mxu1 %vm4063_vm0, %v17185_v32  ;;  %v17186_v41 = vld [vmem:[%s22906_s0 + $0x618] sm:$0xff]  }
 0x30c   :  { %v6978_v16 = vpop.f32.mrf.mxu0  ;;  %v9282_v21 = vpop.f32.mrf.mxu1  ;;  %v17187_v57 = vld [vmem:[%s22906_s0 + $0xf18] sm:$0xff]  }
 0x30d   :  { %v11011_v20 = vmax.f32 %v10435_v44, %v10723_v33  ;;  %v10433_v17 = vmax.f32 %v17815_v42, %v6978_v16  ;;  %v10721_v28 = vmax.f32 %v17817_v43, %v9282_v21  ;;  %v17188_v42 = vld [vmem:[%s22906_s0 + $0x620] sm:$0xff]  }
 0x30e   :  { %v15929_v9 = vpop.f32.mrf.mxu0  ;;  %v16505_v40 = vpop.f32.mrf.mxu1  ;;  %v17189_v43 = vld [vmem:[%s22906_s0 + $0xf20] sm:$0xff]  }
 0x30f   :  { %v11306_v56 = vadd.f32 %v20120_v45, %v11011_v20  ;;  %v11009_v29 = vmax.f32 %v10433_v17, %v10721_v28  ;;  %v10436_v32 = vmax.f32 %v17825_v46, %v15929_v9  ;;  %v10724_v33 = vmax.f32 %v17827_v47, %v16505_v40 }
 0x310   :  { %v6981_v21 = vpop.f32.mrf.mxu0  ;;  %v9285_v16 = vpop.f32.mrf.mxu1 }
 0x311   :  { %v11594_v44 = vmax.f32 %v11306_v56, 0.0  ;;  %v11304_v8 = vadd.f32 %v20120_v45, %v11009_v29  ;;  %v11012_v5 = vmax.f32 %v10436_v32, %v10724_v33  ;;  %v10434_v20 = vmax.f32 %v17835_v50, %v6981_v21  ;;  %v17191_v21 = vld [vmem:[%s22906_s0 + $0xf28] sm:$0xff]  }
 0x312   :  { %v10722_v46 = vmax.f32 %v17837_v51, %v9285_v16  ;;  %v15932_v47 = vpop.f32.mrf.mxu0  ;;  %16027 = vmatmul.mubr.msk.bf16.gmra.mxu0 %vm4063_vm0, %v17186_v41  ;;  %v16508_v9 = vpop.f32.mrf.mxu1  ;;  %16603 = vmatmul.mubr.msk.bf16.gmra.mxu1 %vm4063_vm0, %v17187_v57 }
 0x313   :  { %v14770_v17 = vpack.c.bf16 %v11594_v44, %v11594_v44  ;;  %v11592_v28 = vmax.f32 %v11304_v8, 0.0  ;;  %v11307_v40 = vadd.f32 %v20120_v45, %v11012_v5  ;;  %v10439_v56 = vmax.f32 %v17839_v52, %v15932_v47  ;;  %16030 = vmatprep.mubr.msk.bf16.mxu0 %vm4063_vm0, %v17188_v42  ;;  %16606 = vmatprep.mubr.msk.bf16.mxu1 %vm4063_vm0, %v17189_v43 }
 0x314   :  { %v11010_v50 = vmax.f32 %v10434_v20, %v10722_v46  ;;  %v10727_v29 = vmax.f32 %v17842_v53, %v16508_v9  ;;  %v6994_v51 = vpop.f32.mrf.mxu0  ;;  %v9298_v32 = vpop.f32.mrf.mxu1  ;;  %v17190_v53 = vld [vmem:[%s22906_s0 + $0x628] sm:$0xff]   ;;  %v17192_v20 = vld [vmem:[%s22906_s0 + $0x630] sm:$0xff]  }
 0x315   :  { %13035 = vst.msk [vmem:[%s22908_s3 + $0x8] sm:$0xf] %vm13032_vm1, %v14770_v17  ;;  %v14768_v41 = vpack.c.bf16 %v11592_v28, %v11592_v28  ;;  %v11595_v8 = vmax.f32 %v11307_v40, 0.0  ;;  %v10437_v5 = vmax.f32 %v17847_v54, %v6994_v51  ;;  %v10725_v52 = vmax.f32 %v17849_v55, %v9298_v32  ;;  %v17193_v46 = vld [vmem:[%s22906_s0 + $0xf30] sm:$0xff]  }
 0x316   :  { %v11305_v57 = vadd.f32 %v20120_v45, %v11010_v50  ;;  %v11015_v33 = vmax.f32 %v10439_v56, %v10727_v29  ;;  %v15933_v42 = vpop.f32.mrf.mxu0  ;;  %v16509_v43 = vpop.f32.mrf.mxu1 }
 0x317   :  { %13033 = vst.msk [vmem:[%s22908_s3] sm:$0xf] %vm13032_vm1, %v14768_v41  ;;  %v14771_v54 = vpack.c.bf16 %v11595_v8, %v11595_v8  ;;  %v11013_v55 = vmax.f32 %v10437_v5, %v10725_v52  ;;  %v10440_v16 = vmax.f32 %v17857_v58, %v15933_v42  ;;  %v10728_v44 = vmax.f32 %v17859_v59, %v16509_v43 }
 0x318   :  { %v11593_v47 = vmax.f32 %v11305_v57, 0.0  ;;  %v11310_v9 = vadd.f32 %v20120_v45, %v11015_v33  ;;  %v6997_v17 = vpop.f32.mrf.mxu0  ;;  %v9301_v28 = vpop.f32.mrf.mxu1 }
 0x319   :  { %13036 = vst.msk [vmem:[%s22908_s3 + $0xc] sm:$0xf] %vm13032_vm1, %v14771_v54  ;;  %v11308_v58 = vadd.f32 %v20120_v45, %v11013_v55  ;;  %v11016_v59 = vmax.f32 %v10440_v16, %v10728_v44  ;;  %v10438_v40 = vmax.f32 %v17867_v62, %v6997_v17  ;;  %v10726_v56 = vmax.f32 %v17869_v63, %v9301_v28  ;;  %v17195_v44 = vld [vmem:[%s22906_s0 + $0xf38] sm:$0xff]  }
 0x31a   :  { %v14769_v50 = vpack.c.bf16 %v11593_v47, %v11593_v47  ;;  %v11598_v29 = vmax.f32 %v11310_v9, 0.0  ;;  %v15936_v51 = vpop.f32.mrf.mxu0  ;;  %16031 = vmatmul.mubr.msk.bf16.gmra.mxu0 %vm4063_vm0, %v17190_v53  ;;  %v16512_v32 = vpop.f32.mrf.mxu1  ;;  %16607 = vmatmul.mubr.msk.bf16.gmra.mxu1 %vm4063_vm0, %v17191_v21  ;;  %v17196_v47 = vld [vmem:[%s22906_s0 + $0x640] sm:$0xff]  }
 0x31b   :  { %v11596_v41 = vmax.f32 %v11308_v58, 0.0  ;;  %v11311_v8 = vadd.f32 %v20120_v45, %v11016_v59  ;;  %v11014_v5 = vmax.f32 %v10438_v40, %v10726_v56  ;;  %v10443_v52 = vmax.f32 %v17871_v0, %v15936_v51  ;;  %16034 = vmatprep.mubr.msk.bf16.mxu0 %vm4063_vm0, %v17192_v20  ;;  %16610 = vmatprep.mubr.msk.bf16.mxu1 %vm4063_vm0, %v17193_v46  ;;  %v17197_v59 = vld [vmem:[%s22906_s0 + $0xf40] sm:$0xff]  }
 0x31c   :  { %13034 = vst.msk [vmem:[%s22908_s3 + $0x4] sm:$0xf] %vm13032_vm1, %v14769_v50  ;;  %v14774_v62 = vpack.c.bf16 %v11598_v29, %v11598_v29  ;;  %v10731_v63 = vmax.f32 %v17874_v1, %v16512_v32  ;;  %v7010_v57 = vpop.f32.mrf.mxu0  ;;  %v9314_v33 = vpop.f32.mrf.mxu1  ;;  %v17194_v1 = vld [vmem:[%s22906_s0 + $0x638] sm:$0xff]  }
 0x31d   :  { %v14772_v42 = vpack.c.bf16 %v11596_v41, %v11596_v41  ;;  %v11599_v43 = vmax.f32 %v11311_v8, 0.0  ;;  %v11309_v53 = vadd.f32 %v20120_v45, %v11014_v5  ;;  %v10441_v0 = vmax.f32 %v17879_v2, %v7010_v57 }
 0x31e   :  { %13039 = vst.msk [vmem:[%s22908_s3 + $0x18] sm:$0xf] %vm13032_vm1, %v14774_v62  ;;  %v11019_v21 = vmax.f32 %v10443_v52, %v10731_v63  ;;  %v10729_v54 = vmax.f32 %v17881_v3, %v9314_v33  ;;  %v15937_v55 = vpop.f32.mrf.mxu0  ;;  %v16513_v16 = vpop.f32.mrf.mxu1 }
 0x31f   :  { %13037 = vst.msk [vmem:[%s22908_s3 + $0x10] sm:$0xf] %vm13032_vm1, %v14772_v42  ;;  %v14775_v2 = vpack.c.bf16 %v11599_v43, %v11599_v43  ;;  %v11597_v20 = vmax.f32 %v11309_v53, 0.0  ;;  %v10444_v46 = vmax.f32 %v17889_v6, %v15937_v55  ;;  %v10732_v3 = vmax.f32 %v17891_v7, %v16513_v16 }
 0x320   :  { %v11314_v9 = vadd.f32 %v20120_v45, %v11019_v21  ;;  %v11017_v17 = vmax.f32 %v10441_v0, %v10729_v54  ;;  %v7013_v28 = vpop.f32.mrf.mxu0  ;;  %v9317_v58 = vpop.f32.mrf.mxu1  ;;  %v17198_v21 = vld [vmem:[%s22906_s0 + $0x648] sm:$0xff]  }
 0x321   :  { %13040 = vst.msk [vmem:[%s22908_s3 + $0x1c] sm:$0xf] %vm13032_vm1, %v14775_v2  ;;  %v14773_v6 = vpack.c.bf16 %v11597_v20, %v11597_v20  ;;  %v11020_v7 = vmax.f32 %v10444_v46, %v10732_v3  ;;  %v10442_v40 = vmax.f32 %v17899_v10, %v7013_v28  ;;  %v10730_v56 = vmax.f32 %v17901_v11, %v9317_v58  ;;  %v17199_v54 = vld [vmem:[%s22906_s0 + $0xf48] sm:$0xff]   ;;  %v17201_v3 = vld [vmem:[%s22906_s0 + $0xf50] sm:$0xff]  }
 0x322   :  { %v11602_v50 = vmax.f32 %v11314_v9, 0.0  ;;  %v11312_v29 = vadd.f32 %v20120_v45, %v11017_v17  ;;  %v15940_v51 = vpop.f32.mrf.mxu0  ;;  %16035 = vmatmul.mubr.msk.bf16.gmra.mxu0 %vm4063_vm0, %v17194_v1  ;;  %v16516_v32 = vpop.f32.mrf.mxu1  ;;  %16611 = vmatmul.mubr.msk.bf16.gmra.mxu1 %vm4063_vm0, %v17195_v44 }
 0x323   :  { %13038 = vst.msk [vmem:[%s22908_s3 + $0x14] sm:$0xf] %vm13032_vm1, %v14773_v6  ;;  %v11315_v41 = vadd.f32 %v20120_v45, %v11020_v7  ;;  %v11018_v8 = vmax.f32 %v10442_v40, %v10730_v56  ;;  %v10447_v10 = vmax.f32 %v17903_v12, %v15940_v51  ;;  %v10735_v11 = vmax.f32 %v17906_v13, %v16516_v32 }
 0x324   :  { %16038 = vmatprep.mubr.msk.bf16.mxu0 %vm4063_vm0, %v17196_v47  ;;  %v14778_v5 = vpack.c.bf16 %v11602_v50, %v11602_v50  ;;  %v11600_v52 = vmax.f32 %v11312_v29, 0.0  ;;  %v7026_v62 = vpop.f32.mrf.mxu0  ;;  %v9330_v63 = vpop.f32.mrf.mxu1  ;;  %16614 = vmatprep.mubr.msk.bf16.mxu1 %vm4063_vm0, %v17197_v59 }
 0x325   :  { %v11603_v57 = vmax.f32 %v11315_v41, 0.0  ;;  %v11313_v33 = vadd.f32 %v20120_v45, %v11018_v8  ;;  %v11023_v42 = vmax.f32 %v10447_v10, %v10735_v11  ;;  %v10445_v43 = vmax.f32 %v17911_v14, %v7026_v62 }
 0x326   :  { %13043 = vst.msk [vmem:[%s22908_s3 + $0x28] sm:$0xf] %vm13032_vm1, %v14778_v5  ;;  %v14776_v12 = vpack.c.bf16 %v11600_v52, %v11600_v52  ;;  %v10733_v13 = vmax.f32 %v17913_v15, %v9330_v63  ;;  %v15941_v53 = vpop.f32.mrf.mxu0  ;;  %v16517_v0 = vpop.f32.mrf.mxu1  ;;  %v17200_v15 = vld [vmem:[%s22906_s0 + $0x650] sm:$0xff]   ;;  %v17202_v5 = vld [vmem:[%s22906_s0 + $0x658] sm:$0xff]  }
 0x327   :  { %v14779_v55 = vpack.c.bf16 %v11603_v57, %v11603_v57  ;;  %v11601_v14 = vmax.f32 %v11313_v33, 0.0  ;;  %v11318_v16 = vadd.f32 %v20120_v45, %v11023_v42  ;;  %v10448_v1 = vmax.f32 %v17921_v18, %v15941_v53  ;;  %v17203_v52 = vld [vmem:[%s22906_s0 + $0xf58] sm:$0xff]   ;;  %v17205_v33 = vld [vmem:[%s22906_s0 + $0xf60] sm:$0xff]  }
 0x328   :  { %13041 = vst.msk [vmem:[%s22908_s3 + $0x20] sm:$0xf] %vm13032_vm1, %v14776_v12  ;;  %v11021_v44 = vmax.f32 %v10445_v43, %v10733_v13  ;;  %v10736_v2 = vmax.f32 %v17923_v19, %v16517_v0  ;;  %v7029_v20 = vpop.f32.mrf.mxu0  ;;  %v9333_v46 = vpop.f32.mrf.mxu1 }
 0x329   :  { %13044 = vst.msk [vmem:[%s22908_s3 + $0x2c] sm:$0xf] %vm13032_vm1, %v14779_v55  ;;  %v14777_v18 = vpack.c.bf16 %v11601_v14, %v11601_v14  ;;  %v11606_v47 = vmax.f32 %v11318_v16, 0.0  ;;  %v10446_v9 = vmax.f32 %v17931_v22, %v7029_v20  ;;  %v10734_v17 = vmax.f32 %v17933_v23, %v9333_v46 }
 0x32a   :  { %v11316_v28 = vadd.f32 %v20120_v45, %v11021_v44  ;;  %v11024_v19 = vmax.f32 %v10448_v1, %v10736_v2  ;;  %v15944_v58 = vpop.f32.mrf.mxu0  ;;  %16039 = vmatmul.mubr.msk.bf16.gmra.mxu0 %vm4063_vm0, %v17198_v21  ;;  %v16520_v59 = vpop.f32.mrf.mxu1  ;;  %16615 = vmatmul.mubr.msk.bf16.gmra.mxu1 %vm4063_vm0, %v17199_v54 }
 0x32b   :  { %13042 = vst.msk [vmem:[%s22908_s3 + $0x24] sm:$0xf] %vm13032_vm1, %v14777_v18  ;;  %v14782_v6 = vpack.c.bf16 %v11606_v47, %v11606_v47  ;;  %v11022_v7 = vmax.f32 %v10446_v9, %v10734_v17  ;;  %v10451_v22 = vmax.f32 %v17935_v24, %v15944_v58  ;;  %v10739_v23 = vmax.f32 %v17938_v25, %v16520_v59 }
 0x32c   :  { %16042 = vmatprep.mubr.msk.bf16.mxu0 %vm4063_vm0, %v17200_v15  ;;  %v11604_v40 = vmax.f32 %v11316_v28, 0.0  ;;  %v11319_v56 = vadd.f32 %v20120_v45, %v11024_v19  ;;  %v7042_v50 = vpop.f32.mrf.mxu0  ;;  %v9346_v29 = vpop.f32.mrf.mxu1  ;;  %16618 = vmatprep.mubr.msk.bf16.mxu1 %vm4063_vm0, %v17201_v3  ;;  %v17206_v28 = vld [vmem:[%s22906_s0 + $0x668] sm:$0xff]  }
 0x32d   :  { %13047 = vst.msk [vmem:[%s22908_s3 + $0x38] sm:$0xf] %vm13032_vm1, %v14782_v6  ;;  %v11317_v51 = vadd.f32 %v20120_v45, %v11022_v7  ;;  %v11027_v32 = vmax.f32 %v10451_v22, %v10739_v23  ;;  %v10449_v24 = vmax.f32 %v17943_v26, %v7042_v50  ;;  %v10737_v25 = vmax.f32 %v17945_v27, %v9346_v29  ;;  %v17204_v27 = vld [vmem:[%s22906_s0 + $0x660] sm:$0xff]   ;;  %v17207_v19 = vld [vmem:[%s22906_s0 + $0xf68] sm:$0xff]   ;;  %v17208_v6 = vld [vmem:[%s22906_s0 + $0x670] sm:$0xff]  }
 0x32e   :  { %v14780_v41 = vpack.c.bf16 %v11604_v40, %v11604_v40  ;;  %v11607_v8 = vmax.f32 %v11319_v56, 0.0  ;;  %v15945_v10 = vpop.f32.mrf.mxu0  ;;  %v16521_v11 = vpop.f32.mrf.mxu1  ;;  %v17209_v7 = vld [vmem:[%s22906_s0 + $0xf70] sm:$0xff]  }
 0x32f   :  { %v11605_v62 = vmax.f32 %v11317_v51, 0.0  ;;  %v11322_v63 = vadd.f32 %v20120_v45, %v11027_v32  ;;  %v11025_v57 = vmax.f32 %v10449_v24, %v10737_v25  ;;  %v10452_v26 = vmax.f32 %v17953_v30, %v15945_v10 }
 0x330   :  { %13045 = vst.msk [vmem:[%s22908_s3 + $0x30] sm:$0xf] %vm13032_vm1, %v14780_v41  ;;  %v14783_v42 = vpack.c.bf16 %v11607_v8, %v11607_v8  ;;  %v10740_v43 = vmax.f32 %v17955_v31, %v16521_v11  ;;  %v7045_v12 = vpop.f32.mrf.mxu0  ;;  %v9349_v13 = vpop.f32.mrf.mxu1  ;;  %v23436_v11 = vld [vmem:[#allocation2_spill] sm:$0xff] }
 0x331   :  { %v14781_v53 = vpack.c.bf16 %v11605_v62, %v11605_v62  ;;  %v11610_v30 = vmax.f32 %v11322_v63, 0.0  ;;  %v11320_v0 = vadd.f32 %v20120_v45, %v11025_v57  ;;  %v10450_v21 = vmax.f32 %v17963_v34, %v7045_v12  ;;  %v23437_v57 = vld [vmem:[#allocation3_spill] sm:$0xff] }
 0x332   :  { %13048 = vst.msk [vmem:[%s22908_s3 + $0x3c] sm:$0xf] %vm13032_vm1, %v14783_v42  ;;  %v11028_v54 = vmax.f32 %v10452_v26, %v10740_v43  ;;  %v10738_v55 = vmax.f32 %v17965_v35, %v9349_v13  ;;  %v15948_v14 = vpop.f32.mrf.mxu0  ;;  %16043 = vmatmul.mubr.msk.bf16.gmra.mxu0 %vm4063_vm0, %v17202_v5  ;;  %v16524_v31 = vpop.f32.mrf.mxu1  ;;  %16619 = vmatmul.mubr.msk.bf16.gmra.mxu1 %vm4063_vm0, %v17203_v52 }
 0x333   :  { %13046 = vst.msk [vmem:[%s22908_s3 + $0x34] sm:$0xf] %vm13032_vm1, %v14781_v53  ;;  %v14786_v34 = vpack.c.bf16 %v11610_v30, %v11610_v30  ;;  %v11608_v16 = vmax.f32 %v11320_v0, 0.0  ;;  %v10455_v1 = vmax.f32 %v17967_v36, %v15948_v14  ;;  %v10743_v15 = vmax.f32 %v17970_v37, %v16524_v31  ;;  %16046 = vmatprep.mubr.msk.bf16.mxu0 %vm4063_vm0, %v17204_v27  ;;  %v23438_v27 = vld [vmem:[#allocation4_spill] sm:$0xff]  ;;  %v17210_v53 = vld [vmem:[%s22906_s0 + $0x678] sm:$0xff]   ;;  %v23440_v14 = vld [vmem:[#allocation6_spill] sm:$0xff] }
 0x334   :  { %16622 = vmatprep.mubr.msk.bf16.mxu1 %vm4063_vm0, %v17205_v33  ;;  %v11323_v35 = vadd.f32 %v20120_v45, %v11028_v54  ;;  %v11026_v44 = vmax.f32 %v10450_v21, %v10738_v55  ;;  %v7058_v2 = vpop.f32.mrf.mxu0  ;;  %v9362_v20 = vpop.f32.mrf.mxu1  ;;  %v17211_v30 = vld [vmem:[%s22906_s0 + $0xf78] sm:$0xff]  }
 0x335   :  { %13051 = vst.msk [vmem:[%s22908_s3 + $0x48] sm:$0xf] %vm13032_vm1, %v14786_v34  ;;  %v14784_v46 = vpack.c.bf16 %v11608_v16, %v11608_v16  ;;  %v11031_v3 = vmax.f32 %v10455_v1, %v10743_v15  ;;  %v10453_v36 = vmax.f32 %v17975_v38, %v7058_v2  ;;  %v10741_v37 = vmax.f32 %v17977_v39, %v9362_v20  ;;  %v23439_v54 = vld [vmem:[#allocation5_spill] sm:$0xff]  ;;  %v17212_v34 = vld [vmem:[%s22906_s0 + $0x680] sm:$0xff]  }
 0x336   :  { %v11611_v18 = vmax.f32 %v11323_v35, 0.0  ;;  %v11321_v47 = vadd.f32 %v20120_v45, %v11026_v44  ;;  %v15949_v9 = vpop.f32.mrf.mxu0  ;;  %v16525_v17 = vpop.f32.mrf.mxu1  ;;  %v17213_v16 = vld [vmem:[%s22906_s0 + $0xf80] sm:$0xff]  }
 0x337   :  { %13049 = vst.msk [vmem:[%s22908_s3 + $0x40] sm:$0xf] %vm13032_vm1, %v14784_v46  ;;  %v11326_v38 = vadd.f32 %v20120_v45, %v11031_v3  ;;  %v11029_v39 = vmax.f32 %v10453_v36, %v10741_v37  ;;  %v10456_v58 = vmax.f32 %v17985_v48, %v15949_v9  ;;  %v10744_v59 = vmax.f32 %v17987_v49, %v16525_v17  ;;  %v23441_v46 = vld [vmem:[#allocation7_spill] sm:$0xff]  ;;  %v23442_v36 = vld [vmem:[#allocation8_spill] sm:$0xff] }
 0x338   :  { %v14787_v22 = vpack.c.bf16 %v11611_v18, %v11611_v18  ;;  %v11609_v23 = vmax.f32 %v11321_v47, 0.0  ;;  %v7061_v40 = vpop.f32.mrf.mxu0  ;;  %v9365_v56 = vpop.f32.mrf.mxu1 }
 0x339   :  { %v11614_v50 = vmax.f32 %v11326_v38, 0.0  ;;  %v11324_v29 = vadd.f32 %v20120_v45, %v11029_v39  ;;  %v11032_v51 = vmax.f32 %v10456_v58, %v10744_v59  ;;  %v10454_v48 = vmax.f32 %v17995_v60, %v7061_v40  ;;  %v23443_v39 = vld [vmem:[#allocation9_spill] sm:$0xff] }
 0x33a   :  { %13052 = vst.msk [vmem:[%s22908_s3 + $0x4c] sm:$0xf] %vm13032_vm1, %v14787_v22  ;;  %v14785_v49 = vpack.c.bf16 %v11609_v23, %v11609_v23  ;;  %v10742_v32 = vmax.f32 %v17997_v61, %v9365_v56  ;;  %v15952_v24 = vpop.f32.mrf.mxu0  ;;  %16047 = vmatmul.mubr.msk.bf16.gmra.mxu0 %vm4063_vm0, %v17206_v28  ;;  %v16528_v25 = vpop.f32.mrf.mxu1  ;;  %16623 = vmatmul.mubr.msk.bf16.gmra.mxu1 %vm4063_vm0, %v17207_v19 }
 0x33b   :  { %v14790_v41 = vpack.c.bf16 %v11614_v50, %v11614_v50  ;;  %v11612_v8 = vmax.f32 %v11324_v29, 0.0  ;;  %v11327_v10 = vadd.f32 %v20120_v45, %v11032_v51  ;;  %v10459_v60 = vmax.f32 %v17999_v4, %v15952_v24  ;;  %16050 = vmatprep.mubr.msk.bf16.mxu0 %vm4063_vm0, %v17208_v6  ;;  %16626 = vmatprep.mubr.msk.bf16.mxu1 %vm4063_vm0, %v17209_v7  ;;  %v23444_v6 = vld [vmem:[#allocation10_spill] sm:$0xff]  ;;  %v23445_v29 = vld [vmem:[#allocation11_spill] sm:$0xff] }
 0x33c   :  { %13050 = vst.msk [vmem:[%s22908_s3 + $0x44] sm:$0xf] %vm13032_vm1, %v14785_v49  ;;  %v11030_v61 = vmax.f32 %v10454_v48, %v10742_v32  ;;  %v10747_v5 = vmax.f32 %v23436_v11, %v16528_v25  ;;  %v7074_v52 = vpop.f32.mrf.mxu0  ;;  %v9378_v62 = vpop.f32.mrf.mxu1  ;;  %v23446_v49 = vld [vmem:[#allocation12_spill] sm:$0xff] }
 0x33d   :  { %13055 = vst.msk [vmem:[%s22908_s3 + $0x58] sm:$0xf] %vm13032_vm1, %v14790_v41  ;;  %v14788_v4 = vpack.c.bf16 %v11612_v8, %v11612_v8  ;;  %v11615_v63 = vmax.f32 %v11327_v10, 0.0  ;;  %v10457_v26 = vmax.f32 %v23437_v57, %v7074_v52  ;;  %v10745_v33 = vmax.f32 %v23438_v27, %v9378_v62  ;;  %v17214_v41 = vld [vmem:[%s22906_s0 + $0x688] sm:$0xff]   ;;  %v17216_v62 = vld [vmem:[%s22906_s0 + $0x690] sm:$0xff]  }
 0x33e   :  { %v11325_v42 = vadd.f32 %v20120_v45, %v11030_v61  ;;  %v11035_v43 = vmax.f32 %v10459_v60, %v10747_v5  ;;  %v15953_v12 = vpop.f32.mrf.mxu0  ;;  %v16529_v13 = vpop.f32.mrf.mxu1  ;;  %v17215_v8 = vld [vmem:[%s22906_s0 + $0xf88] sm:$0xff]   ;;  %v23447_v61 = vld [vmem:[#allocation13_spill] sm:$0xff]  ;;  %v23448_v5 = vld [vmem:[#allocation14_spill] sm:$0xff] }
 0x33f   :  { %13053 = vst.msk [vmem:[%s22908_s3 + $0x50] sm:$0xf] %vm13032_vm1, %v14788_v4  ;;  %v14791_v0 = vpack.c.bf16 %v11615_v63, %v11615_v63  ;;  %v11033_v21 = vmax.f32 %v10457_v26, %v10745_v33  ;;  %v10460_v55 = vmax.f32 %v23439_v54, %v15953_v12  ;;  %v10748_v31 = vmax.f32 %v23440_v14, %v16529_v13  ;;  %v17217_v27 = vld [vmem:[%s22906_s0 + $0xf90] sm:$0xff]  }
 0x340   :  { %v11613_v1 = vmax.f32 %v11325_v42, 0.0  ;;  %v11330_v15 = vadd.f32 %v20120_v45, %v11035_v43  ;;  %v7077_v35 = vpop.f32.mrf.mxu0  ;;  %v9381_v44 = vpop.f32.mrf.mxu1  ;;  %v23449_v43 = vld [vmem:[#allocation15_spill] sm:$0xff]  ;;  %v23450_v13 = vld [vmem:[#allocation16_spill] sm:$0xff] }
 0x341   :  { %13056 = vst.msk [vmem:[%s22908_s3 + $0x5c] sm:$0xf] %vm13032_vm1, %v14791_v0  ;;  %v11328_v2 = vadd.f32 %v20120_v45, %v11033_v21  ;;  %v11036_v20 = vmax.f32 %v10460_v55, %v10748_v31  ;;  %v10458_v3 = vmax.f32 %v23441_v46, %v7077_v35  ;;  %v10746_v37 = vmax.f32 %v23442_v36, %v9381_v44  ;;  %v23451_v31 = vld [vmem:[#allocation17_spill] sm:$0xff]  ;;  %v23453_v36 = vld [vmem:[#allocation19_spill] sm:$0xff] }
 0x342   :  { %v14789_v18 = vpack.c.bf16 %v11613_v1, %v11613_v1  ;;  %v11618_v47 = vmax.f32 %v11330_v15, 0.0  ;;  %v15956_v9 = vpop.f32.mrf.mxu0  ;;  %16051 = vmatmul.mubr.msk.bf16.gmra.mxu0 %vm4063_vm0, %v17210_v53  ;;  %v16532_v17 = vpop.f32.mrf.mxu1  ;;  %16627 = vmatmul.mubr.msk.bf16.gmra.mxu1 %vm4063_vm0, %v17211_v30 }
 0x343   :  { %v11616_v28 = vmax.f32 %v11328_v2, 0.0  ;;  %v11331_v19 = vadd.f32 %v20120_v45, %v11036_v20  ;;  %v11034_v38 = vmax.f32 %v10458_v3, %v10746_v37  ;;  %v10463_v58 = vmax.f32 %v23443_v39, %v15956_v9  ;;  %16054 = vmatprep.mubr.msk.bf16.mxu0 %vm4063_vm0, %v17212_v34  ;;  %16630 = vmatprep.mubr.msk.bf16.mxu1 %vm4063_vm0, %v17213_v16  ;;  %v23452_v16 = vld [vmem:[#allocation18_spill] sm:$0xff] }
 0x344   :  { %13054 = vst.msk [vmem:[%s22908_s3 + $0x54] sm:$0xf] %vm13032_vm1, %v14789_v18  ;;  %v14794_v59 = vpack.c.bf16 %v11618_v47, %v11618_v47  ;;  %v10751_v7 = vmax.f32 %v23444_v6, %v16532_v17  ;;  %v7090_v22 = vpop.f32.mrf.mxu0  ;;  %v9394_v23 = vpop.f32.mrf.mxu1  ;;  %v23454_v47 = vld [vmem:[#allocation20_spill] sm:$0xff]  ;;  %v23455_v6 = vld [vmem:[#allocation21_spill] sm:$0xff] }
 0x345   :  { %v14792_v40 = vpack.c.bf16 %v11616_v28, %v11616_v28  ;;  %v11619_v56 = vmax.f32 %v11331_v19, 0.0  ;;  %v11329_v50 = vadd.f32 %v20120_v45, %v11034_v38  ;;  %v10461_v51 = vmax.f32 %v23445_v29, %v7090_v22  ;;  %v17218_v19 = vld [vmem:[%s22906_s0 + $0x698] sm:$0xff]   ;;  %v17220_v22 = vld [vmem:[%s22906_s0 + $0x6a0] sm:$0xff]  }
 0x346   :  { %13059 = vst.msk [vmem:[%s22908_s3 + $0x68] sm:$0xf] %vm13032_vm1, %v14794_v59  ;;  %v11039_v48 = vmax.f32 %v10463_v58, %v10751_v7  ;;  %v10749_v32 = vmax.f32 %v23446_v49, %v9394_v23  ;;  %v15957_v24 = vpop.f32.mrf.mxu0  ;;  %v16533_v25 = vpop.f32.mrf.mxu1  ;;  %v17219_v38 = vld [vmem:[%s22906_s0 + $0xf98] sm:$0xff]  }
 0x347   :  { %13057 = vst.msk [vmem:[%s22908_s3 + $0x60] sm:$0xf] %vm13032_vm1, %v14792_v40  ;;  %v14795_v10 = vpack.c.bf16 %v11619_v56, %v11619_v56  ;;  %v11617_v60 = vmax.f32 %v11329_v50, 0.0  ;;  %v10464_v11 = vmax.f32 %v23447_v61, %v15957_v24  ;;  %v10752_v52 = vmax.f32 %v23448_v5, %v16533_v25  ;;  %v23456_v40 = vld [vmem:[#allocation22_spill] sm:$0xff]  ;;  %v23458_v25 = vld [vmem:[#allocation24_spill] sm:$0xff] }
 0x348   :  { %v11334_v4 = vadd.f32 %v20120_v45, %v11039_v48  ;;  %v11037_v63 = vmax.f32 %v10461_v51, %v10749_v32  ;;  %v7093_v57 = vpop.f32.mrf.mxu0  ;;  %v9397_v26 = vpop.f32.mrf.mxu1  ;;  %v17221_v51 = vld [vmem:[%s22906_s0 + $0xfa0] sm:$0xff]   ;;  %v23457_v32 = vld [vmem:[#allocation23_spill] sm:$0xff] }
 0x349   :  { %13060 = vst.msk [vmem:[%s22908_s3 + $0x6c] sm:$0xf] %vm13032_vm1, %v14795_v10  ;;  %v14793_v33 = vpack.c.bf16 %v11617_v60, %v11617_v60  ;;  %v11040_v42 = vmax.f32 %v10464_v11, %v10752_v52  ;;  %v10462_v12 = vmax.f32 %v23449_v43, %v7093_v57  ;;  %v10750_v53 = vmax.f32 %v23450_v13, %v9397_v26  ;;  %v23459_v52 = vld [vmem:[#allocation25_spill] sm:$0xff] }
 0x34a   :  { %v11622_v30 = vmax.f32 %v11334_v4, 0.0  ;;  %v11332_v0 = vadd.f32 %v20120_v45, %v11037_v63  ;;  %v15960_v21 = vpop.f32.mrf.mxu0  ;;  %16055 = vmatmul.mubr.msk.bf16.gmra.mxu0 %vm4063_vm0, %v17214_v41  ;;  %v16536_v54 = vpop.f32.mrf.mxu1  ;;  %16631 = vmatmul.mubr.msk.bf16.gmra.mxu1 %vm4063_vm0, %v17215_v8  ;;  %v23460_v4 = vld [vmem:[#allocation26_spill] sm:$0xff] }
 0x34b   :  { %13058 = vst.msk [vmem:[%s22908_s3 + $0x64] sm:$0xf] %vm13032_vm1, %v14793_v33  ;;  %v11335_v55 = vadd.f32 %v20120_v45, %v11040_v42  ;;  %v11038_v14 = vmax.f32 %v10462_v12, %v10750_v53  ;;  %v10467_v34 = vmax.f32 %v23451_v31, %v15960_v21  ;;  %v10755_v1 = vmax.f32 %v23452_v16, %v16536_v54  ;;  %v23461_v12 = vld [vmem:[#allocation27_spill] sm:$0xff]  ;;  %v23462_v53 = vld [vmem:[#allocation28_spill] sm:$0xff] }
 0x34c   :  { %16058 = vmatprep.mubr.msk.bf16.mxu0 %vm4063_vm0, %v17216_v62  ;;  %v14798_v15 = vpack.c.bf16 %v11622_v30, %v11622_v30  ;;  %v11620_v35 = vmax.f32 %v11332_v0, 0.0  ;;  %v7106_v44 = vpop.f32.mrf.mxu0  ;;  %v9410_v2 = vpop.f32.mrf.mxu1  ;;  %16634 = vmatprep.mubr.msk.bf16.mxu1 %vm4063_vm0, %v17217_v27  ;;  %v17223_v31 = vld [vmem:[%s22906_s0 + $0xfa8] sm:$0xff]  }
 0x34d   :  { %v11623_v20 = vmax.f32 %v11335_v55, 0.0  ;;  %v11333_v46 = vadd.f32 %v20120_v45, %v11038_v14  ;;  %v11043_v3 = vmax.f32 %v10467_v34, %v10755_v1  ;;  %v10465_v37 = vmax.f32 %v23453_v36, %v7106_v44  ;;  %v17222_v14 = vld [vmem:[%s22906_s0 + $0x6a8] sm:$0xff]   ;;  %v17224_v44 = vld [vmem:[%s22906_s0 + $0x6b0] sm:$0xff]  }
 0x34e   :  { %13063 = vst.msk [vmem:[%s22908_s3 + $0x78] sm:$0xf] %vm13032_vm1, %v14798_v15  ;;  %v14796_v18 = vpack.c.bf16 %v11620_v35, %v11620_v35  ;;  %v10753_v9 = vmax.f32 %v23454_v47, %v9410_v2  ;;  %v15961_v17 = vpop.f32.mrf.mxu0  ;;  %v16537_v28 = vpop.f32.mrf.mxu1  ;;  %v23463_v15 = vld [vmem:[#allocation29_spill] sm:$0xff]  ;;  %v17225_v2 = vld [vmem:[%s22906_s0 + $0xfb0] sm:$0xff]  }
 0x34f   :  { %v14799_v39 = vpack.c.bf16 %v11623_v20, %v11623_v20  ;;  %v11621_v58 = vmax.f32 %v11333_v46, 0.0  ;;  %v11338_v59 = vadd.f32 %v20120_v45, %v11043_v3  ;;  %v10468_v7 = vmax.f32 %v23455_v6, %v15961_v17  ;;  %v23464_v46 = vld [vmem:[#allocation30_spill] sm:$0xff]  ;;  %v23465_v17 = vld [vmem:[#allocation31_spill] sm:$0xff] }
 0x350   :  { %13061 = vst.msk [vmem:[%s22908_s3 + $0x70] sm:$0xf] %vm13032_vm1, %v14796_v18  ;;  %v11041_v23 = vmax.f32 %v10465_v37, %v10753_v9  ;;  %v10756_v56 = vmax.f32 %v23456_v40, %v16537_v28  ;;  %v7109_v50 = vpop.f32.mrf.mxu0  ;;  %v9413_v29 = vpop.f32.mrf.mxu1  ;;  %v23468_v40 = vld [vmem:[#allocation34_spill] sm:$0xff] }
 0x351   :  { %13064 = vst.msk [vmem:[%s22908_s3 + $0x7c] sm:$0xf] %vm13032_vm1, %v14799_v39  ;;  %v14797_v48 = vpack.c.bf16 %v11621_v58, %v11621_v58  ;;  %v11626_v49 = vmax.f32 %v11338_v59, 0.0  ;;  %v10466_v24 = vmax.f32 %v23457_v32, %v7109_v50  ;;  %v10754_v41 = vmax.f32 %v23458_v25, %v9413_v29 }
 0x352   :  { %v11336_v8 = vadd.f32 %v20120_v45, %v11041_v23  ;;  %v11044_v10 = vmax.f32 %v10468_v7, %v10756_v56  ;;  %v15964_v60 = vpop.f32.mrf.mxu0  ;;  %16059 = vmatmul.mubr.msk.bf16.gmra.mxu0 %vm4063_vm0, %v17218_v19  ;;  %v16540_v61 = vpop.f32.mrf.mxu1  ;;  %16635 = vmatmul.mubr.msk.bf16.gmra.mxu1 %vm4063_vm0, %v17219_v38  ;;  %v23466_v38 = vld [vmem:[#allocation32_spill] sm:$0xff] }
 0x353   :  { %13062 = vst.msk [vmem:[%s22908_s3 + $0x74] sm:$0xf] %vm13032_vm1, %v14797_v48  ;;  %v14802_v11 = vpack.c.bf16 %v11626_v49, %v11626_v49  ;;  %v11042_v5 = vmax.f32 %v10466_v24, %v10754_v41  ;;  %v10471_v62 = vmax.f32 %v23459_v52, %v15964_v60  ;;  %v10759_v63 = vmax.f32 %v23460_v4, %v16540_v61  ;;  %v23469_v24 = vld [vmem:[#allocation35_spill] sm:$0xff]  ;;  %v23470_v41 = vld [vmem:[#allocation36_spill] sm:$0xff]  ;;  %v17227_v52 = vld [vmem:[%s22906_s0 + $0xfb8] sm:$0xff]  }
 0x354   :  { %16062 = vmatprep.mubr.msk.bf16.mxu0 %vm4063_vm0, %v17220_v22  ;;  %v11624_v57 = vmax.f32 %v11336_v8, 0.0  ;;  %v11339_v26 = vadd.f32 %v20120_v45, %v11044_v10  ;;  %v7122_v27 = vpop.f32.mrf.mxu0  ;;  %v9426_v33 = vpop.f32.mrf.mxu1  ;;  %16638 = vmatprep.mubr.msk.bf16.mxu1 %vm4063_vm0, %v17221_v51  ;;  %v23467_v22 = vld [vmem:[#allocation33_spill] sm:$0xff] }
 0x355   :  { %13067 = vst.msk [vmem:[%s22908_s3 + $0x88] sm:$0xf] %vm13032_vm1, %v14802_v11  ;;  %v11337_v42 = vadd.f32 %v20120_v45, %v11042_v5  ;;  %v11047_v43 = vmax.f32 %v10471_v62, %v10759_v63  ;;  %v10469_v13 = vmax.f32 %v23461_v12, %v7122_v27  ;;  %v10757_v30 = vmax.f32 %v23462_v53, %v9426_v33  ;;  %v17226_v5 = vld [vmem:[%s22906_s0 + $0x6b8] sm:$0xff]   ;;  %v17228_v33 = vld [vmem:[%s22906_s0 + $0x6c0] sm:$0xff]  }
 0x356   :  { %v14800_v0 = vpack.c.bf16 %v11624_v57, %v11624_v57  ;;  %v11627_v21 = vmax.f32 %v11339_v26, 0.0  ;;  %v15965_v54 = vpop.f32.mrf.mxu0  ;;  %v16541_v55 = vpop.f32.mrf.mxu1  ;;  %v23471_v63 = vld [vmem:[#allocation37_spill] sm:$0xff]  ;;  %v23472_v26 = vld [vmem:[#allocation38_spill] sm:$0xff] }
 0x357   :  { %v11625_v34 = vmax.f32 %v11337_v42, 0.0  ;;  %v11342_v16 = vadd.f32 %v20120_v45, %v11047_v43  ;;  %v11045_v1 = vmax.f32 %v10469_v13, %v10757_v30  ;;  %v10472_v35 = vmax.f32 %v23463_v15, %v15965_v54  ;;  %v17229_v42 = vld [vmem:[%s22906_s0 + $0xfc0] sm:$0xff]   ;;  %v23473_v54 = vld [vmem:[#allocation39_spill] sm:$0xff] }
 0x358   :  { %13065 = vst.msk [vmem:[%s22908_s3 + $0x80] sm:$0xf] %vm13032_vm1, %v14800_v0  ;;  %v14803_v20 = vpack.c.bf16 %v11627_v21, %v11627_v21  ;;  %v10760_v3 = vmax.f32 %v23464_v46, %v16541_v55  ;;  %v7125_v36 = vpop.f32.mrf.mxu0  ;;  %v9429_v37 = vpop.f32.mrf.mxu1 }
 0x359   :  { %v14801_v18 = vpack.c.bf16 %v11625_v34, %v11625_v34  ;;  %v11630_v47 = vmax.f32 %v11342_v16, 0.0  ;;  %v11340_v9 = vadd.f32 %v20120_v45, %v11045_v1  ;;  %v10470_v28 = vmax.f32 %v23465_v17, %v7125_v36  ;;  %v23477_v17 = vld [vmem:[#allocation43_spill] sm:$0xff] }
 0x35a   :  { %13068 = vst.msk [vmem:[%s22908_s3 + $0x8c] sm:$0xf] %vm13032_vm1, %v14803_v20  ;;  %v11048_v19 = vmax.f32 %v10472_v35, %v10760_v3  ;;  %v10758_v39 = vmax.f32 %v23466_v38, %v9429_v37  ;;  %v15968_v58 = vpop.f32.mrf.mxu0  ;;  %16063 = vmatmul.mubr.msk.bf16.gmra.mxu0 %vm4063_vm0, %v17222_v14  ;;  %v16544_v59 = vpop.f32.mrf.mxu1  ;;  %16639 = vmatmul.mubr.msk.bf16.gmra.mxu1 %vm4063_vm0, %v17223_v31  ;;  %v23474_v31 = vld [vmem:[#allocation40_spill] sm:$0xff]  ;;  %v23476_v3 = vld [vmem:[#allocation42_spill] sm:$0xff] }
 0x35b   :  { %13066 = vst.msk [vmem:[%s22908_s3 + $0x84] sm:$0xf] %vm13032_vm1, %v14801_v18  ;;  %v14806_v6 = vpack.c.bf16 %v11630_v47, %v11630_v47  ;;  %v11628_v7 = vmax.f32 %v11340_v9, 0.0  ;;  %v10475_v23 = vmax.f32 %v23467_v22, %v15968_v58  ;;  %v10763_v56 = vmax.f32 %v23468_v40, %v16544_v59  ;;  %16066 = vmatprep.mubr.msk.bf16.mxu0 %vm4063_vm0, %v17224_v44  ;;  %v17231_v22 = vld [vmem:[%s22906_s0 + $0xfc8] sm:$0xff]  }
 0x35c   :  { %16642 = vmatprep.mubr.msk.bf16.mxu1 %vm4063_vm0, %v17225_v2  ;;  %v11343_v50 = vadd.f32 %v20120_v45, %v11048_v19  ;;  %v11046_v29 = vmax.f32 %v10470_v28, %v10758_v39  ;;  %v7138_v51 = vpop.f32.mrf.mxu0  ;;  %v9442_v48 = vpop.f32.mrf.mxu1  ;;  %v23475_v2 = vld [vmem:[#allocation41_spill] sm:$0xff]  ;;  %v23478_v19 = vld [vmem:[#allocation44_spill] sm:$0xff] }
 0x35d   :  { %13071 = vst.msk [vmem:[%s22908_s3 + $0x98] sm:$0xf] %vm13032_vm1, %v14806_v6  ;;  %v14804_v49 = vpack.c.bf16 %v11628_v7, %v11628_v7  ;;  %v11051_v32 = vmax.f32 %v10475_v23, %v10763_v56  ;;  %v10473_v25 = vmax.f32 %v23469_v24, %v7138_v51  ;;  %v10761_v8 = vmax.f32 %v23470_v41, %v9442_v48  ;;  %v17230_v7 = vld [vmem:[%s22906_s0 + $0x6c8] sm:$0xff]   ;;  %v23479_v56 = vld [vmem:[#allocation45_spill] sm:$0xff]  ;;  %v17232_v48 = vld [vmem:[%s22906_s0 + $0x6d0] sm:$0xff]  }
 0x35e   :  { %v11631_v10 = vmax.f32 %v11343_v50, 0.0  ;;  %v11341_v60 = vadd.f32 %v20120_v45, %v11046_v29  ;;  %v15969_v61 = vpop.f32.mrf.mxu0  ;;  %v16545_v11 = vpop.f32.mrf.mxu1  ;;  %v23480_v29 = vld [vmem:[#allocation46_spill] sm:$0xff] }
 0x35f   :  { %13069 = vst.msk [vmem:[%s22908_s3 + $0x90] sm:$0xf] %vm13032_vm1, %v14804_v49  ;;  %v11346_v62 = vadd.f32 %v20120_v45, %v11051_v32  ;;  %v11049_v4 = vmax.f32 %v10473_v25, %v10761_v8  ;;  %v10476_v57 = vmax.f32 %v23471_v63, %v15969_v61  ;;  %v10764_v27 = vmax.f32 %v23472_v26, %v16545_v11  ;;  %v17233_v49 = vld [vmem:[%s22906_s0 + $0xfd0] sm:$0xff]   ;;  %v20627_v26 = vld [vmem:[%s22907_s2] ss:$0 sm:$0xff] }
 0x360   :  { %v14807_v43 = vpack.c.bf16 %v11631_v10, %v11631_v10  ;;  %v11629_v12 = vmax.f32 %v11341_v60, 0.0  ;;  %v7141_v13 = vpop.f32.mrf.mxu0  ;;  %v9445_v53 = vpop.f32.mrf.mxu1  ;;  %v23481_v60 = vld [vmem:[#allocation47_spill] sm:$0xff]  ;;  %v23482_v11 = vld [vmem:[#allocation48_spill] sm:$0xff] }
 0x361   :  { %v11634_v30 = vmax.f32 %v11346_v62, 0.0  ;;  %v11344_v0 = vadd.f32 %v20120_v45, %v11049_v4  ;;  %v11052_v21 = vmax.f32 %v10476_v57, %v10764_v27  ;;  %v10474_v55 = vmax.f32 %v23473_v54, %v7141_v13 }
 0x362   :  { %13072 = vst.msk [vmem:[%s22908_s3 + $0x9c] sm:$0xf] %vm13032_vm1, %v14807_v43  ;;  %v14805_v14 = vpack.c.bf16 %v11629_v12, %v11629_v12  ;;  %v10762_v34 = vmax.f32 %v23474_v31, %v9445_v53  ;;  %v15972_v16 = vpop.f32.mrf.mxu0  ;;  %16067 = vmatmul.mubr.msk.bf16.gmra.mxu0 %vm4063_vm0, %v17226_v5  ;;  %v16548_v1 = vpop.f32.mrf.mxu1  ;;  %16643 = vmatmul.mubr.msk.bf16.gmra.mxu1 %vm4063_vm0, %v17227_v52  ;;  %v23484_v12 = vld [vmem:[#allocation50_spill] sm:$0xff] }
 0x363   :  { %v14810_v15 = vpack.c.bf16 %v11634_v30, %v11634_v30  ;;  %v11632_v35 = vmax.f32 %v11344_v0, 0.0  ;;  %v11347_v44 = vadd.f32 %v20120_v45, %v11052_v21  ;;  %v10479_v20 = vmax.f32 %v23475_v2, %v15972_v16  ;;  %16070 = vmatprep.mubr.msk.bf16.mxu0 %vm4063_vm0, %v17228_v33  ;;  %16646 = vmatprep.mubr.msk.bf16.mxu1 %vm4063_vm0, %v17229_v42  ;;  %v23483_v33 = vld [vmem:[#allocation49_spill] sm:$0xff] }
 0x364   :  { %13070 = vst.msk [vmem:[%s22908_s3 + $0x94] sm:$0xf] %vm13032_vm1, %v14805_v14  ;;  %v11050_v46 = vmax.f32 %v10474_v55, %v10762_v34  ;;  %v10767_v36 = vmax.f32 %v23476_v3, %v16548_v1  ;;  %v7154_v37 = vpop.f32.mrf.mxu0  ;;  %v9458_v18 = vpop.f32.mrf.mxu1  ;;  %v23485_v55 = vld [vmem:[#allocation51_spill] sm:$0xff]  ;;  %v23486_v34 = vld [vmem:[#allocation52_spill] sm:$0xff] }
 0x365   :  { %13075 = vst.msk [vmem:[%s22908_s3 + $0xa8] sm:$0xf] %vm13032_vm1, %v14810_v15  ;;  %v14808_v47 = vpack.c.bf16 %v11632_v35, %v11632_v35  ;;  %v11635_v9 = vmax.f32 %v11347_v44, 0.0  ;;  %v10477_v28 = vmax.f32 %v23477_v17, %v7154_v37  ;;  %v10765_v38 = vmax.f32 %v23478_v19, %v9458_v18  ;;  %v17234_v35 = vld [vmem:[%s22906_s0 + $0x6d8] sm:$0xff]   ;;  %v17236_v18 = vld [vmem:[%s22906_s0 + $0x6e0] sm:$0xff]  }
 0x366   :  { %v11345_v39 = vadd.f32 %v20120_v45, %v11050_v46  ;;  %v11055_v58 = vmax.f32 %v10479_v20, %v10767_v36  ;;  %v15973_v59 = vpop.f32.mrf.mxu0  ;;  %v16549_v6 = vpop.f32.mrf.mxu1  ;;  %v17235_v44 = vld [vmem:[%s22906_s0 + $0xfd8] sm:$0xff]   ;;  %v23488_v36 = vld [vmem:[#allocation54_spill] sm:$0xff] }
 0x367   :  { %13073 = vst.msk [vmem:[%s22908_s3 + $0xa0] sm:$0xf] %vm13032_vm1, %v14808_v47  ;;  %v14811_v23 = vpack.c.bf16 %v11635_v9, %v11635_v9  ;;  %v11053_v40 = vmax.f32 %v10477_v28, %v10765_v38  ;;  %v10480_v50 = vmax.f32 %v23479_v56, %v15973_v59  ;;  %v10768_v51 = vmax.f32 %v23480_v29, %v16549_v6  ;;  %v23487_v46 = vld [vmem:[#allocation53_spill] sm:$0xff]  ;;  %v17237_v19 = vld [vmem:[%s22906_s0 + $0xfe0] sm:$0xff]   ;;  %v23490_v6 = vld [vmem:[#allocation56_spill] sm:$0xff] }
 0x368   :  { %v11633_v32 = vmax.f32 %v11345_v39, 0.0  ;;  %v11350_v24 = vadd.f32 %v20120_v45, %v11055_v58  ;;  %v7157_v25 = vpop.f32.mrf.mxu0  ;;  %v9461_v41 = vpop.f32.mrf.mxu1  ;;  %v23489_v58 = vld [vmem:[#allocation55_spill] sm:$0xff] }
 0x369   :  { %13076 = vst.msk [vmem:[%s22908_s3 + $0xac] sm:$0xf] %vm13032_vm1, %v14811_v23  ;;  %v11348_v8 = vadd.f32 %v20120_v45, %v11053_v40  ;;  %v11056_v10 = vmax.f32 %v10480_v50, %v10768_v51  ;;  %v10478_v61 = vmax.f32 %v23481_v60, %v7157_v25  ;;  %v10766_v5 = vmax.f32 %v23482_v11, %v9461_v41  ;;  %v23491_v51 = vld [vmem:[#allocation57_spill] sm:$0xff]  ;;  %v23493_v11 = vld [vmem:[#allocation59_spill] sm:$0xff] }
 0x36a   :  { %v14809_v52 = vpack.c.bf16 %v11633_v32, %v11633_v32  ;;  %v11638_v62 = vmax.f32 %v11350_v24, 0.0  ;;  %v15976_v4 = vpop.f32.mrf.mxu0  ;;  %16071 = vmatmul.mubr.msk.bf16.gmra.mxu0 %vm4063_vm0, %v17230_v7  ;;  %v16552_v63 = vpop.f32.mrf.mxu1  ;;  %16647 = vmatmul.mubr.msk.bf16.gmra.mxu1 %vm4063_vm0, %v17231_v22 }
 0x36b   :  { %v11636_v57 = vmax.f32 %v11348_v8, 0.0  ;;  %v11351_v45 = vadd.f32 %v20627_v26, %v11056_v10  ;;  %v11054_v27 = vmax.f32 %v10478_v61, %v10766_v5  ;;  %v10483_v42 = vmax.f32 %v23483_v33, %v15976_v4  ;;  %16074 = vmatprep.mubr.msk.bf16.mxu0 %vm4063_vm0, %v17232_v48  ;;  %16650 = vmatprep.mubr.msk.bf16.mxu1 %vm4063_vm0, %v17233_v49  ;;  %v23492_v49 = vld [vmem:[#allocation58_spill] sm:$0xff] }
 0x36c   :  { %13074 = vst.msk [vmem:[%s22908_s3 + $0xa4] sm:$0xf] %vm13032_vm1, %v14809_v52  ;;  %v14814_v43 = vpack.c.bf16 %v11638_v62, %v11638_v62  ;;  %v10771_v13 = vmax.f32 %v23484_v12, %v16552_v63  ;;  %v7170_v53 = vpop.f32.mrf.mxu0  ;;  %v9474_v30 = vpop.f32.mrf.mxu1  ;;  %v23494_v62 = vld [vmem:[#allocation60_spill] sm:$0xff]  ;;  %v23495_v12 = vld [vmem:[#allocation61_spill] sm:$0xff] }
 0x36d   :  { %v14812_v0 = vpack.c.bf16 %v11636_v57, %v11636_v57  ;;  %v11639_v21 = vmax.f32 %v11351_v45, 0.0  ;;  %v11349_v54 = vadd.f32 %v20627_v26, %v11054_v27  ;;  %v10481_v14 = vmax.f32 %v23485_v55, %v7170_v53  ;;  %v17238_v45 = vld [vmem:[%s22906_s0 + $0x6e8] sm:$0xff]   ;;  %v17240_v53 = vld [vmem:[%s22906_s0 + $0x6f0] sm:$0xff]  }
 0x36e   :  { %13079 = vst.msk [vmem:[%s22908_s3 + $0xb8] sm:$0xf] %vm13032_vm1, %v14814_v43  ;;  %v11059_v31 = vmax.f32 %v10483_v42, %v10771_v13  ;;  %v10769_v16 = vmax.f32 %v23486_v34, %v9474_v30  ;;  %v15977_v1 = vpop.f32.mrf.mxu0  ;;  %v16553_v15 = vpop.f32.mrf.mxu1  ;;  %v17239_v27 = vld [vmem:[%s22906_s0 + $0xfe8] sm:$0xff]  }
 0x36f   :  { %13077 = vst.msk [vmem:[%s22908_s3 + $0xb0] sm:$0xf] %vm13032_vm1, %v14812_v0  ;;  %v14815_v2 = vpack.c.bf16 %v11639_v21, %v11639_v21  ;;  %v11637_v20 = vmax.f32 %v11349_v54, 0.0  ;;  %v10484_v3 = vmax.f32 %v23487_v46, %v15977_v1  ;;  %v10772_v37 = vmax.f32 %v23488_v36, %v16553_v15  ;;  %v23496_v0 = vld [vmem:[#allocation62_spill] sm:$0xff]  ;;  %v23498_v15 = vld [vmem:[#allocation64_spill] sm:$0xff] }
 0x370   :  { %v11354_v47 = vadd.f32 %v20627_v26, %v11059_v31  ;;  %v11057_v9 = vmax.f32 %v10481_v14, %v10769_v16  ;;  %v7173_v17 = vpop.f32.mrf.mxu0  ;;  %v9477_v28 = vpop.f32.mrf.mxu1  ;;  %v17241_v14 = vld [vmem:[%s22906_s0 + $0xff0] sm:$0xff]   ;;  %v23497_v16 = vld [vmem:[#allocation63_spill] sm:$0xff] }
 0x371   :  { %13080 = vst.msk [vmem:[%s22908_s3 + $0xbc] sm:$0xf] %vm13032_vm1, %v14815_v2  ;;  %v14813_v38 = vpack.c.bf16 %v11637_v20, %v11637_v20  ;;  %v11060_v39 = vmax.f32 %v10484_v3, %v10772_v37  ;;  %v10482_v59 = vmax.f32 %v23489_v58, %v7173_v17  ;;  %v10770_v7 = vmax.f32 %v23490_v6, %v9477_v28  ;;  %v23499_v37 = vld [vmem:[#allocation65_spill] sm:$0xff] }
 0x372   :  { %v11642_v22 = vmax.f32 %v11354_v47, 0.0  ;;  %v11352_v23 = vadd.f32 %v20627_v26, %v11057_v9  ;;  %v15980_v40 = vpop.f32.mrf.mxu0  ;;  %16075 = vmatmul.mubr.msk.bf16.gmra.mxu0 %vm4063_vm0, %v17234_v35  ;;  %v16556_v56 = vpop.f32.mrf.mxu1  ;;  %16651 = vmatmul.mubr.msk.bf16.gmra.mxu1 %vm4063_vm0, %v17235_v44  ;;  %v23500_v47 = vld [vmem:[#allocation66_spill] sm:$0xff] }
 0x373   :  { %13078 = vst.msk [vmem:[%s22908_s3 + $0xb4] sm:$0xf] %vm13032_vm1, %v14813_v38  ;;  %v11355_v50 = vadd.f32 %v20627_v26, %v11060_v39  ;;  %v11058_v29 = vmax.f32 %v10482_v59, %v10770_v7  ;;  %v10487_v48 = vmax.f32 %v23491_v51, %v15980_v40  ;;  %v10775_v32 = vmax.f32 %v23492_v49, %v16556_v56  ;;  %v23501_v59 = vld [vmem:[#allocation67_spill] sm:$0xff]  ;;  %v23502_v7 = vld [vmem:[#allocation68_spill] sm:$0xff]  ;;  %v17243_v51 = vld [vmem:[%s22906_s0 + $0xff8] sm:$0xff]  }
 0x374   :  { %16078 = vmatprep.mubr.msk.bf16.mxu0 %vm4063_vm0, %v17236_v18  ;;  %v14818_v24 = vpack.c.bf16 %v11642_v22, %v11642_v22  ;;  %v11640_v25 = vmax.f32 %v11352_v23, 0.0  ;;  %v7186_v41 = vpop.f32.mrf.mxu0  ;;  %v9490_v8 = vpop.f32.mrf.mxu1  ;;  %16654 = vmatprep.mubr.msk.bf16.mxu1 %vm4063_vm0, %v17237_v19 }
 0x375   :  { %v11643_v10 = vmax.f32 %v11355_v50, 0.0  ;;  %v11353_v60 = vadd.f32 %v20627_v26, %v11058_v29  ;;  %v11063_v61 = vmax.f32 %v10487_v48, %v10775_v32  ;;  %v10485_v5 = vmax.f32 %v23493_v11, %v7186_v41  ;;  %v17242_v29 = vld [vmem:[%s22906_s0 + $0x6f8] sm:$0xff]   ;;  %v17244_v41 = vld [vmem:[%s22906_s0 + $0x700] sm:$0xff]  }
 0x376   :  { %13083 = vst.msk [vmem:[%s22908_s3 + $0xc8] sm:$0xf] %vm13032_vm1, %v14818_v24  ;;  %v14816_v52 = vpack.c.bf16 %v11640_v25, %v11640_v25  ;;  %v10773_v4 = vmax.f32 %v23494_v62, %v9490_v8  ;;  %v15981_v63 = vpop.f32.mrf.mxu0  ;;  %v16557_v57 = vpop.f32.mrf.mxu1  ;;  %v23503_v24 = vld [vmem:[#allocation69_spill] sm:$0xff]  ;;  %v17245_v8 = vld [vmem:[%s22906_s0 + $0x1000] sm:$0xff]  }
 0x377   :  { %v14819_v33 = vpack.c.bf16 %v11643_v10, %v11643_v10  ;;  %v11641_v42 = vmax.f32 %v11353_v60, 0.0  ;;  %v11358_v43 = vadd.f32 %v20627_v26, %v11063_v61  ;;  %v10488_v13 = vmax.f32 %v23495_v12, %v15981_v63  ;;  %v23504_v60 = vld [vmem:[#allocation70_spill] sm:$0xff]  ;;  %v23505_v63 = vld [vmem:[#allocation71_spill] sm:$0xff] }
 0x378   :  { %13081 = vst.msk [vmem:[%s22908_s3 + $0xc0] sm:$0xf] %vm13032_vm1, %v14816_v52  ;;  %v11061_v30 = vmax.f32 %v10485_v5, %v10773_v4  ;;  %v10776_v21 = vmax.f32 %v23496_v0, %v16557_v57  ;;  %v7189_v54 = vpop.f32.mrf.mxu0  ;;  %v9493_v55 = vpop.f32.mrf.mxu1  ;;  %v23508_v0 = vld [vmem:[#allocation74_spill] sm:$0xff] }
 0x379   :  { %13084 = vst.msk [vmem:[%s22908_s3 + $0xcc] sm:$0xf] %vm13032_vm1, %v14819_v33  ;;  %v14817_v31 = vpack.c.bf16 %v11641_v42, %v11641_v42  ;;  %v11646_v34 = vmax.f32 %v11358_v43, 0.0  ;;  %v10486_v1 = vmax.f32 %v23497_v16, %v7189_v54  ;;  %v10774_v35 = vmax.f32 %v23498_v15, %v9493_v55 }
 0x37a   :  { %v11356_v44 = vadd.f32 %v20627_v26, %v11061_v30  ;;  %v11064_v2 = vmax.f32 %v10488_v13, %v10776_v21  ;;  %v15984_v20 = vpop.f32.mrf.mxu0  ;;  %16079 = vmatmul.mubr.msk.bf16.gmra.mxu0 %vm4063_vm0, %v17238_v45  ;;  %v16560_v46 = vpop.f32.mrf.mxu1  ;;  %16655 = vmatmul.mubr.msk.bf16.gmra.mxu1 %vm4063_vm0, %v17239_v27  ;;  %v23506_v27 = vld [vmem:[#allocation72_spill] sm:$0xff] }
 0x37b   :  { %13082 = vst.msk [vmem:[%s22908_s3 + $0xc4] sm:$0xf] %vm13032_vm1, %v14817_v31  ;;  %v14822_v3 = vpack.c.bf16 %v11646_v34, %v11646_v34  ;;  %v11062_v36 = vmax.f32 %v10486_v1, %v10774_v35  ;;  %v10491_v18 = vmax.f32 %v23499_v37, %v15984_v20  ;;  %v10779_v9 = vmax.f32 %v23500_v47, %v16560_v46  ;;  %v23509_v1 = vld [vmem:[#allocation75_spill] sm:$0xff]  ;;  %v23510_v35 = vld [vmem:[#allocation76_spill] sm:$0xff] }
 0x37c   :  { %16082 = vmatprep.mubr.msk.bf16.mxu0 %vm4063_vm0, %v17240_v53  ;;  %v11644_v17 = vmax.f32 %v11356_v44, 0.0  ;;  %v11359_v28 = vadd.f32 %v20627_v26, %v11064_v2  ;;  %v7202_v19 = vpop.f32.mrf.mxu0  ;;  %v9506_v38 = vpop.f32.mrf.mxu1  ;;  %16658 = vmatprep.mubr.msk.bf16.mxu1 %vm4063_vm0, %v17241_v14  ;;  %v23507_v53 = vld [vmem:[#allocation73_spill] sm:$0xff]  ;;  %v17247_v37 = vld [vmem:[%s22906_s0 + $0x1008] sm:$0xff]  }
 0x37d   :  { %13087 = vst.msk [vmem:[%s22908_s3 + $0xd8] sm:$0xf] %vm13032_vm1, %v14822_v3  ;;  %v11357_v39 = vadd.f32 %v20627_v26, %v11062_v36  ;;  %v11067_v58 = vmax.f32 %v10491_v18, %v10779_v9  ;;  %v10489_v6 = vmax.f32 %v23501_v59, %v7202_v19  ;;  %v10777_v22 = vmax.f32 %v23502_v7, %v9506_v38  ;;  %v17246_v36 = vld [vmem:[%s22906_s0 + $0x708] sm:$0xff]   ;;  %v23511_v9 = vld [vmem:[#allocation77_spill] sm:$0xff]  ;;  %v17248_v38 = vld [vmem:[%s22906_s0 + $0x710] sm:$0xff]  }
 0x37e   :  { %v14820_v23 = vpack.c.bf16 %v11644_v17, %v11644_v17  ;;  %v11647_v40 = vmax.f32 %v11359_v28, 0.0  ;;  %v15985_v56 = vpop.f32.mrf.mxu0  ;;  %v16561_v50 = vpop.f32.mrf.mxu1  ;;  %v23512_v28 = vld [vmem:[#allocation78_spill] sm:$0xff] }
 0x37f   :  { %v11645_v48 = vmax.f32 %v11357_v39, 0.0  ;;  %v11362_v49 = vadd.f32 %v20627_v26, %v11067_v58  ;;  %v11065_v32 = vmax.f32 %v10489_v6, %v10777_v22  ;;  %v10492_v25 = vmax.f32 %v23503_v24, %v15985_v56  ;;  %v17249_v39 = vld [vmem:[%s22906_s0 + $0x1010] sm:$0xff]   ;;  %v23513_v56 = vld [vmem:[#allocation79_spill] sm:$0xff] }
 0x380   :  { %13085 = vst.msk [vmem:[%s22908_s3 + $0xd0] sm:$0xf] %vm13032_vm1, %v14820_v23  ;;  %v14823_v10 = vpack.c.bf16 %v11647_v40, %v11647_v40  ;;  %v10780_v61 = vmax.f32 %v23504_v60, %v16561_v50  ;;  %v7205_v11 = vpop.f32.mrf.mxu0  ;;  %v9509_v5 = vpop.f32.mrf.mxu1 }
 0x381   :  { %v14821_v52 = vpack.c.bf16 %v11645_v48, %v11645_v48  ;;  %v11650_v62 = vmax.f32 %v11362_v49, 0.0  ;;  %v11360_v4 = vadd.f32 %v20627_v26, %v11065_v32  ;;  %v10490_v57 = vmax.f32 %v23505_v63, %v7205_v11  ;;  %v23517_v63 = vld [vmem:[#allocation83_spill] sm:$0xff] }
 0x382   :  { %13088 = vst.msk [vmem:[%s22908_s3 + $0xdc] sm:$0xf] %vm13032_vm1, %v14823_v10  ;;  %v11068_v45 = vmax.f32 %v10492_v25, %v10780_v61  ;;  %v10778_v33 = vmax.f32 %v23506_v27, %v9509_v5  ;;  %v15988_v42 = vpop.f32.mrf.mxu0  ;;  %16083 = vmatmul.mubr.msk.bf16.gmra.mxu0 %vm4063_vm0, %v17242_v29  ;;  %v16564_v43 = vpop.f32.mrf.mxu1  ;;  %16659 = vmatmul.mubr.msk.bf16.gmra.mxu1 %vm4063_vm0, %v17243_v51  ;;  %v23514_v51 = vld [vmem:[#allocation80_spill] sm:$0xff]  ;;  %v23516_v61 = vld [vmem:[#allocation82_spill] sm:$0xff] }
 0x383   :  { %13086 = vst.msk [vmem:[%s22908_s3 + $0xd4] sm:$0xf] %vm13032_vm1, %v14821_v52  ;;  %v14826_v12 = vpack.c.bf16 %v11650_v62, %v11650_v62  ;;  %v11648_v13 = vmax.f32 %v11360_v4, 0.0  ;;  %v10495_v30 = vmax.f32 %v23507_v53, %v15988_v42  ;;  %v10783_v21 = vmax.f32 %v23508_v0, %v16564_v43  ;;  %16086 = vmatprep.mubr.msk.bf16.mxu0 %vm4063_vm0, %v17244_v41  ;;  %v17251_v53 = vld [vmem:[%s22906_s0 + $0x1018] sm:$0xff]  }
 0x384   :  { %16662 = vmatprep.mubr.msk.bf16.mxu1 %vm4063_vm0, %v17245_v8  ;;  %v11363_v54 = vadd.f32 %v20627_v26, %v11068_v45  ;;  %v11066_v55 = vmax.f32 %v10490_v57, %v10778_v33  ;;  %v7218_v14 = vpop.f32.mrf.mxu0  ;;  %v9522_v31 = vpop.f32.mrf.mxu1  ;;  %v23515_v8 = vld [vmem:[#allocation81_spill] sm:$0xff]  ;;  %v23518_v45 = vld [vmem:[#allocation84_spill] sm:$0xff] }
 0x385   :  { %13091 = vst.msk [vmem:[%s22908_s3 + $0xe8] sm:$0xf] %vm13032_vm1, %v14826_v12  ;;  %v14824_v34 = vpack.c.bf16 %v11648_v13, %v11648_v13  ;;  %v11071_v16 = vmax.f32 %v10495_v30, %v10783_v21  ;;  %v10493_v15 = vmax.f32 %v23509_v1, %v7218_v14  ;;  %v10781_v44 = vmax.f32 %v23510_v35, %v9522_v31  ;;  %v17250_v13 = vld [vmem:[%s22906_s0 + $0x718] sm:$0xff]   ;;  %v17252_v31 = vld [vmem:[%s22906_s0 + $0x720] sm:$0xff]  }
 0x386   :  { %v11651_v2 = vmax.f32 %v11363_v54, 0.0  ;;  %v11361_v20 = vadd.f32 %v20627_v26, %v11066_v55  ;;  %v15989_v46 = vpop.f32.mrf.mxu0  ;;  %v16565_v3 = vpop.f32.mrf.mxu1  ;;  %v23519_v21 = vld [vmem:[#allocation85_spill] sm:$0xff]  ;;  %v23520_v55 = vld [vmem:[#allocation86_spill] sm:$0xff] }
 0x387   :  { %13089 = vst.msk [vmem:[%s22908_s3 + $0xe0] sm:$0xf] %vm13032_vm1, %v14824_v34  ;;  %v11366_v18 = vadd.f32 %v20627_v26, %v11071_v16  ;;  %v11069_v47 = vmax.f32 %v10493_v15, %v10781_v44  ;;  %v10496_v17 = vmax.f32 %v23511_v9, %v15989_v46  ;;  %v10784_v19 = vmax.f32 %v23512_v28, %v16565_v3  ;;  %v17253_v34 = vld [vmem:[%s22906_s0 + $0x1020] sm:$0xff]   ;;  %v23522_v3 = vld [vmem:[#allocation88_spill] sm:$0xff] }
 0x388   :  { %v14827_v58 = vpack.c.bf16 %v11651_v2, %v11651_v2  ;;  %v11649_v59 = vmax.f32 %v11361_v20, 0.0  ;;  %v7221_v6 = vpop.f32.mrf.mxu0  ;;  %v9525_v7 = vpop.f32.mrf.mxu1  ;;  %v23521_v20 = vld [vmem:[#allocation87_spill] sm:$0xff] }
 0x389   :  { %v11654_v22 = vmax.f32 %v11366_v18, 0.0  ;;  %v11364_v23 = vadd.f32 %v20627_v26, %v11069_v47  ;;  %v11072_v40 = vmax.f32 %v10496_v17, %v10784_v19  ;;  %v10494_v50 = vmax.f32 %v23513_v56, %v7221_v6 }
 0x38a   :  { %13092 = vst.msk [vmem:[%s22908_s3 + $0xec] sm:$0xf] %vm13032_vm1, %v14827_v58  ;;  %v14825_v29 = vpack.c.bf16 %v11649_v59, %v11649_v59  ;;  %v10782_v48 = vmax.f32 %v23514_v51, %v9525_v7  ;;  %v15992_v49 = vpop.f32.mrf.mxu0  ;;  %16087 = vmatmul.mubr.msk.bf16.gmra.mxu0 %vm4063_vm0, %v17246_v36  ;;  %v16568_v32 = vpop.f32.mrf.mxu1  ;;  %16663 = vmatmul.mubr.msk.bf16.gmra.mxu1 %vm4063_vm0, %v17247_v37  ;;  %v23524_v59 = vld [vmem:[#allocation90_spill] sm:$0xff] }
 0x38b   :  { %v14830_v24 = vpack.c.bf16 %v11654_v22, %v11654_v22  ;;  %v11652_v25 = vmax.f32 %v11364_v23, 0.0  ;;  %v11367_v41 = vadd.f32 %v20627_v26, %v11072_v40  ;;  %v10499_v10 = vmax.f32 %v23515_v8, %v15992_v49  ;;  %16090 = vmatprep.mubr.msk.bf16.mxu0 %vm4063_vm0, %v17248_v38  ;;  %16666 = vmatprep.mubr.msk.bf16.mxu1 %vm4063_vm0, %v17249_v39  ;;  %v23523_v38 = vld [vmem:[#allocation89_spill] sm:$0xff] }
 0x38c   :  { %13090 = vst.msk [vmem:[%s22908_s3 + $0xe4] sm:$0xf] %vm13032_vm1, %v14825_v29  ;;  %v11070_v60 = vmax.f32 %v10494_v50, %v10782_v48  ;;  %v10787_v11 = vmax.f32 %v23516_v61, %v16568_v32  ;;  %v7234_v5 = vpop.f32.mrf.mxu0  ;;  %v9538_v52 = vpop.f32.mrf.mxu1  ;;  %v23525_v50 = vld [vmem:[#allocation91_spill] sm:$0xff]  ;;  %v23526_v48 = vld [vmem:[#allocation92_spill] sm:$0xff] }
 0x38d   :  { %13095 = vst.msk [vmem:[%s22908_s3 + $0xf8] sm:$0xf] %vm13032_vm1, %v14830_v24  ;;  %v14828_v62 = vpack.c.bf16 %v11652_v25, %v11652_v25  ;;  %v11655_v4 = vmax.f32 %v11367_v41, 0.0  ;;  %v10497_v57 = vmax.f32 %v23517_v63, %v7234_v5  ;;  %v10785_v27 = vmax.f32 %v23518_v45, %v9538_v52  ;;  %v17254_v25 = vld [vmem:[%s22906_s0 + $0x728] sm:$0xff]   ;;  %v17256_v52 = vld [vmem:[%s22906_s0 + $0x730] sm:$0xff]  }
 0x38e   :  { %v11365_v33 = vadd.f32 %v20627_v26, %v11070_v60  ;;  %v11075_v42 = vmax.f32 %v10499_v10, %v10787_v11  ;;  %v15993_v43 = vpop.f32.mrf.mxu0  ;;  %v16569_v12 = vpop.f32.mrf.mxu1  ;;  %v17255_v41 = vld [vmem:[%s22906_s0 + $0x1028] sm:$0xff]   ;;  %v23527_v60 = vld [vmem:[#allocation93_spill] sm:$0xff]  ;;  %v23528_v11 = vld [vmem:[#allocation94_spill] sm:$0xff] }
 0x38f   :  { %13093 = vst.msk [vmem:[%s22908_s3 + $0xf0] sm:$0xf] %vm13032_vm1, %v14828_v62  ;;  %v14831_v30 = vpack.c.bf16 %v11655_v4, %v11655_v4  ;;  %v11073_v0 = vmax.f32 %v10497_v57, %v10785_v27  ;;  %v10500_v54 = vmax.f32 %v23519_v21, %v15993_v43  ;;  %v10788_v14 = vmax.f32 %v23520_v55, %v16569_v12  ;;  %v17257_v45 = vld [vmem:[%s22906_s0 + $0x1030] sm:$0xff]  }
 0x390   :  { %v11653_v16 = vmax.f32 %v11365_v33, 0.0  ;;  %v11370_v1 = vadd.f32 %v20627_v26, %v11075_v42  ;;  %v7237_v15 = vpop.f32.mrf.mxu0  ;;  %v9541_v35 = vpop.f32.mrf.mxu1  ;;  %v23529_v42 = vld [vmem:[#allocation95_spill] sm:$0xff]  ;;  %v23530_v12 = vld [vmem:[#allocation96_spill] sm:$0xff] }
 0x391   :  { %13096 = vst.msk [vmem:[%s22908_s3 + $0xfc] sm:$0xf] %vm13032_vm1, %v14831_v30  ;;  %v11368_v44 = vadd.f32 %v20627_v26, %v11073_v0  ;;  %v11076_v2 = vmax.f32 %v10500_v54, %v10788_v14  ;;  %v10498_v46 = vmax.f32 %v23521_v20, %v7237_v15  ;;  %v10786_v36 = vmax.f32 %v23522_v3, %v9541_v35  ;;  %v23531_v14 = vld [vmem:[#allocation97_spill] sm:$0xff]  ;;  %v23533_v3 = vld [vmem:[#allocation99_spill] sm:$0xff] }
 0x392   :  { %v14829_v37 = vpack.c.bf16 %v11653_v16, %v11653_v16  ;;  %v11658_v18 = vmax.f32 %v11370_v1, 0.0  ;;  %v15996_v47 = vpop.f32.mrf.mxu0  ;;  %16091 = vmatmul.mubr.msk.bf16.gmra.mxu0 %vm4063_vm0, %v17250_v13  ;;  %v16572_v9 = vpop.f32.mrf.mxu1  ;;  %16667 = vmatmul.mubr.msk.bf16.gmra.mxu1 %vm4063_vm0, %v17251_v53 }
 0x393   :  { %v11656_v17 = vmax.f32 %v11368_v44, 0.0  ;;  %v11371_v28 = vadd.f32 %v20627_v26, %v11076_v2  ;;  %v11074_v19 = vmax.f32 %v10498_v46, %v10786_v36  ;;  %v10503_v39 = vmax.f32 %v23523_v38, %v15996_v47  ;;  %16094 = vmatprep.mubr.msk.bf16.mxu0 %vm4063_vm0, %v17252_v31  ;;  %16670 = vmatprep.mubr.msk.bf16.mxu1 %vm4063_vm0, %v17253_v34  ;;  %v23532_v34 = vld [vmem:[#allocation98_spill] sm:$0xff] }
 0x394   :  { %13094 = vst.msk [vmem:[%s22908_s3 + $0xf4] sm:$0xf] %vm13032_vm1, %v14829_v37  ;;  %v14834_v58 = vpack.c.bf16 %v11658_v18, %v11658_v18  ;;  %v10791_v6 = vmax.f32 %v23524_v59, %v16572_v9  ;;  %v7250_v7 = vpop.f32.mrf.mxu0  ;;  %v9554_v22 = vpop.f32.mrf.mxu1  ;;  %v23534_v18 = vld [vmem:[#allocation100_spill] sm:$0xff]  ;;  %v23535_v59 = vld [vmem:[#allocation101_spill] sm:$0xff] }
 0x395   :  { %v14832_v23 = vpack.c.bf16 %v11656_v17, %v11656_v17  ;;  %v11659_v40 = vmax.f32 %v11371_v28, 0.0  ;;  %v11369_v56 = vadd.f32 %v20627_v26, %v11074_v19  ;;  %v10501_v29 = vmax.f32 %v23525_v50, %v7250_v7  ;;  %v17258_v28 = vld [vmem:[%s22906_s0 + $0x738] sm:$0xff]   ;;  %v17260_v7 = vld [vmem:[%s22906_s0 + $0x740] sm:$0xff]  }
 0x396   :  { %13099 = vst.msk [vmem:[%s22908_s3 + $0x108] sm:$0xf] %vm13032_vm1, %v14834_v58  ;;  %v11079_v51 = vmax.f32 %v10503_v39, %v10791_v6  ;;  %v10789_v49 = vmax.f32 %v23526_v48, %v9554_v22  ;;  %v15997_v32 = vpop.f32.mrf.mxu0  ;;  %v16573_v24 = vpop.f32.mrf.mxu1  ;;  %v17259_v19 = vld [vmem:[%s22906_s0 + $0x1038] sm:$0xff]  }
 0x397   :  { %13097 = vst.msk [vmem:[%s22908_s3 + $0x100] sm:$0xf] %vm13032_vm1, %v14832_v23  ;;  %v14835_v8 = vpack.c.bf16 %v11659_v40, %v11659_v40  ;;  %v11657_v10 = vmax.f32 %v11369_v56, 0.0  ;;  %v10504_v61 = vmax.f32 %v23527_v60, %v15997_v32  ;;  %v10792_v5 = vmax.f32 %v23528_v11, %v16573_v24  ;;  %v23536_v23 = vld [vmem:[#allocation102_spill] sm:$0xff]  ;;  %v23538_v24 = vld [vmem:[#allocation104_spill] sm:$0xff] }
 0x398   :  { %v11374_v62 = vadd.f32 %v20627_v26, %v11079_v51  ;;  %v11077_v4 = vmax.f32 %v10501_v29, %v10789_v49  ;;  %v7253_v63 = vpop.f32.mrf.mxu0  ;;  %v9557_v57 = vpop.f32.mrf.mxu1  ;;  %v17261_v29 = vld [vmem:[%s22906_s0 + $0x1040] sm:$0xff]   ;;  %v23537_v49 = vld [vmem:[#allocation103_spill] sm:$0xff] }
 0x399   :  { %13100 = vst.msk [vmem:[%s22908_s3 + $0x10c] sm:$0xf] %vm13032_vm1, %v14835_v8  ;;  %v14833_v27 = vpack.c.bf16 %v11657_v10, %v11657_v10  ;;  %v11080_v33 = vmax.f32 %v10504_v61, %v10792_v5  ;;  %v10502_v43 = vmax.f32 %v23529_v42, %v7253_v63  ;;  %v10790_v13 = vmax.f32 %v23530_v12, %v9557_v57  ;;  %v23539_v5 = vld [vmem:[#allocation105_spill] sm:$0xff] }
 0x39a   :  { %v11662_v53 = vmax.f32 %v11374_v62, 0.0  ;;  %v11372_v30 = vadd.f32 %v20627_v26, %v11077_v4  ;;  %v16000_v0 = vpop.f32.mrf.mxu0  ;;  %16095 = vmatmul.mubr.msk.bf16.gmra.mxu0 %vm4063_vm0, %v17254_v25  ;;  %v16576_v21 = vpop.f32.mrf.mxu1  ;;  %16671 = vmatmul.mubr.msk.bf16.gmra.mxu1 %vm4063_vm0, %v17255_v41  ;;  %v23540_v62 = vld [vmem:[#allocation106_spill] sm:$0xff] }
 0x39b   :  { %13098 = vst.msk [vmem:[%s22908_s3 + $0x104] sm:$0xf] %vm13032_vm1, %v14833_v27  ;;  %v11375_v54 = vadd.f32 %v20627_v26, %v11080_v33  ;;  %v11078_v55 = vmax.f32 %v10502_v43, %v10790_v13  ;;  %v10507_v31 = vmax.f32 %v23531_v14, %v16000_v0  ;;  %v10795_v16 = vmax.f32 %v23532_v34, %v16576_v21  ;;  %v23541_v43 = vld [vmem:[#allocation107_spill] sm:$0xff]  ;;  %v23542_v13 = vld [vmem:[#allocation108_spill] sm:$0xff] }
 0x39c   :  { %16098 = vmatprep.mubr.msk.bf16.mxu0 %vm4063_vm0, %v17256_v52  ;;  %v14838_v1 = vpack.c.bf16 %v11662_v53, %v11662_v53  ;;  %v11660_v15 = vmax.f32 %v11372_v30, 0.0  ;;  %v7266_v35 = vpop.f32.mrf.mxu0  ;;  %v9570_v44 = vpop.f32.mrf.mxu1  ;;  %16674 = vmatprep.mubr.msk.bf16.mxu1 %vm4063_vm0, %v17257_v45  ;;  %v17263_v14 = vld [vmem:[%s22906_s0 + $0x1048] sm:$0xff]  }
 0x39d   :  { %v11663_v2 = vmax.f32 %v11375_v54, 0.0  ;;  %v11373_v20 = vadd.f32 %v20627_v26, %v11078_v55  ;;  %v11083_v46 = vmax.f32 %v10507_v31, %v10795_v16  ;;  %v10505_v36 = vmax.f32 %v23533_v3, %v7266_v35  ;;  %v17262_v55 = vld [vmem:[%s22906_s0 + $0x748] sm:$0xff]   ;;  %v17264_v35 = vld [vmem:[%s22906_s0 + $0x750] sm:$0xff]  }
 0x39e   :  { %13103 = vst.msk [vmem:[%s22908_s3 + $0x118] sm:$0xf] %vm13032_vm1, %v14838_v1  ;;  %v14836_v37 = vpack.c.bf16 %v11660_v15, %v11660_v15  ;;  %v10793_v47 = vmax.f32 %v23534_v18, %v9570_v44  ;;  %v16001_v9 = vpop.f32.mrf.mxu0  ;;  %v16577_v17 = vpop.f32.mrf.mxu1  ;;  %v23543_v1 = vld [vmem:[#allocation109_spill] sm:$0xff]  ;;  %v17265_v44 = vld [vmem:[%s22906_s0 + $0x1050] sm:$0xff]  }
 0x39f   :  { %v14839_v38 = vpack.c.bf16 %v11663_v2, %v11663_v2  ;;  %v11661_v39 = vmax.f32 %v11373_v20, 0.0  ;;  %v11378_v58 = vadd.f32 %v20627_v26, %v11083_v46  ;;  %v10508_v6 = vmax.f32 %v23535_v59, %v16001_v9  ;;  %v23544_v20 = vld [vmem:[#allocation110_spill] sm:$0xff]  ;;  %v23545_v9 = vld [vmem:[#allocation111_spill] sm:$0xff] }
 0x3a0   :  { %13101 = vst.msk [vmem:[%s22908_s3 + $0x110] sm:$0xf] %vm13032_vm1, %v14836_v37  ;;  %v11081_v22 = vmax.f32 %v10505_v36, %v10793_v47  ;;  %v10796_v40 = vmax.f32 %v23536_v23, %v16577_v17  ;;  %v7269_v56 = vpop.f32.mrf.mxu0  ;;  %v9573_v50 = vpop.f32.mrf.mxu1  ;;  %v23548_v23 = vld [vmem:[#allocation114_spill] sm:$0xff] }
 0x3a1   :  { %13104 = vst.msk [vmem:[%s22908_s3 + $0x11c] sm:$0xf] %vm13032_vm1, %v14839_v38  ;;  %v14837_v51 = vpack.c.bf16 %v11661_v39, %v11661_v39  ;;  %v11666_v48 = vmax.f32 %v11378_v58, 0.0  ;;  %v10506_v32 = vmax.f32 %v23537_v49, %v7269_v56  ;;  %v10794_v25 = vmax.f32 %v23538_v24, %v9573_v50 }
 0x3a2   :  { %v11376_v41 = vadd.f32 %v20627_v26, %v11081_v22  ;;  %v11084_v8 = vmax.f32 %v10508_v6, %v10796_v40  ;;  %v16004_v10 = vpop.f32.mrf.mxu0  ;;  %16099 = vmatmul.mubr.msk.bf16.gmra.mxu0 %vm4063_vm0, %v17258_v28  ;;  %v16580_v60 = vpop.f32.mrf.mxu1  ;;  %16675 = vmatmul.mubr.msk.bf16.gmra.mxu1 %vm4063_vm0, %v17259_v19  ;;  %v23546_v19 = vld [vmem:[#allocation112_spill] sm:$0xff] }
 0x3a3   :  { %13102 = vst.msk [vmem:[%s22908_s3 + $0x114] sm:$0xf] %vm13032_vm1, %v14837_v51  ;;  %v14842_v61 = vpack.c.bf16 %v11666_v48, %v11666_v48  ;;  %v11082_v11 = vmax.f32 %v10506_v32, %v10794_v25  ;;  %v10511_v52 = vmax.f32 %v23539_v5, %v16004_v10  ;;  %v10799_v4 = vmax.f32 %v23540_v62, %v16580_v60  ;;  %v23549_v32 = vld [vmem:[#allocation115_spill] sm:$0xff]  ;;  %v23550_v25 = vld [vmem:[#allocation116_spill] sm:$0xff]  ;;  %v17267_v5 = vld [vmem:[%s22906_s0 + $0x1058] sm:$0xff]  }
 0x3a4   :  { %16102 = vmatprep.mubr.msk.bf16.mxu0 %vm4063_vm0, %v17260_v7  ;;  %v11664_v63 = vmax.f32 %v11376_v41, 0.0  ;;  %v11379_v57 = vadd.f32 %v20627_v26, %v11084_v8  ;;  %v7282_v45 = vpop.f32.mrf.mxu0  ;;  %v9586_v27 = vpop.f32.mrf.mxu1  ;;  %16678 = vmatprep.mubr.msk.bf16.mxu1 %vm4063_vm0, %v17261_v29  ;;  %v23547_v7 = vld [vmem:[#allocation113_spill] sm:$0xff] }
 0x3a5   :  { %13107 = vst.msk [vmem:[%s22908_s3 + $0x128] sm:$0xf] %vm13032_vm1, %v14842_v61  ;;  %v11377_v33 = vadd.f32 %v20627_v26, %v11082_v11  ;;  %v11087_v42 = vmax.f32 %v10511_v52, %v10799_v4  ;;  %v10509_v12 = vmax.f32 %v23541_v43, %v7282_v45  ;;  %v10797_v53 = vmax.f32 %v23542_v13, %v9586_v27  ;;  %v17266_v11 = vld [vmem:[%s22906_s0 + $0x758] sm:$0xff]   ;;  %v17268_v27 = vld [vmem:[%s22906_s0 + $0x760] sm:$0xff]  }
 0x3a6   :  { %v14840_v30 = vpack.c.bf16 %v11664_v63, %v11664_v63  ;;  %v11667_v0 = vmax.f32 %v11379_v57, 0.0  ;;  %v16005_v21 = vpop.f32.mrf.mxu0  ;;  %v16581_v54 = vpop.f32.mrf.mxu1  ;;  %v23551_v4 = vld [vmem:[#allocation117_spill] sm:$0xff]  ;;  %v23552_v57 = vld [vmem:[#allocation118_spill] sm:$0xff] }
 0x3a7   :  { %v11665_v31 = vmax.f32 %v11377_v33, 0.0  ;;  %v11382_v34 = vadd.f32 %v20627_v26, %v11087_v42  ;;  %v11085_v16 = vmax.f32 %v10509_v12, %v10797_v53  ;;  %v10512_v15 = vmax.f32 %v23543_v1, %v16005_v21  ;;  %v17269_v33 = vld [vmem:[%s22906_s0 + $0x1060] sm:$0xff]   ;;  %v23553_v21 = vld [vmem:[#allocation119_spill] sm:$0xff] }
 0x3a8   :  { %13105 = vst.msk [vmem:[%s22908_s3 + $0x120] sm:$0xf] %vm13032_vm1, %v14840_v30  ;;  %v14843_v2 = vpack.c.bf16 %v11667_v0, %v11667_v0  ;;  %v10800_v46 = vmax.f32 %v23544_v20, %v16581_v54  ;;  %v7285_v3 = vpop.f32.mrf.mxu0  ;;  %v9589_v36 = vpop.f32.mrf.mxu1 }
 0x3a9   :  { %v14841_v37 = vpack.c.bf16 %v11665_v31, %v11665_v31  ;;  %v11670_v18 = vmax.f32 %v11382_v34, 0.0  ;;  %v11380_v47 = vadd.f32 %v20627_v26, %v11085_v16  ;;  %v10510_v17 = vmax.f32 %v23545_v9, %v7285_v3  ;;  %v23557_v9 = vld [vmem:[#allocation123_spill] sm:$0xff] }
 0x3aa   :  { %13108 = vst.msk [vmem:[%s22908_s3 + $0x12c] sm:$0xf] %vm13032_vm1, %v14843_v2  ;;  %v11088_v28 = vmax.f32 %v10512_v15, %v10800_v46  ;;  %v10798_v38 = vmax.f32 %v23546_v19, %v9589_v36  ;;  %v16008_v39 = vpop.f32.mrf.mxu0  ;;  %16103 = vmatmul.mubr.msk.bf16.gmra.mxu0 %vm4063_vm0, %v17262_v55  ;;  %v16584_v58 = vpop.f32.mrf.mxu1  ;;  %16679 = vmatmul.mubr.msk.bf16.gmra.mxu1 %vm4063_vm0, %v17263_v14  ;;  %v23554_v14 = vld [vmem:[#allocation120_spill] sm:$0xff]  ;;  %v23556_v46 = vld [vmem:[#allocation122_spill] sm:$0xff] }
 0x3ab   :  { %13106 = vst.msk [vmem:[%s22908_s3 + $0x124] sm:$0xf] %vm13032_vm1, %v14841_v37  ;;  %v14846_v59 = vpack.c.bf16 %v11670_v18, %v11670_v18  ;;  %v11668_v6 = vmax.f32 %v11380_v47, 0.0  ;;  %v10515_v22 = vmax.f32 %v23547_v7, %v16008_v39  ;;  %v10803_v40 = vmax.f32 %v23548_v23, %v16584_v58  ;;  %16106 = vmatprep.mubr.msk.bf16.mxu0 %vm4063_vm0, %v17264_v35  ;;  %v17271_v7 = vld [vmem:[%s22906_s0 + $0x1068] sm:$0xff]  }
 0x3ac   :  { %16682 = vmatprep.mubr.msk.bf16.mxu1 %vm4063_vm0, %v17265_v44  ;;  %v11383_v56 = vadd.f32 %v20627_v26, %v11088_v28  ;;  %v11086_v50 = vmax.f32 %v10510_v17, %v10798_v38  ;;  %v7298_v29 = vpop.f32.mrf.mxu0  ;;  %v9602_v51 = vpop.f32.mrf.mxu1  ;;  %v23555_v44 = vld [vmem:[#allocation121_spill] sm:$0xff]  ;;  %v23558_v28 = vld [vmem:[#allocation124_spill] sm:$0xff] }
 0x3ad   :  { %13111 = vst.msk [vmem:[%s22908_s3 + $0x138] sm:$0xf] %vm13032_vm1, %v14846_v59  ;;  %v14844_v48 = vpack.c.bf16 %v11668_v6, %v11668_v6  ;;  %v11091_v49 = vmax.f32 %v10515_v22, %v10803_v40  ;;  %v10513_v24 = vmax.f32 %v23549_v32, %v7298_v29  ;;  %v10801_v41 = vmax.f32 %v23550_v25, %v9602_v51  ;;  %v17270_v6 = vld [vmem:[%s22906_s0 + $0x768] sm:$0xff]   ;;  %v23559_v40 = vld [vmem:[#allocation125_spill] sm:$0xff]  ;;  %v17272_v51 = vld [vmem:[%s22906_s0 + $0x770] sm:$0xff]  }
 0x3ae   :  { %v11671_v8 = vmax.f32 %v11383_v56, 0.0  ;;  %v11381_v10 = vadd.f32 %v20627_v26, %v11086_v50  ;;  %v16009_v60 = vpop.f32.mrf.mxu0  ;;  %v16585_v61 = vpop.f32.mrf.mxu1  ;;  %v23560_v50 = vld [vmem:[#allocation126_spill] sm:$0xff] }
 0x3af   :  { %13109 = vst.msk [vmem:[%s22908_s3 + $0x130] sm:$0xf] %vm13032_vm1, %v14844_v48  ;;  %v11386_v52 = vadd.f32 %v20627_v26, %v11091_v49  ;;  %v11089_v62 = vmax.f32 %v10513_v24, %v10801_v41  ;;  %v10516_v63 = vmax.f32 %v23551_v4, %v16009_v60  ;;  %v10804_v45 = vmax.f32 %v23552_v57, %v16585_v61  ;;  %v17273_v48 = vld [vmem:[%s22906_s0 + $0x1070] sm:$0xff]  }
 0x3b0   :  { %v14847_v42 = vpack.c.bf16 %v11671_v8, %v11671_v8  ;;  %v11669_v43 = vmax.f32 %v11381_v10, 0.0  ;;  %v7301_v12 = vpop.f32.mrf.mxu0  ;;  %v9605_v13 = vpop.f32.mrf.mxu1  ;;  %v23561_v10 = vld [vmem:[#allocation127_spill] sm:$0xff]  ;;  %v23562_v61 = vld [vmem:[#allocation128_spill] sm:$0xff] }
 0x3b1   :  { %v11674_v53 = vmax.f32 %v11386_v52, 0.0  ;;  %v11384_v30 = vadd.f32 %v20627_v26, %v11089_v62  ;;  %v11092_v0 = vmax.f32 %v10516_v63, %v10804_v45  ;;  %v10514_v54 = vmax.f32 %v23553_v21, %v7301_v12 }
 0x3b2   :  { %13112 = vst.msk [vmem:[%s22908_s3 + $0x13c] sm:$0xf] %vm13032_vm1, %v14847_v42  ;;  %v14845_v55 = vpack.c.bf16 %v11669_v43, %v11669_v43  ;;  %v10802_v31 = vmax.f32 %v23554_v14, %v9605_v13  ;;  %v16012_v34 = vpop.f32.mrf.mxu0  ;;  %16107 = vmatmul.mubr.msk.bf16.gmra.mxu0 %vm4063_vm0, %v17266_v11  ;;  %v16588_v16 = vpop.f32.mrf.mxu1  ;;  %16683 = vmatmul.mubr.msk.bf16.gmra.mxu1 %vm4063_vm0, %v17267_v5  ;;  %v23564_v43 = vld [vmem:[#allocation130_spill] sm:$0xff] }
 0x3b3   :  { %v14850_v1 = vpack.c.bf16 %v11674_v53, %v11674_v53  ;;  %v11672_v15 = vmax.f32 %v11384_v30, 0.0  ;;  %v11387_v35 = vadd.f32 %v20627_v26, %v11092_v0  ;;  %v10519_v2 = vmax.f32 %v23555_v44, %v16012_v34  ;;  %16110 = vmatprep.mubr.msk.bf16.mxu0 %vm4063_vm0, %v17268_v27  ;;  %16686 = vmatprep.mubr.msk.bf16.mxu1 %vm4063_vm0, %v17269_v33  ;;  %v23563_v27 = vld [vmem:[#allocation129_spill] sm:$0xff] }
 0x3b4   :  { %13110 = vst.msk [vmem:[%s22908_s3 + $0x134] sm:$0xf] %vm13032_vm1, %v14845_v55  ;;  %v11090_v20 = vmax.f32 %v10514_v54, %v10802_v31  ;;  %v10807_v3 = vmax.f32 %v23556_v46, %v16588_v16  ;;  %v7314_v36 = vpop.f32.mrf.mxu0  ;;  %v9618_v37 = vpop.f32.mrf.mxu1  ;;  %v23565_v54 = vld [vmem:[#allocation131_spill] sm:$0xff]  ;;  %v23566_v31 = vld [vmem:[#allocation132_spill] sm:$0xff] }
 0x3b5   :  { %13115 = vst.msk [vmem:[%s22908_s3 + $0x148] sm:$0xf] %vm13032_vm1, %v14850_v1  ;;  %v14848_v18 = vpack.c.bf16 %v11672_v15, %v11672_v15  ;;  %v11675_v47 = vmax.f32 %v11387_v35, 0.0  ;;  %v10517_v17 = vmax.f32 %v23557_v9, %v7314_v36  ;;  %v10805_v19 = vmax.f32 %v23558_v28, %v9618_v37  ;;  %v17274_v15 = vld [vmem:[%s22906_s0 + $0x778] sm:$0xff]   ;;  %v17276_v37 = vld [vmem:[%s22906_s0 + $0x780] sm:$0xff]  }
 0x3b6   :  { %v11385_v38 = vadd.f32 %v20627_v26, %v11090_v20  ;;  %v11095_v39 = vmax.f32 %v10519_v2, %v10807_v3  ;;  %v16013_v58 = vpop.f32.mrf.mxu0  ;;  %v16589_v59 = vpop.f32.mrf.mxu1  ;;  %v17275_v35 = vld [vmem:[%s22906_s0 + $0x1078] sm:$0xff]   ;;  %v23568_v3 = vld [vmem:[#allocation134_spill] sm:$0xff] }
 0x3b7   :  { %13113 = vst.msk [vmem:[%s22908_s3 + $0x140] sm:$0xf] %vm13032_vm1, %v14848_v18  ;;  %v14851_v22 = vpack.c.bf16 %v11675_v47, %v11675_v47  ;;  %v11093_v23 = vmax.f32 %v10517_v17, %v10805_v19  ;;  %v10520_v56 = vmax.f32 %v23559_v40, %v16013_v58  ;;  %v10808_v29 = vmax.f32 %v23560_v50, %v16589_v59  ;;  %v23567_v20 = vld [vmem:[#allocation133_spill] sm:$0xff]  ;;  %v17277_v28 = vld [vmem:[%s22906_s0 + $0x1080] sm:$0xff]   ;;  %v23570_v59 = vld [vmem:[#allocation136_spill] sm:$0xff] }
 0x3b8   :  { %v11673_v49 = vmax.f32 %v11385_v38, 0.0  ;;  %v11390_v32 = vadd.f32 %v20627_v26, %v11095_v39  ;;  %v7317_v24 = vpop.f32.mrf.mxu0  ;;  %v9621_v25 = vpop.f32.mrf.mxu1  ;;  %v23569_v39 = vld [vmem:[#allocation135_spill] sm:$0xff] }
 0x3b9   :  { %13116 = vst.msk [vmem:[%s22908_s3 + $0x14c] sm:$0xf] %vm13032_vm1, %v14851_v22  ;;  %v11388_v41 = vadd.f32 %v20627_v26, %v11093_v23  ;;  %v11096_v8 = vmax.f32 %v10520_v56, %v10808_v29  ;;  %v10518_v60 = vmax.f32 %v23561_v10, %v7317_v24  ;;  %v10806_v11 = vmax.f32 %v23562_v61, %v9621_v25  ;;  %v23571_v29 = vld [vmem:[#allocation137_spill] sm:$0xff]  ;;  %v23573_v61 = vld [vmem:[#allocation139_spill] sm:$0xff] }
 0x3ba   :  { %v14849_v5 = vpack.c.bf16 %v11673_v49, %v11673_v49  ;;  %v11678_v52 = vmax.f32 %v11390_v32, 0.0  ;;  %v16016_v62 = vpop.f32.mrf.mxu0  ;;  %16111 = vmatmul.mubr.msk.bf16.gmra.mxu0 %vm4063_vm0, %v17270_v6  ;;  %v16592_v4 = vpop.f32.mrf.mxu1  ;;  %16687 = vmatmul.mubr.msk.bf16.gmra.mxu1 %vm4063_vm0, %v17271_v7 }
 0x3bb   :  { %v11676_v63 = vmax.f32 %v11388_v41, 0.0  ;;  %v11391_v57 = vadd.f32 %v20627_v26, %v11096_v8  ;;  %v11094_v45 = vmax.f32 %v10518_v60, %v10806_v11  ;;  %v10523_v33 = vmax.f32 %v23563_v27, %v16016_v62  ;;  %16114 = vmatprep.mubr.msk.bf16.mxu0 %vm4063_vm0, %v17272_v51  ;;  %16690 = vmatprep.mubr.msk.bf16.mxu1 %vm4063_vm0, %v17273_v48  ;;  %v23572_v48 = vld [vmem:[#allocation138_spill] sm:$0xff] }
 0x3bc   :  { %13114 = vst.msk [vmem:[%s22908_s3 + $0x144] sm:$0xf] %vm13032_vm1, %v14849_v5  ;;  %v14854_v42 = vpack.c.bf16 %v11678_v52, %v11678_v52  ;;  %v10811_v12 = vmax.f32 %v23564_v43, %v16592_v4  ;;  %v7330_v13 = vpop.f32.mrf.mxu0  ;;  %v9634_v53 = vpop.f32.mrf.mxu1  ;;  %v23574_v52 = vld [vmem:[#allocation140_spill] sm:$0xff]  ;;  %v23575_v43 = vld [vmem:[#allocation141_spill] sm:$0xff] }
 0x3bd   :  { %v14852_v30 = vpack.c.bf16 %v11676_v63, %v11676_v63  ;;  %v11679_v0 = vmax.f32 %v11391_v57, 0.0  ;;  %v11389_v21 = vadd.f32 %v20627_v26, %v11094_v45  ;;  %v10521_v55 = vmax.f32 %v23565_v54, %v7330_v13  ;;  %v17278_v57 = vld [vmem:[%s22906_s0 + $0x788] sm:$0xff]   ;;  %v17280_v13 = vld [vmem:[%s22906_s0 + $0x790] sm:$0xff]  }
 0x3be   :  { %13119 = vst.msk [vmem:[%s22908_s3 + $0x158] sm:$0xf] %vm13032_vm1, %v14854_v42  ;;  %v11099_v14 = vmax.f32 %v10523_v33, %v10811_v12  ;;  %v10809_v34 = vmax.f32 %v23566_v31, %v9634_v53  ;;  %v16017_v16 = vpop.f32.mrf.mxu0  ;;  %v16593_v1 = vpop.f32.mrf.mxu1  ;;  %v17279_v45 = vld [vmem:[%s22906_s0 + $0x1088] sm:$0xff]  }
 0x3bf   :  { %13117 = vst.msk [vmem:[%s22908_s3 + $0x150] sm:$0xf] %vm13032_vm1, %v14852_v30  ;;  %v14855_v44 = vpack.c.bf16 %v11679_v0, %v11679_v0  ;;  %v11677_v2 = vmax.f32 %v11389_v21, 0.0  ;;  %v10524_v46 = vmax.f32 %v23567_v20, %v16017_v16  ;;  %v10812_v36 = vmax.f32 %v23568_v3, %v16593_v1  ;;  %v23576_v30 = vld [vmem:[#allocation142_spill] sm:$0xff]  ;;  %v23577_v31 = vld [vmem:[#allocation143_spill] sm:$0xff]  ;;  %v23578_v16 = vld [vmem:[#allocation144_spill] sm:$0xff] }
 0x3c0   :  { %v11394_v18 = vadd.f32 %v20627_v26, %v11099_v14  ;;  %v11097_v47 = vmax.f32 %v10521_v55, %v10809_v34  ;;  %v7333_v9 = vpop.f32.mrf.mxu0  ;;  %v9637_v17 = vpop.f32.mrf.mxu1 }
 0x3c1   :  { %13120 = vst.msk [vmem:[%s22908_s3 + $0x15c] sm:$0xf] %vm13032_vm1, %v14855_v44  ;;  %v14853_v19 = vpack.c.bf16 %v11677_v2, %v11677_v2  ;;  %v11100_v38 = vmax.f32 %v10524_v46, %v10812_v36  ;;  %v10522_v58 = vmax.f32 %v23569_v39, %v7333_v9  ;;  %v10810_v6 = vmax.f32 %v23570_v59, %v9637_v17  ;;  %v23579_v36 = vld [vmem:[#allocation145_spill] sm:$0xff] }
 0x3c2   :  { %v11682_v7 = vmax.f32 %v11394_v18, 0.0  ;;  %v11392_v22 = vadd.f32 %v20627_v26, %v11097_v47  ;;  %v16020_v23 = vpop.f32.mrf.mxu0  ;;  %16115 = vmatmul.mubr.msk.bf16.gmra.mxu0 %vm4063_vm0, %v17274_v15  ;;  %v16596_v40 = vpop.f32.mrf.mxu1  ;;  %16691 = vmatmul.mubr.msk.bf16.gmra.mxu1 %vm4063_vm0, %v17275_v35  ;;  %v21157_v15 = vld [vmem:[%s22907_s2] ss:$0 sm:$0xff] }
 0x3c3   :  { %13118 = vst.msk [vmem:[%s22908_s3 + $0x154] sm:$0xf] %vm13032_vm1, %v14853_v19  ;;  %v11395_v56 = vadd.f32 %v20627_v26, %v11100_v38  ;;  %v11098_v50 = vmax.f32 %v10522_v58, %v10810_v6  ;;  %v10527_v51 = vmax.f32 %v23571_v29, %v16020_v23  ;;  %v10815_v49 = vmax.f32 %v23572_v48, %v16596_v40  ;;  %v23580_v18 = vld [vmem:[#allocation146_spill] sm:$0xff]  ;;  %v23581_v58 = vld [vmem:[#allocation147_spill] sm:$0xff]  ;;  %v23582_v6 = vld [vmem:[#allocation148_spill] sm:$0xff] }
 0x3c4   :  { %16118 = vmatprep.mubr.msk.bf16.mxu0 %vm4063_vm0, %v17276_v37  ;;  %v14858_v32 = vpack.c.bf16 %v11682_v7, %v11682_v7  ;;  %v11680_v24 = vmax.f32 %v11392_v22, 0.0  ;;  %v7346_v25 = vpop.f32.mrf.mxu0  ;;  %v9650_v41 = vpop.f32.mrf.mxu1  ;;  %16694 = vmatprep.mubr.msk.bf16.mxu1 %vm4063_vm0, %v17277_v28  ;;  %v17283_v29 = vld [vmem:[%s22906_s0 + $0x1098] sm:$0xff]  }
 0x3c5   :  { %v11683_v8 = vmax.f32 %v11395_v56, 0.0  ;;  %v11393_v10 = vadd.f32 %v20627_v26, %v11098_v50  ;;  %v11103_v60 = vmax.f32 %v10527_v51, %v10815_v49  ;;  %v10525_v11 = vmax.f32 %v23573_v61, %v7346_v25  ;;  %v17282_v50 = vld [vmem:[%s22906_s0 + $0x798] sm:$0xff]   ;;  %v17284_v25 = vld [vmem:[%s22906_s0 + $0x7a0] sm:$0xff]  }
 0x3c6   :  { %13123 = vst.msk [vmem:[%s22908_s3 + $0x168] sm:$0xf] %vm13032_vm1, %v14858_v32  ;;  %v14856_v5 = vpack.c.bf16 %v11680_v24, %v11680_v24  ;;  %v10813_v62 = vmax.f32 %v23574_v52, %v9650_v41  ;;  %v16021_v4 = vpop.f32.mrf.mxu0  ;;  %v16597_v63 = vpop.f32.mrf.mxu1  ;;  %v23583_v32 = vld [vmem:[#allocation149_spill] sm:$0xff]  ;;  %v17285_v41 = vld [vmem:[%s22906_s0 + $0x10a0] sm:$0xff]  }
 0x3c7   :  { %v14859_v27 = vpack.c.bf16 %v11683_v8, %v11683_v8  ;;  %v11681_v33 = vmax.f32 %v11393_v10, 0.0  ;;  %v11398_v42 = vadd.f32 %v20627_v26, %v11103_v60  ;;  %v10528_v12 = vmax.f32 %v23575_v43, %v16021_v4  ;;  %v17281_v26 = vld [vmem:[%s22906_s0 + $0x1090] sm:$0xff]   ;;  %v23584_v10 = vld [vmem:[#allocation150_spill] sm:$0xff]  ;;  %v23585_v4 = vld [vmem:[#allocation151_spill] sm:$0xff] }
 0x3c8   :  { %13121 = vst.msk [vmem:[%s22908_s3 + $0x160] sm:$0xf] %vm13032_vm1, %v14856_v5  ;;  %v11101_v53 = vmax.f32 %v10525_v11, %v10813_v62  ;;  %v10816_v0 = vmax.f32 %v23576_v30, %v16597_v63  ;;  %v7349_v21 = vpop.f32.mrf.mxu0  ;;  %v9653_v54 = vpop.f32.mrf.mxu1  ;;  %v23588_v30 = vld [vmem:[#allocation154_spill] sm:$0xff] }
 0x3c9   :  { %13124 = vst.msk [vmem:[%s22908_s3 + $0x16c] sm:$0xf] %vm13032_vm1, %v14859_v27  ;;  %v14857_v55 = vpack.c.bf16 %v11681_v33, %v11681_v33  ;;  %v11686_v14 = vmax.f32 %v11398_v42, 0.0  ;;  %v10526_v34 = vmax.f32 %v23577_v31, %v7349_v21  ;;  %v10814_v1 = vmax.f32 %v23578_v16, %v9653_v54 }
 0x3ca   :  { %v11396_v35 = vadd.f32 %v21157_v15, %v11101_v53  ;;  %v11104_v44 = vmax.f32 %v10528_v12, %v10816_v0  ;;  %v16024_v2 = vpop.f32.mrf.mxu0  ;;  %16119 = vmatmul.mubr.msk.bf16.gmra.mxu0 %vm4063_vm0, %v17278_v57  ;;  %v16600_v20 = vpop.f32.mrf.mxu1  ;;  %16695 = vmatmul.mubr.msk.bf16.gmra.mxu1 %vm4063_vm0, %v17279_v45  ;;  %v23586_v45 = vld [vmem:[#allocation152_spill] sm:$0xff] }
 0x3cb   :  { %13122 = vst.msk [vmem:[%s22908_s3 + $0x164] sm:$0xf] %vm13032_vm1, %v14857_v55  ;;  %v14862_v46 = vpack.c.bf16 %v11686_v14, %v11686_v14  ;;  %v11102_v3 = vmax.f32 %v10526_v34, %v10814_v1  ;;  %v10531_v37 = vmax.f32 %v23579_v36, %v16024_v2  ;;  %v10819_v47 = vmax.f32 %v23580_v18, %v16600_v20  ;;  %v23589_v34 = vld [vmem:[#allocation155_spill] sm:$0xff]  ;;  %v23590_v1 = vld [vmem:[#allocation156_spill] sm:$0xff] }
 0x3cc   :  { %16122 = vmatprep.mubr.msk.bf16.mxu0 %vm4063_vm0, %v17280_v13  ;;  %v11684_v9 = vmax.f32 %v11396_v35, 0.0  ;;  %v11399_v17 = vadd.f32 %v21157_v15, %v11104_v44  ;;  %v7362_v28 = vpop.f32.mrf.mxu0  ;;  %v9666_v19 = vpop.f32.mrf.mxu1  ;;  %16698 = vmatprep.mubr.msk.bf16.mxu1 %vm4063_vm0, %v17281_v26  ;;  %v23587_v13 = vld [vmem:[#allocation153_spill] sm:$0xff]  ;;  %v17287_v36 = vld [vmem:[%s22906_s0 + $0x10a8] sm:$0xff]  }
 0x3cd   :  { %13127 = vst.msk [vmem:[%s22908_s3 + $0x178] sm:$0xf] %vm13032_vm1, %v14862_v46  ;;  %v11397_v38 = vadd.f32 %v21157_v15, %v11102_v3  ;;  %v11107_v39 = vmax.f32 %v10531_v37, %v10819_v47  ;;  %v10529_v59 = vmax.f32 %v23581_v58, %v7362_v28  ;;  %v10817_v7 = vmax.f32 %v23582_v6, %v9666_v19  ;;  %v17286_v3 = vld [vmem:[%s22906_s0 + $0x7a8] sm:$0xff]   ;;  %v23591_v47 = vld [vmem:[#allocation157_spill] sm:$0xff]  ;;  %v17288_v19 = vld [vmem:[%s22906_s0 + $0x7b0] sm:$0xff]  }
 0x3ce   :  { %v14860_v22 = vpack.c.bf16 %v11684_v9, %v11684_v9  ;;  %v11687_v23 = vmax.f32 %v11399_v17, 0.0  ;;  %v16025_v40 = vpop.f32.mrf.mxu0  ;;  %v16601_v56 = vpop.f32.mrf.mxu1  ;;  %v23592_v17 = vld [vmem:[#allocation158_spill] sm:$0xff] }
 0x3cf   :  { %v11685_v51 = vmax.f32 %v11397_v38, 0.0  ;;  %v11402_v48 = vadd.f32 %v21157_v15, %v11107_v39  ;;  %v11105_v49 = vmax.f32 %v10529_v59, %v10817_v7  ;;  %v10532_v24 = vmax.f32 %v23583_v32, %v16025_v40  ;;  %v17289_v38 = vld [vmem:[%s22906_s0 + $0x10b0] sm:$0xff]   ;;  %v23593_v40 = vld [vmem:[#allocation159_spill] sm:$0xff] }
 0x3d0   :  { %13125 = vst.msk [vmem:[%s22908_s3 + $0x170] sm:$0xf] %vm13032_vm1, %v14860_v22  ;;  %v14863_v8 = vpack.c.bf16 %v11687_v23, %v11687_v23  ;;  %v10820_v60 = vmax.f32 %v23584_v10, %v16601_v56  ;;  %v7365_v61 = vpop.f32.mrf.mxu0  ;;  %v9669_v11 = vpop.f32.mrf.mxu1 }
 0x3d1   :  { %v14861_v5 = vpack.c.bf16 %v11685_v51, %v11685_v51  ;;  %v11690_v52 = vmax.f32 %v11402_v48, 0.0  ;;  %v11400_v62 = vadd.f32 %v21157_v15, %v11105_v49  ;;  %v10530_v63 = vmax.f32 %v23585_v4, %v7365_v61  ;;  %v23597_v4 = vld [vmem:[#allocation163_spill] sm:$0xff] }
 0x3d2   :  { %13128 = vst.msk [vmem:[%s22908_s3 + $0x17c] sm:$0xf] %vm13032_vm1, %v14863_v8  ;;  %v11108_v57 = vmax.f32 %v10532_v24, %v10820_v60  ;;  %v10818_v27 = vmax.f32 %v23586_v45, %v9669_v11  ;;  %v16028_v33 = vpop.f32.mrf.mxu0  ;;  %16123 = vmatmul.mubr.msk.bf16.gmra.mxu0 %vm4063_vm0, %v17282_v50  ;;  %v16604_v42 = vpop.f32.mrf.mxu1  ;;  %16699 = vmatmul.mubr.msk.bf16.gmra.mxu1 %vm4063_vm0, %v17283_v29  ;;  %v23594_v29 = vld [vmem:[#allocation160_spill] sm:$0xff]  ;;  %v23596_v60 = vld [vmem:[#allocation162_spill] sm:$0xff] }
 0x3d3   :  { %13126 = vst.msk [vmem:[%s22908_s3 + $0x174] sm:$0xf] %vm13032_vm1, %v14861_v5  ;;  %v14866_v43 = vpack.c.bf16 %v11690_v52, %v11690_v52  ;;  %v11688_v12 = vmax.f32 %v11400_v62, 0.0  ;;  %v10535_v53 = vmax.f32 %v23587_v13, %v16028_v33  ;;  %v10823_v0 = vmax.f32 %v23588_v30, %v16604_v42  ;;  %16126 = vmatprep.mubr.msk.bf16.mxu0 %vm4063_vm0, %v17284_v25  ;;  %v17291_v13 = vld [vmem:[%s22906_s0 + $0x10b8] sm:$0xff]  }
 0x3d4   :  { %16702 = vmatprep.mubr.msk.bf16.mxu1 %vm4063_vm0, %v17285_v41  ;;  %v11403_v21 = vadd.f32 %v21157_v15, %v11108_v57  ;;  %v11106_v54 = vmax.f32 %v10530_v63, %v10818_v27  ;;  %v7378_v26 = vpop.f32.mrf.mxu0  ;;  %v9682_v55 = vpop.f32.mrf.mxu1  ;;  %v23595_v41 = vld [vmem:[#allocation161_spill] sm:$0xff]  ;;  %v23598_v57 = vld [vmem:[#allocation164_spill] sm:$0xff] }
 0x3d5   :  { %13131 = vst.msk [vmem:[%s22908_s3 + $0x188] sm:$0xf] %vm13032_vm1, %v14866_v43  ;;  %v14864_v14 = vpack.c.bf16 %v11688_v12, %v11688_v12  ;;  %v11111_v31 = vmax.f32 %v10535_v53, %v10823_v0  ;;  %v10533_v16 = vmax.f32 %v23589_v34, %v7378_v26  ;;  %v10821_v35 = vmax.f32 %v23590_v1, %v9682_v55  ;;  %v17290_v12 = vld [vmem:[%s22906_s0 + $0x7b8] sm:$0xff]   ;;  %v17292_v55 = vld [vmem:[%s22906_s0 + $0x7c0] sm:$0xff]  }
 0x3d6   :  { %v11691_v44 = vmax.f32 %v11403_v21, 0.0  ;;  %v11401_v2 = vadd.f32 %v21157_v15, %v11106_v54  ;;  %v16029_v20 = vpop.f32.mrf.mxu0  ;;  %v16605_v46 = vpop.f32.mrf.mxu1  ;;  %v23599_v0 = vld [vmem:[#allocation165_spill] sm:$0xff]  ;;  %v23600_v54 = vld [vmem:[#allocation166_spill] sm:$0xff] }
 0x3d7   :  { %13129 = vst.msk [vmem:[%s22908_s3 + $0x180] sm:$0xf] %vm13032_vm1, %v14864_v14  ;;  %v11406_v37 = vadd.f32 %v21157_v15, %v11111_v31  ;;  %v11109_v18 = vmax.f32 %v10533_v16, %v10821_v35  ;;  %v10536_v9 = vmax.f32 %v23591_v47, %v16029_v20  ;;  %v10824_v28 = vmax.f32 %v23592_v17, %v16605_v46  ;;  %v17293_v14 = vld [vmem:[%s22906_s0 + $0x10c0] sm:$0xff]   ;;  %v23602_v46 = vld [vmem:[#allocation168_spill] sm:$0xff] }
 0x3d8   :  { %v14867_v39 = vpack.c.bf16 %v11691_v44, %v11691_v44  ;;  %v11689_v58 = vmax.f32 %v11401_v2, 0.0  ;;  %v7381_v59 = vpop.f32.mrf.mxu0  ;;  %v9685_v6 = vpop.f32.mrf.mxu1  ;;  %v23601_v2 = vld [vmem:[#allocation167_spill] sm:$0xff] }
 0x3d9   :  { %v11694_v7 = vmax.f32 %v11406_v37, 0.0  ;;  %v11404_v22 = vadd.f32 %v21157_v15, %v11109_v18  ;;  %v11112_v23 = vmax.f32 %v10536_v9, %v10824_v28  ;;  %v10534_v56 = vmax.f32 %v23593_v40, %v7381_v59 }
 0x3da   :  { %13132 = vst.msk [vmem:[%s22908_s3 + $0x18c] sm:$0xf] %vm13032_vm1, %v14867_v39  ;;  %v14865_v50 = vpack.c.bf16 %v11689_v58, %v11689_v58  ;;  %v10822_v51 = vmax.f32 %v23594_v29, %v9685_v6  ;;  %v16032_v48 = vpop.f32.mrf.mxu0  ;;  %16127 = vmatmul.mubr.msk.bf16.gmra.mxu0 %vm4063_vm0, %v17286_v3  ;;  %v16608_v49 = vpop.f32.mrf.mxu1  ;;  %16703 = vmatmul.mubr.msk.bf16.gmra.mxu1 %vm4063_vm0, %v17287_v36  ;;  %v23604_v58 = vld [vmem:[#allocation170_spill] sm:$0xff] }
 0x3db   :  { %v14870_v32 = vpack.c.bf16 %v11694_v7, %v11694_v7  ;;  %v11692_v24 = vmax.f32 %v11404_v22, 0.0  ;;  %v11407_v25 = vadd.f32 %v21157_v15, %v11112_v23  ;;  %v10539_v8 = vmax.f32 %v23595_v41, %v16032_v48  ;;  %16130 = vmatprep.mubr.msk.bf16.mxu0 %vm4063_vm0, %v17288_v19  ;;  %16706 = vmatprep.mubr.msk.bf16.mxu1 %vm4063_vm0, %v17289_v38  ;;  %v23603_v19 = vld [vmem:[#allocation169_spill] sm:$0xff] }
 0x3dc   :  { %13130 = vst.msk [vmem:[%s22908_s3 + $0x184] sm:$0xf] %vm13032_vm1, %v14865_v50  ;;  %v11110_v10 = vmax.f32 %v10534_v56, %v10822_v51  ;;  %v10827_v61 = vmax.f32 %v23596_v60, %v16608_v49  ;;  %v7394_v11 = vpop.f32.mrf.mxu0  ;;  %v9698_v5 = vpop.f32.mrf.mxu1  ;;  %v23605_v56 = vld [vmem:[#allocation171_spill] sm:$0xff]  ;;  %v23606_v51 = vld [vmem:[#allocation172_spill] sm:$0xff] }
 0x3dd   :  { %13135 = vst.msk [vmem:[%s22908_s3 + $0x198] sm:$0xf] %vm13032_vm1, %v14870_v32  ;;  %v14868_v52 = vpack.c.bf16 %v11692_v24, %v11692_v24  ;;  %v11695_v62 = vmax.f32 %v11407_v25, 0.0  ;;  %v10537_v63 = vmax.f32 %v23597_v4, %v7394_v11  ;;  %v10825_v45 = vmax.f32 %v23598_v57, %v9698_v5  ;;  %v17294_v24 = vld [vmem:[%s22906_s0 + $0x7c8] sm:$0xff]   ;;  %v17296_v5 = vld [vmem:[%s22906_s0 + $0x7d0] sm:$0xff]  }
 0x3de   :  { %v11405_v27 = vadd.f32 %v21157_v15, %v11110_v10  ;;  %v11115_v33 = vmax.f32 %v10539_v8, %v10827_v61  ;;  %v16033_v42 = vpop.f32.mrf.mxu0  ;;  %v16609_v43 = vpop.f32.mrf.mxu1  ;;  %v17295_v25 = vld [vmem:[%s22906_s0 + $0x10c8] sm:$0xff]   ;;  %v23607_v10 = vld [vmem:[#allocation173_spill] sm:$0xff]  ;;  %v23608_v61 = vld [vmem:[#allocation174_spill] sm:$0xff] }
 0x3df   :  { %13133 = vst.msk [vmem:[%s22908_s3 + $0x190] sm:$0xf] %vm13032_vm1, %v14868_v52  ;;  %v14871_v53 = vpack.c.bf16 %v11695_v62, %v11695_v62  ;;  %v11113_v30 = vmax.f32 %v10537_v63, %v10825_v45  ;;  %v10540_v21 = vmax.f32 %v23599_v0, %v16033_v42  ;;  %v10828_v26 = vmax.f32 %v23600_v54, %v16609_v43  ;;  %v17297_v57 = vld [vmem:[%s22906_s0 + $0x10d0] sm:$0xff]  }
 0x3e0   :  { %v11693_v31 = vmax.f32 %v11405_v27, 0.0  ;;  %v11410_v34 = vadd.f32 %v21157_v15, %v11115_v33  ;;  %v7397_v16 = vpop.f32.mrf.mxu0  ;;  %v9701_v1 = vpop.f32.mrf.mxu1  ;;  %v23609_v33 = vld [vmem:[#allocation175_spill] sm:$0xff]  ;;  %v23610_v43 = vld [vmem:[#allocation176_spill] sm:$0xff] }
 0x3e1   :  { %13136 = vst.msk [vmem:[%s22908_s3 + $0x19c] sm:$0xf] %vm13032_vm1, %v14871_v53  ;;  %v11408_v35 = vadd.f32 %v21157_v15, %v11113_v30  ;;  %v11116_v44 = vmax.f32 %v10540_v21, %v10828_v26  ;;  %v10538_v20 = vmax.f32 %v23601_v2, %v7397_v16  ;;  %v10826_v3 = vmax.f32 %v23602_v46, %v9701_v1  ;;  %v23611_v26 = vld [vmem:[#allocation177_spill] sm:$0xff]  ;;  %v23613_v46 = vld [vmem:[#allocation179_spill] sm:$0xff] }
 0x3e2   :  { %v14869_v36 = vpack.c.bf16 %v11693_v31, %v11693_v31  ;;  %v11698_v37 = vmax.f32 %v11410_v34, 0.0  ;;  %v16036_v18 = vpop.f32.mrf.mxu0  ;;  %16131 = vmatmul.mubr.msk.bf16.gmra.mxu0 %vm4063_vm0, %v17290_v12  ;;  %v16612_v47 = vpop.f32.mrf.mxu1  ;;  %16707 = vmatmul.mubr.msk.bf16.gmra.mxu1 %vm4063_vm0, %v17291_v13 }
 0x3e3   :  { %v11696_v9 = vmax.f32 %v11408_v35, 0.0  ;;  %v11411_v17 = vadd.f32 %v21157_v15, %v11116_v44  ;;  %v11114_v28 = vmax.f32 %v10538_v20, %v10826_v3  ;;  %v10543_v38 = vmax.f32 %v23603_v19, %v16036_v18  ;;  %16134 = vmatprep.mubr.msk.bf16.mxu0 %vm4063_vm0, %v17292_v55  ;;  %16710 = vmatprep.mubr.msk.bf16.mxu1 %vm4063_vm0, %v17293_v14  ;;  %v23612_v14 = vld [vmem:[#allocation178_spill] sm:$0xff] }
 0x3e4   :  { %13134 = vst.msk [vmem:[%s22908_s3 + $0x194] sm:$0xf] %vm13032_vm1, %v14869_v36  ;;  %v14874_v39 = vpack.c.bf16 %v11698_v37, %v11698_v37  ;;  %v10831_v59 = vmax.f32 %v23604_v58, %v16612_v47  ;;  %v7410_v6 = vpop.f32.mrf.mxu0  ;;  %v9714_v7 = vpop.f32.mrf.mxu1  ;;  %v23614_v37 = vld [vmem:[#allocation180_spill] sm:$0xff]  ;;  %v23615_v58 = vld [vmem:[#allocation181_spill] sm:$0xff] }
 0x3e5   :  { %v14872_v22 = vpack.c.bf16 %v11696_v9, %v11696_v9  ;;  %v11699_v23 = vmax.f32 %v11411_v17, 0.0  ;;  %v11409_v40 = vadd.f32 %v21157_v15, %v11114_v28  ;;  %v10541_v50 = vmax.f32 %v23605_v56, %v7410_v6  ;;  %v17298_v17 = vld [vmem:[%s22906_s0 + $0x7d8] sm:$0xff]   ;;  %v17300_v6 = vld [vmem:[%s22906_s0 + $0x7e0] sm:$0xff]  }
 0x3e6   :  { %13139 = vst.msk [vmem:[%s22908_s3 + $0x1a8] sm:$0xf] %vm13032_vm1, %v14874_v39  ;;  %v11119_v29 = vmax.f32 %v10543_v38, %v10831_v59  ;;  %v10829_v48 = vmax.f32 %v23606_v51, %v9714_v7  ;;  %v16037_v49 = vpop.f32.mrf.mxu0  ;;  %v16613_v32 = vpop.f32.mrf.mxu1  ;;  %v17299_v28 = vld [vmem:[%s22906_s0 + $0x10d8] sm:$0xff]  }
 0x3e7   :  { %13137 = vst.msk [vmem:[%s22908_s3 + $0x1a0] sm:$0xf] %vm13032_vm1, %v14872_v22  ;;  %v14875_v41 = vpack.c.bf16 %v11699_v23, %v11699_v23  ;;  %v11697_v8 = vmax.f32 %v11409_v40, 0.0  ;;  %v10544_v60 = vmax.f32 %v23607_v10, %v16037_v49  ;;  %v10832_v11 = vmax.f32 %v23608_v61, %v16613_v32  ;;  %v23616_v22 = vld [vmem:[#allocation182_spill] sm:$0xff]  ;;  %v23618_v32 = vld [vmem:[#allocation184_spill] sm:$0xff] }
 0x3e8   :  { %v11414_v52 = vadd.f32 %v21157_v15, %v11119_v29  ;;  %v11117_v62 = vmax.f32 %v10541_v50, %v10829_v48  ;;  %v7413_v4 = vpop.f32.mrf.mxu0  ;;  %v9717_v63 = vpop.f32.mrf.mxu1  ;;  %v17301_v50 = vld [vmem:[%s22906_s0 + $0x10e0] sm:$0xff]   ;;  %v23617_v48 = vld [vmem:[#allocation183_spill] sm:$0xff] }
 0x3e9   :  { %13140 = vst.msk [vmem:[%s22908_s3 + $0x1ac] sm:$0xf] %vm13032_vm1, %v14875_v41  ;;  %v14873_v45 = vpack.c.bf16 %v11697_v8, %v11697_v8  ;;  %v11120_v27 = vmax.f32 %v10544_v60, %v10832_v11  ;;  %v10542_v42 = vmax.f32 %v23609_v33, %v7413_v4  ;;  %v10830_v12 = vmax.f32 %v23610_v43, %v9717_v63  ;;  %v23619_v11 = vld [vmem:[#allocation185_spill] sm:$0xff] }
 0x3ea   :  { %v11702_v13 = vmax.f32 %v11414_v52, 0.0  ;;  %v11412_v53 = vadd.f32 %v21157_v15, %v11117_v62  ;;  %v16040_v30 = vpop.f32.mrf.mxu0  ;;  %16135 = vmatmul.mubr.msk.bf16.gmra.mxu0 %vm4063_vm0, %v17294_v24  ;;  %v16616_v0 = vpop.f32.mrf.mxu1  ;;  %16711 = vmatmul.mubr.msk.bf16.gmra.mxu1 %vm4063_vm0, %v17295_v25  ;;  %v23620_v52 = vld [vmem:[#allocation186_spill] sm:$0xff] }
 0x3eb   :  { %13138 = vst.msk [vmem:[%s22908_s3 + $0x1a4] sm:$0xf] %vm13032_vm1, %v14873_v45  ;;  %v11415_v21 = vadd.f32 %v21157_v15, %v11120_v27  ;;  %v11118_v54 = vmax.f32 %v10542_v42, %v10830_v12  ;;  %v10547_v55 = vmax.f32 %v23611_v26, %v16040_v30  ;;  %v10835_v31 = vmax.f32 %v23612_v14, %v16616_v0  ;;  %v23621_v42 = vld [vmem:[#allocation187_spill] sm:$0xff]  ;;  %v23622_v12 = vld [vmem:[#allocation188_spill] sm:$0xff] }
 0x3ec   :  { %16138 = vmatprep.mubr.msk.bf16.mxu0 %vm4063_vm0, %v17296_v5  ;;  %v14878_v34 = vpack.c.bf16 %v11702_v13, %v11702_v13  ;;  %v11700_v16 = vmax.f32 %v11412_v53, 0.0  ;;  %v7426_v1 = vpop.f32.mrf.mxu0  ;;  %v9730_v35 = vpop.f32.mrf.mxu1  ;;  %16714 = vmatprep.mubr.msk.bf16.mxu1 %vm4063_vm0, %v17297_v57  ;;  %v17303_v26 = vld [vmem:[%s22906_s0 + $0x10e8] sm:$0xff]  }
 0x3ed   :  { %v11703_v44 = vmax.f32 %v11415_v21, 0.0  ;;  %v11413_v2 = vadd.f32 %v21157_v15, %v11118_v54  ;;  %v11123_v20 = vmax.f32 %v10547_v55, %v10835_v31  ;;  %v10545_v3 = vmax.f32 %v23613_v46, %v7426_v1  ;;  %v17302_v54 = vld [vmem:[%s22906_s0 + $0x7e8] sm:$0xff]   ;;  %v17304_v1 = vld [vmem:[%s22906_s0 + $0x7f0] sm:$0xff]  }
 0x3ee   :  { %13143 = vst.msk [vmem:[%s22908_s3 + $0x1b8] sm:$0xf] %vm13032_vm1, %v14878_v34  ;;  %v14876_v36 = vpack.c.bf16 %v11700_v16, %v11700_v16  ;;  %v10833_v18 = vmax.f32 %v23614_v37, %v9730_v35  ;;  %v16041_v47 = vpop.f32.mrf.mxu0  ;;  %v16617_v9 = vpop.f32.mrf.mxu1  ;;  %v23623_v34 = vld [vmem:[#allocation189_spill] sm:$0xff]  ;;  %v17305_v35 = vld [vmem:[%s22906_s0 + $0x10f0] sm:$0xff]  }
 0x3ef   :  { %v14879_v19 = vpack.c.bf16 %v11703_v44, %v11703_v44  ;;  %v11701_v38 = vmax.f32 %v11413_v2, 0.0  ;;  %v11418_v39 = vadd.f32 %v21157_v15, %v11123_v20  ;;  %v10548_v59 = vmax.f32 %v23615_v58, %v16041_v47  ;;  %v23624_v2 = vld [vmem:[#allocation190_spill] sm:$0xff]  ;;  %v23625_v47 = vld [vmem:[#allocation191_spill] sm:$0xff] }
 0x3f0   :  { %13141 = vst.msk [vmem:[%s22908_s3 + $0x1b0] sm:$0xf] %vm13032_vm1, %v14876_v36  ;;  %v11121_v7 = vmax.f32 %v10545_v3, %v10833_v18  ;;  %v10836_v23 = vmax.f32 %v23616_v22, %v16617_v9  ;;  %v7429_v40 = vpop.f32.mrf.mxu0  ;;  %v9733_v56 = vpop.f32.mrf.mxu1  ;;  %v23628_v22 = vld [vmem:[#allocation194_spill] sm:$0xff] }
 0x3f1   :  { %13144 = vst.msk [vmem:[%s22908_s3 + $0x1bc] sm:$0xf] %vm13032_vm1, %v14879_v19  ;;  %v14877_v29 = vpack.c.bf16 %v11701_v38, %v11701_v38  ;;  %v11706_v51 = vmax.f32 %v11418_v39, 0.0  ;;  %v10546_v49 = vmax.f32 %v23617_v48, %v7429_v40  ;;  %v10834_v24 = vmax.f32 %v23618_v32, %v9733_v56 }
 0x3f2   :  { %v11416_v25 = vadd.f32 %v21157_v15, %v11121_v7  ;;  %v11124_v41 = vmax.f32 %v10548_v59, %v10836_v23  ;;  %v16044_v8 = vpop.f32.mrf.mxu0  ;;  %16139 = vmatmul.mubr.msk.bf16.gmra.mxu0 %vm4063_vm0, %v17298_v17  ;;  %v16620_v10 = vpop.f32.mrf.mxu1  ;;  %16715 = vmatmul.mubr.msk.bf16.gmra.mxu1 %vm4063_vm0, %v17299_v28  ;;  %v23626_v28 = vld [vmem:[#allocation192_spill] sm:$0xff] }
 0x3f3   :  { %13142 = vst.msk [vmem:[%s22908_s3 + $0x1b4] sm:$0xf] %vm13032_vm1, %v14877_v29  ;;  %v14882_v60 = vpack.c.bf16 %v11706_v51, %v11706_v51  ;;  %v11122_v61 = vmax.f32 %v10546_v49, %v10834_v24  ;;  %v10551_v5 = vmax.f32 %v23619_v11, %v16044_v8  ;;  %v10839_v62 = vmax.f32 %v23620_v52, %v16620_v10  ;;  %v23629_v49 = vld [vmem:[#allocation195_spill] sm:$0xff]  ;;  %v23630_v24 = vld [vmem:[#allocation196_spill] sm:$0xff]  ;;  %v17307_v11 = vld [vmem:[%s22906_s0 + $0x10f8] sm:$0xff]  }
 0x3f4   :  { %16142 = vmatprep.mubr.msk.bf16.mxu0 %vm4063_vm0, %v17300_v6  ;;  %v11704_v4 = vmax.f32 %v11416_v25, 0.0  ;;  %v11419_v63 = vadd.f32 %v21157_v15, %v11124_v41  ;;  %v7442_v57 = vpop.f32.mrf.mxu0  ;;  %v9746_v45 = vpop.f32.mrf.mxu1  ;;  %16718 = vmatprep.mubr.msk.bf16.mxu1 %vm4063_vm0, %v17301_v50  ;;  %v23627_v6 = vld [vmem:[#allocation193_spill] sm:$0xff] }
 0x3f5   :  { %13147 = vst.msk [vmem:[%s22908_s3 + $0x1c8] sm:$0xf] %vm13032_vm1, %v14882_v60  ;;  %v11417_v27 = vadd.f32 %v21157_v15, %v11122_v61  ;;  %v11127_v33 = vmax.f32 %v10551_v5, %v10839_v62  ;;  %v10549_v43 = vmax.f32 %v23621_v42, %v7442_v57  ;;  %v10837_v13 = vmax.f32 %v23622_v12, %v9746_v45  ;;  %v17306_v61 = vld [vmem:[%s22906_s0 + $0x7f8] sm:$0xff]   ;;  %v17308_v45 = vld [vmem:[%s22906_s0 + $0x800] sm:$0xff]  }
 0x3f6   :  { %v14880_v53 = vpack.c.bf16 %v11704_v4, %v11704_v4  ;;  %v11707_v30 = vmax.f32 %v11419_v63, 0.0  ;;  %v16045_v0 = vpop.f32.mrf.mxu0  ;;  %v16621_v21 = vpop.f32.mrf.mxu1  ;;  %v23631_v62 = vld [vmem:[#allocation197_spill] sm:$0xff]  ;;  %v23632_v63 = vld [vmem:[#allocation198_spill] sm:$0xff] }
 0x3f7   :  { %v11705_v55 = vmax.f32 %v11417_v27, 0.0  ;;  %v11422_v14 = vadd.f32 %v21157_v15, %v11127_v33  ;;  %v11125_v31 = vmax.f32 %v10549_v43, %v10837_v13  ;;  %v10552_v16 = vmax.f32 %v23623_v34, %v16045_v0  ;;  %v17309_v27 = vld [vmem:[%s22906_s0 + $0x1100] sm:$0xff]   ;;  %v23633_v0 = vld [vmem:[#allocation199_spill] sm:$0xff] }
 0x3f8   :  { %13145 = vst.msk [vmem:[%s22908_s3 + $0x1c0] sm:$0xf] %vm13032_vm1, %v14880_v53  ;;  %v14883_v44 = vpack.c.bf16 %v11707_v30, %v11707_v30  ;;  %v10840_v20 = vmax.f32 %v23624_v2, %v16621_v21  ;;  %v7445_v46 = vpop.f32.mrf.mxu0  ;;  %v9749_v3 = vpop.f32.mrf.mxu1 }
 0x3f9   :  { %v14881_v36 = vpack.c.bf16 %v11705_v55, %v11705_v55  ;;  %v11710_v37 = vmax.f32 %v11422_v14, 0.0  ;;  %v11420_v18 = vadd.f32 %v21157_v15, %v11125_v31  ;;  %v10550_v9 = vmax.f32 %v23625_v47, %v7445_v46  ;;  %v23637_v47 = vld [vmem:[#allocation203_spill] sm:$0xff] }
 0x3fa   :  { %13148 = vst.msk [vmem:[%s22908_s3 + $0x1cc] sm:$0xf] %vm13032_vm1, %v14883_v44  ;;  %v11128_v17 = vmax.f32 %v10552_v16, %v10840_v20  ;;  %v10838_v19 = vmax.f32 %v23626_v28, %v9749_v3  ;;  %v16048_v38 = vpop.f32.mrf.mxu0  ;;  %16143 = vmatmul.mubr.msk.bf16.gmra.mxu0 %vm4063_vm0, %v17302_v54  ;;  %v16624_v39 = vpop.f32.mrf.mxu1  ;;  %16719 = vmatmul.mubr.msk.bf16.gmra.mxu1 %vm4063_vm0, %v17303_v26  ;;  %v23634_v26 = vld [vmem:[#allocation200_spill] sm:$0xff]  ;;  %v23636_v20 = vld [vmem:[#allocation202_spill] sm:$0xff] }
 0x3fb   :  { %13146 = vst.msk [vmem:[%s22908_s3 + $0x1c4] sm:$0xf] %vm13032_vm1, %v14881_v36  ;;  %v14886_v58 = vpack.c.bf16 %v11710_v37, %v11710_v37  ;;  %v11708_v59 = vmax.f32 %v11420_v18, 0.0  ;;  %v10555_v7 = vmax.f32 %v23627_v6, %v16048_v38  ;;  %v10843_v23 = vmax.f32 %v23628_v22, %v16624_v39  ;;  %16146 = vmatprep.mubr.msk.bf16.mxu0 %vm4063_vm0, %v17304_v1  ;;  %v17311_v6 = vld [vmem:[%s22906_s0 + $0x1108] sm:$0xff]  }
 0x3fc   :  { %16722 = vmatprep.mubr.msk.bf16.mxu1 %vm4063_vm0, %v17305_v35  ;;  %v11423_v40 = vadd.f32 %v21157_v15, %v11128_v17  ;;  %v11126_v56 = vmax.f32 %v10550_v9, %v10838_v19  ;;  %v7458_v50 = vpop.f32.mrf.mxu0  ;;  %v9762_v29 = vpop.f32.mrf.mxu1  ;;  %v23635_v35 = vld [vmem:[#allocation201_spill] sm:$0xff]  ;;  %v23638_v17 = vld [vmem:[#allocation204_spill] sm:$0xff] }
 0x3fd   :  { %13151 = vst.msk [vmem:[%s22908_s3 + $0x1d8] sm:$0xf] %vm13032_vm1, %v14886_v58  ;;  %v14884_v51 = vpack.c.bf16 %v11708_v59, %v11708_v59  ;;  %v11131_v48 = vmax.f32 %v10555_v7, %v10843_v23  ;;  %v10553_v32 = vmax.f32 %v23629_v49, %v7458_v50  ;;  %v10841_v25 = vmax.f32 %v23630_v24, %v9762_v29  ;;  %v17310_v59 = vld [vmem:[%s22906_s0 + $0x808] sm:$0xff]   ;;  %v23639_v23 = vld [vmem:[#allocation205_spill] sm:$0xff]  ;;  %v17312_v29 = vld [vmem:[%s22906_s0 + $0x810] sm:$0xff]  }
 0x3fe   :  { %v11711_v41 = vmax.f32 %v11423_v40, 0.0  ;;  %v11421_v8 = vadd.f32 %v21157_v15, %v11126_v56  ;;  %v16049_v10 = vpop.f32.mrf.mxu0  ;;  %v16625_v60 = vpop.f32.mrf.mxu1  ;;  %v23640_v56 = vld [vmem:[#allocation206_spill] sm:$0xff] }
 0x3ff   :  { %13149 = vst.msk [vmem:[%s22908_s3 + $0x1d0] sm:$0xf] %vm13032_vm1, %v14884_v51  ;;  %v11426_v5 = vadd.f32 %v21157_v15, %v11131_v48  ;;  %v11129_v52 = vmax.f32 %v10553_v32, %v10841_v25  ;;  %v10556_v4 = vmax.f32 %v23631_v62, %v16049_v10  ;;  %v10844_v57 = vmax.f32 %v23632_v63, %v16625_v60  ;;  %v17313_v51 = vld [vmem:[%s22906_s0 + $0x1110] sm:$0xff]  }
 0x400   :  { %v14887_v33 = vpack.c.bf16 %v11711_v41, %v11711_v41  ;;  %v11709_v42 = vmax.f32 %v11421_v8, 0.0  ;;  %v7461_v43 = vpop.f32.mrf.mxu0  ;;  %v9765_v12 = vpop.f32.mrf.mxu1  ;;  %v23641_v8 = vld [vmem:[#allocation207_spill] sm:$0xff]  ;;  %v23642_v60 = vld [vmem:[#allocation208_spill] sm:$0xff] }
 0x401   :  { %v11714_v13 = vmax.f32 %v11426_v5, 0.0  ;;  %v11424_v53 = vadd.f32 %v21157_v15, %v11129_v52  ;;  %v11132_v30 = vmax.f32 %v10556_v4, %v10844_v57  ;;  %v10554_v21 = vmax.f32 %v23633_v0, %v7461_v43 }
 0x402   :  { %13152 = vst.msk [vmem:[%s22908_s3 + $0x1dc] sm:$0xf] %vm13032_vm1, %v14887_v33  ;;  %v14885_v54 = vpack.c.bf16 %v11709_v42, %v11709_v42  ;;  %v10842_v55 = vmax.f32 %v23634_v26, %v9765_v12  ;;  %v16052_v14 = vpop.f32.mrf.mxu0  ;;  %16147 = vmatmul.mubr.msk.bf16.gmra.mxu0 %vm4063_vm0, %v17306_v61  ;;  %v16628_v31 = vpop.f32.mrf.mxu1  ;;  %16723 = vmatmul.mubr.msk.bf16.gmra.mxu1 %vm4063_vm0, %v17307_v11  ;;  %v23644_v42 = vld [vmem:[#allocation210_spill] sm:$0xff] }
 0x403   :  { %v14890_v34 = vpack.c.bf16 %v11714_v13, %v11714_v13  ;;  %v11712_v16 = vmax.f32 %v11424_v53, 0.0  ;;  %v11427_v1 = vadd.f32 %v21157_v15, %v11132_v30  ;;  %v10559_v44 = vmax.f32 %v23635_v35, %v16052_v14  ;;  %16150 = vmatprep.mubr.msk.bf16.mxu0 %vm4063_vm0, %v17308_v45  ;;  %16726 = vmatprep.mubr.msk.bf16.mxu1 %vm4063_vm0, %v17309_v27  ;;  %v23643_v45 = vld [vmem:[#allocation209_spill] sm:$0xff] }
 0x404   :  { %13150 = vst.msk [vmem:[%s22908_s3 + $0x1d4] sm:$0xf] %vm13032_vm1, %v14885_v54  ;;  %v11130_v2 = vmax.f32 %v10554_v21, %v10842_v55  ;;  %v10847_v46 = vmax.f32 %v23636_v20, %v16628_v31  ;;  %v7474_v3 = vpop.f32.mrf.mxu0  ;;  %v9778_v36 = vpop.f32.mrf.mxu1  ;;  %v23645_v21 = vld [vmem:[#allocation211_spill] sm:$0xff]  ;;  %v23646_v55 = vld [vmem:[#allocation212_spill] sm:$0xff] }
 0x405   :  { %13155 = vst.msk [vmem:[%s22908_s3 + $0x1e8] sm:$0xf] %vm13032_vm1, %v14890_v34  ;;  %v14888_v37 = vpack.c.bf16 %v11712_v16, %v11712_v16  ;;  %v11715_v18 = vmax.f32 %v11427_v1, 0.0  ;;  %v10557_v9 = vmax.f32 %v23637_v47, %v7474_v3  ;;  %v10845_v28 = vmax.f32 %v23638_v17, %v9778_v36  ;;  %v17314_v16 = vld [vmem:[%s22906_s0 + $0x818] sm:$0xff]   ;;  %v17316_v36 = vld [vmem:[%s22906_s0 + $0x820] sm:$0xff]  }
 0x406   :  { %v11425_v19 = vadd.f32 %v21157_v15, %v11130_v2  ;;  %v11135_v38 = vmax.f32 %v10559_v44, %v10847_v46  ;;  %v16053_v39 = vpop.f32.mrf.mxu0  ;;  %v16629_v58 = vpop.f32.mrf.mxu1  ;;  %v17315_v1 = vld [vmem:[%s22906_s0 + $0x1118] sm:$0xff]   ;;  %v23648_v46 = vld [vmem:[#allocation214_spill] sm:$0xff] }
 0x407   :  { %13153 = vst.msk [vmem:[%s22908_s3 + $0x1e0] sm:$0xf] %vm13032_vm1, %v14888_v37  ;;  %v14891_v7 = vpack.c.bf16 %v11715_v18, %v11715_v18  ;;  %v11133_v22 = vmax.f32 %v10557_v9, %v10845_v28  ;;  %v10560_v40 = vmax.f32 %v23639_v23, %v16053_v39  ;;  %v10848_v50 = vmax.f32 %v23640_v56, %v16629_v58  ;;  %v23647_v2 = vld [vmem:[#allocation213_spill] sm:$0xff]  ;;  %v17317_v17 = vld [vmem:[%s22906_s0 + $0x1120] sm:$0xff]   ;;  %v23650_v58 = vld [vmem:[#allocation216_spill] sm:$0xff] }
 0x408   :  { %v11713_v48 = vmax.f32 %v11425_v19, 0.0  ;;  %v11430_v49 = vadd.f32 %v21157_v15, %v11135_v38  ;;  %v7477_v32 = vpop.f32.mrf.mxu0  ;;  %v9781_v24 = vpop.f32.mrf.mxu1  ;;  %v23649_v38 = vld [vmem:[#allocation215_spill] sm:$0xff] }
 0x409   :  { %13156 = vst.msk [vmem:[%s22908_s3 + $0x1ec] sm:$0xf] %vm13032_vm1, %v14891_v7  ;;  %v11428_v25 = vadd.f32 %v21157_v15, %v11133_v22  ;;  %v11136_v41 = vmax.f32 %v10560_v40, %v10848_v50  ;;  %v10558_v10 = vmax.f32 %v23641_v8, %v7477_v32  ;;  %v10846_v61 = vmax.f32 %v23642_v60, %v9781_v24  ;;  %v23651_v50 = vld [vmem:[#allocation217_spill] sm:$0xff]  ;;  %v23653_v60 = vld [vmem:[#allocation219_spill] sm:$0xff] }
 0x40a   :  { %v14889_v11 = vpack.c.bf16 %v11713_v48, %v11713_v48  ;;  %v11718_v5 = vmax.f32 %v11430_v49, 0.0  ;;  %v16056_v52 = vpop.f32.mrf.mxu0  ;;  %16151 = vmatmul.mubr.msk.bf16.gmra.mxu0 %vm4063_vm0, %v17310_v59  ;;  %v16632_v62 = vpop.f32.mrf.mxu1  ;;  %16727 = vmatmul.mubr.msk.bf16.gmra.mxu1 %vm4063_vm0, %v17311_v6 }
 0x40b   :  { %v11716_v4 = vmax.f32 %v11428_v25, 0.0  ;;  %v11431_v63 = vadd.f32 %v21157_v15, %v11136_v41  ;;  %v11134_v57 = vmax.f32 %v10558_v10, %v10846_v61  ;;  %v10563_v27 = vmax.f32 %v23643_v45, %v16056_v52  ;;  %16154 = vmatprep.mubr.msk.bf16.mxu0 %vm4063_vm0, %v17312_v29  ;;  %16730 = vmatprep.mubr.msk.bf16.mxu1 %vm4063_vm0, %v17313_v51  ;;  %v23652_v51 = vld [vmem:[#allocation218_spill] sm:$0xff] }
 0x40c   :  { %13154 = vst.msk [vmem:[%s22908_s3 + $0x1e4] sm:$0xf] %vm13032_vm1, %v14889_v11  ;;  %v14894_v33 = vpack.c.bf16 %v11718_v5, %v11718_v5  ;;  %v10851_v43 = vmax.f32 %v23644_v42, %v16632_v62  ;;  %v7490_v12 = vpop.f32.mrf.mxu0  ;;  %v9794_v13 = vpop.f32.mrf.mxu1  ;;  %v23654_v5 = vld [vmem:[#allocation220_spill] sm:$0xff]  ;;  %v23655_v42 = vld [vmem:[#allocation221_spill] sm:$0xff] }
 0x40d   :  { %v14892_v53 = vpack.c.bf16 %v11716_v4, %v11716_v4  ;;  %v11719_v30 = vmax.f32 %v11431_v63, 0.0  ;;  %v11429_v0 = vadd.f32 %v21157_v15, %v11134_v57  ;;  %v10561_v54 = vmax.f32 %v23645_v21, %v7490_v12  ;;  %v17318_v63 = vld [vmem:[%s22906_s0 + $0x828] sm:$0xff]   ;;  %v17320_v12 = vld [vmem:[%s22906_s0 + $0x830] sm:$0xff]  }
 0x40e   :  { %13159 = vst.msk [vmem:[%s22908_s3 + $0x1f8] sm:$0xf] %vm13032_vm1, %v14894_v33  ;;  %v11139_v26 = vmax.f32 %v10563_v27, %v10851_v43  ;;  %v10849_v14 = vmax.f32 %v23646_v55, %v9794_v13  ;;  %v16057_v31 = vpop.f32.mrf.mxu0  ;;  %v16633_v34 = vpop.f32.mrf.mxu1  ;;  %v17319_v57 = vld [vmem:[%s22906_s0 + $0x1128] sm:$0xff]  }
 0x40f   :  { %13157 = vst.msk [vmem:[%s22908_s3 + $0x1f0] sm:$0xf] %vm13032_vm1, %v14892_v53  ;;  %v14895_v35 = vpack.c.bf16 %v11719_v30, %v11719_v30  ;;  %v11717_v44 = vmax.f32 %v11429_v0, 0.0  ;;  %v10564_v20 = vmax.f32 %v23647_v2, %v16057_v31  ;;  %v10852_v3 = vmax.f32 %v23648_v46, %v16633_v34  ;;  %v23656_v53 = vld [vmem:[#allocation222_spill] sm:$0xff]  ;;  %v23658_v34 = vld [vmem:[#allocation224_spill] sm:$0xff] }
 0x410   :  { %v11434_v37 = vadd.f32 %v21157_v15, %v11139_v26  ;;  %v11137_v18 = vmax.f32 %v10561_v54, %v10849_v14  ;;  %v7493_v47 = vpop.f32.mrf.mxu0  ;;  %v9797_v9 = vpop.f32.mrf.mxu1  ;;  %v17321_v54 = vld [vmem:[%s22906_s0 + $0x1130] sm:$0xff]   ;;  %v23657_v14 = vld [vmem:[#allocation223_spill] sm:$0xff] }
 0x411   :  { %13160 = vst.msk [vmem:[%s22908_s3 + $0x1fc] sm:$0xf] %vm13032_vm1, %v14895_v35  ;;  %v14893_v28 = vpack.c.bf16 %v11717_v44, %v11717_v44  ;;  %v11140_v19 = vmax.f32 %v10564_v20, %v10852_v3  ;;  %v10562_v39 = vmax.f32 %v23649_v38, %v7493_v47  ;;  %v10850_v59 = vmax.f32 %v23650_v58, %v9797_v9  ;;  %v23659_v3 = vld [vmem:[#allocation225_spill] sm:$0xff] }
 0x412   :  { %v11722_v6 = vmax.f32 %v11434_v37, 0.0  ;;  %v11432_v7 = vadd.f32 %v21157_v15, %v11137_v18  ;;  %v16060_v22 = vpop.f32.mrf.mxu0  ;;  %16155 = vmatmul.mubr.msk.bf16.gmra.mxu0 %vm4063_vm0, %v17314_v16  ;;  %v16636_v23 = vpop.f32.mrf.mxu1  ;;  %16731 = vmatmul.mubr.msk.bf16.gmra.mxu1 %vm4063_vm0, %v17315_v1  ;;  %v23660_v37 = vld [vmem:[#allocation226_spill] sm:$0xff] }
 0x413   :  { %13158 = vst.msk [vmem:[%s22908_s3 + $0x1f4] sm:$0xf] %vm13032_vm1, %v14893_v28  ;;  %v11435_v40 = vadd.f32 %v21157_v15, %v11140_v19  ;;  %v11138_v56 = vmax.f32 %v10562_v39, %v10850_v59  ;;  %v10567_v29 = vmax.f32 %v23651_v50, %v16060_v22  ;;  %v10855_v48 = vmax.f32 %v23652_v51, %v16636_v23  ;;  %v23661_v39 = vld [vmem:[#allocation227_spill] sm:$0xff]  ;;  %v23662_v59 = vld [vmem:[#allocation228_spill] sm:$0xff]  ;;  %v17323_v50 = vld [vmem:[%s22906_s0 + $0x1138] sm:$0xff]  }
 0x414   :  { %16158 = vmatprep.mubr.msk.bf16.mxu0 %vm4063_vm0, %v17316_v36  ;;  %v14898_v49 = vpack.c.bf16 %v11722_v6, %v11722_v6  ;;  %v11720_v32 = vmax.f32 %v11432_v7, 0.0  ;;  %v7506_v24 = vpop.f32.mrf.mxu0  ;;  %v9810_v25 = vpop.f32.mrf.mxu1  ;;  %16734 = vmatprep.mubr.msk.bf16.mxu1 %vm4063_vm0, %v17317_v17 }
 0x415   :  { %v11723_v41 = vmax.f32 %v11435_v40, 0.0  ;;  %v11433_v8 = vadd.f32 %v21157_v15, %v11138_v56  ;;  %v11143_v10 = vmax.f32 %v10567_v29, %v10855_v48  ;;  %v10565_v61 = vmax.f32 %v23653_v60, %v7506_v24  ;;  %v17322_v56 = vld [vmem:[%s22906_s0 + $0x838] sm:$0xff]   ;;  %v17324_v24 = vld [vmem:[%s22906_s0 + $0x840] sm:$0xff]  }
 0x416   :  { %13163 = vst.msk [vmem:[%s22908_s3 + $0x208] sm:$0xf] %vm13032_vm1, %v14898_v49  ;;  %v14896_v11 = vpack.c.bf16 %v11720_v32, %v11720_v32  ;;  %v10853_v52 = vmax.f32 %v23654_v5, %v9810_v25  ;;  %v16061_v62 = vpop.f32.mrf.mxu0  ;;  %v16637_v4 = vpop.f32.mrf.mxu1  ;;  %v23663_v49 = vld [vmem:[#allocation229_spill] sm:$0xff]  ;;  %v17325_v25 = vld [vmem:[%s22906_s0 + $0x1140] sm:$0xff]  }
 0x417   :  { %v14899_v45 = vpack.c.bf16 %v11723_v41, %v11723_v41  ;;  %v11721_v27 = vmax.f32 %v11433_v8, 0.0  ;;  %v11438_v33 = vadd.f32 %v21157_v15, %v11143_v10  ;;  %v10568_v43 = vmax.f32 %v23655_v42, %v16061_v62  ;;  %v23664_v8 = vld [vmem:[#allocation230_spill] sm:$0xff]  ;;  %v23665_v62 = vld [vmem:[#allocation231_spill] sm:$0xff] }
 0x418   :  { %13161 = vst.msk [vmem:[%s22908_s3 + $0x200] sm:$0xf] %vm13032_vm1, %v14896_v11  ;;  %v11141_v13 = vmax.f32 %v10565_v61, %v10853_v52  ;;  %v10856_v30 = vmax.f32 %v23656_v53, %v16637_v4  ;;  %v7509_v0 = vpop.f32.mrf.mxu0  ;;  %v9813_v21 = vpop.f32.mrf.mxu1  ;;  %v23668_v53 = vld [vmem:[#allocation234_spill] sm:$0xff] }
 0x419   :  { %13164 = vst.msk [vmem:[%s22908_s3 + $0x20c] sm:$0xf] %vm13032_vm1, %v14899_v45  ;;  %v14897_v26 = vpack.c.bf16 %v11721_v27, %v11721_v27  ;;  %v11726_v55 = vmax.f32 %v11438_v33, 0.0  ;;  %v10566_v31 = vmax.f32 %v23657_v14, %v7509_v0  ;;  %v10854_v16 = vmax.f32 %v23658_v34, %v9813_v21 }
 0x41a   :  { %v11436_v1 = vadd.f32 %v21157_v15, %v11141_v13  ;;  %v11144_v35 = vmax.f32 %v10568_v43, %v10856_v30  ;;  %v16064_v44 = vpop.f32.mrf.mxu0  ;;  %16159 = vmatmul.mubr.msk.bf16.gmra.mxu0 %vm4063_vm0, %v17318_v63  ;;  %v16640_v2 = vpop.f32.mrf.mxu1  ;;  %16735 = vmatmul.mubr.msk.bf16.gmra.mxu1 %vm4063_vm0, %v17319_v57  ;;  %v23666_v57 = vld [vmem:[#allocation232_spill] sm:$0xff] }
 0x41b   :  { %13162 = vst.msk [vmem:[%s22908_s3 + $0x204] sm:$0xf] %vm13032_vm1, %v14897_v26  ;;  %v14902_v20 = vpack.c.bf16 %v11726_v55, %v11726_v55  ;;  %v11142_v46 = vmax.f32 %v10566_v31, %v10854_v16  ;;  %v10571_v36 = vmax.f32 %v23659_v3, %v16064_v44  ;;  %v10859_v18 = vmax.f32 %v23660_v37, %v16640_v2  ;;  %v23669_v31 = vld [vmem:[#allocation235_spill] sm:$0xff]  ;;  %v23670_v16 = vld [vmem:[#allocation236_spill] sm:$0xff] }
 0x41c   :  { %16162 = vmatprep.mubr.msk.bf16.mxu0 %vm4063_vm0, %v17320_v12  ;;  %v11724_v47 = vmax.f32 %v11436_v1, 0.0  ;;  %v11439_v9 = vadd.f32 %v21157_v15, %v11144_v35  ;;  %v7522_v17 = vpop.f32.mrf.mxu0  ;;  %v9826_v28 = vpop.f32.mrf.mxu1  ;;  %16738 = vmatprep.mubr.msk.bf16.mxu1 %vm4063_vm0, %v17321_v54  ;;  %v23667_v12 = vld [vmem:[#allocation233_spill] sm:$0xff]  ;;  %v17327_v3 = vld [vmem:[%s22906_s0 + $0x1148] sm:$0xff]  }
 0x41d   :  { %13167 = vst.msk [vmem:[%s22908_s3 + $0x218] sm:$0xf] %vm13032_vm1, %v14902_v20  ;;  %v11437_v19 = vadd.f32 %v21157_v15, %v11142_v46  ;;  %v11147_v38 = vmax.f32 %v10571_v36, %v10859_v18  ;;  %v10569_v58 = vmax.f32 %v23661_v39, %v7522_v17  ;;  %v10857_v6 = vmax.f32 %v23662_v59, %v9826_v28  ;;  %v17326_v46 = vld [vmem:[%s22906_s0 + $0x848] sm:$0xff]   ;;  %v21675_v36 = vld [vmem:[%s22907_s2] ss:$0 sm:$0xff]  ;;  %v23671_v18 = vld [vmem:[#allocation237_spill] sm:$0xff] }
 0x41e   :  { %v14900_v7 = vpack.c.bf16 %v11724_v47, %v11724_v47  ;;  %v11727_v22 = vmax.f32 %v11439_v9, 0.0  ;;  %v16065_v23 = vpop.f32.mrf.mxu0  ;;  %v16641_v40 = vpop.f32.mrf.mxu1  ;;  %v23672_v9 = vld [vmem:[#allocation238_spill] sm:$0xff]  ;;  %v17328_v28 = vld [vmem:[%s22906_s0 + $0x850] sm:$0xff]  }
 0x41f   :  { %v11725_v29 = vmax.f32 %v11437_v19, 0.0  ;;  %v11442_v51 = vadd.f32 %v21157_v15, %v11147_v38  ;;  %v11145_v48 = vmax.f32 %v10569_v58, %v10857_v6  ;;  %v10572_v32 = vmax.f32 %v23663_v49, %v16065_v23  ;;  %v17329_v19 = vld [vmem:[%s22906_s0 + $0x1150] sm:$0xff]   ;;  %v23673_v23 = vld [vmem:[#allocation239_spill] sm:$0xff] }
 0x420   :  { %13165 = vst.msk [vmem:[%s22908_s3 + $0x210] sm:$0xf] %vm13032_vm1, %v14900_v7  ;;  %v14903_v41 = vpack.c.bf16 %v11727_v22, %v11727_v22  ;;  %v10860_v10 = vmax.f32 %v23664_v8, %v16641_v40  ;;  %v7525_v60 = vpop.f32.mrf.mxu0  ;;  %v9829_v61 = vpop.f32.mrf.mxu1 }
 0x421   :  { %v14901_v11 = vpack.c.bf16 %v11725_v29, %v11725_v29  ;;  %v11730_v5 = vmax.f32 %v11442_v51, 0.0  ;;  %v11440_v52 = vadd.f32 %v21157_v15, %v11145_v48  ;;  %v10570_v4 = vmax.f32 %v23665_v62, %v7525_v60  ;;  %v23677_v62 = vld [vmem:[#allocation243_spill] sm:$0xff] }
 0x422   :  { %13168 = vst.msk [vmem:[%s22908_s3 + $0x21c] sm:$0xf] %vm13032_vm1, %v14903_v41  ;;  %v11148_v63 = vmax.f32 %v10572_v32, %v10860_v10  ;;  %v10858_v45 = vmax.f32 %v23666_v57, %v9829_v61  ;;  %v16068_v27 = vpop.f32.mrf.mxu0  ;;  %16163 = vmatmul.mubr.msk.bf16.gmra.mxu0 %vm4063_vm0, %v17322_v56  ;;  %v16644_v33 = vpop.f32.mrf.mxu1  ;;  %16739 = vmatmul.mubr.msk.bf16.gmra.mxu1 %vm4063_vm0, %v17323_v50  ;;  %v23674_v50 = vld [vmem:[#allocation240_spill] sm:$0xff]  ;;  %v23676_v10 = vld [vmem:[#allocation242_spill] sm:$0xff] }
 0x423   :  { %13166 = vst.msk [vmem:[%s22908_s3 + $0x214] sm:$0xf] %vm13032_vm1, %v14901_v11  ;;  %v14906_v42 = vpack.c.bf16 %v11730_v5, %v11730_v5  ;;  %v11728_v43 = vmax.f32 %v11440_v52, 0.0  ;;  %v10575_v13 = vmax.f32 %v23667_v12, %v16068_v27  ;;  %v10863_v30 = vmax.f32 %v23668_v53, %v16644_v33  ;;  %16166 = vmatprep.mubr.msk.bf16.mxu0 %vm4063_vm0, %v17324_v24  ;;  %v17331_v12 = vld [vmem:[%s22906_s0 + $0x1158] sm:$0xff]  }
 0x424   :  { %16742 = vmatprep.mubr.msk.bf16.mxu1 %vm4063_vm0, %v17325_v25  ;;  %v11443_v0 = vadd.f32 %v21157_v15, %v11148_v63  ;;  %v11146_v21 = vmax.f32 %v10570_v4, %v10858_v45  ;;  %v7538_v54 = vpop.f32.mrf.mxu0  ;;  %v9842_v26 = vpop.f32.mrf.mxu1  ;;  %v23675_v25 = vld [vmem:[#allocation241_spill] sm:$0xff]  ;;  %v23678_v63 = vld [vmem:[#allocation244_spill] sm:$0xff] }
 0x425   :  { %13171 = vst.msk [vmem:[%s22908_s3 + $0x228] sm:$0xf] %vm13032_vm1, %v14906_v42  ;;  %v14904_v55 = vpack.c.bf16 %v11728_v43, %v11728_v43  ;;  %v11151_v14 = vmax.f32 %v10575_v13, %v10863_v30  ;;  %v10573_v34 = vmax.f32 %v23669_v31, %v7538_v54  ;;  %v10861_v1 = vmax.f32 %v23670_v16, %v9842_v26  ;;  %v17330_v43 = vld [vmem:[%s22906_s0 + $0x858] sm:$0xff]   ;;  %v17332_v26 = vld [vmem:[%s22906_s0 + $0x860] sm:$0xff]  }
 0x426   :  { %v11731_v35 = vmax.f32 %v11443_v0, 0.0  ;;  %v11441_v44 = vadd.f32 %v21157_v15, %v11146_v21  ;;  %v16069_v2 = vpop.f32.mrf.mxu0  ;;  %v16645_v20 = vpop.f32.mrf.mxu1  ;;  %v23679_v30 = vld [vmem:[#allocation245_spill] sm:$0xff]  ;;  %v23680_v21 = vld [vmem:[#allocation246_spill] sm:$0xff] }
 0x427   :  { %13169 = vst.msk [vmem:[%s22908_s3 + $0x220] sm:$0xf] %vm13032_vm1, %v14904_v55  ;;  %v11446_v15 = vadd.f32 %v21675_v36, %v11151_v14  ;;  %v11149_v37 = vmax.f32 %v10573_v34, %v10861_v1  ;;  %v10576_v47 = vmax.f32 %v23671_v18, %v16069_v2  ;;  %v10864_v17 = vmax.f32 %v23672_v9, %v16645_v20  ;;  %v17333_v55 = vld [vmem:[%s22906_s0 + $0x1160] sm:$0xff]   ;;  %v23682_v20 = vld [vmem:[#allocation248_spill] sm:$0xff] }
 0x428   :  { %v14907_v38 = vpack.c.bf16 %v11731_v35, %v11731_v35  ;;  %v11729_v39 = vmax.f32 %v11441_v44, 0.0  ;;  %v7541_v58 = vpop.f32.mrf.mxu0  ;;  %v9845_v59 = vpop.f32.mrf.mxu1  ;;  %v23681_v44 = vld [vmem:[#allocation247_spill] sm:$0xff] }
 0x429   :  { %v11734_v6 = vmax.f32 %v11446_v15, 0.0  ;;  %v11444_v7 = vadd.f32 %v21675_v36, %v11149_v37  ;;  %v11152_v22 = vmax.f32 %v10576_v47, %v10864_v17  ;;  %v10574_v40 = vmax.f32 %v23673_v23, %v7541_v58 }
 0x42a   :  { %13172 = vst.msk [vmem:[%s22908_s3 + $0x22c] sm:$0xf] %vm13032_vm1, %v14907_v38  ;;  %v14905_v56 = vpack.c.bf16 %v11729_v39, %v11729_v39  ;;  %v10862_v29 = vmax.f32 %v23674_v50, %v9845_v59  ;;  %v16072_v51 = vpop.f32.mrf.mxu0  ;;  %16167 = vmatmul.mubr.msk.bf16.gmra.mxu0 %vm4063_vm0, %v17326_v46  ;;  %v16648_v48 = vpop.f32.mrf.mxu1  ;;  %16743 = vmatmul.mubr.msk.bf16.gmra.mxu1 %vm4063_vm0, %v17327_v3  ;;  %v23684_v39 = vld [vmem:[#allocation250_spill] sm:$0xff] }
 0x42b   :  { %v14910_v49 = vpack.c.bf16 %v11734_v6, %v11734_v6  ;;  %v11732_v32 = vmax.f32 %v11444_v7, 0.0  ;;  %v11447_v24 = vadd.f32 %v21675_v36, %v11152_v22  ;;  %v10579_v41 = vmax.f32 %v23675_v25, %v16072_v51  ;;  %16170 = vmatprep.mubr.msk.bf16.mxu0 %vm4063_vm0, %v17328_v28  ;;  %16746 = vmatprep.mubr.msk.bf16.mxu1 %vm4063_vm0, %v17329_v19  ;;  %v23683_v28 = vld [vmem:[#allocation249_spill] sm:$0xff] }
 0x42c   :  { %13170 = vst.msk [vmem:[%s22908_s3 + $0x224] sm:$0xf] %vm13032_vm1, %v14905_v56  ;;  %v11150_v8 = vmax.f32 %v10574_v40, %v10862_v29  ;;  %v10867_v60 = vmax.f32 %v23676_v10, %v16648_v48  ;;  %v7554_v61 = vpop.f32.mrf.mxu0  ;;  %v9858_v11 = vpop.f32.mrf.mxu1  ;;  %v23685_v40 = vld [vmem:[#allocation251_spill] sm:$0xff]  ;;  %v23686_v29 = vld [vmem:[#allocation252_spill] sm:$0xff] }
 0x42d   :  { %13175 = vst.msk [vmem:[%s22908_s3 + $0x238] sm:$0xf] %vm13032_vm1, %v14910_v49  ;;  %v14908_v5 = vpack.c.bf16 %v11732_v32, %v11732_v32  ;;  %v11735_v52 = vmax.f32 %v11447_v24, 0.0  ;;  %v10577_v4 = vmax.f32 %v23677_v62, %v7554_v61  ;;  %v10865_v57 = vmax.f32 %v23678_v63, %v9858_v11  ;;  %v17334_v32 = vld [vmem:[%s22906_s0 + $0x868] sm:$0xff]   ;;  %v17336_v11 = vld [vmem:[%s22906_s0 + $0x870] sm:$0xff]  }
 0x42e   :  { %v11445_v45 = vadd.f32 %v21675_v36, %v11150_v8  ;;  %v11155_v27 = vmax.f32 %v10579_v41, %v10867_v60  ;;  %v16073_v33 = vpop.f32.mrf.mxu0  ;;  %v16649_v42 = vpop.f32.mrf.mxu1  ;;  %v17335_v24 = vld [vmem:[%s22906_s0 + $0x1168] sm:$0xff]   ;;  %v23687_v8 = vld [vmem:[#allocation253_spill] sm:$0xff]  ;;  %v23688_v60 = vld [vmem:[#allocation254_spill] sm:$0xff] }
 0x42f   :  { %13173 = vst.msk [vmem:[%s22908_s3 + $0x230] sm:$0xf] %vm13032_vm1, %v14908_v5  ;;  %v14911_v13 = vpack.c.bf16 %v11735_v52, %v11735_v52  ;;  %v11153_v53 = vmax.f32 %v10577_v4, %v10865_v57  ;;  %v10580_v0 = vmax.f32 %v23679_v30, %v16073_v33  ;;  %v10868_v54 = vmax.f32 %v23680_v21, %v16649_v42  ;;  %v17337_v63 = vld [vmem:[%s22906_s0 + $0x1170] sm:$0xff]  }
 0x430   :  { %v11733_v14 = vmax.f32 %v11445_v45, 0.0  ;;  %v11450_v31 = vadd.f32 %v21675_v36, %v11155_v27  ;;  %v7557_v34 = vpop.f32.mrf.mxu0  ;;  %v9861_v16 = vpop.f32.mrf.mxu1  ;;  %v23689_v27 = vld [vmem:[#allocation255_spill] sm:$0xff]  ;;  %v23690_v42 = vld [vmem:[#allocation256_spill] sm:$0xff] }
 0x431   :  { %13176 = vst.msk [vmem:[%s22908_s3 + $0x23c] sm:$0xf] %vm13032_vm1, %v14911_v13  ;;  %v11448_v1 = vadd.f32 %v21675_v36, %v11153_v53  ;;  %v11156_v35 = vmax.f32 %v10580_v0, %v10868_v54  ;;  %v10578_v2 = vmax.f32 %v23681_v44, %v7557_v34  ;;  %v10866_v46 = vmax.f32 %v23682_v20, %v9861_v16  ;;  %v23691_v54 = vld [vmem:[#allocation257_spill] sm:$0xff]  ;;  %v23693_v20 = vld [vmem:[#allocation259_spill] sm:$0xff] }
 0x432   :  { %v14909_v3 = vpack.c.bf16 %v11733_v14, %v11733_v14  ;;  %v11738_v15 = vmax.f32 %v11450_v31, 0.0  ;;  %v16076_v37 = vpop.f32.mrf.mxu0  ;;  %16171 = vmatmul.mubr.msk.bf16.gmra.mxu0 %vm4063_vm0, %v17330_v43  ;;  %v16652_v18 = vpop.f32.mrf.mxu1  ;;  %16747 = vmatmul.mubr.msk.bf16.gmra.mxu1 %vm4063_vm0, %v17331_v12 }
 0x433   :  { %v11736_v47 = vmax.f32 %v11448_v1, 0.0  ;;  %v11451_v9 = vadd.f32 %v21675_v36, %v11156_v35  ;;  %v11154_v17 = vmax.f32 %v10578_v2, %v10866_v46  ;;  %v10583_v19 = vmax.f32 %v23683_v28, %v16076_v37  ;;  %16174 = vmatprep.mubr.msk.bf16.mxu0 %vm4063_vm0, %v17332_v26  ;;  %16750 = vmatprep.mubr.msk.bf16.mxu1 %vm4063_vm0, %v17333_v55  ;;  %v23692_v55 = vld [vmem:[#allocation258_spill] sm:$0xff] }
 0x434   :  { %13174 = vst.msk [vmem:[%s22908_s3 + $0x234] sm:$0xf] %vm13032_vm1, %v14909_v3  ;;  %v14914_v38 = vpack.c.bf16 %v11738_v15, %v11738_v15  ;;  %v10871_v58 = vmax.f32 %v23684_v39, %v16652_v18  ;;  %v7570_v59 = vpop.f32.mrf.mxu0  ;;  %v9874_v6 = vpop.f32.mrf.mxu1  ;;  %v23694_v15 = vld [vmem:[#allocation260_spill] sm:$0xff]  ;;  %v23695_v39 = vld [vmem:[#allocation261_spill] sm:$0xff] }
 0x435   :  { %v14912_v7 = vpack.c.bf16 %v11736_v47, %v11736_v47  ;;  %v11739_v22 = vmax.f32 %v11451_v9, 0.0  ;;  %v11449_v23 = vadd.f32 %v21675_v36, %v11154_v17  ;;  %v10581_v56 = vmax.f32 %v23685_v40, %v7570_v59  ;;  %v17338_v9 = vld [vmem:[%s22906_s0 + $0x878] sm:$0xff]   ;;  %v17340_v59 = vld [vmem:[%s22906_s0 + $0x880] sm:$0xff]  }
 0x436   :  { %13179 = vst.msk [vmem:[%s22908_s3 + $0x248] sm:$0xf] %vm13032_vm1, %v14914_v38  ;;  %v11159_v50 = vmax.f32 %v10583_v19, %v10871_v58  ;;  %v10869_v51 = vmax.f32 %v23686_v29, %v9874_v6  ;;  %v16077_v48 = vpop.f32.mrf.mxu0  ;;  %v16653_v49 = vpop.f32.mrf.mxu1  ;;  %v17339_v17 = vld [vmem:[%s22906_s0 + $0x1178] sm:$0xff]  }
 0x437   :  { %13177 = vst.msk [vmem:[%s22908_s3 + $0x240] sm:$0xf] %vm13032_vm1, %v14912_v7  ;;  %v14915_v25 = vpack.c.bf16 %v11739_v22, %v11739_v22  ;;  %v11737_v41 = vmax.f32 %v11449_v23, 0.0  ;;  %v10584_v10 = vmax.f32 %v23687_v8, %v16077_v48  ;;  %v10872_v61 = vmax.f32 %v23688_v60, %v16653_v49  ;;  %v23696_v7 = vld [vmem:[#allocation262_spill] sm:$0xff]  ;;  %v23698_v49 = vld [vmem:[#allocation264_spill] sm:$0xff] }
 0x438   :  { %v11454_v5 = vadd.f32 %v21675_v36, %v11159_v50  ;;  %v11157_v52 = vmax.f32 %v10581_v56, %v10869_v51  ;;  %v7573_v62 = vpop.f32.mrf.mxu0  ;;  %v9877_v4 = vpop.f32.mrf.mxu1  ;;  %v17341_v56 = vld [vmem:[%s22906_s0 + $0x1180] sm:$0xff]   ;;  %v23697_v51 = vld [vmem:[#allocation263_spill] sm:$0xff] }
 0x439   :  { %13180 = vst.msk [vmem:[%s22908_s3 + $0x24c] sm:$0xf] %vm13032_vm1, %v14915_v25  ;;  %v14913_v57 = vpack.c.bf16 %v11737_v41, %v11737_v41  ;;  %v11160_v45 = vmax.f32 %v10584_v10, %v10872_v61  ;;  %v10582_v33 = vmax.f32 %v23689_v27, %v7573_v62  ;;  %v10870_v43 = vmax.f32 %v23690_v42, %v9877_v4  ;;  %v23699_v61 = vld [vmem:[#allocation265_spill] sm:$0xff] }
 0x43a   :  { %v11742_v12 = vmax.f32 %v11454_v5, 0.0  ;;  %v11452_v13 = vadd.f32 %v21675_v36, %v11157_v52  ;;  %v16080_v53 = vpop.f32.mrf.mxu0  ;;  %16175 = vmatmul.mubr.msk.bf16.gmra.mxu0 %vm4063_vm0, %v17334_v32  ;;  %v16656_v30 = vpop.f32.mrf.mxu1  ;;  %16751 = vmatmul.mubr.msk.bf16.gmra.mxu1 %vm4063_vm0, %v17335_v24  ;;  %v23700_v5 = vld [vmem:[#allocation266_spill] sm:$0xff] }
 0x43b   :  { %13178 = vst.msk [vmem:[%s22908_s3 + $0x244] sm:$0xf] %vm13032_vm1, %v14913_v57  ;;  %v11455_v0 = vadd.f32 %v21675_v36, %v11160_v45  ;;  %v11158_v21 = vmax.f32 %v10582_v33, %v10870_v43  ;;  %v10587_v26 = vmax.f32 %v23691_v54, %v16080_v53  ;;  %v10875_v14 = vmax.f32 %v23692_v55, %v16656_v30  ;;  %v23701_v33 = vld [vmem:[#allocation267_spill] sm:$0xff]  ;;  %v23702_v43 = vld [vmem:[#allocation268_spill] sm:$0xff] }
 0x43c   :  { %16178 = vmatprep.mubr.msk.bf16.mxu0 %vm4063_vm0, %v17336_v11  ;;  %v14918_v31 = vpack.c.bf16 %v11742_v12, %v11742_v12  ;;  %v11740_v34 = vmax.f32 %v11452_v13, 0.0  ;;  %v7586_v16 = vpop.f32.mrf.mxu0  ;;  %v9890_v1 = vpop.f32.mrf.mxu1  ;;  %16754 = vmatprep.mubr.msk.bf16.mxu1 %vm4063_vm0, %v17337_v63  ;;  %v17343_v54 = vld [vmem:[%s22906_s0 + $0x1188] sm:$0xff]  }
 0x43d   :  { %v11743_v35 = vmax.f32 %v11455_v0, 0.0  ;;  %v11453_v44 = vadd.f32 %v21675_v36, %v11158_v21  ;;  %v11163_v2 = vmax.f32 %v10587_v26, %v10875_v14  ;;  %v10585_v46 = vmax.f32 %v23693_v20, %v7586_v16  ;;  %v17342_v21 = vld [vmem:[%s22906_s0 + $0x888] sm:$0xff]   ;;  %v17344_v16 = vld [vmem:[%s22906_s0 + $0x890] sm:$0xff]  }
 0x43e   :  { %13183 = vst.msk [vmem:[%s22908_s3 + $0x258] sm:$0xf] %vm13032_vm1, %v14918_v31  ;;  %v14916_v3 = vpack.c.bf16 %v11740_v34, %v11740_v34  ;;  %v10873_v37 = vmax.f32 %v23694_v15, %v9890_v1  ;;  %v16081_v18 = vpop.f32.mrf.mxu0  ;;  %v16657_v47 = vpop.f32.mrf.mxu1  ;;  %v23703_v31 = vld [vmem:[#allocation269_spill] sm:$0xff]  ;;  %v17345_v1 = vld [vmem:[%s22906_s0 + $0x1190] sm:$0xff]  }
 0x43f   :  { %v14919_v28 = vpack.c.bf16 %v11743_v35, %v11743_v35  ;;  %v11741_v19 = vmax.f32 %v11453_v44, 0.0  ;;  %v11458_v38 = vadd.f32 %v21675_v36, %v11163_v2  ;;  %v10588_v58 = vmax.f32 %v23695_v39, %v16081_v18  ;;  %v23704_v44 = vld [vmem:[#allocation270_spill] sm:$0xff]  ;;  %v23705_v18 = vld [vmem:[#allocation271_spill] sm:$0xff] }
 0x440   :  { %13181 = vst.msk [vmem:[%s22908_s3 + $0x250] sm:$0xf] %vm13032_vm1, %v14916_v3  ;;  %v11161_v6 = vmax.f32 %v10585_v46, %v10873_v37  ;;  %v10876_v22 = vmax.f32 %v23696_v7, %v16657_v47  ;;  %v7589_v23 = vpop.f32.mrf.mxu0  ;;  %v9893_v40 = vpop.f32.mrf.mxu1  ;;  %v23708_v7 = vld [vmem:[#allocation274_spill] sm:$0xff] }
 0x441   :  { %13184 = vst.msk [vmem:[%s22908_s3 + $0x25c] sm:$0xf] %vm13032_vm1, %v14919_v28  ;;  %v14917_v50 = vpack.c.bf16 %v11741_v19, %v11741_v19  ;;  %v11746_v29 = vmax.f32 %v11458_v38, 0.0  ;;  %v10586_v48 = vmax.f32 %v23697_v51, %v7589_v23  ;;  %v10874_v32 = vmax.f32 %v23698_v49, %v9893_v40 }
 0x442   :  { %v11456_v24 = vadd.f32 %v21675_v36, %v11161_v6  ;;  %v11164_v25 = vmax.f32 %v10588_v58, %v10876_v22  ;;  %v16084_v41 = vpop.f32.mrf.mxu0  ;;  %16179 = vmatmul.mubr.msk.bf16.gmra.mxu0 %vm4063_vm0, %v17338_v9  ;;  %v16660_v8 = vpop.f32.mrf.mxu1  ;;  %16755 = vmatmul.mubr.msk.bf16.gmra.mxu1 %vm4063_vm0, %v17339_v17  ;;  %v23706_v17 = vld [vmem:[#allocation272_spill] sm:$0xff] }
 0x443   :  { %13182 = vst.msk [vmem:[%s22908_s3 + $0x254] sm:$0xf] %vm13032_vm1, %v14917_v50  ;;  %v14922_v10 = vpack.c.bf16 %v11746_v29, %v11746_v29  ;;  %v11162_v60 = vmax.f32 %v10586_v48, %v10874_v32  ;;  %v10591_v11 = vmax.f32 %v23699_v61, %v16084_v41  ;;  %v10879_v52 = vmax.f32 %v23700_v5, %v16660_v8  ;;  %v23709_v48 = vld [vmem:[#allocation275_spill] sm:$0xff]  ;;  %v23710_v32 = vld [vmem:[#allocation276_spill] sm:$0xff]  ;;  %v17347_v61 = vld [vmem:[%s22906_s0 + $0x1198] sm:$0xff]  }
 0x444   :  { %16182 = vmatprep.mubr.msk.bf16.mxu0 %vm4063_vm0, %v17340_v59  ;;  %v11744_v62 = vmax.f32 %v11456_v24, 0.0  ;;  %v11459_v4 = vadd.f32 %v21675_v36, %v11164_v25  ;;  %v7602_v63 = vpop.f32.mrf.mxu0  ;;  %v9906_v57 = vpop.f32.mrf.mxu1  ;;  %16758 = vmatprep.mubr.msk.bf16.mxu1 %vm4063_vm0, %v17341_v56  ;;  %v23707_v59 = vld [vmem:[#allocation273_spill] sm:$0xff] }
 0x445   :  { %13187 = vst.msk [vmem:[%s22908_s3 + $0x268] sm:$0xf] %vm13032_vm1, %v14922_v10  ;;  %v11457_v45 = vadd.f32 %v21675_v36, %v11162_v60  ;;  %v11167_v27 = vmax.f32 %v10591_v11, %v10879_v52  ;;  %v10589_v42 = vmax.f32 %v23701_v33, %v7602_v63  ;;  %v10877_v12 = vmax.f32 %v23702_v43, %v9906_v57  ;;  %v17346_v60 = vld [vmem:[%s22906_s0 + $0x898] sm:$0xff]   ;;  %v17348_v57 = vld [vmem:[%s22906_s0 + $0x8a0] sm:$0xff]  }
 0x446   :  { %v14920_v13 = vpack.c.bf16 %v11744_v62, %v11744_v62  ;;  %v11747_v53 = vmax.f32 %v11459_v4, 0.0  ;;  %v16085_v30 = vpop.f32.mrf.mxu0  ;;  %v16661_v0 = vpop.f32.mrf.mxu1  ;;  %v23711_v52 = vld [vmem:[#allocation277_spill] sm:$0xff]  ;;  %v23712_v4 = vld [vmem:[#allocation278_spill] sm:$0xff] }
 0x447   :  { %v11745_v26 = vmax.f32 %v11457_v45, 0.0  ;;  %v11462_v55 = vadd.f32 %v21675_v36, %v11167_v27  ;;  %v11165_v14 = vmax.f32 %v10589_v42, %v10877_v12  ;;  %v10592_v34 = vmax.f32 %v23703_v31, %v16085_v30  ;;  %v17349_v45 = vld [vmem:[%s22906_s0 + $0x11a0] sm:$0xff]   ;;  %v23713_v30 = vld [vmem:[#allocation279_spill] sm:$0xff] }
 0x448   :  { %13185 = vst.msk [vmem:[%s22908_s3 + $0x260] sm:$0xf] %vm13032_vm1, %v14920_v13  ;;  %v14923_v35 = vpack.c.bf16 %v11747_v53, %v11747_v53  ;;  %v10880_v2 = vmax.f32 %v23704_v44, %v16661_v0  ;;  %v7605_v20 = vpop.f32.mrf.mxu0  ;;  %v9909_v46 = vpop.f32.mrf.mxu1 }
 0x449   :  { %v14921_v3 = vpack.c.bf16 %v11745_v26, %v11745_v26  ;;  %v11750_v15 = vmax.f32 %v11462_v55, 0.0  ;;  %v11460_v37 = vadd.f32 %v21675_v36, %v11165_v14  ;;  %v10590_v47 = vmax.f32 %v23705_v18, %v7605_v20  ;;  %v23717_v18 = vld [vmem:[#allocation283_spill] sm:$0xff] }
 0x44a   :  { %13188 = vst.msk [vmem:[%s22908_s3 + $0x26c] sm:$0xf] %vm13032_vm1, %v14923_v35  ;;  %v11168_v9 = vmax.f32 %v10592_v34, %v10880_v2  ;;  %v10878_v28 = vmax.f32 %v23706_v17, %v9909_v46  ;;  %v16088_v19 = vpop.f32.mrf.mxu0  ;;  %16183 = vmatmul.mubr.msk.bf16.gmra.mxu0 %vm4063_vm0, %v17342_v21  ;;  %v16664_v38 = vpop.f32.mrf.mxu1  ;;  %16759 = vmatmul.mubr.msk.bf16.gmra.mxu1 %vm4063_vm0, %v17343_v54  ;;  %v23714_v54 = vld [vmem:[#allocation280_spill] sm:$0xff]  ;;  %v23716_v2 = vld [vmem:[#allocation282_spill] sm:$0xff] }
 0x44b   :  { %13186 = vst.msk [vmem:[%s22908_s3 + $0x264] sm:$0xf] %vm13032_vm1, %v14921_v3  ;;  %v14926_v39 = vpack.c.bf16 %v11750_v15, %v11750_v15  ;;  %v11748_v58 = vmax.f32 %v11460_v37, 0.0  ;;  %v10595_v6 = vmax.f32 %v23707_v59, %v16088_v19  ;;  %v10883_v22 = vmax.f32 %v23708_v7, %v16664_v38  ;;  %16186 = vmatprep.mubr.msk.bf16.mxu0 %vm4063_vm0, %v17344_v16  ;;  %v17351_v59 = vld [vmem:[%s22906_s0 + $0x11a8] sm:$0xff]  }
 0x44c   :  { %16762 = vmatprep.mubr.msk.bf16.mxu1 %vm4063_vm0, %v17345_v1  ;;  %v11463_v23 = vadd.f32 %v21675_v36, %v11168_v9  ;;  %v11166_v40 = vmax.f32 %v10590_v47, %v10878_v28  ;;  %v7618_v56 = vpop.f32.mrf.mxu0  ;;  %v9922_v50 = vpop.f32.mrf.mxu1  ;;  %v23715_v1 = vld [vmem:[#allocation281_spill] sm:$0xff]  ;;  %v23718_v9 = vld [vmem:[#allocation284_spill] sm:$0xff] }
 0x44d   :  { %13191 = vst.msk [vmem:[%s22908_s3 + $0x278] sm:$0xf] %vm13032_vm1, %v14926_v39  ;;  %v14924_v29 = vpack.c.bf16 %v11748_v58, %v11748_v58  ;;  %v11171_v51 = vmax.f32 %v10595_v6, %v10883_v22  ;;  %v10593_v49 = vmax.f32 %v23709_v48, %v7618_v56  ;;  %v10881_v24 = vmax.f32 %v23710_v32, %v9922_v50  ;;  %v17350_v58 = vld [vmem:[%s22906_s0 + $0x8a8] sm:$0xff]   ;;  %v23719_v22 = vld [vmem:[#allocation285_spill] sm:$0xff]  ;;  %v17352_v50 = vld [vmem:[%s22906_s0 + $0x8b0] sm:$0xff]  }
 0x44e   :  { %v11751_v25 = vmax.f32 %v11463_v23, 0.0  ;;  %v11461_v41 = vadd.f32 %v21675_v36, %v11166_v40  ;;  %v16089_v8 = vpop.f32.mrf.mxu0  ;;  %v16665_v10 = vpop.f32.mrf.mxu1  ;;  %v23720_v40 = vld [vmem:[#allocation286_spill] sm:$0xff] }
 0x44f   :  { %13189 = vst.msk [vmem:[%s22908_s3 + $0x270] sm:$0xf] %vm13032_vm1, %v14924_v29  ;;  %v11466_v11 = vadd.f32 %v21675_v36, %v11171_v51  ;;  %v11169_v5 = vmax.f32 %v10593_v49, %v10881_v24  ;;  %v10596_v62 = vmax.f32 %v23711_v52, %v16089_v8  ;;  %v10884_v63 = vmax.f32 %v23712_v4, %v16665_v10  ;;  %v17353_v29 = vld [vmem:[%s22906_s0 + $0x11b0] sm:$0xff]  }
 0x450   :  { %v14927_v27 = vpack.c.bf16 %v11751_v25, %v11751_v25  ;;  %v11749_v33 = vmax.f32 %v11461_v41, 0.0  ;;  %v7621_v42 = vpop.f32.mrf.mxu0  ;;  %v9925_v43 = vpop.f32.mrf.mxu1  ;;  %v23721_v41 = vld [vmem:[#allocation287_spill] sm:$0xff]  ;;  %v23722_v10 = vld [vmem:[#allocation288_spill] sm:$0xff] }
 0x451   :  { %v11754_v12 = vmax.f32 %v11466_v11, 0.0  ;;  %v11464_v13 = vadd.f32 %v21675_v36, %v11169_v5  ;;  %v11172_v53 = vmax.f32 %v10596_v62, %v10884_v63  ;;  %v10594_v0 = vmax.f32 %v23713_v30, %v7621_v42 }
 0x452   :  { %13192 = vst.msk [vmem:[%s22908_s3 + $0x27c] sm:$0xf] %vm13032_vm1, %v14927_v27  ;;  %v14925_v21 = vpack.c.bf16 %v11749_v33, %v11749_v33  ;;  %v10882_v26 = vmax.f32 %v23714_v54, %v9925_v43  ;;  %v16092_v55 = vpop.f32.mrf.mxu0  ;;  %16187 = vmatmul.mubr.msk.bf16.gmra.mxu0 %vm4063_vm0, %v17346_v60  ;;  %v16668_v14 = vpop.f32.mrf.mxu1  ;;  %16763 = vmatmul.mubr.msk.bf16.gmra.mxu1 %vm4063_vm0, %v17347_v61  ;;  %v23724_v33 = vld [vmem:[#allocation290_spill] sm:$0xff] }
 0x453   :  { %v14930_v31 = vpack.c.bf16 %v11754_v12, %v11754_v12  ;;  %v11752_v34 = vmax.f32 %v11464_v13, 0.0  ;;  %v11467_v16 = vadd.f32 %v21675_v36, %v11172_v53  ;;  %v10599_v35 = vmax.f32 %v23715_v1, %v16092_v55  ;;  %16190 = vmatprep.mubr.msk.bf16.mxu0 %vm4063_vm0, %v17348_v57  ;;  %16766 = vmatprep.mubr.msk.bf16.mxu1 %vm4063_vm0, %v17349_v45  ;;  %v23723_v57 = vld [vmem:[#allocation289_spill] sm:$0xff] }
 0x454   :  { %13190 = vst.msk [vmem:[%s22908_s3 + $0x274] sm:$0xf] %vm13032_vm1, %v14925_v21  ;;  %v11170_v44 = vmax.f32 %v10594_v0, %v10882_v26  ;;  %v10887_v20 = vmax.f32 %v23716_v2, %v16668_v14  ;;  %v7634_v46 = vpop.f32.mrf.mxu0  ;;  %v9938_v3 = vpop.f32.mrf.mxu1  ;;  %v23725_v0 = vld [vmem:[#allocation291_spill] sm:$0xff]  ;;  %v23726_v26 = vld [vmem:[#allocation292_spill] sm:$0xff] }
 0x455   :  { %13195 = vst.msk [vmem:[%s22908_s3 + $0x288] sm:$0xf] %vm13032_vm1, %v14930_v31  ;;  %v14928_v15 = vpack.c.bf16 %v11752_v34, %v11752_v34  ;;  %v11755_v37 = vmax.f32 %v11467_v16, 0.0  ;;  %v10597_v47 = vmax.f32 %v23717_v18, %v7634_v46  ;;  %v10885_v17 = vmax.f32 %v23718_v9, %v9938_v3  ;;  %v17354_v34 = vld [vmem:[%s22906_s0 + $0x8b8] sm:$0xff]   ;;  %v17356_v3 = vld [vmem:[%s22906_s0 + $0x8c0] sm:$0xff]  }
 0x456   :  { %v11465_v28 = vadd.f32 %v21675_v36, %v11170_v44  ;;  %v11175_v19 = vmax.f32 %v10599_v35, %v10887_v20  ;;  %v16093_v38 = vpop.f32.mrf.mxu0  ;;  %v16669_v39 = vpop.f32.mrf.mxu1  ;;  %v17355_v16 = vld [vmem:[%s22906_s0 + $0x11b8] sm:$0xff]   ;;  %v23728_v20 = vld [vmem:[#allocation294_spill] sm:$0xff] }
 0x457   :  { %13193 = vst.msk [vmem:[%s22908_s3 + $0x280] sm:$0xf] %vm13032_vm1, %v14928_v15  ;;  %v14931_v6 = vpack.c.bf16 %v11755_v37, %v11755_v37  ;;  %v11173_v7 = vmax.f32 %v10597_v47, %v10885_v17  ;;  %v10600_v23 = vmax.f32 %v23719_v22, %v16093_v38  ;;  %v10888_v56 = vmax.f32 %v23720_v40, %v16669_v39  ;;  %v23727_v44 = vld [vmem:[#allocation293_spill] sm:$0xff]  ;;  %v17357_v9 = vld [vmem:[%s22906_s0 + $0x11c0] sm:$0xff]   ;;  %v23730_v39 = vld [vmem:[#allocation296_spill] sm:$0xff] }
 0x458   :  { %v11753_v51 = vmax.f32 %v11465_v28, 0.0  ;;  %v11470_v48 = vadd.f32 %v21675_v36, %v11175_v19  ;;  %v7637_v49 = vpop.f32.mrf.mxu0  ;;  %v9941_v32 = vpop.f32.mrf.mxu1  ;;  %v23729_v19 = vld [vmem:[#allocation295_spill] sm:$0xff] }
 0x459   :  { %13196 = vst.msk [vmem:[%s22908_s3 + $0x28c] sm:$0xf] %vm13032_vm1, %v14931_v6  ;;  %v11468_v24 = vadd.f32 %v21675_v36, %v11173_v7  ;;  %v11176_v25 = vmax.f32 %v10600_v23, %v10888_v56  ;;  %v10598_v8 = vmax.f32 %v23721_v41, %v7637_v49  ;;  %v10886_v60 = vmax.f32 %v23722_v10, %v9941_v32  ;;  %v23731_v56 = vld [vmem:[#allocation297_spill] sm:$0xff]  ;;  %v23733_v10 = vld [vmem:[#allocation299_spill] sm:$0xff] }
 0x45a   :  { %v14929_v61 = vpack.c.bf16 %v11753_v51, %v11753_v51  ;;  %v11758_v11 = vmax.f32 %v11470_v48, 0.0  ;;  %v16096_v5 = vpop.f32.mrf.mxu0  ;;  %16191 = vmatmul.mubr.msk.bf16.gmra.mxu0 %vm4063_vm0, %v17350_v58  ;;  %v16672_v52 = vpop.f32.mrf.mxu1  ;;  %16767 = vmatmul.mubr.msk.bf16.gmra.mxu1 %vm4063_vm0, %v17351_v59 }
 0x45b   :  { %v11756_v62 = vmax.f32 %v11468_v24, 0.0  ;;  %v11471_v4 = vadd.f32 %v21675_v36, %v11176_v25  ;;  %v11174_v63 = vmax.f32 %v10598_v8, %v10886_v60  ;;  %v10603_v45 = vmax.f32 %v23723_v57, %v16096_v5  ;;  %16194 = vmatprep.mubr.msk.bf16.mxu0 %vm4063_vm0, %v17352_v50  ;;  %16770 = vmatprep.mubr.msk.bf16.mxu1 %vm4063_vm0, %v17353_v29  ;;  %v23732_v29 = vld [vmem:[#allocation298_spill] sm:$0xff] }
 0x45c   :  { %13194 = vst.msk [vmem:[%s22908_s3 + $0x284] sm:$0xf] %vm13032_vm1, %v14929_v61  ;;  %v14934_v27 = vpack.c.bf16 %v11758_v11, %v11758_v11  ;;  %v10891_v42 = vmax.f32 %v23724_v33, %v16672_v52  ;;  %v7650_v43 = vpop.f32.mrf.mxu0  ;;  %v9954_v12 = vpop.f32.mrf.mxu1  ;;  %v23734_v11 = vld [vmem:[#allocation300_spill] sm:$0xff]  ;;  %v23735_v33 = vld [vmem:[#allocation301_spill] sm:$0xff] }
 0x45d   :  { %v14932_v13 = vpack.c.bf16 %v11756_v62, %v11756_v62  ;;  %v11759_v53 = vmax.f32 %v11471_v4, 0.0  ;;  %v11469_v30 = vadd.f32 %v21675_v36, %v11174_v63  ;;  %v10601_v21 = vmax.f32 %v23725_v0, %v7650_v43  ;;  %v17358_v4 = vld [vmem:[%s22906_s0 + $0x8c8] sm:$0xff]   ;;  %v17360_v43 = vld [vmem:[%s22906_s0 + $0x8d0] sm:$0xff]  }
 0x45e   :  { %13199 = vst.msk [vmem:[%s22908_s3 + $0x298] sm:$0xf] %vm13032_vm1, %v14934_v27  ;;  %v11179_v54 = vmax.f32 %v10603_v45, %v10891_v42  ;;  %v10889_v55 = vmax.f32 %v23726_v26, %v9954_v12  ;;  %v16097_v14 = vpop.f32.mrf.mxu0  ;;  %v16673_v31 = vpop.f32.mrf.mxu1  ;;  %v17359_v63 = vld [vmem:[%s22906_s0 + $0x11c8] sm:$0xff]  }
 0x45f   :  { %13197 = vst.msk [vmem:[%s22908_s3 + $0x290] sm:$0xf] %vm13032_vm1, %v14932_v13  ;;  %v14935_v1 = vpack.c.bf16 %v11759_v53, %v11759_v53  ;;  %v11757_v35 = vmax.f32 %v11469_v30, 0.0  ;;  %v10604_v2 = vmax.f32 %v23727_v44, %v16097_v14  ;;  %v10892_v46 = vmax.f32 %v23728_v20, %v16673_v31  ;;  %v23736_v13 = vld [vmem:[#allocation302_spill] sm:$0xff]  ;;  %v23738_v31 = vld [vmem:[#allocation304_spill] sm:$0xff] }
 0x460   :  { %v11474_v15 = vadd.f32 %v21675_v36, %v11179_v54  ;;  %v11177_v37 = vmax.f32 %v10601_v21, %v10889_v55  ;;  %v7653_v18 = vpop.f32.mrf.mxu0  ;;  %v9957_v47 = vpop.f32.mrf.mxu1  ;;  %v17361_v21 = vld [vmem:[%s22906_s0 + $0x11d0] sm:$0xff]   ;;  %v23737_v55 = vld [vmem:[#allocation303_spill] sm:$0xff] }
 0x461   :  { %13200 = vst.msk [vmem:[%s22908_s3 + $0x29c] sm:$0xf] %vm13032_vm1, %v14935_v1  ;;  %v14933_v17 = vpack.c.bf16 %v11757_v35, %v11757_v35  ;;  %v11180_v28 = vmax.f32 %v10604_v2, %v10892_v46  ;;  %v10602_v38 = vmax.f32 %v23729_v19, %v7653_v18  ;;  %v10890_v58 = vmax.f32 %v23730_v39, %v9957_v47  ;;  %v23739_v46 = vld [vmem:[#allocation305_spill] sm:$0xff] }
 0x462   :  { %v11762_v59 = vmax.f32 %v11474_v15, 0.0  ;;  %v11472_v6 = vadd.f32 %v21675_v36, %v11177_v37  ;;  %v16100_v7 = vpop.f32.mrf.mxu0  ;;  %16195 = vmatmul.mubr.msk.bf16.gmra.mxu0 %vm4063_vm0, %v17354_v34  ;;  %v16676_v22 = vpop.f32.mrf.mxu1  ;;  %16771 = vmatmul.mubr.msk.bf16.gmra.mxu1 %vm4063_vm0, %v17355_v16  ;;  %v23740_v15 = vld [vmem:[#allocation306_spill] sm:$0xff] }
 0x463   :  { %13198 = vst.msk [vmem:[%s22908_s3 + $0x294] sm:$0xf] %vm13032_vm1, %v14933_v17  ;;  %v11475_v23 = vadd.f32 %v21675_v36, %v11180_v28  ;;  %v11178_v40 = vmax.f32 %v10602_v38, %v10890_v58  ;;  %v10607_v50 = vmax.f32 %v23731_v56, %v16100_v7  ;;  %v10895_v51 = vmax.f32 %v23732_v29, %v16676_v22  ;;  %v23741_v38 = vld [vmem:[#allocation307_spill] sm:$0xff]  ;;  %v23742_v58 = vld [vmem:[#allocation308_spill] sm:$0xff]  ;;  %v17363_v56 = vld [vmem:[%s22906_s0 + $0x11d8] sm:$0xff]  }
 0x464   :  { %16198 = vmatprep.mubr.msk.bf16.mxu0 %vm4063_vm0, %v17356_v3  ;;  %v14938_v48 = vpack.c.bf16 %v11762_v59, %v11762_v59  ;;  %v11760_v49 = vmax.f32 %v11472_v6, 0.0  ;;  %v7666_v32 = vpop.f32.mrf.mxu0  ;;  %v9970_v24 = vpop.f32.mrf.mxu1  ;;  %16774 = vmatprep.mubr.msk.bf16.mxu1 %vm4063_vm0, %v17357_v9 }
 0x465   :  { %v11763_v25 = vmax.f32 %v11475_v23, 0.0  ;;  %v11473_v41 = vadd.f32 %v21675_v36, %v11178_v40  ;;  %v11183_v8 = vmax.f32 %v10607_v50, %v10895_v51  ;;  %v10605_v60 = vmax.f32 %v23733_v10, %v7666_v32  ;;  %v17362_v40 = vld [vmem:[%s22906_s0 + $0x8d8] sm:$0xff]   ;;  %v17364_v32 = vld [vmem:[%s22906_s0 + $0x8e0] sm:$0xff]  }
 0x466   :  { %13203 = vst.msk [vmem:[%s22908_s3 + $0x2a8] sm:$0xf] %vm13032_vm1, %v14938_v48  ;;  %v14936_v61 = vpack.c.bf16 %v11760_v49, %v11760_v49  ;;  %v10893_v5 = vmax.f32 %v23734_v11, %v9970_v24  ;;  %v16101_v52 = vpop.f32.mrf.mxu0  ;;  %v16677_v62 = vpop.f32.mrf.mxu1  ;;  %v23743_v48 = vld [vmem:[#allocation309_spill] sm:$0xff]  ;;  %v17365_v24 = vld [vmem:[%s22906_s0 + $0x11e0] sm:$0xff]  }
 0x467   :  { %v14939_v57 = vpack.c.bf16 %v11763_v25, %v11763_v25  ;;  %v11761_v45 = vmax.f32 %v11473_v41, 0.0  ;;  %v11478_v27 = vadd.f32 %v21675_v36, %v11183_v8  ;;  %v10608_v42 = vmax.f32 %v23735_v33, %v16101_v52  ;;  %v23744_v41 = vld [vmem:[#allocation310_spill] sm:$0xff]  ;;  %v23745_v52 = vld [vmem:[#allocation311_spill] sm:$0xff] }
 0x468   :  { %13201 = vst.msk [vmem:[%s22908_s3 + $0x2a0] sm:$0xf] %vm13032_vm1, %v14936_v61  ;;  %v11181_v12 = vmax.f32 %v10605_v60, %v10893_v5  ;;  %v10896_v53 = vmax.f32 %v23736_v13, %v16677_v62  ;;  %v7669_v30 = vpop.f32.mrf.mxu0  ;;  %v9973_v0 = vpop.f32.mrf.mxu1  ;;  %v23748_v13 = vld [vmem:[#allocation314_spill] sm:$0xff] }
 0x469   :  { %13204 = vst.msk [vmem:[%s22908_s3 + $0x2ac] sm:$0xf] %vm13032_vm1, %v14939_v57  ;;  %v14937_v54 = vpack.c.bf16 %v11761_v45, %v11761_v45  ;;  %v11766_v26 = vmax.f32 %v11478_v27, 0.0  ;;  %v10606_v14 = vmax.f32 %v23737_v55, %v7669_v30  ;;  %v10894_v34 = vmax.f32 %v23738_v31, %v9973_v0 }
 0x46a   :  { %v11476_v16 = vadd.f32 %v21675_v36, %v11181_v12  ;;  %v11184_v1 = vmax.f32 %v10608_v42, %v10896_v53  ;;  %v16104_v35 = vpop.f32.mrf.mxu0  ;;  %16199 = vmatmul.mubr.msk.bf16.gmra.mxu0 %vm4063_vm0, %v17358_v4  ;;  %v16680_v44 = vpop.f32.mrf.mxu1  ;;  %16775 = vmatmul.mubr.msk.bf16.gmra.mxu1 %vm4063_vm0, %v17359_v63  ;;  %v23746_v63 = vld [vmem:[#allocation312_spill] sm:$0xff] }
 0x46b   :  { %13202 = vst.msk [vmem:[%s22908_s3 + $0x2a4] sm:$0xf] %vm13032_vm1, %v14937_v54  ;;  %v14942_v2 = vpack.c.bf16 %v11766_v26, %v11766_v26  ;;  %v11182_v20 = vmax.f32 %v10606_v14, %v10894_v34  ;;  %v10611_v3 = vmax.f32 %v23739_v46, %v16104_v35  ;;  %v10899_v37 = vmax.f32 %v23740_v15, %v16680_v44  ;;  %v23749_v14 = vld [vmem:[#allocation315_spill] sm:$0xff]  ;;  %v23750_v34 = vld [vmem:[#allocation316_spill] sm:$0xff] }
 0x46c   :  { %16202 = vmatprep.mubr.msk.bf16.mxu0 %vm4063_vm0, %v17360_v43  ;;  %v11764_v18 = vmax.f32 %v11476_v16, 0.0  ;;  %v11479_v47 = vadd.f32 %v21675_v36, %v11184_v1  ;;  %v7682_v9 = vpop.f32.mrf.mxu0  ;;  %v9986_v17 = vpop.f32.mrf.mxu1  ;;  %16778 = vmatprep.mubr.msk.bf16.mxu1 %vm4063_vm0, %v17361_v21  ;;  %v23747_v43 = vld [vmem:[#allocation313_spill] sm:$0xff]  ;;  %v17367_v46 = vld [vmem:[%s22906_s0 + $0x11e8] sm:$0xff]  }
 0x46d   :  { %13207 = vst.msk [vmem:[%s22908_s3 + $0x2b8] sm:$0xf] %vm13032_vm1, %v14942_v2  ;;  %v11477_v28 = vadd.f32 %v21675_v36, %v11182_v20  ;;  %v11187_v19 = vmax.f32 %v10611_v3, %v10899_v37  ;;  %v10609_v39 = vmax.f32 %v23741_v38, %v7682_v9  ;;  %v10897_v59 = vmax.f32 %v23742_v58, %v9986_v17  ;;  %v17366_v20 = vld [vmem:[%s22906_s0 + $0x8e8] sm:$0xff]   ;;  %v23751_v37 = vld [vmem:[#allocation317_spill] sm:$0xff]  ;;  %v17368_v17 = vld [vmem:[%s22906_s0 + $0x8f0] sm:$0xff]  }
 0x46e   :  { %v14940_v6 = vpack.c.bf16 %v11764_v18, %v11764_v18  ;;  %v11767_v7 = vmax.f32 %v11479_v47, 0.0  ;;  %v16105_v22 = vpop.f32.mrf.mxu0  ;;  %v16681_v23 = vpop.f32.mrf.mxu1  ;;  %v23752_v47 = vld [vmem:[#allocation318_spill] sm:$0xff] }
 0x46f   :  { %v11765_v50 = vmax.f32 %v11477_v28, 0.0  ;;  %v11482_v29 = vadd.f32 %v21675_v36, %v11187_v19  ;;  %v11185_v51 = vmax.f32 %v10609_v39, %v10897_v59  ;;  %v10612_v49 = vmax.f32 %v23743_v48, %v16105_v22  ;;  %v17369_v28 = vld [vmem:[%s22906_s0 + $0x11f0] sm:$0xff]   ;;  %v23753_v22 = vld [vmem:[#allocation319_spill] sm:$0xff] }
 0x470   :  { %13205 = vst.msk [vmem:[%s22908_s3 + $0x2b0] sm:$0xf] %vm13032_vm1, %v14940_v6  ;;  %v14943_v25 = vpack.c.bf16 %v11767_v7, %v11767_v7  ;;  %v10900_v8 = vmax.f32 %v23744_v41, %v16681_v23  ;;  %v7685_v10 = vpop.f32.mrf.mxu0  ;;  %v9989_v60 = vpop.f32.mrf.mxu1 }
 0x471   :  { %v14941_v61 = vpack.c.bf16 %v11765_v50, %v11765_v50  ;;  %v11770_v11 = vmax.f32 %v11482_v29, 0.0  ;;  %v11480_v5 = vadd.f32 %v21675_v36, %v11185_v51  ;;  %v10610_v62 = vmax.f32 %v23745_v52, %v7685_v10  ;;  %v23757_v52 = vld [vmem:[#allocation323_spill] sm:$0xff] }
 0x472   :  { %13208 = vst.msk [vmem:[%s22908_s3 + $0x2bc] sm:$0xf] %vm13032_vm1, %v14943_v25  ;;  %v11188_v4 = vmax.f32 %v10612_v49, %v10900_v8  ;;  %v10898_v57 = vmax.f32 %v23746_v63, %v9989_v60  ;;  %v16108_v45 = vpop.f32.mrf.mxu0  ;;  %16203 = vmatmul.mubr.msk.bf16.gmra.mxu0 %vm4063_vm0, %v17362_v40  ;;  %v16684_v27 = vpop.f32.mrf.mxu1  ;;  %16779 = vmatmul.mubr.msk.bf16.gmra.mxu1 %vm4063_vm0, %v17363_v56  ;;  %v23754_v56 = vld [vmem:[#allocation320_spill] sm:$0xff]  ;;  %v23756_v8 = vld [vmem:[#allocation322_spill] sm:$0xff] }
 0x473   :  { %13206 = vst.msk [vmem:[%s22908_s3 + $0x2b4] sm:$0xf] %vm13032_vm1, %v14941_v61  ;;  %v14946_v33 = vpack.c.bf16 %v11770_v11, %v11770_v11  ;;  %v11768_v42 = vmax.f32 %v11480_v5, 0.0  ;;  %v10615_v12 = vmax.f32 %v23747_v43, %v16108_v45  ;;  %v10903_v53 = vmax.f32 %v23748_v13, %v16684_v27  ;;  %16206 = vmatprep.mubr.msk.bf16.mxu0 %vm4063_vm0, %v17364_v32  ;;  %v17371_v43 = vld [vmem:[%s22906_s0 + $0x11f8] sm:$0xff]  }
 0x474   :  { %16782 = vmatprep.mubr.msk.bf16.mxu1 %vm4063_vm0, %v17365_v24  ;;  %v11483_v30 = vadd.f32 %v21675_v36, %v11188_v4  ;;  %v11186_v0 = vmax.f32 %v10610_v62, %v10898_v57  ;;  %v7698_v21 = vpop.f32.mrf.mxu0  ;;  %v10002_v54 = vpop.f32.mrf.mxu1  ;;  %v23755_v24 = vld [vmem:[#allocation321_spill] sm:$0xff]  ;;  %v23758_v4 = vld [vmem:[#allocation324_spill] sm:$0xff] }
 0x475   :  { %13211 = vst.msk [vmem:[%s22908_s3 + $0x2c8] sm:$0xf] %vm13032_vm1, %v14946_v33  ;;  %v14944_v26 = vpack.c.bf16 %v11768_v42, %v11768_v42  ;;  %v11191_v55 = vmax.f32 %v10615_v12, %v10903_v53  ;;  %v10613_v31 = vmax.f32 %v23749_v14, %v7698_v21  ;;  %v10901_v16 = vmax.f32 %v23750_v34, %v10002_v54  ;;  %v17370_v42 = vld [vmem:[%s22906_s0 + $0x8f8] sm:$0xff]  }
 0x476   :  { %v11771_v1 = vmax.f32 %v11483_v30, 0.0  ;;  %v11481_v35 = vadd.f32 %v21675_v36, %v11186_v0  ;;  %v16109_v44 = vpop.f32.mrf.mxu0  ;;  %v16685_v2 = vpop.f32.mrf.mxu1  ;;  %v23759_v53 = vld [vmem:[#allocation325_spill] sm:$0xff]  ;;  %v23760_v0 = vld [vmem:[#allocation326_spill] sm:$0xff] }
 0x477   :  { %13209 = vst.msk [vmem:[%s22908_s3 + $0x2c0] sm:$0xf] %vm13032_vm1, %v14944_v26  ;;  %v11486_v3 = vadd.f32 %v21675_v36, %v11191_v55  ;;  %v11189_v15 = vmax.f32 %v10613_v31, %v10901_v16  ;;  %v10616_v18 = vmax.f32 %v23751_v37, %v16109_v44  ;;  %v10904_v9 = vmax.f32 %v23752_v47, %v16685_v2  ;;  %v23761_v16 = vld [vmem:[#allocation327_spill] sm:$0xff]  ;;  %v23763_v47 = vld [vmem:[#allocation329_spill] sm:$0xff] }
 0x478   :  { %v14947_v19 = vpack.c.bf16 %v11771_v1, %v11771_v1  ;;  %v11769_v38 = vmax.f32 %v11481_v35, 0.0  ;;  %v7701_v39 = vpop.f32.mrf.mxu0  ;;  %v10005_v58 = vpop.f32.mrf.mxu1  ;;  %v23762_v35 = vld [vmem:[#allocation328_spill] sm:$0xff] }
 0x479   :  { %v11774_v59 = vmax.f32 %v11486_v3, 0.0  ;;  %v11484_v6 = vadd.f32 %v21675_v36, %v11189_v15  ;;  %v11192_v7 = vmax.f32 %v10616_v18, %v10904_v9  ;;  %v10614_v23 = vmax.f32 %v23753_v22, %v7701_v39 }
 0x47a   :  { %13212 = vst.msk [vmem:[%s22908_s3 + $0x2cc] sm:$0xf] %vm13032_vm1, %v14947_v19  ;;  %v14945_v40 = vpack.c.bf16 %v11769_v38, %v11769_v38  ;;  %v10902_v50 = vmax.f32 %v23754_v56, %v10005_v58  ;;  %v16112_v29 = vpop.f32.mrf.mxu0  ;;  %16207 = vmatmul.mubr.msk.bf16.gmra.mxu0 %vm4063_vm0, %v17366_v20  ;;  %v16688_v51 = vpop.f32.mrf.mxu1  ;;  %16783 = vmatmul.mubr.msk.bf16.gmra.mxu1 %vm4063_vm0, %v17367_v46 }
 0x47b   :  { %v14950_v48 = vpack.c.bf16 %v11774_v59, %v11774_v59  ;;  %v11772_v49 = vmax.f32 %v11484_v6, 0.0  ;;  %v11487_v32 = vadd.f32 %v21675_v36, %v11192_v7  ;;  %v10619_v25 = vmax.f32 %v23755_v24, %v16112_v29  ;;  %16210 = vmatprep.mubr.msk.bf16.mxu0 %vm4063_vm0, %v17368_v17  ;;  %16786 = vmatprep.mubr.msk.bf16.mxu1 %vm4063_vm0, %v17369_v28  ;;  %v23764_v28 = vld [vmem:[#allocation330_spill] sm:$0xff]  ;;  %v23765_v7 = vld [vmem:[#allocation331_spill] sm:$0xff] }
 0x47c   :  { %13210 = vst.msk [vmem:[%s22908_s3 + $0x2c4] sm:$0xf] %vm13032_vm1, %v14945_v40  ;;  %v11190_v41 = vmax.f32 %v10614_v23, %v10902_v50  ;;  %v10907_v10 = vmax.f32 %v23756_v8, %v16688_v51  ;;  %v7714_v60 = vpop.f32.mrf.mxu0  ;;  %v10018_v61 = vpop.f32.mrf.mxu1  ;;  %v22183_v6 = vld [vmem:[%s22907_s2] ss:$0 sm:$0xff]  ;;  %v23766_v40 = vld [vmem:[#allocation332_spill] sm:$0xff] }
 0x47d   :  { %13215 = vst.msk [vmem:[%s22908_s3 + $0x2d8] sm:$0xf] %vm13032_vm1, %v14950_v48  ;;  %v14948_v11 = vpack.c.bf16 %v11772_v49, %v11772_v49  ;;  %v11775_v5 = vmax.f32 %v11487_v32, 0.0  ;;  %v10617_v62 = vmax.f32 %v23757_v52, %v7714_v60  ;;  %v10905_v63 = vmax.f32 %v23758_v4, %v10018_v61  ;;  %v23767_v49 = vld [vmem:[#allocation333_spill] sm:$0xff]  ;;  %v23768_v24 = vld [vmem:[#allocation334_spill] sm:$0xff] }
 0x47e   :  { %v11485_v57 = vadd.f32 %v21675_v36, %v11190_v41  ;;  %v11195_v45 = vmax.f32 %v10619_v25, %v10907_v10  ;;  %v16113_v27 = vpop.f32.mrf.mxu0  ;;  %v16689_v33 = vpop.f32.mrf.mxu1 }
 0x47f   :  { %13213 = vst.msk [vmem:[%s22908_s3 + $0x2d0] sm:$0xf] %vm13032_vm1, %v14948_v11  ;;  %v14951_v12 = vpack.c.bf16 %v11775_v5, %v11775_v5  ;;  %v11193_v13 = vmax.f32 %v10617_v62, %v10905_v63  ;;  %v10620_v30 = vmax.f32 %v23759_v53, %v16113_v27  ;;  %v10908_v21 = vmax.f32 %v23760_v0, %v16689_v33  ;;  %v23769_v5 = vld [vmem:[#allocation335_spill] sm:$0xff]  ;;  %v23770_v62 = vld [vmem:[#allocation336_spill] sm:$0xff] }
 0x480   :  { %v11773_v54 = vmax.f32 %v11485_v57, 0.0  ;;  %v11490_v26 = vadd.f32 %v21675_v36, %v11195_v45  ;;  %v7717_v55 = vpop.f32.mrf.mxu0  ;;  %v10021_v14 = vpop.f32.mrf.mxu1 }
 0x481   :  { %13216 = vst.msk [vmem:[%s22908_s3 + $0x2dc] sm:$0xf] %vm13032_vm1, %v14951_v12  ;;  %v11488_v31 = vadd.f32 %v21675_v36, %v11193_v13  ;;  %v11196_v34 = vmax.f32 %v10620_v30, %v10908_v21  ;;  %v10618_v1 = vmax.f32 %v23761_v16, %v7717_v55  ;;  %v10906_v44 = vmax.f32 %v23762_v35, %v10021_v14  ;;  %v23772_v13 = vld [vmem:[#allocation338_spill] sm:$0xff] }
 0x482   :  { %v14949_v2 = vpack.c.bf16 %v11773_v54, %v11773_v54  ;;  %v11778_v20 = vmax.f32 %v11490_v26, 0.0  ;;  %v16116_v46 = vpop.f32.mrf.mxu0  ;;  %16211 = vmatmul.mubr.msk.bf16.gmra.mxu0 %vm4063_vm0, %v17370_v42  ;;  %v16692_v3 = vpop.f32.mrf.mxu1  ;;  %16787 = vmatmul.mubr.msk.bf16.gmra.mxu1 %vm4063_vm0, %v17371_v43  ;;  %v23771_v43 = vld [vmem:[#allocation337_spill] sm:$0xff] }
 0x483   :  { %v11776_v15 = vmax.f32 %v11488_v31, 0.0  ;;  %v11491_v37 = vadd.f32 %v21675_v36, %v11196_v34  ;;  %v11194_v18 = vmax.f32 %v10618_v1, %v10906_v44  ;;  %v10623_v9 = vmax.f32 %v23763_v47, %v16116_v46  ;;  %v23773_v31 = vld [vmem:[#allocation339_spill] sm:$0xff]  ;;  %v23774_v1 = vld [vmem:[#allocation340_spill] sm:$0xff]  ;;  %v23776_v47 = vld [vmem:[#allocation342_spill] sm:$0xff] }
 0x484   :  { %13214 = vst.msk [vmem:[%s22908_s3 + $0x2d4] sm:$0xf] %vm13032_vm1, %v14949_v2  ;;  %v14954_v17 = vpack.c.bf16 %v11778_v20, %v11778_v20  ;;  %v10911_v19 = vmax.f32 %v23764_v28, %v16692_v3  ;;  %v7730_v38 = vpop.f32.mrf.mxu0  ;;  %v10034_v39 = vpop.f32.mrf.mxu1 }
 0x485   :  { %v14952_v58 = vpack.c.bf16 %v11776_v15, %v11776_v15  ;;  %v11779_v59 = vmax.f32 %v11491_v37, 0.0  ;;  %v11489_v36 = vadd.f32 %v22183_v6, %v11194_v18  ;;  %v10621_v22 = vmax.f32 %v23765_v7, %v7730_v38  ;;  %v23775_v15 = vld [vmem:[#allocation341_spill] sm:$0xff] }
 0x486   :  { %13219 = vst.msk [vmem:[%s22908_s3 + $0x2e8] sm:$0xf] %vm13032_vm1, %v14954_v17  ;;  %v11199_v23 = vmax.f32 %v10623_v9, %v10911_v19  ;;  %v10909_v56 = vmax.f32 %v23766_v40, %v10034_v39  ;;  %v16117_v50 = vpop.f32.mrf.mxu0  ;;  %v16693_v29 = vpop.f32.mrf.mxu1  ;;  %v23777_v39 = vld [vmem:[#allocation343_spill] sm:$0xff] }
 0x487   :  { %13217 = vst.msk [vmem:[%s22908_s3 + $0x2e0] sm:$0xf] %vm13032_vm1, %v14952_v58  ;;  %v14955_v51 = vpack.c.bf16 %v11779_v59, %v11779_v59  ;;  %v11777_v48 = vmax.f32 %v11489_v36, 0.0  ;;  %v10624_v32 = vmax.f32 %v23767_v49, %v16117_v50  ;;  %v10912_v25 = vmax.f32 %v23768_v24, %v16693_v29  ;;  %v23778_v59 = vld [vmem:[#allocation344_spill] sm:$0xff]  ;;  %v23779_v29 = vld [vmem:[#allocation345_spill] sm:$0xff] }
 0x488   :  { %v11494_v41 = vadd.f32 %v22183_v6, %v11199_v23  ;;  %v11197_v8 = vmax.f32 %v10621_v22, %v10909_v56  ;;  %v7733_v10 = vpop.f32.mrf.mxu0  ;;  %v10037_v60 = vpop.f32.mrf.mxu1 }
 0x489   :  { %13220 = vst.msk [vmem:[%s22908_s3 + $0x2ec] sm:$0xf] %vm13032_vm1, %v14955_v51  ;;  %v14953_v61 = vpack.c.bf16 %v11777_v48, %v11777_v48  ;;  %v11200_v11 = vmax.f32 %v10624_v32, %v10912_v25  ;;  %v10622_v52 = vmax.f32 %v23769_v5, %v7733_v10  ;;  %v10910_v4 = vmax.f32 %v23770_v62, %v10037_v60  ;;  %v23780_v48 = vld [vmem:[#allocation346_spill] sm:$0xff]  ;;  %v23781_v60 = vld [vmem:[#allocation347_spill] sm:$0xff] }
 0x48a   :  { %v11782_v63 = vmax.f32 %v11494_v41, 0.0  ;;  %v11492_v57 = vadd.f32 %v22183_v6, %v11197_v8  ;;  %v16120_v45 = vpop.f32.mrf.mxu0  ;;  %v16696_v27 = vpop.f32.mrf.mxu1 }
 0x48b   :  { %13218 = vst.msk [vmem:[%s22908_s3 + $0x2e4] sm:$0xf] %vm13032_vm1, %v14953_v61  ;;  %v11495_v33 = vadd.f32 %v22183_v6, %v11200_v11  ;;  %v11198_v42 = vmax.f32 %v10622_v52, %v10910_v4  ;;  %v10627_v12 = vmax.f32 %v23771_v43, %v16120_v45  ;;  %v10915_v53 = vmax.f32 %v23772_v13, %v16696_v27  ;;  %v23782_v11 = vld [vmem:[#allocation348_spill] sm:$0xff] }
 0x48c   :  { %v14958_v30 = vpack.c.bf16 %v11782_v63, %v11782_v63  ;;  %v11780_v0 = vmax.f32 %v11492_v57, 0.0  ;;  %v7746_v21 = vpop.f32.mrf.mxu0  ;;  %v10050_v54 = vpop.f32.mrf.mxu1 }
 0x48d   :  { %v11783_v26 = vmax.f32 %v11495_v33, 0.0  ;;  %v11493_v55 = vadd.f32 %v22183_v6, %v11198_v42  ;;  %v11203_v14 = vmax.f32 %v10627_v12, %v10915_v53  ;;  %v10625_v34 = vmax.f32 %v23773_v31, %v7746_v21  ;;  %v23783_v33 = vld [vmem:[#allocation349_spill] sm:$0xff]  ;;  %v23784_v12 = vld [vmem:[#allocation350_spill] sm:$0xff]  ;;  %v23786_v31 = vld [vmem:[#allocation352_spill] sm:$0xff] }
 0x48e   :  { %13223 = vst.msk [vmem:[%s22908_s3 + $0x2f8] sm:$0xf] %vm13032_vm1, %v14958_v30  ;;  %v14956_v16 = vpack.c.bf16 %v11780_v0, %v11780_v0  ;;  %v10913_v35 = vmax.f32 %v23774_v1, %v10050_v54  ;;  %v16121_v44 = vpop.f32.mrf.mxu0  ;;  %v16697_v2 = vpop.f32.mrf.mxu1 }
 0x48f   :  { %v14959_v20 = vpack.c.bf16 %v11783_v26, %v11783_v26  ;;  %v11781_v46 = vmax.f32 %v11493_v55, 0.0  ;;  %v11498_v3 = vadd.f32 %v22183_v6, %v11203_v14  ;;  %v10628_v37 = vmax.f32 %v23775_v15, %v16121_v44  ;;  %v23785_v26 = vld [vmem:[#allocation351_spill] sm:$0xff] }
 0x490   :  { %13221 = vst.msk [vmem:[%s22908_s3 + $0x2f0] sm:$0xf] %vm13032_vm1, %v14956_v16  ;;  %v11201_v18 = vmax.f32 %v10625_v34, %v10913_v35  ;;  %v10916_v9 = vmax.f32 %v23776_v47, %v16697_v2  ;;  %v7749_v17 = vpop.f32.mrf.mxu0  ;;  %v10053_v28 = vpop.f32.mrf.mxu1  ;;  %v23787_v2 = vld [vmem:[#allocation353_spill] sm:$0xff] }
 0x491   :  { %13224 = vst.msk [vmem:[%s22908_s3 + $0x2fc] sm:$0xf] %vm13032_vm1, %v14959_v20  ;;  %v14957_v19 = vpack.c.bf16 %v11781_v46, %v11781_v46  ;;  %v11786_v38 = vmax.f32 %v11498_v3, 0.0  ;;  %v10626_v58 = vmax.f32 %v23777_v39, %v7749_v17  ;;  %v10914_v36 = vmax.f32 %v23778_v59, %v10053_v28  ;;  %v23788_v46 = vld [vmem:[#allocation354_spill] sm:$0xff]  ;;  %v23789_v28 = vld [vmem:[#allocation355_spill] sm:$0xff] }
 0x492   :  { %v11496_v7 = vadd.f32 %v22183_v6, %v11201_v18  ;;  %v11204_v22 = vmax.f32 %v10628_v37, %v10916_v9  ;;  %v16124_v23 = vpop.f32.mrf.mxu0  ;;  %v16700_v40 = vpop.f32.mrf.mxu1 }
 0x493   :  { %13222 = vst.msk [vmem:[%s22908_s3 + $0x2f4] sm:$0xf] %vm13032_vm1, %v14957_v19  ;;  %v14962_v56 = vpack.c.bf16 %v11786_v38, %v11786_v38  ;;  %v11202_v50 = vmax.f32 %v10626_v58, %v10914_v36  ;;  %v10631_v51 = vmax.f32 %v23779_v29, %v16124_v23  ;;  %v10919_v49 = vmax.f32 %v23780_v48, %v16700_v40  ;;  %v23790_v38 = vld [vmem:[#allocation356_spill] sm:$0xff]  ;;  %v23791_v40 = vld [vmem:[#allocation357_spill] sm:$0xff] }
 0x494   :  { %v11784_v32 = vmax.f32 %v11496_v7, 0.0  ;;  %v11499_v24 = vadd.f32 %v22183_v6, %v11204_v22  ;;  %v7762_v25 = vpop.f32.mrf.mxu0  ;;  %v10066_v41 = vpop.f32.mrf.mxu1 }
 0x495   :  { %13227 = vst.msk [vmem:[%s22908_s3 + $0x308] sm:$0xf] %vm13032_vm1, %v14962_v56  ;;  %v11497_v8 = vadd.f32 %v22183_v6, %v11202_v50  ;;  %v11207_v10 = vmax.f32 %v10631_v51, %v10919_v49  ;;  %v10629_v61 = vmax.f32 %v23781_v60, %v7762_v25  ;;  %v10917_v5 = vmax.f32 %v23782_v11, %v10066_v41  ;;  %v23792_v50 = vld [vmem:[#allocation358_spill] sm:$0xff] }
 0x496   :  { %v14960_v52 = vpack.c.bf16 %v11784_v32, %v11784_v32  ;;  %v11787_v62 = vmax.f32 %v11499_v24, 0.0  ;;  %v16125_v4 = vpop.f32.mrf.mxu0  ;;  %v16701_v63 = vpop.f32.mrf.mxu1 }
 0x497   :  { %v11785_v57 = vmax.f32 %v11497_v8, 0.0  ;;  %v11502_v45 = vadd.f32 %v22183_v6, %v11207_v10  ;;  %v11205_v27 = vmax.f32 %v10629_v61, %v10917_v5  ;;  %v10632_v42 = vmax.f32 %v23783_v33, %v16125_v4  ;;  %v23793_v8 = vld [vmem:[#allocation359_spill] sm:$0xff]  ;;  %v23794_v61 = vld [vmem:[#allocation360_spill] sm:$0xff]  ;;  %v23796_v33 = vld [vmem:[#allocation362_spill] sm:$0xff] }
 0x498   :  { %13225 = vst.msk [vmem:[%s22908_s3 + $0x300] sm:$0xf] %vm13032_vm1, %v14960_v52  ;;  %v14963_v43 = vpack.c.bf16 %v11787_v62, %v11787_v62  ;;  %v10920_v13 = vmax.f32 %v23784_v12, %v16701_v63  ;;  %v7765_v53 = vpop.f32.mrf.mxu0  ;;  %v10069_v30 = vpop.f32.mrf.mxu1 }
 0x499   :  { %v14961_v0 = vpack.c.bf16 %v11785_v57, %v11785_v57  ;;  %v11790_v21 = vmax.f32 %v11502_v45, 0.0  ;;  %v11500_v54 = vadd.f32 %v22183_v6, %v11205_v27  ;;  %v10630_v55 = vmax.f32 %v23785_v26, %v7765_v53  ;;  %v23795_v57 = vld [vmem:[#allocation361_spill] sm:$0xff] }
 0x49a   :  { %13228 = vst.msk [vmem:[%s22908_s3 + $0x30c] sm:$0xf] %vm13032_vm1, %v14963_v43  ;;  %v11208_v14 = vmax.f32 %v10632_v42, %v10920_v13  ;;  %v10918_v34 = vmax.f32 %v23786_v31, %v10069_v30  ;;  %v16128_v16 = vpop.f32.mrf.mxu0  ;;  %v16704_v1 = vpop.f32.mrf.mxu1  ;;  %v23797_v30 = vld [vmem:[#allocation363_spill] sm:$0xff] }
 0x49b   :  { %13226 = vst.msk [vmem:[%s22908_s3 + $0x304] sm:$0xf] %vm13032_vm1, %v14961_v0  ;;  %v14966_v35 = vpack.c.bf16 %v11790_v21, %v11790_v21  ;;  %v11788_v44 = vmax.f32 %v11500_v54, 0.0  ;;  %v10635_v20 = vmax.f32 %v23787_v2, %v16128_v16  ;;  %v10923_v3 = vmax.f32 %v23788_v46, %v16704_v1  ;;  %v23798_v21 = vld [vmem:[#allocation364_spill] sm:$0xff]  ;;  %v23799_v1 = vld [vmem:[#allocation365_spill] sm:$0xff] }
 0x49c   :  { %v11503_v15 = vadd.f32 %v22183_v6, %v11208_v14  ;;  %v11206_v37 = vmax.f32 %v10630_v55, %v10918_v34  ;;  %v7778_v18 = vpop.f32.mrf.mxu0  ;;  %v10082_v47 = vpop.f32.mrf.mxu1 }
 0x49d   :  { %13231 = vst.msk [vmem:[%s22908_s3 + $0x318] sm:$0xf] %vm13032_vm1, %v14966_v35  ;;  %v14964_v9 = vpack.c.bf16 %v11788_v44, %v11788_v44  ;;  %v11211_v17 = vmax.f32 %v10635_v20, %v10923_v3  ;;  %v10633_v19 = vmax.f32 %v23789_v28, %v7778_v18  ;;  %v10921_v39 = vmax.f32 %v23790_v38, %v10082_v47  ;;  %v23800_v44 = vld [vmem:[#allocation366_spill] sm:$0xff]  ;;  %v23801_v47 = vld [vmem:[#allocation367_spill] sm:$0xff] }
 0x49e   :  { %v11791_v58 = vmax.f32 %v11503_v15, 0.0  ;;  %v11501_v59 = vadd.f32 %v22183_v6, %v11206_v37  ;;  %v16129_v36 = vpop.f32.mrf.mxu0  ;;  %v16705_v7 = vpop.f32.mrf.mxu1 }
 0x49f   :  { %13229 = vst.msk [vmem:[%s22908_s3 + $0x310] sm:$0xf] %vm13032_vm1, %v14964_v9  ;;  %v11506_v22 = vadd.f32 %v22183_v6, %v11211_v17  ;;  %v11209_v23 = vmax.f32 %v10633_v19, %v10921_v39  ;;  %v10636_v56 = vmax.f32 %v23791_v40, %v16129_v36  ;;  %v10924_v29 = vmax.f32 %v23792_v50, %v16705_v7  ;;  %v23802_v17 = vld [vmem:[#allocation368_spill] sm:$0xff] }
 0x4a0   :  { %v14967_v51 = vpack.c.bf16 %v11791_v58, %v11791_v58  ;;  %v11789_v48 = vmax.f32 %v11501_v59, 0.0  ;;  %v7781_v49 = vpop.f32.mrf.mxu0  ;;  %v10085_v32 = vpop.f32.mrf.mxu1 }
 0x4a1   :  { %v11794_v24 = vmax.f32 %v11506_v22, 0.0  ;;  %v11504_v25 = vadd.f32 %v22183_v6, %v11209_v23  ;;  %v11212_v41 = vmax.f32 %v10636_v56, %v10924_v29  ;;  %v10634_v10 = vmax.f32 %v23793_v8, %v7781_v49  ;;  %v23803_v22 = vld [vmem:[#allocation369_spill] sm:$0xff]  ;;  %v23804_v56 = vld [vmem:[#allocation370_spill] sm:$0xff]  ;;  %v23806_v8 = vld [vmem:[#allocation372_spill] sm:$0xff] }
 0x4a2   :  { %13232 = vst.msk [vmem:[%s22908_s3 + $0x31c] sm:$0xf] %vm13032_vm1, %v14967_v51  ;;  %v14965_v60 = vpack.c.bf16 %v11789_v48, %v11789_v48  ;;  %v10922_v11 = vmax.f32 %v23794_v61, %v10085_v32  ;;  %v16132_v5 = vpop.f32.mrf.mxu0  ;;  %v16708_v52 = vpop.f32.mrf.mxu1 }
 0x4a3   :  { %v14970_v62 = vpack.c.bf16 %v11794_v24, %v11794_v24  ;;  %v11792_v4 = vmax.f32 %v11504_v25, 0.0  ;;  %v11507_v63 = vadd.f32 %v22183_v6, %v11212_v41  ;;  %v10639_v45 = vmax.f32 %v23795_v57, %v16132_v5  ;;  %v23805_v24 = vld [vmem:[#allocation371_spill] sm:$0xff] }
 0x4a4   :  { %13230 = vst.msk [vmem:[%s22908_s3 + $0x314] sm:$0xf] %vm13032_vm1, %v14965_v60  ;;  %v11210_v27 = vmax.f32 %v10634_v10, %v10922_v11  ;;  %v10927_v42 = vmax.f32 %v23796_v33, %v16708_v52  ;;  %v7794_v43 = vpop.f32.mrf.mxu0  ;;  %v10098_v12 = vpop.f32.mrf.mxu1  ;;  %v23807_v52 = vld [vmem:[#allocation373_spill] sm:$0xff] }
 0x4a5   :  { %13235 = vst.msk [vmem:[%s22908_s3 + $0x328] sm:$0xf] %vm13032_vm1, %v14970_v62  ;;  %v14968_v13 = vpack.c.bf16 %v11792_v4, %v11792_v4  ;;  %v11795_v53 = vmax.f32 %v11507_v63, 0.0  ;;  %v10637_v0 = vmax.f32 %v23797_v30, %v7794_v43  ;;  %v10925_v54 = vmax.f32 %v23798_v21, %v10098_v12  ;;  %v23808_v4 = vld [vmem:[#allocation374_spill] sm:$0xff]  ;;  %v23809_v12 = vld [vmem:[#allocation375_spill] sm:$0xff] }
 0x4a6   :  { %v11505_v26 = vadd.f32 %v22183_v6, %v11210_v27  ;;  %v11215_v55 = vmax.f32 %v10639_v45, %v10927_v42  ;;  %v16133_v14 = vpop.f32.mrf.mxu0  ;;  %v16709_v31 = vpop.f32.mrf.mxu1 }
 0x4a7   :  { %13233 = vst.msk [vmem:[%s22908_s3 + $0x320] sm:$0xf] %vm13032_vm1, %v14968_v13  ;;  %v14971_v34 = vpack.c.bf16 %v11795_v53, %v11795_v53  ;;  %v11213_v16 = vmax.f32 %v10637_v0, %v10925_v54  ;;  %v10640_v35 = vmax.f32 %v23799_v1, %v16133_v14  ;;  %v10928_v2 = vmax.f32 %v23800_v44, %v16709_v31  ;;  %v23810_v53 = vld [vmem:[#allocation376_spill] sm:$0xff]  ;;  %v23811_v31 = vld [vmem:[#allocation377_spill] sm:$0xff] }
 0x4a8   :  { %v11793_v20 = vmax.f32 %v11505_v26, 0.0  ;;  %v11510_v46 = vadd.f32 %v22183_v6, %v11215_v55  ;;  %v7797_v3 = vpop.f32.mrf.mxu0  ;;  %v10101_v15 = vpop.f32.mrf.mxu1 }
 0x4a9   :  { %13236 = vst.msk [vmem:[%s22908_s3 + $0x32c] sm:$0xf] %vm13032_vm1, %v14971_v34  ;;  %v11508_v37 = vadd.f32 %v22183_v6, %v11213_v16  ;;  %v11216_v18 = vmax.f32 %v10640_v35, %v10928_v2  ;;  %v10638_v9 = vmax.f32 %v23801_v47, %v7797_v3  ;;  %v10926_v28 = vmax.f32 %v23802_v17, %v10101_v15  ;;  %v23812_v16 = vld [vmem:[#allocation378_spill] sm:$0xff] }
 0x4aa   :  { %v14969_v19 = vpack.c.bf16 %v11793_v20, %v11793_v20  ;;  %v11798_v38 = vmax.f32 %v11510_v46, 0.0  ;;  %v16136_v39 = vpop.f32.mrf.mxu0  ;;  %v16712_v58 = vpop.f32.mrf.mxu1 }
 0x4ab   :  { %v11796_v59 = vmax.f32 %v11508_v37, 0.0  ;;  %v11511_v36 = vadd.f32 %v22183_v6, %v11216_v18  ;;  %v11214_v7 = vmax.f32 %v10638_v9, %v10926_v28  ;;  %v10643_v23 = vmax.f32 %v23803_v22, %v16136_v39  ;;  %v23813_v37 = vld [vmem:[#allocation379_spill] sm:$0xff]  ;;  %v23814_v9 = vld [vmem:[#allocation380_spill] sm:$0xff]  ;;  %v23816_v22 = vld [vmem:[#allocation382_spill] sm:$0xff] }
 0x4ac   :  { %13234 = vst.msk [vmem:[%s22908_s3 + $0x324] sm:$0xf] %vm13032_vm1, %v14969_v19  ;;  %v14974_v40 = vpack.c.bf16 %v11798_v38, %v11798_v38  ;;  %v10931_v50 = vmax.f32 %v23804_v56, %v16712_v58  ;;  %v7810_v29 = vpop.f32.mrf.mxu0  ;;  %v10114_v51 = vpop.f32.mrf.mxu1 }
 0x4ad   :  { %v14972_v48 = vpack.c.bf16 %v11796_v59, %v11796_v59  ;;  %v11799_v49 = vmax.f32 %v11511_v36, 0.0  ;;  %v11509_v32 = vadd.f32 %v22183_v6, %v11214_v7  ;;  %v10641_v25 = vmax.f32 %v23805_v24, %v7810_v29  ;;  %v23815_v59 = vld [vmem:[#allocation381_spill] sm:$0xff] }
 0x4ae   :  { %13239 = vst.msk [vmem:[%s22908_s3 + $0x338] sm:$0xf] %vm13032_vm1, %v14974_v40  ;;  %v11219_v41 = vmax.f32 %v10643_v23, %v10931_v50  ;;  %v10929_v10 = vmax.f32 %v23806_v8, %v10114_v51  ;;  %v16137_v60 = vpop.f32.mrf.mxu0  ;;  %v16713_v61 = vpop.f32.mrf.mxu1  ;;  %v23817_v51 = vld [vmem:[#allocation383_spill] sm:$0xff] }
 0x4af   :  { %13237 = vst.msk [vmem:[%s22908_s3 + $0x330] sm:$0xf] %vm13032_vm1, %v14972_v48  ;;  %v14975_v11 = vpack.c.bf16 %v11799_v49, %v11799_v49  ;;  %v11797_v5 = vmax.f32 %v11509_v32, 0.0  ;;  %v10644_v62 = vmax.f32 %v23807_v52, %v16137_v60  ;;  %v10932_v63 = vmax.f32 %v23808_v4, %v16713_v61  ;;  %v23818_v49 = vld [vmem:[#allocation384_spill] sm:$0xff]  ;;  %v23819_v61 = vld [vmem:[#allocation385_spill] sm:$0xff] }
 0x4b0   :  { %v11514_v57 = vadd.f32 %v22183_v6, %v11219_v41  ;;  %v11217_v45 = vmax.f32 %v10641_v25, %v10929_v10  ;;  %v7813_v27 = vpop.f32.mrf.mxu0  ;;  %v10117_v33 = vpop.f32.mrf.mxu1 }
 0x4b1   :  { %13240 = vst.msk [vmem:[%s22908_s3 + $0x33c] sm:$0xf] %vm13032_vm1, %v14975_v11  ;;  %v14973_v42 = vpack.c.bf16 %v11797_v5, %v11797_v5  ;;  %v11220_v43 = vmax.f32 %v10644_v62, %v10932_v63  ;;  %v10642_v13 = vmax.f32 %v23809_v12, %v7813_v27  ;;  %v10930_v30 = vmax.f32 %v23810_v53, %v10117_v33  ;;  %v23820_v5 = vld [vmem:[#allocation386_spill] sm:$0xff]  ;;  %v23821_v33 = vld [vmem:[#allocation387_spill] sm:$0xff] }
 0x4b2   :  { %v11802_v0 = vmax.f32 %v11514_v57, 0.0  ;;  %v11512_v21 = vadd.f32 %v22183_v6, %v11217_v45  ;;  %v16140_v54 = vpop.f32.mrf.mxu0  ;;  %v16716_v26 = vpop.f32.mrf.mxu1 }
 0x4b3   :  { %13238 = vst.msk [vmem:[%s22908_s3 + $0x334] sm:$0xf] %vm13032_vm1, %v14973_v42  ;;  %v11515_v55 = vadd.f32 %v22183_v6, %v11220_v43  ;;  %v11218_v14 = vmax.f32 %v10642_v13, %v10930_v30  ;;  %v10647_v34 = vmax.f32 %v23811_v31, %v16140_v54  ;;  %v10935_v1 = vmax.f32 %v23812_v16, %v16716_v26  ;;  %v23822_v43 = vld [vmem:[#allocation388_spill] sm:$0xff] }
 0x4b4   :  { %v14978_v35 = vpack.c.bf16 %v11802_v0, %v11802_v0  ;;  %v11800_v44 = vmax.f32 %v11512_v21, 0.0  ;;  %v7826_v2 = vpop.f32.mrf.mxu0  ;;  %v10130_v20 = vpop.f32.mrf.mxu1 }
 0x4b5   :  { %v11803_v46 = vmax.f32 %v11515_v55, 0.0  ;;  %v11513_v3 = vadd.f32 %v22183_v6, %v11218_v14  ;;  %v11223_v15 = vmax.f32 %v10647_v34, %v10935_v1  ;;  %v10645_v18 = vmax.f32 %v23813_v37, %v7826_v2  ;;  %v23823_v55 = vld [vmem:[#allocation389_spill] sm:$0xff]  ;;  %v23824_v34 = vld [vmem:[#allocation390_spill] sm:$0xff]  ;;  %v23826_v37 = vld [vmem:[#allocation392_spill] sm:$0xff] }
 0x4b6   :  { %13243 = vst.msk [vmem:[%s22908_s3 + $0x348] sm:$0xf] %vm13032_vm1, %v14978_v35  ;;  %v14976_v47 = vpack.c.bf16 %v11800_v44, %v11800_v44  ;;  %v10933_v17 = vmax.f32 %v23814_v9, %v10130_v20  ;;  %v16141_v28 = vpop.f32.mrf.mxu0  ;;  %v16717_v19 = vpop.f32.mrf.mxu1 }
 0x4b7   :  { %v14979_v38 = vpack.c.bf16 %v11803_v46, %v11803_v46  ;;  %v11801_v39 = vmax.f32 %v11513_v3, 0.0  ;;  %v11518_v58 = vadd.f32 %v22183_v6, %v11223_v15  ;;  %v10648_v36 = vmax.f32 %v23815_v59, %v16141_v28  ;;  %v23825_v46 = vld [vmem:[#allocation391_spill] sm:$0xff] }
 0x4b8   :  { %13241 = vst.msk [vmem:[%s22908_s3 + $0x340] sm:$0xf] %vm13032_vm1, %v14976_v47  ;;  %v11221_v7 = vmax.f32 %v10645_v18, %v10933_v17  ;;  %v10936_v23 = vmax.f32 %v23816_v22, %v16717_v19  ;;  %v7829_v40 = vpop.f32.mrf.mxu0  ;;  %v10133_v56 = vpop.f32.mrf.mxu1  ;;  %v23827_v19 = vld [vmem:[#allocation393_spill] sm:$0xff] }
 0x4b9   :  { %13244 = vst.msk [vmem:[%s22908_s3 + $0x34c] sm:$0xf] %vm13032_vm1, %v14979_v38  ;;  %v14977_v50 = vpack.c.bf16 %v11801_v39, %v11801_v39  ;;  %v11806_v29 = vmax.f32 %v11518_v58, 0.0  ;;  %v10646_v48 = vmax.f32 %v23817_v51, %v7829_v40  ;;  %v10934_v32 = vmax.f32 %v23818_v49, %v10133_v56  ;;  %v23828_v39 = vld [vmem:[#allocation394_spill] sm:$0xff]  ;;  %v23829_v56 = vld [vmem:[#allocation395_spill] sm:$0xff] }
 0x4ba   :  { %v11516_v24 = vadd.f32 %v22183_v6, %v11221_v7  ;;  %v11224_v25 = vmax.f32 %v10648_v36, %v10936_v23  ;;  %v16144_v41 = vpop.f32.mrf.mxu0  ;;  %v16720_v8 = vpop.f32.mrf.mxu1 }
 0x4bb   :  { %13242 = vst.msk [vmem:[%s22908_s3 + $0x344] sm:$0xf] %vm13032_vm1, %v14977_v50  ;;  %v14982_v10 = vpack.c.bf16 %v11806_v29, %v11806_v29  ;;  %v11222_v60 = vmax.f32 %v10646_v48, %v10934_v32  ;;  %v10651_v11 = vmax.f32 %v23819_v61, %v16144_v41  ;;  %v10939_v52 = vmax.f32 %v23820_v5, %v16720_v8  ;;  %v23830_v29 = vld [vmem:[#allocation396_spill] sm:$0xff]  ;;  %v23831_v8 = vld [vmem:[#allocation397_spill] sm:$0xff] }
 0x4bc   :  { %v11804_v62 = vmax.f32 %v11516_v24, 0.0  ;;  %v11519_v4 = vadd.f32 %v22183_v6, %v11224_v25  ;;  %v7842_v63 = vpop.f32.mrf.mxu0  ;;  %v10146_v57 = vpop.f32.mrf.mxu1 }
 0x4bd   :  { %13247 = vst.msk [vmem:[%s22908_s3 + $0x358] sm:$0xf] %vm13032_vm1, %v14982_v10  ;;  %v11517_v45 = vadd.f32 %v22183_v6, %v11222_v60  ;;  %v11227_v27 = vmax.f32 %v10651_v11, %v10939_v52  ;;  %v10649_v42 = vmax.f32 %v23821_v33, %v7842_v63  ;;  %v10937_v12 = vmax.f32 %v23822_v43, %v10146_v57  ;;  %v23832_v60 = vld [vmem:[#allocation398_spill] sm:$0xff] }
 0x4be   :  { %v14980_v13 = vpack.c.bf16 %v11804_v62, %v11804_v62  ;;  %v11807_v53 = vmax.f32 %v11519_v4, 0.0  ;;  %v16145_v30 = vpop.f32.mrf.mxu0  ;;  %v16721_v0 = vpop.f32.mrf.mxu1 }
 0x4bf   :  { %v11805_v21 = vmax.f32 %v11517_v45, 0.0  ;;  %v11522_v54 = vadd.f32 %v22183_v6, %v11227_v27  ;;  %v11225_v26 = vmax.f32 %v10649_v42, %v10937_v12  ;;  %v10652_v14 = vmax.f32 %v23823_v55, %v16145_v30  ;;  %v23833_v45 = vld [vmem:[#allocation399_spill] sm:$0xff]  ;;  %v23834_v42 = vld [vmem:[#allocation400_spill] sm:$0xff]  ;;  %v23836_v55 = vld [vmem:[#allocation402_spill] sm:$0xff] }
 0x4c0   :  { %13245 = vst.msk [vmem:[%s22908_s3 + $0x350] sm:$0xf] %vm13032_vm1, %v14980_v13  ;;  %v14983_v31 = vpack.c.bf16 %v11807_v53, %v11807_v53  ;;  %v10940_v16 = vmax.f32 %v23824_v34, %v16721_v0  ;;  %v7845_v1 = vpop.f32.mrf.mxu0  ;;  %v10149_v35 = vpop.f32.mrf.mxu1 }
 0x4c1   :  { %v14981_v44 = vpack.c.bf16 %v11805_v21, %v11805_v21  ;;  %v11810_v2 = vmax.f32 %v11522_v54, 0.0  ;;  %v11520_v20 = vadd.f32 %v22183_v6, %v11225_v26  ;;  %v10650_v3 = vmax.f32 %v23825_v46, %v7845_v1  ;;  %v23835_v21 = vld [vmem:[#allocation401_spill] sm:$0xff] }
 0x4c2   :  { %13248 = vst.msk [vmem:[%s22908_s3 + $0x35c] sm:$0xf] %vm13032_vm1, %v14983_v31  ;;  %v11228_v15 = vmax.f32 %v10652_v14, %v10940_v16  ;;  %v10938_v18 = vmax.f32 %v23826_v37, %v10149_v35  ;;  %v16148_v47 = vpop.f32.mrf.mxu0  ;;  %v16724_v9 = vpop.f32.mrf.mxu1  ;;  %v23837_v35 = vld [vmem:[#allocation403_spill] sm:$0xff] }
 0x4c3   :  { %13246 = vst.msk [vmem:[%s22908_s3 + $0x354] sm:$0xf] %vm13032_vm1, %v14981_v44  ;;  %v14986_v17 = vpack.c.bf16 %v11810_v2, %v11810_v2  ;;  %v11808_v28 = vmax.f32 %v11520_v20, 0.0  ;;  %v10655_v38 = vmax.f32 %v23827_v19, %v16148_v47  ;;  %v10943_v58 = vmax.f32 %v23828_v39, %v16724_v9  ;;  %v23838_v2 = vld [vmem:[#allocation404_spill] sm:$0xff]  ;;  %v23839_v9 = vld [vmem:[#allocation405_spill] sm:$0xff] }
 0x4c4   :  { %v11523_v59 = vadd.f32 %v22183_v6, %v11228_v15  ;;  %v11226_v36 = vmax.f32 %v10650_v3, %v10938_v18  ;;  %v7858_v7 = vpop.f32.mrf.mxu0  ;;  %v10162_v22 = vpop.f32.mrf.mxu1 }
 0x4c5   :  { %13251 = vst.msk [vmem:[%s22908_s3 + $0x368] sm:$0xf] %vm13032_vm1, %v14986_v17  ;;  %v14984_v23 = vpack.c.bf16 %v11808_v28, %v11808_v28  ;;  %v11231_v40 = vmax.f32 %v10655_v38, %v10943_v58  ;;  %v10653_v50 = vmax.f32 %v23829_v56, %v7858_v7  ;;  %v10941_v51 = vmax.f32 %v23830_v29, %v10162_v22  ;;  %v23840_v28 = vld [vmem:[#allocation406_spill] sm:$0xff]  ;;  %v23841_v22 = vld [vmem:[#allocation407_spill] sm:$0xff] }
 0x4c6   :  { %v11811_v48 = vmax.f32 %v11523_v59, 0.0  ;;  %v11521_v49 = vadd.f32 %v22183_v6, %v11226_v36  ;;  %v16149_v32 = vpop.f32.mrf.mxu0  ;;  %v16725_v24 = vpop.f32.mrf.mxu1 }
 0x4c7   :  { %13249 = vst.msk [vmem:[%s22908_s3 + $0x360] sm:$0xf] %vm13032_vm1, %v14984_v23  ;;  %v11526_v25 = vadd.f32 %v22183_v6, %v11231_v40  ;;  %v11229_v41 = vmax.f32 %v10653_v50, %v10941_v51  ;;  %v10656_v10 = vmax.f32 %v23831_v8, %v16149_v32  ;;  %v10944_v61 = vmax.f32 %v23832_v60, %v16725_v24  ;;  %v23842_v40 = vld [vmem:[#allocation408_spill] sm:$0xff] }
 0x4c8   :  { %v14987_v11 = vpack.c.bf16 %v11811_v48, %v11811_v48  ;;  %v11809_v5 = vmax.f32 %v11521_v49, 0.0  ;;  %v7861_v52 = vpop.f32.mrf.mxu0  ;;  %v10165_v62 = vpop.f32.mrf.mxu1 }
 0x4c9   :  { %v11814_v4 = vmax.f32 %v11526_v25, 0.0  ;;  %v11524_v63 = vadd.f32 %v22183_v6, %v11229_v41  ;;  %v11232_v57 = vmax.f32 %v10656_v10, %v10944_v61  ;;  %v10654_v27 = vmax.f32 %v23833_v45, %v7861_v52  ;;  %v23843_v25 = vld [vmem:[#allocation409_spill] sm:$0xff]  ;;  %v23844_v10 = vld [vmem:[#allocation410_spill] sm:$0xff]  ;;  %v23846_v45 = vld [vmem:[#allocation412_spill] sm:$0xff] }
 0x4ca   :  { %13252 = vst.msk [vmem:[%s22908_s3 + $0x36c] sm:$0xf] %vm13032_vm1, %v14987_v11  ;;  %v14985_v33 = vpack.c.bf16 %v11809_v5, %v11809_v5  ;;  %v10942_v43 = vmax.f32 %v23834_v42, %v10165_v62  ;;  %v16152_v12 = vpop.f32.mrf.mxu0  ;;  %v16728_v13 = vpop.f32.mrf.mxu1 }
 0x4cb   :  { %v14990_v53 = vpack.c.bf16 %v11814_v4, %v11814_v4  ;;  %v11812_v30 = vmax.f32 %v11524_v63, 0.0  ;;  %v11527_v0 = vadd.f32 %v22183_v6, %v11232_v57  ;;  %v10659_v54 = vmax.f32 %v23835_v21, %v16152_v12  ;;  %v23845_v4 = vld [vmem:[#allocation411_spill] sm:$0xff] }
 0x4cc   :  { %13250 = vst.msk [vmem:[%s22908_s3 + $0x364] sm:$0xf] %vm13032_vm1, %v14985_v33  ;;  %v11230_v26 = vmax.f32 %v10654_v27, %v10942_v43  ;;  %v10947_v14 = vmax.f32 %v23836_v55, %v16728_v13  ;;  %v7874_v31 = vpop.f32.mrf.mxu0  ;;  %v10178_v34 = vpop.f32.mrf.mxu1  ;;  %v23847_v13 = vld [vmem:[#allocation413_spill] sm:$0xff] }
 0x4cd   :  { %13255 = vst.msk [vmem:[%s22908_s3 + $0x378] sm:$0xf] %vm13032_vm1, %v14990_v53  ;;  %v14988_v16 = vpack.c.bf16 %v11812_v30, %v11812_v30  ;;  %v11815_v1 = vmax.f32 %v11527_v0, 0.0  ;;  %v10657_v44 = vmax.f32 %v23837_v35, %v7874_v31  ;;  %v10945_v20 = vmax.f32 %v23838_v2, %v10178_v34  ;;  %v23848_v30 = vld [vmem:[#allocation414_spill] sm:$0xff]  ;;  %v23849_v34 = vld [vmem:[#allocation415_spill] sm:$0xff] }
 0x4ce   :  { %v11525_v46 = vadd.f32 %v22183_v6, %v11230_v26  ;;  %v11235_v3 = vmax.f32 %v10659_v54, %v10947_v14  ;;  %v16153_v15 = vpop.f32.mrf.mxu0  ;;  %v16729_v37 = vpop.f32.mrf.mxu1 }
 0x4cf   :  { %13253 = vst.msk [vmem:[%s22908_s3 + $0x370] sm:$0xf] %vm13032_vm1, %v14988_v16  ;;  %v14991_v18 = vpack.c.bf16 %v11815_v1, %v11815_v1  ;;  %v11233_v47 = vmax.f32 %v10657_v44, %v10945_v20  ;;  %v10660_v17 = vmax.f32 %v23839_v9, %v16153_v15  ;;  %v10948_v19 = vmax.f32 %v23840_v28, %v16729_v37  ;;  %v23850_v1 = vld [vmem:[#allocation416_spill] sm:$0xff]  ;;  %v23851_v37 = vld [vmem:[#allocation417_spill] sm:$0xff] }
 0x4d0   :  { %v11813_v38 = vmax.f32 %v11525_v46, 0.0  ;;  %v11530_v39 = vadd.f32 %v22183_v6, %v11235_v3  ;;  %v7877_v58 = vpop.f32.mrf.mxu0  ;;  %v10181_v59 = vpop.f32.mrf.mxu1 }
 0x4d1   :  { %13256 = vst.msk [vmem:[%s22908_s3 + $0x37c] sm:$0xf] %vm13032_vm1, %v14991_v18  ;;  %v11528_v36 = vadd.f32 %v22183_v6, %v11233_v47  ;;  %v11236_v7 = vmax.f32 %v10660_v17, %v10948_v19  ;;  %v10658_v23 = vmax.f32 %v23841_v22, %v7877_v58  ;;  %v10946_v56 = vmax.f32 %v23842_v40, %v10181_v59  ;;  %v23852_v47 = vld [vmem:[#allocation418_spill] sm:$0xff] }
 0x4d2   :  { %v14989_v50 = vpack.c.bf16 %v11813_v38, %v11813_v38  ;;  %v11818_v29 = vmax.f32 %v11530_v39, 0.0  ;;  %v16156_v51 = vpop.f32.mrf.mxu0  ;;  %v16732_v48 = vpop.f32.mrf.mxu1 }
 0x4d3   :  { %v11816_v49 = vmax.f32 %v11528_v36, 0.0  ;;  %v11531_v32 = vadd.f32 %v22183_v6, %v11236_v7  ;;  %v11234_v24 = vmax.f32 %v10658_v23, %v10946_v56  ;;  %v10663_v41 = vmax.f32 %v23843_v25, %v16156_v51  ;;  %v23853_v36 = vld [vmem:[#allocation419_spill] sm:$0xff]  ;;  %v23854_v23 = vld [vmem:[#allocation420_spill] sm:$0xff]  ;;  %v23856_v25 = vld [vmem:[#allocation422_spill] sm:$0xff] }
 0x4d4   :  { %13254 = vst.msk [vmem:[%s22908_s3 + $0x374] sm:$0xf] %vm13032_vm1, %v14989_v50  ;;  %v14994_v8 = vpack.c.bf16 %v11818_v29, %v11818_v29  ;;  %v10951_v60 = vmax.f32 %v23844_v10, %v16732_v48  ;;  %v7890_v61 = vpop.f32.mrf.mxu0  ;;  %v10194_v11 = vpop.f32.mrf.mxu1 }
 0x4d5   :  { %v14992_v5 = vpack.c.bf16 %v11816_v49, %v11816_v49  ;;  %v11819_v52 = vmax.f32 %v11531_v32, 0.0  ;;  %v11529_v62 = vadd.f32 %v22183_v6, %v11234_v24  ;;  %v10661_v63 = vmax.f32 %v23845_v4, %v7890_v61  ;;  %v23855_v49 = vld [vmem:[#allocation421_spill] sm:$0xff] }
 0x4d6   :  { %13259 = vst.msk [vmem:[%s22908_s3 + $0x388] sm:$0xf] %vm13032_vm1, %v14994_v8  ;;  %v11239_v57 = vmax.f32 %v10663_v41, %v10951_v60  ;;  %v10949_v27 = vmax.f32 %v23846_v45, %v10194_v11  ;;  %v16157_v33 = vpop.f32.mrf.mxu0  ;;  %v16733_v42 = vpop.f32.mrf.mxu1  ;;  %v23857_v11 = vld [vmem:[#allocation423_spill] sm:$0xff] }
 0x4d7   :  { %13257 = vst.msk [vmem:[%s22908_s3 + $0x380] sm:$0xf] %vm13032_vm1, %v14992_v5  ;;  %v14995_v43 = vpack.c.bf16 %v11819_v52, %v11819_v52  ;;  %v11817_v12 = vmax.f32 %v11529_v62, 0.0  ;;  %v10664_v53 = vmax.f32 %v23847_v13, %v16157_v33  ;;  %v10952_v0 = vmax.f32 %v23848_v30, %v16733_v42  ;;  %v23858_v52 = vld [vmem:[#allocation424_spill] sm:$0xff]  ;;  %v23859_v42 = vld [vmem:[#allocation425_spill] sm:$0xff] }
 0x4d8   :  { %v11534_v21 = vadd.f32 %v22183_v6, %v11239_v57  ;;  %v11237_v54 = vmax.f32 %v10661_v63, %v10949_v27  ;;  %v7893_v26 = vpop.f32.mrf.mxu0  ;;  %v10197_v55 = vpop.f32.mrf.mxu1 }
 0x4d9   :  { %13260 = vst.msk [vmem:[%s22908_s3 + $0x38c] sm:$0xf] %vm13032_vm1, %v14995_v43  ;;  %v14993_v14 = vpack.c.bf16 %v11817_v12, %v11817_v12  ;;  %v11240_v31 = vmax.f32 %v10664_v53, %v10952_v0  ;;  %v10662_v16 = vmax.f32 %v23849_v34, %v7893_v26  ;;  %v10950_v35 = vmax.f32 %v23850_v1, %v10197_v55  ;;  %v23860_v12 = vld [vmem:[#allocation426_spill] sm:$0xff]  ;;  %v23861_v55 = vld [vmem:[#allocation427_spill] sm:$0xff] }
 0x4da   :  { %v11822_v44 = vmax.f32 %v11534_v21, 0.0  ;;  %v11532_v2 = vadd.f32 %v22183_v6, %v11237_v54  ;;  %v16160_v20 = vpop.f32.mrf.mxu0  ;;  %v16736_v46 = vpop.f32.mrf.mxu1 }
 0x4db   :  { %13258 = vst.msk [vmem:[%s22908_s3 + $0x384] sm:$0xf] %vm13032_vm1, %v14993_v14  ;;  %v11535_v3 = vadd.f32 %v22183_v6, %v11240_v31  ;;  %v11238_v15 = vmax.f32 %v10662_v16, %v10950_v35  ;;  %v10667_v18 = vmax.f32 %v23851_v37, %v16160_v20  ;;  %v10955_v9 = vmax.f32 %v23852_v47, %v16736_v46  ;;  %v23862_v31 = vld [vmem:[#allocation428_spill] sm:$0xff] }
 0x4dc   :  { %v14998_v17 = vpack.c.bf16 %v11822_v44, %v11822_v44  ;;  %v11820_v28 = vmax.f32 %v11532_v2, 0.0  ;;  %v7906_v19 = vpop.f32.mrf.mxu0  ;;  %v10210_v38 = vpop.f32.mrf.mxu1 }
 0x4dd   :  { %v11823_v39 = vmax.f32 %v11535_v3, 0.0  ;;  %v11533_v58 = vadd.f32 %v22183_v6, %v11238_v15  ;;  %v11243_v59 = vmax.f32 %v10667_v18, %v10955_v9  ;;  %v10665_v7 = vmax.f32 %v23853_v36, %v7906_v19  ;;  %v23863_v3 = vld [vmem:[#allocation429_spill] sm:$0xff]  ;;  %v23864_v18 = vld [vmem:[#allocation430_spill] sm:$0xff]  ;;  %v23866_v36 = vld [vmem:[#allocation432_spill] sm:$0xff] }
 0x4de   :  { %13263 = vst.msk [vmem:[%s22908_s3 + $0x398] sm:$0xf] %vm13032_vm1, %v14998_v17  ;;  %v14996_v22 = vpack.c.bf16 %v11820_v28, %v11820_v28  ;;  %v10953_v40 = vmax.f32 %v23854_v23, %v10210_v38  ;;  %v16161_v56 = vpop.f32.mrf.mxu0  ;;  %v16737_v50 = vpop.f32.mrf.mxu1 }
 0x4df   :  { %v14999_v29 = vpack.c.bf16 %v11823_v39, %v11823_v39  ;;  %v11821_v51 = vmax.f32 %v11533_v58, 0.0  ;;  %v11538_v48 = vadd.f32 %v22183_v6, %v11243_v59  ;;  %v10668_v32 = vmax.f32 %v23855_v49, %v16161_v56  ;;  %v23865_v39 = vld [vmem:[#allocation431_spill] sm:$0xff] }
 0x4e0   :  { %13261 = vst.msk [vmem:[%s22908_s3 + $0x390] sm:$0xf] %vm13032_vm1, %v14996_v22  ;;  %v11241_v24 = vmax.f32 %v10665_v7, %v10953_v40  ;;  %v10956_v41 = vmax.f32 %v23856_v25, %v16737_v50  ;;  %v7909_v8 = vpop.f32.mrf.mxu0  ;;  %v10213_v10 = vpop.f32.mrf.mxu1  ;;  %v23867_v50 = vld [vmem:[#allocation433_spill] sm:$0xff] }
 0x4e1   :  { %13264 = vst.msk [vmem:[%s22908_s3 + $0x39c] sm:$0xf] %vm13032_vm1, %v14999_v29  ;;  %v14997_v60 = vpack.c.bf16 %v11821_v51, %v11821_v51  ;;  %v11826_v61 = vmax.f32 %v11538_v48, 0.0  ;;  %v10666_v5 = vmax.f32 %v23857_v11, %v7909_v8  ;;  %v10954_v62 = vmax.f32 %v23858_v52, %v10213_v10  ;;  %v23868_v51 = vld [vmem:[#allocation434_spill] sm:$0xff]  ;;  %v23869_v10 = vld [vmem:[#allocation435_spill] sm:$0xff] }
 0x4e2   :  { %v11536_v4 = vadd.f32 %v22183_v6, %v11241_v24  ;;  %v11244_v63 = vmax.f32 %v10668_v32, %v10956_v41  ;;  %v16164_v57 = vpop.f32.mrf.mxu0  ;;  %v16740_v45 = vpop.f32.mrf.mxu1 }
 0x4e3   :  { %13262 = vst.msk [vmem:[%s22908_s3 + $0x394] sm:$0xf] %vm13032_vm1, %v14997_v60  ;;  %v15002_v27 = vpack.c.bf16 %v11826_v61, %v11826_v61  ;;  %v11242_v33 = vmax.f32 %v10666_v5, %v10954_v62  ;;  %v10671_v43 = vmax.f32 %v23859_v42, %v16164_v57  ;;  %v10959_v13 = vmax.f32 %v23860_v12, %v16740_v45  ;;  %v23870_v61 = vld [vmem:[#allocation436_spill] sm:$0xff]  ;;  %v23871_v45 = vld [vmem:[#allocation437_spill] sm:$0xff] }
 0x4e4   :  { %v11824_v53 = vmax.f32 %v11536_v4, 0.0  ;;  %v11539_v30 = vadd.f32 %v22183_v6, %v11244_v63  ;;  %v7922_v0 = vpop.f32.mrf.mxu0  ;;  %v10226_v21 = vpop.f32.mrf.mxu1 }
 0x4e5   :  { %13267 = vst.msk [vmem:[%s22908_s3 + $0x3a8] sm:$0xf] %vm13032_vm1, %v15002_v27  ;;  %v11537_v54 = vadd.f32 %v22183_v6, %v11242_v33  ;;  %v11247_v26 = vmax.f32 %v10671_v43, %v10959_v13  ;;  %v10669_v14 = vmax.f32 %v23861_v55, %v7922_v0  ;;  %v10957_v34 = vmax.f32 %v23862_v31, %v10226_v21  ;;  %v23872_v33 = vld [vmem:[#allocation438_spill] sm:$0xff] }
 0x4e6   :  { %v15000_v16 = vpack.c.bf16 %v11824_v53, %v11824_v53  ;;  %v11827_v1 = vmax.f32 %v11539_v30, 0.0  ;;  %v16165_v35 = vpop.f32.mrf.mxu0  ;;  %v16741_v44 = vpop.f32.mrf.mxu1 }
 0x4e7   :  { %v11825_v2 = vmax.f32 %v11537_v54, 0.0  ;;  %v11542_v20 = vadd.f32 %v22183_v6, %v11247_v26  ;;  %v11245_v46 = vmax.f32 %v10669_v14, %v10957_v34  ;;  %v10672_v15 = vmax.f32 %v23863_v3, %v16165_v35  ;;  %v23873_v54 = vld [vmem:[#allocation439_spill] sm:$0xff]  ;;  %v23874_v14 = vld [vmem:[#allocation440_spill] sm:$0xff]  ;;  %v23876_v3 = vld [vmem:[#allocation442_spill] sm:$0xff] }
 0x4e8   :  { %13265 = vst.msk [vmem:[%s22908_s3 + $0x3a0] sm:$0xf] %vm13032_vm1, %v15000_v16  ;;  %v15003_v37 = vpack.c.bf16 %v11827_v1, %v11827_v1  ;;  %v10960_v47 = vmax.f32 %v23864_v18, %v16741_v44  ;;  %v7925_v9 = vpop.f32.mrf.mxu0  ;;  %v10229_v17 = vpop.f32.mrf.mxu1 }
 0x4e9   :  { %v15001_v28 = vpack.c.bf16 %v11825_v2, %v11825_v2  ;;  %v11830_v19 = vmax.f32 %v11542_v20, 0.0  ;;  %v11540_v38 = vadd.f32 %v22183_v6, %v11245_v46  ;;  %v10670_v58 = vmax.f32 %v23865_v39, %v7925_v9  ;;  %v23875_v2 = vld [vmem:[#allocation441_spill] sm:$0xff] }
 0x4ea   :  { %13268 = vst.msk [vmem:[%s22908_s3 + $0x3ac] sm:$0xf] %vm13032_vm1, %v15003_v37  ;;  %v11248_v59 = vmax.f32 %v10672_v15, %v10960_v47  ;;  %v10958_v7 = vmax.f32 %v23866_v36, %v10229_v17  ;;  %v16168_v22 = vpop.f32.mrf.mxu0  ;;  %v16744_v23 = vpop.f32.mrf.mxu1  ;;  %v23877_v17 = vld [vmem:[#allocation443_spill] sm:$0xff] }
 0x4eb   :  { %13266 = vst.msk [vmem:[%s22908_s3 + $0x3a4] sm:$0xf] %vm13032_vm1, %v15001_v28  ;;  %v15006_v40 = vpack.c.bf16 %v11830_v19, %v11830_v19  ;;  %v11828_v56 = vmax.f32 %v11540_v38, 0.0  ;;  %v10675_v29 = vmax.f32 %v23867_v50, %v16168_v22  ;;  %v10963_v48 = vmax.f32 %v23868_v51, %v16744_v23  ;;  %v23878_v19 = vld [vmem:[#allocation444_spill] sm:$0xff]  ;;  %v23879_v23 = vld [vmem:[#allocation445_spill] sm:$0xff] }
 0x4ec   :  { %v11543_v49 = vadd.f32 %v22183_v6, %v11248_v59  ;;  %v11246_v32 = vmax.f32 %v10670_v58, %v10958_v7  ;;  %v7938_v24 = vpop.f32.mrf.mxu0  ;;  %v10242_v25 = vpop.f32.mrf.mxu1  ;;  %v22593_v51 = vld [vmem:[%s22907_s2] ss:$0 sm:$0xff] }
 0x4ed   :  { %13271 = vst.msk [vmem:[%s22908_s3 + $0x3b8] sm:$0xf] %vm13032_vm1, %v15006_v40  ;;  %v15004_v41 = vpack.c.bf16 %v11828_v56, %v11828_v56  ;;  %v11251_v8 = vmax.f32 %v10675_v29, %v10963_v48  ;;  %v10673_v60 = vmax.f32 %v23869_v10, %v7938_v24  ;;  %v10961_v11 = vmax.f32 %v23870_v61, %v10242_v25  ;;  %v23880_v56 = vld [vmem:[#allocation446_spill] sm:$0xff]  ;;  %v23881_v25 = vld [vmem:[#allocation447_spill] sm:$0xff] }
 0x4ee   :  { %v11831_v5 = vmax.f32 %v11543_v49, 0.0  ;;  %v11541_v52 = vadd.f32 %v22183_v6, %v11246_v32  ;;  %v16169_v62 = vpop.f32.mrf.mxu0  ;;  %v16745_v4 = vpop.f32.mrf.mxu1 }
 0x4ef   :  { %13269 = vst.msk [vmem:[%s22908_s3 + $0x3b0] sm:$0xf] %vm13032_vm1, %v15004_v41  ;;  %v11546_v63 = vadd.f32 %v22183_v6, %v11251_v8  ;;  %v11249_v57 = vmax.f32 %v10673_v60, %v10961_v11  ;;  %v10676_v27 = vmax.f32 %v23871_v45, %v16169_v62  ;;  %v10964_v42 = vmax.f32 %v23872_v33, %v16745_v4  ;;  %v23882_v8 = vld [vmem:[#allocation448_spill] sm:$0xff] }
 0x4f0   :  { %v15007_v43 = vpack.c.bf16 %v11831_v5, %v11831_v5  ;;  %v11829_v12 = vmax.f32 %v11541_v52, 0.0  ;;  %v7941_v13 = vpop.f32.mrf.mxu0  ;;  %v10245_v53 = vpop.f32.mrf.mxu1 }
 0x4f1   :  { %v11834_v30 = vmax.f32 %v11546_v63, 0.0  ;;  %v11544_v0 = vadd.f32 %v22183_v6, %v11249_v57  ;;  %v11252_v21 = vmax.f32 %v10676_v27, %v10964_v42  ;;  %v10674_v26 = vmax.f32 %v23873_v54, %v7941_v13  ;;  %v23883_v63 = vld [vmem:[#allocation449_spill] sm:$0xff]  ;;  %v23884_v27 = vld [vmem:[#allocation450_spill] sm:$0xff]  ;;  %v23886_v54 = vld [vmem:[#allocation452_spill] sm:$0xff] }
 0x4f2   :  { %13272 = vst.msk [vmem:[%s22908_s3 + $0x3bc] sm:$0xf] %vm13032_vm1, %v15007_v43  ;;  %v15005_v55 = vpack.c.bf16 %v11829_v12, %v11829_v12  ;;  %v10962_v31 = vmax.f32 %v23874_v14, %v10245_v53  ;;  %v16172_v34 = vpop.f32.mrf.mxu0  ;;  %v16748_v16 = vpop.f32.mrf.mxu1 }
 0x4f3   :  { %v15010_v1 = vpack.c.bf16 %v11834_v30, %v11834_v30  ;;  %v11832_v35 = vmax.f32 %v11544_v0, 0.0  ;;  %v11547_v44 = vadd.f32 %v22183_v6, %v11252_v21  ;;  %v10679_v20 = vmax.f32 %v23875_v2, %v16172_v34  ;;  %v23885_v30 = vld [vmem:[#allocation451_spill] sm:$0xff] }
 0x4f4   :  { %13270 = vst.msk [vmem:[%s22908_s3 + $0x3b4] sm:$0xf] %vm13032_vm1, %v15005_v55  ;;  %v11250_v46 = vmax.f32 %v10674_v26, %v10962_v31  ;;  %v10967_v15 = vmax.f32 %v23876_v3, %v16748_v16  ;;  %v7954_v37 = vpop.f32.mrf.mxu0  ;;  %v10258_v18 = vpop.f32.mrf.mxu1  ;;  %v23887_v16 = vld [vmem:[#allocation453_spill] sm:$0xff] }
 0x4f5   :  { %13275 = vst.msk [vmem:[%s22908_s3 + $0x3c8] sm:$0xf] %vm13032_vm1, %v15010_v1  ;;  %v15008_v47 = vpack.c.bf16 %v11832_v35, %v11832_v35  ;;  %v11835_v9 = vmax.f32 %v11547_v44, 0.0  ;;  %v10677_v28 = vmax.f32 %v23877_v17, %v7954_v37  ;;  %v10965_v38 = vmax.f32 %v23878_v19, %v10258_v18  ;;  %v23888_v35 = vld [vmem:[#allocation454_spill] sm:$0xff]  ;;  %v23889_v18 = vld [vmem:[#allocation455_spill] sm:$0xff] }
 0x4f6   :  { %v11545_v39 = vadd.f32 %v22183_v6, %v11250_v46  ;;  %v11255_v58 = vmax.f32 %v10679_v20, %v10967_v15  ;;  %v16173_v59 = vpop.f32.mrf.mxu0  ;;  %v16749_v36 = vpop.f32.mrf.mxu1 }
 0x4f7   :  { %13273 = vst.msk [vmem:[%s22908_s3 + $0x3c0] sm:$0xf] %vm13032_vm1, %v15008_v47  ;;  %v15011_v7 = vpack.c.bf16 %v11835_v9, %v11835_v9  ;;  %v11253_v22 = vmax.f32 %v10677_v28, %v10965_v38  ;;  %v10680_v40 = vmax.f32 %v23879_v23, %v16173_v59  ;;  %v10968_v50 = vmax.f32 %v23880_v56, %v16749_v36  ;;  %v23890_v9 = vld [vmem:[#allocation456_spill] sm:$0xff]  ;;  %v23891_v36 = vld [vmem:[#allocation457_spill] sm:$0xff] }
 0x4f8   :  { %v11833_v29 = vmax.f32 %v11545_v39, 0.0  ;;  %v11550_v6 = vadd.f32 %v22593_v51, %v11255_v58  ;;  %v7957_v48 = vpop.f32.mrf.mxu0  ;;  %v10261_v49 = vpop.f32.mrf.mxu1 }
 0x4f9   :  { %13276 = vst.msk [vmem:[%s22908_s3 + $0x3cc] sm:$0xf] %vm13032_vm1, %v15011_v7  ;;  %v11548_v32 = vadd.f32 %v22593_v51, %v11253_v22  ;;  %v11256_v24 = vmax.f32 %v10680_v40, %v10968_v50  ;;  %v10678_v41 = vmax.f32 %v23881_v25, %v7957_v48  ;;  %v10966_v10 = vmax.f32 %v23882_v8, %v10261_v49  ;;  %v23892_v22 = vld [vmem:[#allocation458_spill] sm:$0xff] }
 0x4fa   :  { %v15009_v60 = vpack.c.bf16 %v11833_v29, %v11833_v29  ;;  %v11838_v61 = vmax.f32 %v11550_v6, 0.0  ;;  %v16176_v11 = vpop.f32.mrf.mxu0  ;;  %v16752_v5 = vpop.f32.mrf.mxu1 }
 0x4fb   :  { %v11836_v52 = vmax.f32 %v11548_v32, 0.0  ;;  %v11551_v62 = vadd.f32 %v22593_v51, %v11256_v24  ;;  %v11254_v4 = vmax.f32 %v10678_v41, %v10966_v10  ;;  %v10683_v57 = vmax.f32 %v23883_v63, %v16176_v11  ;;  %v23893_v32 = vld [vmem:[#allocation459_spill] sm:$0xff]  ;;  %v23894_v41 = vld [vmem:[#allocation460_spill] sm:$0xff]  ;;  %v23896_v63 = vld [vmem:[#allocation462_spill] sm:$0xff] }
 0x4fc   :  { %13274 = vst.msk [vmem:[%s22908_s3 + $0x3c4] sm:$0xf] %vm13032_vm1, %v15009_v60  ;;  %v15014_v45 = vpack.c.bf16 %v11838_v61, %v11838_v61  ;;  %v10971_v33 = vmax.f32 %v23884_v27, %v16752_v5  ;;  %v7970_v42 = vpop.f32.mrf.mxu0  ;;  %v10274_v43 = vpop.f32.mrf.mxu1 }
 0x4fd   :  { %v15012_v12 = vpack.c.bf16 %v11836_v52, %v11836_v52  ;;  %v11839_v13 = vmax.f32 %v11551_v62, 0.0  ;;  %v11549_v53 = vadd.f32 %v22593_v51, %v11254_v4  ;;  %v10681_v0 = vmax.f32 %v23885_v30, %v7970_v42  ;;  %v23895_v52 = vld [vmem:[#allocation461_spill] sm:$0xff] }
 0x4fe   :  { %13279 = vst.msk [vmem:[%s22908_s3 + $0x3d8] sm:$0xf] %vm13032_vm1, %v15014_v45  ;;  %v11259_v21 = vmax.f32 %v10683_v57, %v10971_v33  ;;  %v10969_v26 = vmax.f32 %v23886_v54, %v10274_v43  ;;  %v16177_v55 = vpop.f32.mrf.mxu0  ;;  %v16753_v14 = vpop.f32.mrf.mxu1  ;;  %v23897_v43 = vld [vmem:[#allocation463_spill] sm:$0xff] }
 0x4ff   :  { %13277 = vst.msk [vmem:[%s22908_s3 + $0x3d0] sm:$0xf] %vm13032_vm1, %v15012_v12  ;;  %v15015_v31 = vpack.c.bf16 %v11839_v13, %v11839_v13  ;;  %v11837_v34 = vmax.f32 %v11549_v53, 0.0  ;;  %v10684_v1 = vmax.f32 %v23887_v16, %v16177_v55  ;;  %v10972_v44 = vmax.f32 %v23888_v35, %v16753_v14  ;;  %v23898_v13 = vld [vmem:[#allocation464_spill] sm:$0xff]  ;;  %v23899_v14 = vld [vmem:[#allocation465_spill] sm:$0xff] }
 0x500   :  { %v11554_v2 = vadd.f32 %v22593_v51, %v11259_v21  ;;  %v11257_v20 = vmax.f32 %v10681_v0, %v10969_v26  ;;  %v7973_v46 = vpop.f32.mrf.mxu0  ;;  %v10277_v3 = vpop.f32.mrf.mxu1 }
 0x501   :  { %13280 = vst.msk [vmem:[%s22908_s3 + $0x3dc] sm:$0xf] %vm13032_vm1, %v15015_v31  ;;  %v15013_v15 = vpack.c.bf16 %v11837_v34, %v11837_v34  ;;  %v11260_v37 = vmax.f32 %v10684_v1, %v10972_v44  ;;  %v10682_v47 = vmax.f32 %v23889_v18, %v7973_v46  ;;  %v10970_v17 = vmax.f32 %v23890_v9, %v10277_v3  ;;  %v23900_v34 = vld [vmem:[#allocation466_spill] sm:$0xff]  ;;  %v23901_v3 = vld [vmem:[#allocation467_spill] sm:$0xff] }
 0x502   :  { %v11842_v28 = vmax.f32 %v11554_v2, 0.0  ;;  %v11552_v19 = vadd.f32 %v22593_v51, %v11257_v20  ;;  %v16180_v38 = vpop.f32.mrf.mxu0  ;;  %v16756_v39 = vpop.f32.mrf.mxu1 }
 0x503   :  { %13278 = vst.msk [vmem:[%s22908_s3 + $0x3d4] sm:$0xf] %vm13032_vm1, %v15013_v15  ;;  %v11555_v58 = vadd.f32 %v22593_v51, %v11260_v37  ;;  %v11258_v59 = vmax.f32 %v10682_v47, %v10970_v17  ;;  %v10687_v7 = vmax.f32 %v23891_v36, %v16180_v38  ;;  %v10975_v23 = vmax.f32 %v23892_v22, %v16756_v39  ;;  %v23902_v37 = vld [vmem:[#allocation468_spill] sm:$0xff] }
 0x504   :  { %v15018_v40 = vpack.c.bf16 %v11842_v28, %v11842_v28  ;;  %v11840_v56 = vmax.f32 %v11552_v19, 0.0  ;;  %v7986_v50 = vpop.f32.mrf.mxu0  ;;  %v10290_v29 = vpop.f32.mrf.mxu1 }
 0x505   :  { %v11843_v6 = vmax.f32 %v11555_v58, 0.0  ;;  %v11553_v48 = vadd.f32 %v22593_v51, %v11258_v59  ;;  %v11263_v49 = vmax.f32 %v10687_v7, %v10975_v23  ;;  %v10685_v24 = vmax.f32 %v23893_v32, %v7986_v50  ;;  %v23903_v58 = vld [vmem:[#allocation469_spill] sm:$0xff]  ;;  %v23904_v7 = vld [vmem:[#allocation470_spill] sm:$0xff]  ;;  %v23906_v32 = vld [vmem:[#allocation472_spill] sm:$0xff] }
 0x506   :  { %13283 = vst.msk [vmem:[%s22908_s3 + $0x3e8] sm:$0xf] %vm13032_vm1, %v15018_v40  ;;  %v15016_v25 = vpack.c.bf16 %v11840_v56, %v11840_v56  ;;  %v10973_v8 = vmax.f32 %v23894_v41, %v10290_v29  ;;  %v16181_v10 = vpop.f32.mrf.mxu0  ;;  %v16757_v60 = vpop.f32.mrf.mxu1 }
 0x507   :  { %v15019_v61 = vpack.c.bf16 %v11843_v6, %v11843_v6  ;;  %v11841_v11 = vmax.f32 %v11553_v48, 0.0  ;;  %v11558_v5 = vadd.f32 %v22593_v51, %v11263_v49  ;;  %v10688_v62 = vmax.f32 %v23895_v52, %v16181_v10  ;;  %v23905_v6 = vld [vmem:[#allocation471_spill] sm:$0xff] }
 0x508   :  { %13281 = vst.msk [vmem:[%s22908_s3 + $0x3e0] sm:$0xf] %vm13032_vm1, %v15016_v25  ;;  %v11261_v4 = vmax.f32 %v10685_v24, %v10973_v8  ;;  %v10976_v57 = vmax.f32 %v23896_v63, %v16757_v60  ;;  %v7989_v45 = vpop.f32.mrf.mxu0  ;;  %v10293_v27 = vpop.f32.mrf.mxu1  ;;  %v23907_v60 = vld [vmem:[#allocation473_spill] sm:$0xff] }
 0x509   :  { %13284 = vst.msk [vmem:[%s22908_s3 + $0x3ec] sm:$0xf] %vm13032_vm1, %v15019_v61  ;;  %v15017_v33 = vpack.c.bf16 %v11841_v11, %v11841_v11  ;;  %v11846_v42 = vmax.f32 %v11558_v5, 0.0  ;;  %v10686_v12 = vmax.f32 %v23897_v43, %v7989_v45  ;;  %v10974_v53 = vmax.f32 %v23898_v13, %v10293_v27  ;;  %v23908_v11 = vld [vmem:[#allocation474_spill] sm:$0xff]  ;;  %v23909_v27 = vld [vmem:[#allocation475_spill] sm:$0xff] }
 0x50a   :  { %v11556_v30 = vadd.f32 %v22593_v51, %v11261_v4  ;;  %v11264_v0 = vmax.f32 %v10688_v62, %v10976_v57  ;;  %v16184_v21 = vpop.f32.mrf.mxu0  ;;  %v16760_v54 = vpop.f32.mrf.mxu1 }
 0x50b   :  { %13282 = vst.msk [vmem:[%s22908_s3 + $0x3e4] sm:$0xf] %vm13032_vm1, %v15017_v33  ;;  %v15022_v26 = vpack.c.bf16 %v11846_v42, %v11846_v42  ;;  %v11262_v55 = vmax.f32 %v10686_v12, %v10974_v53  ;;  %v10691_v31 = vmax.f32 %v23899_v14, %v16184_v21  ;;  %v10979_v16 = vmax.f32 %v23900_v34, %v16760_v54  ;;  %v23910_v42 = vld [vmem:[#allocation476_spill] sm:$0xff]  ;;  %v23911_v54 = vld [vmem:[#allocation477_spill] sm:$0xff] }
 0x50c   :  { %v11844_v1 = vmax.f32 %v11556_v30, 0.0  ;;  %v11559_v35 = vadd.f32 %v22593_v51, %v11264_v0  ;;  %v8002_v44 = vpop.f32.mrf.mxu0  ;;  %v10306_v2 = vpop.f32.mrf.mxu1 }
 0x50d   :  { %13287 = vst.msk [vmem:[%s22908_s3 + $0x3f8] sm:$0xf] %vm13032_vm1, %v15022_v26  ;;  %v11557_v20 = vadd.f32 %v22593_v51, %v11262_v55  ;;  %v11267_v46 = vmax.f32 %v10691_v31, %v10979_v16  ;;  %v10689_v15 = vmax.f32 %v23901_v3, %v8002_v44  ;;  %v10977_v18 = vmax.f32 %v23902_v37, %v10306_v2  ;;  %v23912_v55 = vld [vmem:[#allocation478_spill] sm:$0xff] }
 0x50e   :  { %v15020_v47 = vpack.c.bf16 %v11844_v1, %v11844_v1  ;;  %v11847_v9 = vmax.f32 %v11559_v35, 0.0  ;;  %v16185_v17 = vpop.f32.mrf.mxu0  ;;  %v16761_v28 = vpop.f32.mrf.mxu1 }
 0x50f   :  { %v11845_v19 = vmax.f32 %v11557_v20, 0.0  ;;  %v11562_v38 = vadd.f32 %v22593_v51, %v11267_v46  ;;  %v11265_v39 = vmax.f32 %v10689_v15, %v10977_v18  ;;  %v10692_v59 = vmax.f32 %v23903_v58, %v16185_v17  ;;  %v23913_v20 = vld [vmem:[#allocation479_spill] sm:$0xff]  ;;  %v23914_v15 = vld [vmem:[#allocation480_spill] sm:$0xff]  ;;  %v23916_v58 = vld [vmem:[#allocation482_spill] sm:$0xff] }
 0x510   :  { %13285 = vst.msk [vmem:[%s22908_s3 + $0x3f0] sm:$0xf] %vm13032_vm1, %v15020_v47  ;;  %v15023_v36 = vpack.c.bf16 %v11847_v9, %v11847_v9  ;;  %v10980_v22 = vmax.f32 %v23904_v7, %v16761_v28  ;;  %v8005_v23 = vpop.f32.mrf.mxu0  ;;  %v10309_v40 = vpop.f32.mrf.mxu1 }
 0x511   :  { %v15021_v56 = vpack.c.bf16 %v11845_v19, %v11845_v19  ;;  %v11850_v50 = vmax.f32 %v11562_v38, 0.0  ;;  %v11560_v29 = vadd.f32 %v22593_v51, %v11265_v39  ;;  %v10690_v48 = vmax.f32 %v23905_v6, %v8005_v23  ;;  %v23915_v19 = vld [vmem:[#allocation481_spill] sm:$0xff] }
 0x512   :  { %13288 = vst.msk [vmem:[%s22908_s3 + $0x3fc] sm:$0xf] %vm13032_vm1, %v15023_v36  ;;  %v11268_v49 = vmax.f32 %v10692_v59, %v10980_v22  ;;  %v10978_v24 = vmax.f32 %v23906_v32, %v10309_v40  ;;  %v16188_v25 = vpop.f32.mrf.mxu0  ;;  %v16764_v41 = vpop.f32.mrf.mxu1  ;;  %v23917_v40 = vld [vmem:[#allocation483_spill] sm:$0xff] }
 0x513   :  { %13286 = vst.msk [vmem:[%s22908_s3 + $0x3f4] sm:$0xf] %vm13032_vm1, %v15021_v56  ;;  %v15026_v8 = vpack.c.bf16 %v11850_v50, %v11850_v50  ;;  %v11848_v10 = vmax.f32 %v11560_v29, 0.0  ;;  %v10695_v61 = vmax.f32 %v23907_v60, %v16188_v25  ;;  %v10983_v5 = vmax.f32 %v23908_v11, %v16764_v41  ;;  %v23918_v50 = vld [vmem:[#allocation484_spill] sm:$0xff]  ;;  %v23919_v41 = vld [vmem:[#allocation485_spill] sm:$0xff] }
 0x514   :  { %v11563_v52 = vadd.f32 %v22593_v51, %v11268_v49  ;;  %v11266_v62 = vmax.f32 %v10690_v48, %v10978_v24  ;;  %v8018_v4 = vpop.f32.mrf.mxu0  ;;  %v10322_v63 = vpop.f32.mrf.mxu1 }
 0x515   :  { %13291 = vst.msk [vmem:[%s22908_s3 + $0x408] sm:$0xf] %vm13032_vm1, %v15026_v8  ;;  %v15024_v57 = vpack.c.bf16 %v11848_v10, %v11848_v10  ;;  %v11271_v45 = vmax.f32 %v10695_v61, %v10983_v5  ;;  %v10693_v33 = vmax.f32 %v23909_v27, %v8018_v4  ;;  %v10981_v43 = vmax.f32 %v23910_v42, %v10322_v63  ;;  %v23920_v10 = vld [vmem:[#allocation486_spill] sm:$0xff]  ;;  %v23921_v63 = vld [vmem:[#allocation487_spill] sm:$0xff] }
 0x516   :  { %v11851_v12 = vmax.f32 %v11563_v52, 0.0  ;;  %v11561_v13 = vadd.f32 %v22593_v51, %v11266_v62  ;;  %v16189_v53 = vpop.f32.mrf.mxu0  ;;  %v16765_v30 = vpop.f32.mrf.mxu1 }
 0x517   :  { %13289 = vst.msk [vmem:[%s22908_s3 + $0x400] sm:$0xf] %vm13032_vm1, %v15024_v57  ;;  %v11566_v0 = vadd.f32 %v22593_v51, %v11271_v45  ;;  %v11269_v21 = vmax.f32 %v10693_v33, %v10981_v43  ;;  %v10696_v26 = vmax.f32 %v23911_v54, %v16189_v53  ;;  %v10984_v14 = vmax.f32 %v23912_v55, %v16765_v30  ;;  %v23922_v45 = vld [vmem:[#allocation488_spill] sm:$0xff] }
 0x518   :  { %v15027_v31 = vpack.c.bf16 %v11851_v12, %v11851_v12  ;;  %v11849_v34 = vmax.f32 %v11561_v13, 0.0  ;;  %v8021_v16 = vpop.f32.mrf.mxu0  ;;  %v10325_v1 = vpop.f32.mrf.mxu1 }
 0x519   :  { %v11854_v35 = vmax.f32 %v11566_v0, 0.0  ;;  %v11564_v44 = vadd.f32 %v22593_v51, %v11269_v21  ;;  %v11272_v2 = vmax.f32 %v10696_v26, %v10984_v14  ;;  %v10694_v46 = vmax.f32 %v23913_v20, %v8021_v16  ;;  %v23923_v0 = vld [vmem:[#allocation489_spill] sm:$0xff]  ;;  %v23924_v26 = vld [vmem:[#allocation490_spill] sm:$0xff]  ;;  %v23926_v20 = vld [vmem:[#allocation492_spill] sm:$0xff] }
 0x51a   :  { %13292 = vst.msk [vmem:[%s22908_s3 + $0x40c] sm:$0xf] %vm13032_vm1, %v15027_v31  ;;  %v15025_v3 = vpack.c.bf16 %v11849_v34, %v11849_v34  ;;  %v10982_v37 = vmax.f32 %v23914_v15, %v10325_v1  ;;  %v16192_v18 = vpop.f32.mrf.mxu0  ;;  %v16768_v47 = vpop.f32.mrf.mxu1 }
 0x51b   :  { %v15030_v9 = vpack.c.bf16 %v11854_v35, %v11854_v35  ;;  %v11852_v17 = vmax.f32 %v11564_v44, 0.0  ;;  %v11567_v28 = vadd.f32 %v22593_v51, %v11272_v2  ;;  %v10699_v38 = vmax.f32 %v23915_v19, %v16192_v18  ;;  %v23925_v35 = vld [vmem:[#allocation491_spill] sm:$0xff] }
 0x51c   :  { %13290 = vst.msk [vmem:[%s22908_s3 + $0x404] sm:$0xf] %vm13032_vm1, %v15025_v3  ;;  %v11270_v39 = vmax.f32 %v10694_v46, %v10982_v37  ;;  %v10987_v59 = vmax.f32 %v23916_v58, %v16768_v47  ;;  %v8034_v36 = vpop.f32.mrf.mxu0  ;;  %v10338_v7 = vpop.f32.mrf.mxu1  ;;  %v23927_v47 = vld [vmem:[#allocation493_spill] sm:$0xff] }
 0x51d   :  { %13295 = vst.msk [vmem:[%s22908_s3 + $0x418] sm:$0xf] %vm13032_vm1, %v15030_v9  ;;  %v15028_v22 = vpack.c.bf16 %v11852_v17, %v11852_v17  ;;  %v11855_v23 = vmax.f32 %v11567_v28, 0.0  ;;  %v10697_v56 = vmax.f32 %v23917_v40, %v8034_v36  ;;  %v10985_v29 = vmax.f32 %v23918_v50, %v10338_v7  ;;  %v23928_v17 = vld [vmem:[#allocation494_spill] sm:$0xff]  ;;  %v23929_v7 = vld [vmem:[#allocation495_spill] sm:$0xff] }
 0x51e   :  { %v11565_v6 = vadd.f32 %v22593_v51, %v11270_v39  ;;  %v11275_v48 = vmax.f32 %v10699_v38, %v10987_v59  ;;  %v16193_v49 = vpop.f32.mrf.mxu0  ;;  %v16769_v32 = vpop.f32.mrf.mxu1 }
 0x51f   :  { %13293 = vst.msk [vmem:[%s22908_s3 + $0x410] sm:$0xf] %vm13032_vm1, %v15028_v22  ;;  %v15031_v24 = vpack.c.bf16 %v11855_v23, %v11855_v23  ;;  %v11273_v25 = vmax.f32 %v10697_v56, %v10985_v29  ;;  %v10700_v8 = vmax.f32 %v23919_v41, %v16193_v49  ;;  %v10988_v60 = vmax.f32 %v23920_v10, %v16769_v32  ;;  %v23930_v23 = vld [vmem:[#allocation496_spill] sm:$0xff]  ;;  %v23931_v32 = vld [vmem:[#allocation497_spill] sm:$0xff] }
 0x520   :  { %v11853_v61 = vmax.f32 %v11565_v6, 0.0  ;;  %v11570_v11 = vadd.f32 %v22593_v51, %v11275_v48  ;;  %v8037_v5 = vpop.f32.mrf.mxu0  ;;  %v10341_v52 = vpop.f32.mrf.mxu1 }
 0x521   :  { %13296 = vst.msk [vmem:[%s22908_s3 + $0x41c] sm:$0xf] %vm13032_vm1, %v15031_v24  ;;  %v11568_v62 = vadd.f32 %v22593_v51, %v11273_v25  ;;  %v11276_v4 = vmax.f32 %v10700_v8, %v10988_v60  ;;  %v10698_v57 = vmax.f32 %v23921_v63, %v8037_v5  ;;  %v10986_v27 = vmax.f32 %v23922_v45, %v10341_v52  ;;  %v23932_v25 = vld [vmem:[#allocation498_spill] sm:$0xff] }
 0x522   :  { %v15029_v33 = vpack.c.bf16 %v11853_v61, %v11853_v61  ;;  %v11858_v42 = vmax.f32 %v11570_v11, 0.0  ;;  %v16196_v43 = vpop.f32.mrf.mxu0  ;;  %v16772_v12 = vpop.f32.mrf.mxu1 }
 0x523   :  { %v11856_v13 = vmax.f32 %v11568_v62, 0.0  ;;  %v11571_v53 = vadd.f32 %v22593_v51, %v11276_v4  ;;  %v11274_v30 = vmax.f32 %v10698_v57, %v10986_v27  ;;  %v10703_v21 = vmax.f32 %v23923_v0, %v16196_v43  ;;  %v23933_v62 = vld [vmem:[#allocation499_spill] sm:$0xff]  ;;  %v23934_v57 = vld [vmem:[#allocation500_spill] sm:$0xff]  ;;  %v23936_v0 = vld [vmem:[#allocation502_spill] sm:$0xff] }
 0x524   :  { %13294 = vst.msk [vmem:[%s22908_s3 + $0x414] sm:$0xf] %vm13032_vm1, %v15029_v33  ;;  %v15034_v54 = vpack.c.bf16 %v11858_v42, %v11858_v42  ;;  %v10991_v55 = vmax.f32 %v23924_v26, %v16772_v12  ;;  %v8050_v14 = vpop.f32.mrf.mxu0  ;;  %v10354_v31 = vpop.f32.mrf.mxu1 }
 0x525   :  { %v15032_v34 = vpack.c.bf16 %v11856_v13, %v11856_v13  ;;  %v11859_v16 = vmax.f32 %v11571_v53, 0.0  ;;  %v11569_v1 = vadd.f32 %v22593_v51, %v11274_v30  ;;  %v10701_v44 = vmax.f32 %v23925_v35, %v8050_v14  ;;  %v23935_v13 = vld [vmem:[#allocation501_spill] sm:$0xff] }
 0x526   :  { %13299 = vst.msk [vmem:[%s22908_s3 + $0x428] sm:$0xf] %vm13032_vm1, %v15034_v54  ;;  %v11279_v2 = vmax.f32 %v10703_v21, %v10991_v55  ;;  %v10989_v46 = vmax.f32 %v23926_v20, %v10354_v31  ;;  %v16197_v3 = vpop.f32.mrf.mxu0  ;;  %v16773_v15 = vpop.f32.mrf.mxu1  ;;  %v23937_v31 = vld [vmem:[#allocation503_spill] sm:$0xff] }
 0x527   :  { %13297 = vst.msk [vmem:[%s22908_s3 + $0x420] sm:$0xf] %vm13032_vm1, %v15032_v34  ;;  %v15035_v37 = vpack.c.bf16 %v11859_v16, %v11859_v16  ;;  %v11857_v18 = vmax.f32 %v11569_v1, 0.0  ;;  %v10704_v9 = vmax.f32 %v23927_v47, %v16197_v3  ;;  %v10992_v28 = vmax.f32 %v23928_v17, %v16773_v15  ;;  %v23938_v16 = vld [vmem:[#allocation504_spill] sm:$0xff]  ;;  %v23939_v15 = vld [vmem:[#allocation505_spill] sm:$0xff] }
 0x528   :  { %v11574_v19 = vadd.f32 %v22593_v51, %v11279_v2  ;;  %v11277_v38 = vmax.f32 %v10701_v44, %v10989_v46  ;;  %v8053_v39 = vpop.f32.mrf.mxu0  ;;  %v10357_v58 = vpop.f32.mrf.mxu1 }
 0x529   :  { %13300 = vst.msk [vmem:[%s22908_s3 + $0x42c] sm:$0xf] %vm13032_vm1, %v15035_v37  ;;  %v15033_v59 = vpack.c.bf16 %v11857_v18, %v11857_v18  ;;  %v11280_v36 = vmax.f32 %v10704_v9, %v10992_v28  ;;  %v10702_v22 = vmax.f32 %v23929_v7, %v8053_v39  ;;  %v10990_v40 = vmax.f32 %v23930_v23, %v10357_v58  ;;  %v23940_v18 = vld [vmem:[#allocation506_spill] sm:$0xff]  ;;  %v23941_v58 = vld [vmem:[#allocation507_spill] sm:$0xff] }
 0x52a   :  { %v11862_v56 = vmax.f32 %v11574_v19, 0.0  ;;  %v11572_v50 = vadd.f32 %v22593_v51, %v11277_v38  ;;  %v16200_v29 = vpop.f32.mrf.mxu0  ;;  %v16776_v6 = vpop.f32.mrf.mxu1 }
 0x52b   :  { %13298 = vst.msk [vmem:[%s22908_s3 + $0x424] sm:$0xf] %vm13032_vm1, %v15033_v59  ;;  %v11575_v48 = vadd.f32 %v22593_v51, %v11280_v36  ;;  %v11278_v49 = vmax.f32 %v10702_v22, %v10990_v40  ;;  %v10707_v24 = vmax.f32 %v23931_v32, %v16200_v29  ;;  %v10995_v41 = vmax.f32 %v23932_v25, %v16776_v6  ;;  %v23942_v36 = vld [vmem:[#allocation508_spill] sm:$0xff] }
 0x52c   :  { %v15038_v8 = vpack.c.bf16 %v11862_v56, %v11862_v56  ;;  %v11860_v10 = vmax.f32 %v11572_v50, 0.0  ;;  %v8066_v60 = vpop.f32.mrf.mxu0  ;;  %v10370_v61 = vpop.f32.mrf.mxu1 }
 0x52d   :  { %v11863_v11 = vmax.f32 %v11575_v48, 0.0  ;;  %v11573_v5 = vadd.f32 %v22593_v51, %v11278_v49  ;;  %v11283_v52 = vmax.f32 %v10707_v24, %v10995_v41  ;;  %v10705_v4 = vmax.f32 %v23933_v62, %v8066_v60  ;;  %v23943_v48 = vld [vmem:[#allocation509_spill] sm:$0xff]  ;;  %v23944_v24 = vld [vmem:[#allocation510_spill] sm:$0xff]  ;;  %v23946_v62 = vld [vmem:[#allocation512_spill] sm:$0xff] }
 0x52e   :  { %13303 = vst.msk [vmem:[%s22908_s3 + $0x438] sm:$0xf] %vm13032_vm1, %v15038_v8  ;;  %v15036_v63 = vpack.c.bf16 %v11860_v10, %v11860_v10  ;;  %v10993_v45 = vmax.f32 %v23934_v57, %v10370_v61  ;;  %v16201_v27 = vpop.f32.mrf.mxu0  ;;  %v16777_v33 = vpop.f32.mrf.mxu1 }
 0x52f   :  { %v15039_v42 = vpack.c.bf16 %v11863_v11, %v11863_v11  ;;  %v11861_v43 = vmax.f32 %v11573_v5, 0.0  ;;  %v11578_v12 = vadd.f32 %v22593_v51, %v11283_v52  ;;  %v10708_v53 = vmax.f32 %v23935_v13, %v16201_v27  ;;  %v23945_v11 = vld [vmem:[#allocation511_spill] sm:$0xff] }
 0x530   :  { %13301 = vst.msk [vmem:[%s22908_s3 + $0x430] sm:$0xf] %vm13032_vm1, %v15036_v63  ;;  %v11281_v30 = vmax.f32 %v10705_v4, %v10993_v45  ;;  %v10996_v21 = vmax.f32 %v23936_v0, %v16777_v33  ;;  %v8069_v54 = vpop.f32.mrf.mxu0  ;;  %v10373_v26 = vpop.f32.mrf.mxu1  ;;  %v23947_v33 = vld [vmem:[#allocation513_spill] sm:$0xff] }
 0x531   :  { %13304 = vst.msk [vmem:[%s22908_s3 + $0x43c] sm:$0xf] %vm13032_vm1, %v15039_v42  ;;  %v15037_v55 = vpack.c.bf16 %v11861_v43, %v11861_v43  ;;  %v11866_v14 = vmax.f32 %v11578_v12, 0.0  ;;  %v10706_v34 = vmax.f32 %v23937_v31, %v8069_v54  ;;  %v10994_v1 = vmax.f32 %v23938_v16, %v10373_v26  ;;  %v23948_v43 = vld [vmem:[#allocation514_spill] sm:$0xff]  ;;  %v23949_v26 = vld [vmem:[#allocation515_spill] sm:$0xff] }
 0x532   :  { %v11576_v35 = vadd.f32 %v22593_v51, %v11281_v30  ;;  %v11284_v44 = vmax.f32 %v10708_v53, %v10996_v21  ;;  %v16204_v2 = vpop.f32.mrf.mxu0  ;;  %v16780_v20 = vpop.f32.mrf.mxu1 }
 0x533   :  { %13302 = vst.msk [vmem:[%s22908_s3 + $0x434] sm:$0xf] %vm13032_vm1, %v15037_v55  ;;  %v15042_v46 = vpack.c.bf16 %v11866_v14, %v11866_v14  ;;  %v11282_v3 = vmax.f32 %v10706_v34, %v10994_v1  ;;  %v10711_v37 = vmax.f32 %v23939_v15, %v16204_v2  ;;  %v10999_v47 = vmax.f32 %v23940_v18, %v16780_v20  ;;  %v23950_v14 = vld [vmem:[#allocation516_spill] sm:$0xff]  ;;  %v23951_v20 = vld [vmem:[#allocation517_spill] sm:$0xff] }
 0x534   :  { %v11864_v9 = vmax.f32 %v11576_v35, 0.0  ;;  %v11579_v17 = vadd.f32 %v22593_v51, %v11284_v44  ;;  %v8082_v28 = vpop.f32.mrf.mxu0  ;;  %v10386_v19 = vpop.f32.mrf.mxu1 }
 0x535   :  { %13307 = vst.msk [vmem:[%s22908_s3 + $0x448] sm:$0xf] %vm13032_vm1, %v15042_v46  ;;  %v11577_v38 = vadd.f32 %v22593_v51, %v11282_v3  ;;  %v11287_v39 = vmax.f32 %v10711_v37, %v10999_v47  ;;  %v10709_v59 = vmax.f32 %v23941_v58, %v8082_v28  ;;  %v10997_v7 = vmax.f32 %v23942_v36, %v10386_v19  ;;  %v23952_v3 = vld [vmem:[#allocation518_spill] sm:$0xff] }
 0x536   :  { %v15040_v22 = vpack.c.bf16 %v11864_v9, %v11864_v9  ;;  %v11867_v23 = vmax.f32 %v11579_v17, 0.0  ;;  %v16205_v40 = vpop.f32.mrf.mxu0  ;;  %v16781_v56 = vpop.f32.mrf.mxu1 }
 0x537   :  { %v11865_v50 = vmax.f32 %v11577_v38, 0.0  ;;  %v11582_v29 = vadd.f32 %v22593_v51, %v11287_v39  ;;  %v11285_v6 = vmax.f32 %v10709_v59, %v10997_v7  ;;  %v10712_v49 = vmax.f32 %v23943_v48, %v16205_v40  ;;  %v23953_v38 = vld [vmem:[#allocation519_spill] sm:$0xff]  ;;  %v23954_v59 = vld [vmem:[#allocation520_spill] sm:$0xff]  ;;  %v23956_v48 = vld [vmem:[#allocation522_spill] sm:$0xff] }
 0x538   :  { %13305 = vst.msk [vmem:[%s22908_s3 + $0x440] sm:$0xf] %vm13032_vm1, %v15040_v22  ;;  %v15043_v32 = vpack.c.bf16 %v11867_v23, %v11867_v23  ;;  %v11000_v25 = vmax.f32 %v23944_v24, %v16781_v56  ;;  %v8085_v41 = vpop.f32.mrf.mxu0  ;;  %v10389_v8 = vpop.f32.mrf.mxu1 }
 0x539   :  { %v15041_v10 = vpack.c.bf16 %v11865_v50, %v11865_v50  ;;  %v11870_v60 = vmax.f32 %v11582_v29, 0.0  ;;  %v11580_v61 = vadd.f32 %v22593_v51, %v11285_v6  ;;  %v10710_v5 = vmax.f32 %v23945_v11, %v8085_v41  ;;  %v23955_v50 = vld [vmem:[#allocation521_spill] sm:$0xff] }
 0x53a   :  { %13308 = vst.msk [vmem:[%s22908_s3 + $0x44c] sm:$0xf] %vm13032_vm1, %v15043_v32  ;;  %v11288_v52 = vmax.f32 %v10712_v49, %v11000_v25  ;;  %v10998_v4 = vmax.f32 %v23946_v62, %v10389_v8  ;;  %v16208_v63 = vpop.f32.mrf.mxu0  ;;  %v16784_v57 = vpop.f32.mrf.mxu1  ;;  %v23957_v8 = vld [vmem:[#allocation523_spill] sm:$0xff] }
 0x53b   :  { %13306 = vst.msk [vmem:[%s22908_s3 + $0x444] sm:$0xf] %vm13032_vm1, %v15041_v10  ;;  %v15046_v45 = vpack.c.bf16 %v11870_v60, %v11870_v60  ;;  %v11868_v27 = vmax.f32 %v11580_v61, 0.0  ;;  %v10715_v42 = vmax.f32 %v23947_v33, %v16208_v63  ;;  %v11003_v12 = vmax.f32 %v23948_v43, %v16784_v57  ;;  %v23958_v60 = vld [vmem:[#allocation524_spill] sm:$0xff]  ;;  %v23959_v57 = vld [vmem:[#allocation525_spill] sm:$0xff] }
 0x53c   :  { %v11583_v13 = vadd.f32 %v22593_v51, %v11288_v52  ;;  %v11286_v53 = vmax.f32 %v10710_v5, %v10998_v4  ;;  %v8098_v30 = vpop.f32.mrf.mxu0  ;;  %v10402_v0 = vpop.f32.mrf.mxu1 }
 0x53d   :  { %13311 = vst.msk [vmem:[%s22908_s3 + $0x458] sm:$0xf] %vm13032_vm1, %v15046_v45  ;;  %v15044_v21 = vpack.c.bf16 %v11868_v27, %v11868_v27  ;;  %v11291_v54 = vmax.f32 %v10715_v42, %v11003_v12  ;;  %v10713_v55 = vmax.f32 %v23949_v26, %v8098_v30  ;;  %v11001_v31 = vmax.f32 %v23950_v14, %v10402_v0  ;;  %v23960_v27 = vld [vmem:[#allocation526_spill] sm:$0xff]  ;;  %v23961_v0 = vld [vmem:[#allocation527_spill] sm:$0xff] }
 0x53e   :  { %v11871_v34 = vmax.f32 %v11583_v13, 0.0  ;;  %v11581_v16 = vadd.f32 %v22593_v51, %v11286_v53  ;;  %v16209_v1 = vpop.f32.mrf.mxu0  ;;  %v16785_v35 = vpop.f32.mrf.mxu1 }
 0x53f   :  { %13309 = vst.msk [vmem:[%s22908_s3 + $0x450] sm:$0xf] %vm13032_vm1, %v15044_v21  ;;  %v11586_v44 = vadd.f32 %v22593_v51, %v11291_v54  ;;  %v11289_v2 = vmax.f32 %v10713_v55, %v11001_v31  ;;  %v10716_v46 = vmax.f32 %v23951_v20, %v16209_v1  ;;  %v11004_v15 = vmax.f32 %v23952_v3, %v16785_v35  ;;  %v23962_v54 = vld [vmem:[#allocation528_spill] sm:$0xff] }
 0x540   :  { %v15047_v37 = vpack.c.bf16 %v11871_v34, %v11871_v34  ;;  %v11869_v18 = vmax.f32 %v11581_v16, 0.0  ;;  %v8101_v47 = vpop.f32.mrf.mxu0  ;;  %v10405_v9 = vpop.f32.mrf.mxu1 }
 0x541   :  { %v11874_v17 = vmax.f32 %v11586_v44, 0.0  ;;  %v11584_v28 = vadd.f32 %v22593_v51, %v11289_v2  ;;  %v11292_v19 = vmax.f32 %v10716_v46, %v11004_v15  ;;  %v10714_v39 = vmax.f32 %v23953_v38, %v8101_v47 }
 0x542   :  { %13312 = vst.msk [vmem:[%s22908_s3 + $0x45c] sm:$0xf] %vm13032_vm1, %v15047_v37  ;;  %v15045_v58 = vpack.c.bf16 %v11869_v18, %v11869_v18  ;;  %v11002_v36 = vmax.f32 %v23954_v59, %v10405_v9  ;;  %v16212_v7 = vpop.f32.mrf.mxu0  ;;  %v16788_v22 = vpop.f32.mrf.mxu1 }
 0x543   :  { %v15050_v23 = vpack.c.bf16 %v11874_v17, %v11874_v17  ;;  %v11872_v40 = vmax.f32 %v11584_v28, 0.0  ;;  %v11587_v56 = vadd.f32 %v22593_v51, %v11292_v19  ;;  %v10719_v29 = vmax.f32 %v23955_v50, %v16212_v7 }
 0x544   :  { %13310 = vst.msk [vmem:[%s22908_s3 + $0x454] sm:$0xf] %vm13032_vm1, %v15045_v58  ;;  %v11290_v6 = vmax.f32 %v10714_v39, %v11002_v36  ;;  %v11007_v49 = vmax.f32 %v23956_v48, %v16788_v22  ;;  %v8114_v32 = vpop.f32.mrf.mxu0  ;;  %v10418_v24 = vpop.f32.mrf.mxu1 }
 0x545   :  { %13315 = vst.msk [vmem:[%s22908_s3 + $0x468] sm:$0xf] %vm13032_vm1, %v15050_v23  ;;  %v15048_v25 = vpack.c.bf16 %v11872_v40, %v11872_v40  ;;  %v11875_v41 = vmax.f32 %v11587_v56, 0.0  ;;  %v10717_v10 = vmax.f32 %v23957_v8, %v8114_v32  ;;  %v11005_v61 = vmax.f32 %v23958_v60, %v10418_v24 }
 0x546   :  { %v11585_v11 = vadd.f32 %v22593_v51, %v11290_v6  ;;  %v11295_v5 = vmax.f32 %v10719_v29, %v11007_v49  ;;  %v16213_v52 = vpop.f32.mrf.mxu0  ;;  %v16789_v62 = vpop.f32.mrf.mxu1 }
 0x547   :  { %13313 = vst.msk [vmem:[%s22908_s3 + $0x460] sm:$0xf] %vm13032_vm1, %v15048_v25  ;;  %v15051_v4 = vpack.c.bf16 %v11875_v41, %v11875_v41  ;;  %v11293_v63 = vmax.f32 %v10717_v10, %v11005_v61  ;;  %v10720_v45 = vmax.f32 %v23959_v57, %v16213_v52  ;;  %v11008_v33 = vmax.f32 %v23960_v27, %v16789_v62 }
 0x548   :  { %v11873_v42 = vmax.f32 %v11585_v11, 0.0  ;;  %v11590_v43 = vadd.f32 %v22593_v51, %v11295_v5  ;;  %v8117_v12 = vpop.f32.mrf.mxu0  ;;  %v10421_v13 = vpop.f32.mrf.mxu1 }
 0x549   :  { %13316 = vst.msk [vmem:[%s22908_s3 + $0x46c] sm:$0xf] %vm13032_vm1, %v15051_v4  ;;  %v11588_v53 = vadd.f32 %v22593_v51, %v11293_v63  ;;  %v11296_v30 = vmax.f32 %v10720_v45, %v11008_v33  ;;  %v10718_v21 = vmax.f32 %v23961_v0, %v8117_v12  ;;  %v11006_v26 = vmax.f32 %v23962_v54, %v10421_v13 }
 0x54a   :  { %v15049_v55 = vpack.c.bf16 %v11873_v42, %v11873_v42  ;;  %v11878_v14 = vmax.f32 %v11590_v43, 0.0 }
 0x54b   :  { %v11876_v31 = vmax.f32 %v11588_v53, 0.0  ;;  %v11591_v34 = vadd.f32 %v22593_v51, %v11296_v30  ;;  %v11294_v16 = vmax.f32 %v10718_v21, %v11006_v26 }
 0x54c   :  { %13314 = vst.msk [vmem:[%s22908_s3 + $0x464] sm:$0xf] %vm13032_vm1, %v15049_v55  ;;  %v15054_v1 = vpack.c.bf16 %v11878_v14, %v11878_v14 }
 0x54d   :  { %v15052_v35 = vpack.c.bf16 %v11876_v31, %v11876_v31  ;;  %v11879_v44 = vmax.f32 %v11591_v34, 0.0  ;;  %v11589_v2 = vadd.f32 %v22593_v51, %v11294_v16 }
 0x54e   :  { %13319 = vst.msk [vmem:[%s22908_s3 + $0x478] sm:$0xf] %vm13032_vm1, %v15054_v1 }
 0x54f   :  { %13317 = vst.msk [vmem:[%s22908_s3 + $0x470] sm:$0xf] %vm13032_vm1, %v15052_v35  ;;  %v15055_v20 = vpack.c.bf16 %v11879_v44, %v11879_v44  ;;  %v11877_v46 = vmax.f32 %v11589_v2, 0.0 }
 0x551   :  { %13320 = vst.msk [vmem:[%s22908_s3 + $0x47c] sm:$0xf] %vm13032_vm1, %v15055_v20  ;;  %v15053_v3 = vpack.c.bf16 %v11877_v46, %v11877_v46 }
 0x553   :  { %13318 = vst.msk [vmem:[%s22908_s3 + $0x474] sm:$0xf] %vm13032_vm1, %v15053_v3 }

// kernel: net_forward.3
= control target key start
LH: loop header
LB: loop body
LE: loop exit
PB: predicated region body
PF: predicated region fallthrough
CT: control target
= control target key end

     0   :  { %v4895_v0 = vmov 0   ;;  %vm4897_vm0 = vmmov 0   ;;  %s6330_s1 = inlined_call_operand.vmem [shape: bf16[256,128], index: 1, kind: input, shape index: {}]   ;;  %s6331_s0 = inlined_call_operand.vmem [shape: bf16[4,16,16,256], index: 0, kind: input, shape index: {}]   ;;  %s6332_s3 = inlined_call_operand.vmem [shape: bf16[16,128,128], index: 3, kind: input, shape index: {}]   ;;  %s6333_s2 = inlined_call_operand.vmem [shape: f32[1,128], index: 2, kind: input, shape index: {}]   ;;  %s6334_s5 = inlined_call_operand.vmem [shape: bf16[128,128], index: 5, kind: input, shape index: {}]   ;;  %s6335_s4 = inlined_call_operand.vmem [shape: f32[1,128], index: 4, kind: input, shape index: {}]   ;;  %s6336_s6 = inlined_call_operand.vmem [shape: f32[1,128], index: 6, kind: input, shape index: {}]   ;;  %s6337_s7 = inlined_call_operand.vmem [shape: f32[16,128], index: 7, kind: output, shape index: {}]  }
   0x1   :  { %923 = vmatprep.subr.bf16.mxu0 %v4895_v0  ;;  %v4543_v1 = vld [vmem:[%s6330_s1 + $0x38] sm:$0xff]   ;;  %v4544_v2 = vld [vmem:[%s6330_s1 + $0x30] sm:$0xff]   ;;  %v4545_v3 = vld [vmem:[%s6330_s1 + $0x28] sm:$0xff]  }
   0x2   :  { %924 = vmatpush1.bf16.msra.mxu0 %v4543_v1  ;;  %v4546_v4 = vld [vmem:[%s6330_s1 + $0x20] sm:$0xff]   ;;  %v4547_v5 = vld [vmem:[%s6330_s1 + $0x18] sm:$0xff]   ;;  %v4548_v7 = vld [vmem:[%s6330_s1 + $0x10] sm:$0xff]  }
   0x3   :  { %925 = vmatprep.subr.bf16.mxu0 %v4895_v0  ;;  %v4561_v6 = vld [vmem:[%s6331_s0 + $0x4] ss:$8 sps:$4 sm:$0xff]   ;;  %v4551_v10 = vld [vmem:[%s6330_s1 + $0x78] sm:$0xff]   ;;  %v4552_v11 = vld [vmem:[%s6330_s1 + $0x70] sm:$0xff]  }
   0x4   :  { %955 = vmatprep.mubr.bf16.mxu0 %v4561_v6  ;;  %v4549_v8 = vld [vmem:[%s6330_s1 + $0x8] sm:$0xff]   ;;  %v4550_v9 = vld [vmem:[%s6330_s1] sm:$0xff]   ;;  %v4555_v14 = vld [vmem:[%s6330_s1 + $0x58] sm:$0xff]  }
   0x5   :  { %v4553_v12 = vld [vmem:[%s6330_s1 + $0x68] sm:$0xff]   ;;  %v4554_v13 = vld [vmem:[%s6330_s1 + $0x60] sm:$0xff]   ;;  %v4556_v15 = vld [vmem:[%s6330_s1 + $0x50] sm:$0xff]  }
   0x6   :  { %926 = vmatpush1.bf16.msra.mxu0 %v4544_v2  ;;  %v4557_v16 = vld [vmem:[%s6330_s1 + $0x48] sm:$0xff]   ;;  %v4558_v17 = vld [vmem:[%s6330_s1 + $0x40] sm:$0xff]   ;;  %v4562_v19 = vld [vmem:[%s6331_s0 + $0x14] ss:$8 sps:$4 sm:$0xff]  }
   0x7   :  { %927 = vmatprep.subr.bf16.mxu0 %v4895_v0  ;;  %v4559_v18 = vld [vmem:[%s6331_s0] ss:$8 sps:$4 sm:$0xff]   ;;  %v4564_v20 = vld [vmem:[%s6331_s0 + $0x10] ss:$8 sps:$4 sm:$0xff]   ;;  %v4565_v21 = vld [vmem:[%s6331_s0 + $0x24] ss:$8 sps:$4 sm:$0xff]  }
   0x8   :  { %v4567_v22 = vld [vmem:[%s6331_s0 + $0x20] ss:$8 sps:$4 sm:$0xff]   ;;  %v4568_v23 = vld [vmem:[%s6331_s0 + $0x34] ss:$8 sps:$4 sm:$0xff]   ;;  %v4570_v24 = vld [vmem:[%s6331_s0 + $0x30] ss:$8 sps:$4 sm:$0xff]  }
   0x9   :  { %v4571_v25 = vld [vmem:[%s6331_s0 + $0x44] ss:$8 sps:$4 sm:$0xff]   ;;  %v4573_v26 = vld [vmem:[%s6331_s0 + $0x40] ss:$8 sps:$4 sm:$0xff]   ;;  %v4574_v27 = vld [vmem:[%s6331_s0 + $0x54] ss:$8 sps:$4 sm:$0xff]  }
   0xa   :  { %928 = vmatpush1.bf16.msra.mxu0 %v4545_v3  ;;  %v4576_v28 = vld [vmem:[%s6331_s0 + $0x50] ss:$8 sps:$4 sm:$0xff]   ;;  %v4577_v29 = vld [vmem:[%s6331_s0 + $0x64] ss:$8 sps:$4 sm:$0xff]   ;;  %v4579_v30 = vld [vmem:[%s6331_s0 + $0x60] ss:$8 sps:$4 sm:$0xff]  }
   0xb   :  { %929 = vmatprep.subr.bf16.mxu0 %v4895_v0  ;;  %v4580_v31 = vld [vmem:[%s6331_s0 + $0x74] ss:$8 sps:$4 sm:$0xff]   ;;  %v4582_v32 = vld [vmem:[%s6331_s0 + $0x70] ss:$8 sps:$4 sm:$0xff]   ;;  %v4583_v33 = vld [vmem:[%s6331_s0 + $0x84] ss:$8 sps:$4 sm:$0xff]  }
   0xc   :  { %v4585_v34 = vld [vmem:[%s6331_s0 + $0x80] ss:$8 sps:$4 sm:$0xff]   ;;  %v4586_v35 = vld [vmem:[%s6331_s0 + $0x94] ss:$8 sps:$4 sm:$0xff]   ;;  %v4588_v36 = vld [vmem:[%s6331_s0 + $0x90] ss:$8 sps:$4 sm:$0xff]  }
   0xd   :  { %v4589_v37 = vld [vmem:[%s6331_s0 + $0xa4] ss:$8 sps:$4 sm:$0xff]   ;;  %v4591_v38 = vld [vmem:[%s6331_s0 + $0xa0] ss:$8 sps:$4 sm:$0xff]   ;;  %v4592_v39 = vld [vmem:[%s6331_s0 + $0xb4] ss:$8 sps:$4 sm:$0xff]  }
   0xe   :  { %930 = vmatpush1.bf16.msra.mxu0 %v4546_v4  ;;  %v4594_v40 = vld [vmem:[%s6331_s0 + $0xb0] ss:$8 sps:$4 sm:$0xff]   ;;  %v4595_v41 = vld [vmem:[%s6331_s0 + $0xc4] ss:$8 sps:$4 sm:$0xff]   ;;  %v4597_v42 = vld [vmem:[%s6331_s0 + $0xc0] ss:$8 sps:$4 sm:$0xff]  }
   0xf   :  { %931 = vmatprep.subr.bf16.mxu0 %v4895_v0  ;;  %v4598_v43 = vld [vmem:[%s6331_s0 + $0xd4] ss:$8 sps:$4 sm:$0xff]   ;;  %v4600_v44 = vld [vmem:[%s6331_s0 + $0xd0] ss:$8 sps:$4 sm:$0xff]   ;;  %v4601_v45 = vld [vmem:[%s6331_s0 + $0xe4] ss:$8 sps:$4 sm:$0xff]  }
  0x10   :  { %v4603_v46 = vld [vmem:[%s6331_s0 + $0xe0] ss:$8 sps:$4 sm:$0xff]   ;;  %v4604_v47 = vld [vmem:[%s6331_s0 + $0xf4] ss:$8 sps:$4 sm:$0xff]   ;;  %v4606_v48 = vld [vmem:[%s6331_s0 + $0xf0] ss:$8 sps:$4 sm:$0xff]  }
  0x11   :  { %v4607_v49 = vld [vmem:[%s6331_s0 + $0x104] ss:$8 sps:$4 sm:$0xff]   ;;  %v4609_v50 = vld [vmem:[%s6331_s0 + $0x100] ss:$8 sps:$4 sm:$0xff]   ;;  %v4610_v51 = vld [vmem:[%s6331_s0 + $0x114] ss:$8 sps:$4 sm:$0xff]  }
  0x12   :  { %932 = vmatpush1.bf16.msra.mxu0 %v4547_v5  ;;  %v4612_v52 = vld [vmem:[%s6331_s0 + $0x110] ss:$8 sps:$4 sm:$0xff]   ;;  %v4613_v53 = vld [vmem:[%s6331_s0 + $0x124] ss:$8 sps:$4 sm:$0xff]   ;;  %v4615_v54 = vld [vmem:[%s6331_s0 + $0x120] ss:$8 sps:$4 sm:$0xff]  }
  0x13   :  { %933 = vmatprep.subr.bf16.mxu0 %v4895_v0  ;;  %v4616_v55 = vld [vmem:[%s6331_s0 + $0x134] ss:$8 sps:$4 sm:$0xff]   ;;  %v4618_v56 = vld [vmem:[%s6331_s0 + $0x130] ss:$8 sps:$4 sm:$0xff]   ;;  %v4619_v57 = vld [vmem:[%s6331_s0 + $0x144] ss:$8 sps:$4 sm:$0xff]  }
  0x14   :  { %v4621_v58 = vld [vmem:[%s6331_s0 + $0x140] ss:$8 sps:$4 sm:$0xff]   ;;  %v4622_v59 = vld [vmem:[%s6331_s0 + $0x154] ss:$8 sps:$4 sm:$0xff]   ;;  %v4624_v60 = vld [vmem:[%s6331_s0 + $0x150] ss:$8 sps:$4 sm:$0xff]  }
  0x15   :  { %v4625_v61 = vld [vmem:[%s6331_s0 + $0x164] ss:$8 sps:$4 sm:$0xff]   ;;  %v4627_v62 = vld [vmem:[%s6331_s0 + $0x160] ss:$8 sps:$4 sm:$0xff]   ;;  %v4628_v63 = vld [vmem:[%s6331_s0 + $0x174] ss:$8 sps:$4 sm:$0xff]  }
  0x16   :  { %934 = vmatpush1.bf16.msra.mxu0 %v4548_v7  ;;  %v4631_v1 = vld [vmem:[%s6331_s0 + $0x184] ss:$8 sps:$4 sm:$0xff]   ;;  %v4633_v2 = vld [vmem:[%s6331_s0 + $0x180] ss:$8 sps:$4 sm:$0xff]   ;;  %v4634_v3 = vld [vmem:[%s6331_s0 + $0x194] ss:$8 sps:$4 sm:$0xff]  }
  0x17   :  { %935 = vmatprep.subr.bf16.mxu0 %v4895_v0  ;;  %v4636_v7 = vld [vmem:[%s6331_s0 + $0x190] ss:$8 sps:$4 sm:$0xff]  }
  0x1a   :  { %936 = vmatpush1.bf16.msra.mxu0 %v4549_v8  ;;  %v4637_v8 = vld [vmem:[%s6331_s0 + $0x1a4] ss:$8 sps:$4 sm:$0xff]  }
  0x1b   :  { %937 = vmatprep.subr.bf16.mxu0 %v4895_v0 }
  0x1e   :  { %938 = vmatpush1.bf16.msra.mxu0 %v4550_v9 }
  0x1f   :  { %939 = vmatprep.subr.bf16.mxu0 %v4895_v0 }
  0x22   :  { %940 = vmatpush2.bf16.msra.mxu0 %v4551_v10 }
  0x23   :  { %941 = vmatprep.subr.bf16.mxu0 %v4895_v0 }
  0x26   :  { %942 = vmatpush2.bf16.msra.mxu0 %v4552_v11 }
  0x27   :  { %943 = vmatprep.subr.bf16.mxu0 %v4895_v0 }
  0x2a   :  { %944 = vmatpush2.bf16.msra.mxu0 %v4553_v12 }
  0x2b   :  { %945 = vmatprep.subr.bf16.mxu0 %v4895_v0 }
  0x2e   :  { %946 = vmatpush2.bf16.msra.mxu0 %v4554_v13  ;;  %v4639_v13 = vld [vmem:[%s6331_s0 + $0x1a0] ss:$8 sps:$4 sm:$0xff]  }
  0x2f   :  { %947 = vmatprep.subr.bf16.mxu0 %v4895_v0 }
  0x32   :  { %948 = vmatpush2.bf16.msra.mxu0 %v4555_v14  ;;  %v4640_v14 = vld [vmem:[%s6331_s0 + $0x1b4] ss:$8 sps:$4 sm:$0xff]  }
  0x33   :  { %949 = vmatprep.subr.bf16.mxu0 %v4895_v0 }
  0x36   :  { %950 = vmatpush2.bf16.msra.mxu0 %v4556_v15 }
  0x37   :  { %951 = vmatprep.subr.bf16.mxu0 %v4895_v0 }
  0x3a   :  { %952 = vmatpush2.bf16.msra.mxu0 %v4557_v16 }
  0x3b   :  { %953 = vmatprep.subr.bf16.mxu0 %v4895_v0  ;;  %v4630_v0 = vld [vmem:[%s6331_s0 + $0x170] ss:$8 sps:$4 sm:$0xff]  }
  0x3e   :  { %954 = vmatpush2.bf16.msra.mxu0 %v4558_v17 }
  0x41   :  { %956 = vmatmul.mubr.bf16.vlgmr.msra.gmra.mxu0 %v4559_v18 }
  0x42   :  { %963 = vmatprep.mubr.bf16.mxu0 %v4562_v19  ;;  %v4642_v19 = vld [vmem:[%s6331_s0 + $0x1b0] ss:$8 sps:$4 sm:$0xff]  }
  0x49   :  { %964 = vmatmul.mubr.bf16.gmra.mxu0 %v4564_v20  ;;  %v4645_v20 = vld [vmem:[%s6331_s0 + $0x1c4] ss:$8 sps:$4 sm:$0xff]  }
  0x4a   :  { %971 = vmatprep.mubr.bf16.mxu0 %v4565_v21 }
  0x51   :  { %972 = vmatmul.mubr.bf16.gmra.mxu0 %v4567_v22 }
  0x52   :  { %979 = vmatprep.mubr.bf16.mxu0 %v4568_v23 }
  0x59   :  { %980 = vmatmul.mubr.bf16.gmra.mxu0 %v4570_v24 }
  0x5a   :  { %987 = vmatprep.mubr.bf16.mxu0 %v4571_v25  ;;  %v4643_v25 = vld [vmem:[%s6331_s0 + $0x1c0] ss:$8 sps:$4 sm:$0xff]  }
  0x61   :  { %988 = vmatmul.mubr.bf16.gmra.mxu0 %v4573_v26  ;;  %v4648_v26 = vld [vmem:[%s6331_s0 + $0x1d4] ss:$8 sps:$4 sm:$0xff]  }
  0x62   :  { %995 = vmatprep.mubr.bf16.mxu0 %v4574_v27 }
  0x69   :  { %996 = vmatmul.mubr.bf16.gmra.mxu0 %v4576_v28 }
  0x6a   :  { %1003 = vmatprep.mubr.bf16.mxu0 %v4577_v29 }
  0x71   :  { %1004 = vmatmul.mubr.bf16.gmra.mxu0 %v4579_v30 }
  0x72   :  { %1011 = vmatprep.mubr.bf16.mxu0 %v4580_v31  ;;  %v4646_v31 = vld [vmem:[%s6331_s0 + $0x1d0] ss:$8 sps:$4 sm:$0xff]  }
  0x79   :  { %1012 = vmatmul.mubr.bf16.gmra.mxu0 %v4582_v32  ;;  %v4651_v32 = vld [vmem:[%s6331_s0 + $0x1e4] ss:$8 sps:$4 sm:$0xff]  }
  0x7a   :  { %1019 = vmatprep.mubr.bf16.mxu0 %v4583_v33 }
  0x81   :  { %1020 = vmatmul.mubr.bf16.gmra.mxu0 %v4585_v34 }
  0x82   :  { %1027 = vmatprep.mubr.bf16.mxu0 %v4586_v35 }
  0x89   :  { %1028 = vmatmul.mubr.bf16.gmra.mxu0 %v4588_v36 }
  0x8a   :  { %1035 = vmatprep.mubr.bf16.mxu0 %v4589_v37  ;;  %v4649_v37 = vld [vmem:[%s6331_s0 + $0x1e0] ss:$8 sps:$4 sm:$0xff]  }
  0x91   :  { %1036 = vmatmul.mubr.bf16.gmra.mxu0 %v4591_v38  ;;  %v4654_v38 = vld [vmem:[%s6331_s0 + $0x1f4] ss:$8 sps:$4 sm:$0xff]  }
  0x92   :  { %1043 = vmatprep.mubr.bf16.mxu0 %v4592_v39 }
  0x99   :  { %1044 = vmatmul.mubr.bf16.gmra.mxu0 %v4594_v40 }
  0x9a   :  { %1051 = vmatprep.mubr.bf16.mxu0 %v4595_v41 }
  0xa1   :  { %1052 = vmatmul.mubr.bf16.gmra.mxu0 %v4597_v42 }
  0xa2   :  { %1059 = vmatprep.mubr.bf16.mxu0 %v4598_v43  ;;  %v4652_v43 = vld [vmem:[%s6331_s0 + $0x1f0] ss:$8 sps:$4 sm:$0xff]  }
  0xa9   :  { %1060 = vmatmul.mubr.bf16.gmra.mxu0 %v4600_v44  ;;  %v4657_v44 = vld [vmem:[%s6331_s0 + $0x204] ss:$8 sps:$4 sm:$0xff]  }
  0xaa   :  { %1067 = vmatprep.mubr.bf16.mxu0 %v4601_v45 }
  0xb1   :  { %1068 = vmatmul.mubr.bf16.gmra.mxu0 %v4603_v46 }
  0xb2   :  { %1075 = vmatprep.mubr.bf16.mxu0 %v4604_v47 }
  0xb9   :  { %1076 = vmatmul.mubr.bf16.gmra.mxu0 %v4606_v48 }
  0xba   :  { %1083 = vmatprep.mubr.bf16.mxu0 %v4607_v49  ;;  %v4655_v49 = vld [vmem:[%s6331_s0 + $0x200] ss:$8 sps:$4 sm:$0xff]  }
  0xc1   :  { %1084 = vmatmul.mubr.bf16.gmra.mxu0 %v4609_v50  ;;  %v4660_v50 = vld [vmem:[%s6331_s0 + $0x214] ss:$8 sps:$4 sm:$0xff]  }
  0xc2   :  { %1091 = vmatprep.mubr.bf16.mxu0 %v4610_v51 }
  0xc9   :  { %1092 = vmatmul.mubr.bf16.gmra.mxu0 %v4612_v52 }
  0xca   :  { %1099 = vmatprep.mubr.bf16.mxu0 %v4613_v53 }
  0xd1   :  { %1100 = vmatmul.mubr.bf16.gmra.mxu0 %v4615_v54 }
  0xd2   :  { %1107 = vmatprep.mubr.bf16.mxu0 %v4616_v55  ;;  %v4658_v55 = vld [vmem:[%s6331_s0 + $0x210] ss:$8 sps:$4 sm:$0xff]  }
  0xd9   :  { %1108 = vmatmul.mubr.bf16.gmra.mxu0 %v4618_v56  ;;  %v4663_v56 = vld [vmem:[%s6331_s0 + $0x224] ss:$8 sps:$4 sm:$0xff]  }
  0xda   :  { %1115 = vmatprep.mubr.bf16.mxu0 %v4619_v57 }
  0xe1   :  { %1116 = vmatmul.mubr.bf16.gmra.mxu0 %v4621_v58 }
  0xe2   :  { %1123 = vmatprep.mubr.bf16.mxu0 %v4622_v59 }
  0xe9   :  { %1124 = vmatmul.mubr.bf16.gmra.mxu0 %v4624_v60 }
  0xea   :  { %1131 = vmatprep.mubr.bf16.mxu0 %v4625_v61  ;;  %v4661_v61 = vld [vmem:[%s6331_s0 + $0x220] ss:$8 sps:$4 sm:$0xff]  }
  0xf1   :  { %1132 = vmatmul.mubr.bf16.gmra.mxu0 %v4627_v62  ;;  %v4666_v62 = vld [vmem:[%s6331_s0 + $0x234] ss:$8 sps:$4 sm:$0xff]  }
  0xf2   :  { %1139 = vmatprep.mubr.bf16.mxu0 %v4628_v63 }
  0xf9   :  { %1140 = vmatmul.mubr.bf16.gmra.mxu0 %v4630_v0 }
  0xfa   :  { %1147 = vmatprep.mubr.bf16.mxu0 %v4631_v1 }
 0x101   :  { %v5139_v4 = vpop.f32.mrf.mxu0  ;;  %1148 = vmatmul.mubr.bf16.gmra.mxu0 %v4633_v2 }
 0x102   :  { %1155 = vmatprep.mubr.bf16.mxu0 %v4634_v3  ;;  %v4664_v3 = vld [vmem:[%s6331_s0 + $0x230] ss:$8 sps:$4 sm:$0xff]  }
 0x103   :  { %v959_v5 = vpop.f32.mrf.mxu0 }
 0x104   :  { %v4669_v5 = vld [vmem:[%s6331_s0 + $0x244] ss:$8 sps:$4 sm:$0xff]  }
 0x105   :  { %v5141_v6 = vpop.f32.mrf.mxu0 }
 0x107   :  { %v962_v9 = vpop.f32.mrf.mxu0 }
 0x109   :  { %v5149_v10 = vpop.f32.mrf.mxu0  ;;  %1156 = vmatmul.mubr.bf16.gmra.mxu0 %v4636_v7 }
 0x10a   :  { %1163 = vmatprep.mubr.bf16.mxu0 %v4637_v8 }
 0x10b   :  { %v967_v11 = vpop.f32.mrf.mxu0 }
 0x10d   :  { %v5151_v12 = vpop.f32.mrf.mxu0 }
 0x10f   :  { %v970_v15 = vpop.f32.mrf.mxu0 }
 0x111   :  { %v5159_v16 = vpop.f32.mrf.mxu0  ;;  %1164 = vmatmul.mubr.bf16.gmra.mxu0 %v4639_v13  ;;  %v4667_v13 = vld [vmem:[%s6331_s0 + $0x240] ss:$8 sps:$4 sm:$0xff]  }
 0x112   :  { %1171 = vmatprep.mubr.bf16.mxu0 %v4640_v14  ;;  %v4672_v14 = vld [vmem:[%s6331_s0 + $0x254] ss:$8 sps:$4 sm:$0xff]  }
 0x113   :  { %v975_v17 = vpop.f32.mrf.mxu0 }
 0x115   :  { %v5161_v18 = vpop.f32.mrf.mxu0 }
 0x117   :  { %v978_v21 = vpop.f32.mrf.mxu0 }
 0x118   :  { %v4670_v21 = vld [vmem:[%s6331_s0 + $0x250] ss:$8 sps:$4 sm:$0xff]  }
 0x119   :  { %v5169_v22 = vpop.f32.mrf.mxu0  ;;  %1172 = vmatmul.mubr.bf16.gmra.mxu0 %v4642_v19 }
 0x11a   :  { %1179 = vmatprep.mubr.bf16.mxu0 %v4645_v20 }
 0x11b   :  { %v983_v23 = vpop.f32.mrf.mxu0 }
 0x11c   :  { %v4675_v23 = vld [vmem:[%s6331_s0 + $0x264] ss:$8 sps:$4 sm:$0xff]  }
 0x11d   :  { %v5171_v24 = vpop.f32.mrf.mxu0 }
 0x11f   :  { %v986_v27 = vpop.f32.mrf.mxu0 }
 0x121   :  { %v5179_v28 = vpop.f32.mrf.mxu0  ;;  %1180 = vmatmul.mubr.bf16.gmra.mxu0 %v4643_v25 }
 0x122   :  { %1187 = vmatprep.mubr.bf16.mxu0 %v4648_v26 }
 0x123   :  { %v991_v29 = vpop.f32.mrf.mxu0 }
 0x125   :  { %v5181_v30 = vpop.f32.mrf.mxu0 }
 0x127   :  { %v994_v33 = vpop.f32.mrf.mxu0 }
 0x129   :  { %v5189_v34 = vpop.f32.mrf.mxu0  ;;  %1188 = vmatmul.mubr.bf16.gmra.mxu0 %v4646_v31  ;;  %v4673_v31 = vld [vmem:[%s6331_s0 + $0x260] ss:$8 sps:$4 sm:$0xff]  }
 0x12a   :  { %1195 = vmatprep.mubr.bf16.mxu0 %v4651_v32  ;;  %v4678_v32 = vld [vmem:[%s6331_s0 + $0x274] ss:$8 sps:$4 sm:$0xff]  }
 0x12b   :  { %v999_v35 = vpop.f32.mrf.mxu0 }
 0x12d   :  { %v5191_v36 = vpop.f32.mrf.mxu0 }
 0x12f   :  { %v1002_v39 = vpop.f32.mrf.mxu0 }
 0x130   :  { %v4676_v39 = vld [vmem:[%s6331_s0 + $0x270] ss:$8 sps:$4 sm:$0xff]  }
 0x131   :  { %v5199_v40 = vpop.f32.mrf.mxu0  ;;  %1196 = vmatmul.mubr.bf16.gmra.mxu0 %v4649_v37 }
 0x132   :  { %1203 = vmatprep.mubr.bf16.mxu0 %v4654_v38 }
 0x133   :  { %v1007_v41 = vpop.f32.mrf.mxu0 }
 0x134   :  { %v4681_v41 = vld [vmem:[%s6331_s0 + $0x284] ss:$8 sps:$4 sm:$0xff]  }
 0x135   :  { %v5201_v42 = vpop.f32.mrf.mxu0 }
 0x137   :  { %v1010_v45 = vpop.f32.mrf.mxu0 }
 0x139   :  { %v5209_v46 = vpop.f32.mrf.mxu0  ;;  %1204 = vmatmul.mubr.bf16.gmra.mxu0 %v4652_v43 }
 0x13a   :  { %1211 = vmatprep.mubr.bf16.mxu0 %v4657_v44 }
 0x13b   :  { %v1015_v47 = vpop.f32.mrf.mxu0 }
 0x13d   :  { %v5211_v48 = vpop.f32.mrf.mxu0 }
 0x13f   :  { %v1018_v51 = vpop.f32.mrf.mxu0 }
 0x141   :  { %v5219_v52 = vpop.f32.mrf.mxu0  ;;  %1212 = vmatmul.mubr.bf16.gmra.mxu0 %v4655_v49  ;;  %v4679_v49 = vld [vmem:[%s6331_s0 + $0x280] ss:$8 sps:$4 sm:$0xff]  }
 0x142   :  { %1219 = vmatprep.mubr.bf16.mxu0 %v4660_v50  ;;  %v4684_v50 = vld [vmem:[%s6331_s0 + $0x294] ss:$8 sps:$4 sm:$0xff]  }
 0x143   :  { %v1023_v53 = vpop.f32.mrf.mxu0 }
 0x145   :  { %v5221_v54 = vpop.f32.mrf.mxu0 }
 0x146   :  { %6340 = vst [vmem:[#allocation2_spill] sm:$0xff] %v5221_v54 }
 0x147   :  { %v1026_v57 = vpop.f32.mrf.mxu0 }
 0x148   :  { %v4682_v57 = vld [vmem:[%s6331_s0 + $0x290] ss:$8 sps:$4 sm:$0xff]  }
 0x149   :  { %v5229_v58 = vpop.f32.mrf.mxu0  ;;  %1220 = vmatmul.mubr.bf16.gmra.mxu0 %v4658_v55 }
 0x14a   :  { %6341 = vst [vmem:[#allocation3_spill] sm:$0xff] %v5229_v58  ;;  %1227 = vmatprep.mubr.bf16.mxu0 %v4663_v56 }
 0x14b   :  { %v1031_v59 = vpop.f32.mrf.mxu0 }
 0x14c   :  { %v4687_v59 = vld [vmem:[%s6331_s0 + $0x2a4] ss:$8 sps:$4 sm:$0xff]  }
 0x14d   :  { %v5231_v60 = vpop.f32.mrf.mxu0 }
 0x14e   :  { %6342 = vst [vmem:[#allocation4_spill] sm:$0xff] %v5231_v60 }
 0x14f   :  { %v1034_v63 = vpop.f32.mrf.mxu0 }
 0x151   :  { %v5239_v0 = vpop.f32.mrf.mxu0  ;;  %1228 = vmatmul.mubr.bf16.gmra.mxu0 %v4661_v61 }
 0x152   :  { %6343 = vst [vmem:[#allocation5_spill] sm:$0xff] %v5239_v0  ;;  %1235 = vmatprep.mubr.bf16.mxu0 %v4666_v62 }
 0x153   :  { %v1039_v1 = vpop.f32.mrf.mxu0 }
 0x155   :  { %v5241_v2 = vpop.f32.mrf.mxu0 }
 0x156   :  { %6344 = vst [vmem:[#allocation6_spill] sm:$0xff] %v5241_v2 }
 0x157   :  { %v1042_v7 = vpop.f32.mrf.mxu0 }
 0x159   :  { %v5249_v8 = vpop.f32.mrf.mxu0  ;;  %1236 = vmatmul.mubr.bf16.gmra.mxu0 %v4664_v3  ;;  %v4685_v3 = vld [vmem:[%s6331_s0 + $0x2a0] ss:$8 sps:$4 sm:$0xff]  }
 0x15a   :  { %6345 = vst [vmem:[#allocation7_spill] sm:$0xff] %v5249_v8  ;;  %1243 = vmatprep.mubr.bf16.mxu0 %v4669_v5  ;;  %v4690_v5 = vld [vmem:[%s6331_s0 + $0x2b4] ss:$8 sps:$4 sm:$0xff]  }
 0x15b   :  { %v1047_v9 = vpop.f32.mrf.mxu0 }
 0x15d   :  { %v5251_v11 = vpop.f32.mrf.mxu0 }
 0x15e   :  { %6346 = vst [vmem:[#allocation8_spill] sm:$0xff] %v5251_v11 }
 0x15f   :  { %v1050_v15 = vpop.f32.mrf.mxu0 }
 0x160   :  { %v4688_v15 = vld [vmem:[%s6331_s0 + $0x2b0] ss:$8 sps:$4 sm:$0xff]  }
 0x161   :  { %v5259_v17 = vpop.f32.mrf.mxu0  ;;  %1244 = vmatmul.mubr.bf16.gmra.mxu0 %v4667_v13 }
 0x162   :  { %6347 = vst [vmem:[#allocation9_spill] sm:$0xff] %v5259_v17  ;;  %1251 = vmatprep.mubr.bf16.mxu0 %v4672_v14 }
 0x163   :  { %v1055_v19 = vpop.f32.mrf.mxu0 }
 0x164   :  { %v4693_v19 = vld [vmem:[%s6331_s0 + $0x2c4] ss:$8 sps:$4 sm:$0xff]  }
 0x165   :  { %v5261_v20 = vpop.f32.mrf.mxu0 }
 0x166   :  { %6348 = vst [vmem:[#allocation10_spill] sm:$0xff] %v5261_v20  ;;  %v4736_v20 = vld [vmem:[%s6331_s0 + $0x3b0] ss:$8 sps:$4 sm:$0xff]  }
 0x167   :  { %v1058_v25 = vpop.f32.mrf.mxu0 }
 0x169   :  { %v5269_v26 = vpop.f32.mrf.mxu0  ;;  %1252 = vmatmul.mubr.bf16.gmra.mxu0 %v4670_v21 }
 0x16a   :  { %6349 = vst [vmem:[#allocation11_spill] sm:$0xff] %v5269_v26  ;;  %1259 = vmatprep.mubr.bf16.mxu0 %v4675_v23  ;;  %v4733_v26 = vld [vmem:[%s6331_s0 + $0x3a0] ss:$8 sps:$4 sm:$0xff]  }
 0x16b   :  { %v1063_v27 = vpop.f32.mrf.mxu0 }
 0x16d   :  { %v5271_v29 = vpop.f32.mrf.mxu0 }
 0x16e   :  { %6350 = vst [vmem:[#allocation12_spill] sm:$0xff] %v5271_v29 }
 0x16f   :  { %v1066_v33 = vpop.f32.mrf.mxu0 }
 0x171   :  { %v5279_v35 = vpop.f32.mrf.mxu0  ;;  %1260 = vmatmul.mubr.bf16.gmra.mxu0 %v4673_v31  ;;  %v4691_v31 = vld [vmem:[%s6331_s0 + $0x2c0] ss:$8 sps:$4 sm:$0xff]  }
 0x172   :  { %6351 = vst [vmem:[#allocation13_spill] sm:$0xff] %v5279_v35  ;;  %1267 = vmatprep.mubr.bf16.mxu0 %v4678_v32  ;;  %v4696_v32 = vld [vmem:[%s6331_s0 + $0x2d4] ss:$8 sps:$4 sm:$0xff]  }
 0x173   :  { %v1071_v37 = vpop.f32.mrf.mxu0 }
 0x175   :  { %v5281_v38 = vpop.f32.mrf.mxu0 }
 0x176   :  { %6352 = vst [vmem:[#allocation14_spill] sm:$0xff] %v5281_v38 }
 0x177   :  { %v1074_v43 = vpop.f32.mrf.mxu0 }
 0x178   :  { %v4694_v43 = vld [vmem:[%s6331_s0 + $0x2d0] ss:$8 sps:$4 sm:$0xff]  }
 0x179   :  { %v5289_v44 = vpop.f32.mrf.mxu0  ;;  %1268 = vmatmul.mubr.bf16.gmra.mxu0 %v4676_v39 }
 0x17a   :  { %6353 = vst [vmem:[#allocation15_spill] sm:$0xff] %v5289_v44  ;;  %1275 = vmatprep.mubr.bf16.mxu0 %v4681_v41 }
 0x17b   :  { %v1079_v45 = vpop.f32.mrf.mxu0 }
 0x17c   :  { %v4699_v45 = vld [vmem:[%s6331_s0 + $0x2e4] ss:$8 sps:$4 sm:$0xff]  }
 0x17d   :  { %v5291_v47 = vpop.f32.mrf.mxu0 }
 0x17e   :  { %6354 = vst [vmem:[#allocation16_spill] sm:$0xff] %v5291_v47 }
 0x17f   :  { %v1082_v51 = vpop.f32.mrf.mxu0 }
 0x181   :  { %v5299_v53 = vpop.f32.mrf.mxu0  ;;  %1276 = vmatmul.mubr.bf16.gmra.mxu0 %v4679_v49 }
 0x182   :  { %1283 = vmatprep.mubr.bf16.mxu0 %v4684_v50 }
 0x183   :  { %v1087_v55 = vpop.f32.mrf.mxu0 }
 0x185   :  { %v5301_v56 = vpop.f32.mrf.mxu0 }
 0x187   :  { %v1090_v61 = vpop.f32.mrf.mxu0 }
 0x189   :  { %v5309_v62 = vpop.f32.mrf.mxu0  ;;  %1284 = vmatmul.mubr.bf16.gmra.mxu0 %v4682_v57  ;;  %v4697_v57 = vld [vmem:[%s6331_s0 + $0x2e0] ss:$8 sps:$4 sm:$0xff]  }
 0x18a   :  { %1291 = vmatprep.mubr.bf16.mxu0 %v4687_v59  ;;  %v4702_v59 = vld [vmem:[%s6331_s0 + $0x2f4] ss:$8 sps:$4 sm:$0xff]  }
 0x18b   :  { %v1095_v63 = vpop.f32.mrf.mxu0 }
 0x18d   :  { %v5311_v1 = vpop.f32.mrf.mxu0 }
 0x18f   :  { %v1098_v7 = vpop.f32.mrf.mxu0 }
 0x190   :  { %v4700_v7 = vld [vmem:[%s6331_s0 + $0x2f0] ss:$8 sps:$4 sm:$0xff]  }
 0x191   :  { %v5319_v9 = vpop.f32.mrf.mxu0  ;;  %1292 = vmatmul.mubr.bf16.gmra.mxu0 %v4685_v3 }
 0x192   :  { %1299 = vmatprep.mubr.bf16.mxu0 %v4690_v5 }
 0x193   :  { %v1103_v13 = vpop.f32.mrf.mxu0 }
 0x194   :  { %v4705_v13 = vld [vmem:[%s6331_s0 + $0x304] ss:$8 sps:$4 sm:$0xff]  }
 0x195   :  { %v5321_v14 = vpop.f32.mrf.mxu0 }
 0x197   :  { %v1106_v21 = vpop.f32.mrf.mxu0 }
 0x199   :  { %v5329_v23 = vpop.f32.mrf.mxu0  ;;  %1300 = vmatmul.mubr.bf16.gmra.mxu0 %v4688_v15 }
 0x19a   :  { %1307 = vmatprep.mubr.bf16.mxu0 %v4693_v19 }
 0x19b   :  { %v1111_v25 = vpop.f32.mrf.mxu0 }
 0x19d   :  { %v5331_v27 = vpop.f32.mrf.mxu0 }
 0x19f   :  { %v1114_v33 = vpop.f32.mrf.mxu0 }
 0x1a1   :  { %v5339_v37 = vpop.f32.mrf.mxu0  ;;  %1308 = vmatmul.mubr.bf16.gmra.mxu0 %v4691_v31  ;;  %v4703_v31 = vld [vmem:[%s6331_s0 + $0x300] ss:$8 sps:$4 sm:$0xff]  }
 0x1a2   :  { %1315 = vmatprep.mubr.bf16.mxu0 %v4696_v32  ;;  %v4708_v32 = vld [vmem:[%s6331_s0 + $0x314] ss:$8 sps:$4 sm:$0xff]  }
 0x1a3   :  { %v1119_v39 = vpop.f32.mrf.mxu0 }
 0x1a5   :  { %v5341_v41 = vpop.f32.mrf.mxu0 }
 0x1a7   :  { %v1122_v49 = vpop.f32.mrf.mxu0 }
 0x1a8   :  { %v4706_v49 = vld [vmem:[%s6331_s0 + $0x310] ss:$8 sps:$4 sm:$0xff]  }
 0x1a9   :  { %v5349_v50 = vpop.f32.mrf.mxu0  ;;  %1316 = vmatmul.mubr.bf16.gmra.mxu0 %v4694_v43 }
 0x1aa   :  { %1323 = vmatprep.mubr.bf16.mxu0 %v4699_v45 }
 0x1ab   :  { %v1127_v51 = vpop.f32.mrf.mxu0 }
 0x1ac   :  { %v4711_v51 = vld [vmem:[%s6331_s0 + $0x324] ss:$8 sps:$4 sm:$0xff]  }
 0x1ad   :  { %v5351_v55 = vpop.f32.mrf.mxu0 }
 0x1af   :  { %v1130_v61 = vpop.f32.mrf.mxu0 }
 0x1b1   :  { %v5359_v63 = vpop.f32.mrf.mxu0  ;;  %1324 = vmatmul.mubr.bf16.gmra.mxu0 %v4697_v57 }
 0x1b2   :  { %1331 = vmatprep.mubr.bf16.mxu0 %v4702_v59 }
 0x1b3   :  { %v1135_v3 = vpop.f32.mrf.mxu0 }
 0x1b5   :  { %v5361_v5 = vpop.f32.mrf.mxu0 }
 0x1b7   :  { %v1138_v15 = vpop.f32.mrf.mxu0 }
 0x1b9   :  { %v5369_v19 = vpop.f32.mrf.mxu0  ;;  %1332 = vmatmul.mubr.bf16.gmra.mxu0 %v4700_v7  ;;  %v4709_v7 = vld [vmem:[%s6331_s0 + $0x320] ss:$8 sps:$4 sm:$0xff]  }
 0x1ba   :  { %1339 = vmatprep.mubr.bf16.mxu0 %v4705_v13  ;;  %v4714_v13 = vld [vmem:[%s6331_s0 + $0x334] ss:$8 sps:$4 sm:$0xff]  }
 0x1bb   :  { %v1143_v21 = vpop.f32.mrf.mxu0 }
 0x1bd   :  { %v5371_v25 = vpop.f32.mrf.mxu0 }
 0x1bf   :  { %v1146_v33 = vpop.f32.mrf.mxu0 }
 0x1c0   :  { %v4712_v33 = vld [vmem:[%s6331_s0 + $0x330] ss:$8 sps:$4 sm:$0xff]  }
 0x1c1   :  { %v5379_v39 = vpop.f32.mrf.mxu0  ;;  %1340 = vmatmul.mubr.bf16.gmra.mxu0 %v4703_v31 }
 0x1c2   :  { %1347 = vmatprep.mubr.bf16.mxu0 %v4708_v32 }
 0x1c3   :  { %v1151_v43 = vpop.f32.mrf.mxu0 }
 0x1c4   :  { %v4717_v43 = vld [vmem:[%s6331_s0 + $0x344] ss:$8 sps:$4 sm:$0xff]  }
 0x1c5   :  { %v5381_v45 = vpop.f32.mrf.mxu0 }
 0x1c6   :  { %6355 = vst [vmem:[#allocation17_spill] sm:$0xff] %v5381_v45 }
 0x1c7   :  { %v1154_v57 = vpop.f32.mrf.mxu0 }
 0x1c9   :  { %v5389_v59 = vpop.f32.mrf.mxu0  ;;  %1348 = vmatmul.mubr.bf16.gmra.mxu0 %v4706_v49 }
 0x1ca   :  { %6356 = vst [vmem:[#allocation18_spill] sm:$0xff] %v5389_v59  ;;  %1355 = vmatprep.mubr.bf16.mxu0 %v4711_v51 }
 0x1cb   :  { %v1159_v61 = vpop.f32.mrf.mxu0 }
 0x1cd   :  { %v5391_v3 = vpop.f32.mrf.mxu0 }
 0x1ce   :  { %6357 = vst [vmem:[#allocation19_spill] sm:$0xff] %v5391_v3 }
 0x1cf   :  { %v1162_v15 = vpop.f32.mrf.mxu0 }
 0x1d1   :  { %v5399_v21 = vpop.f32.mrf.mxu0  ;;  %1356 = vmatmul.mubr.bf16.gmra.mxu0 %v4709_v7  ;;  %v4715_v7 = vld [vmem:[%s6331_s0 + $0x340] ss:$8 sps:$4 sm:$0xff]  }
 0x1d2   :  { %6358 = vst [vmem:[#allocation20_spill] sm:$0xff] %v5399_v21  ;;  %1363 = vmatprep.mubr.bf16.mxu0 %v4714_v13  ;;  %v4720_v13 = vld [vmem:[%s6331_s0 + $0x354] ss:$8 sps:$4 sm:$0xff]  }
 0x1d3   :  { %v1167_v31 = vpop.f32.mrf.mxu0 }
 0x1d5   :  { %v5401_v32 = vpop.f32.mrf.mxu0 }
 0x1d6   :  { %6359 = vst [vmem:[#allocation21_spill] sm:$0xff] %v5401_v32 }
 0x1d7   :  { %v1170_v49 = vpop.f32.mrf.mxu0 }
 0x1d9   :  { %v5409_v51 = vpop.f32.mrf.mxu0  ;;  %1364 = vmatmul.mubr.bf16.gmra.mxu0 %v4712_v33  ;;  %v4718_v33 = vld [vmem:[%s6331_s0 + $0x350] ss:$8 sps:$4 sm:$0xff]  }
 0x1da   :  { %6360 = vst [vmem:[#allocation22_spill] sm:$0xff] %v5409_v51  ;;  %1371 = vmatprep.mubr.bf16.mxu0 %v4717_v43  ;;  %v4723_v43 = vld [vmem:[%s6331_s0 + $0x364] ss:$8 sps:$4 sm:$0xff]  }
 0x1db   :  { %v1175_v57 = vpop.f32.mrf.mxu0 }
 0x1dd   :  { %v5411_v61 = vpop.f32.mrf.mxu0 }
 0x1de   :  { %6361 = vst [vmem:[#allocation23_spill] sm:$0xff] %v5411_v61 }
 0x1df   :  { %v1178_v15 = vpop.f32.mrf.mxu0 }
 0x1e1   :  { %v5419_v31 = vpop.f32.mrf.mxu0  ;;  %1372 = vmatmul.mubr.bf16.gmra.mxu0 %v4715_v7  ;;  %v4721_v7 = vld [vmem:[%s6331_s0 + $0x360] ss:$8 sps:$4 sm:$0xff]  }
 0x1e2   :  { %6362 = vst [vmem:[#allocation24_spill] sm:$0xff] %v5419_v31  ;;  %1379 = vmatprep.mubr.bf16.mxu0 %v4720_v13  ;;  %v4726_v13 = vld [vmem:[%s6331_s0 + $0x374] ss:$8 sps:$4 sm:$0xff]  }
 0x1e3   :  { %v1183_v49 = vpop.f32.mrf.mxu0 }
 0x1e5   :  { %v5421_v47 = vpop.f32.mrf.mxu0 }
 0x1e6   :  { %6363 = vst [vmem:[#allocation25_spill] sm:$0xff] %v5421_v47  ;;  %v4739_v47 = vld [vmem:[%s6331_s0 + $0x3c0] ss:$8 sps:$4 sm:$0xff]  }
 0x1e7   :  { %v1186_v57 = vpop.f32.mrf.mxu0 }
 0x1e9   :  { %v5429_v44 = vpop.f32.mrf.mxu0  ;;  %1380 = vmatmul.mubr.bf16.gmra.mxu0 %v4718_v33  ;;  %v4724_v33 = vld [vmem:[%s6331_s0 + $0x370] ss:$8 sps:$4 sm:$0xff]  }
 0x1ea   :  { %6364 = vst [vmem:[#allocation26_spill] sm:$0xff] %v5429_v44  ;;  %1387 = vmatprep.mubr.bf16.mxu0 %v4723_v43  ;;  %v4729_v43 = vld [vmem:[%s6331_s0 + $0x384] ss:$8 sps:$4 sm:$0xff]  }
 0x1eb   :  { %v1191_v15 = vpop.f32.mrf.mxu0 }
 0x1ec   :  { %v4751_v15 = vld [vmem:[%s6332_s3 + $0x78] sm:$0xff]  }
 0x1ed   :  { %v5431_v38 = vpop.f32.mrf.mxu0 }
 0x1ee   :  { %6365 = vst [vmem:[#allocation27_spill] sm:$0xff] %v5431_v38  ;;  %v6338_v38 = vmov 0.0  }
 0x1ef   :  { %v1194_v49 = vpop.f32.mrf.mxu0  ;;  %4200 = vmatprep.subr.bf16.mxu1 %v6338_v38  ;;  %4216 = vmatprep.mubr.msk.bf16.mxu1 %vm4897_vm0, %v6338_v38 }
 0x1f0   :  { %4201 = vmatpush3.bf16.msra.mxu1 %v4751_v15 }
 0x1f1   :  { %v5439_v35 = vpop.f32.mrf.mxu0  ;;  %1388 = vmatmul.mubr.bf16.gmra.mxu0 %v4721_v7  ;;  %4202 = vmatprep.subr.bf16.mxu1 %v6338_v38 }
 0x1f2   :  { %6366 = vst [vmem:[#allocation28_spill] sm:$0xff] %v5439_v35  ;;  %1395 = vmatprep.mubr.bf16.mxu0 %v4726_v13  ;;  %v4752_v13 = vld [vmem:[%s6332_s3 + $0x70] sm:$0xff]  }
 0x1f3   :  { %v1199_v57 = vpop.f32.mrf.mxu0 }
 0x1f4   :  { %4203 = vmatpush3.bf16.msra.mxu1 %v4752_v13  ;;  %v4754_v13 = vld [vmem:[%s6332_s3 + $0x60] sm:$0xff]  }
 0x1f5   :  { %v5441_v29 = vpop.f32.mrf.mxu0  ;;  %4204 = vmatprep.subr.bf16.mxu1 %v6338_v38 }
 0x1f6   :  { %6367 = vst [vmem:[#allocation29_spill] sm:$0xff] %v5441_v29  ;;  %v4727_v29 = vld [vmem:[%s6331_s0 + $0x380] ss:$8 sps:$4 sm:$0xff]  }
 0x1f7   :  { %v1202_v49 = vpop.f32.mrf.mxu0 }
 0x1f8   :  { %v4732_v49 = vld [vmem:[%s6331_s0 + $0x394] ss:$8 sps:$4 sm:$0xff]  }
 0x1f9   :  { %v5453_v7 = vpop.f32.mrf.mxu0  ;;  %1396 = vmatmul.mubr.bf16.gmra.mxu0 %v4724_v33  ;;  %v4753_v33 = vld [vmem:[%s6332_s3 + $0x68] sm:$0xff]  }
 0x1fa   :  { %6368 = vst [vmem:[#allocation30_spill] sm:$0xff] %v5453_v7  ;;  %1403 = vmatprep.mubr.bf16.mxu0 %v4729_v43  ;;  %4205 = vmatpush3.bf16.msra.mxu1 %v4753_v33 }
 0x1fb   :  { %v1207_v57 = vpop.f32.mrf.mxu0  ;;  %4206 = vmatprep.subr.bf16.mxu1 %v6338_v38 }
 0x1fd   :  { %v5465_v15 = vpop.f32.mrf.mxu0 }
 0x1fe   :  { %6369 = vst [vmem:[#allocation31_spill] sm:$0xff] %v5465_v15  ;;  %v4730_v15 = vld [vmem:[%s6331_s0 + $0x390] ss:$8 sps:$4 sm:$0xff]   ;;  %4207 = vmatpush3.bf16.msra.mxu1 %v4754_v13 }
 0x1ff   :  { %v1210_v43 = vpop.f32.mrf.mxu0  ;;  %4208 = vmatprep.subr.bf16.mxu1 %v6338_v38  ;;  %v4756_v13 = vld [vmem:[%s6332_s3 + $0x50] sm:$0xff]  }
 0x200   :  { %v4735_v43 = vld [vmem:[%s6331_s0 + $0x3a4] ss:$8 sps:$4 sm:$0xff]  }
 0x201   :  { %v5471_v57 = vpop.f32.mrf.mxu0  ;;  %1404 = vmatmul.mubr.bf16.gmra.mxu0 %v4727_v29  ;;  %v4755_v29 = vld [vmem:[%s6332_s3 + $0x58] sm:$0xff]  }
 0x202   :  { %1411 = vmatprep.mubr.bf16.mxu0 %v4732_v49  ;;  %4209 = vmatpush3.bf16.msra.mxu1 %v4755_v29 }
 0x203   :  { %v1215_v7 = vpop.f32.mrf.mxu0  ;;  %4210 = vmatprep.subr.bf16.mxu1 %v6338_v38 }
 0x205   :  { %v5483_v33 = vpop.f32.mrf.mxu0 }
 0x206   :  { %4211 = vmatpush3.bf16.msra.mxu1 %v4756_v13  ;;  %v4758_v13 = vld [vmem:[%s6332_s3 + $0x40] sm:$0xff]  }
 0x207   :  { %v1218_v49 = vpop.f32.mrf.mxu0  ;;  %4212 = vmatprep.subr.bf16.mxu1 %v6338_v38 }
 0x208   :  { %v4738_v49 = vld [vmem:[%s6331_s0 + $0x3b4] ss:$8 sps:$4 sm:$0xff]  }
 0x209   :  { %v5489_v7 = vpop.f32.mrf.mxu0  ;;  %1412 = vmatmul.mubr.bf16.gmra.mxu0 %v4730_v15  ;;  %v4757_v15 = vld [vmem:[%s6332_s3 + $0x48] sm:$0xff]  }
 0x20a   :  { %1419 = vmatprep.mubr.bf16.mxu0 %v4735_v43  ;;  %4213 = vmatpush3.bf16.msra.mxu1 %v4757_v15 }
 0x20b   :  { %v1223_v35 = vpop.f32.mrf.mxu0  ;;  %4214 = vmatprep.subr.bf16.mxu1 %v6338_v38 }
 0x20d   :  { %v5501_v29 = vpop.f32.mrf.mxu0 }
 0x20e   :  { %4215 = vmatpush3.bf16.msra.mxu1 %v4758_v13  ;;  %v4744_v13 = vld [vmem:[%s6331_s0 + $0x3d4] ss:$8 sps:$4 sm:$0xff]  }
 0x20f   :  { %v1226_v43 = vpop.f32.mrf.mxu0  ;;  %4220 = vmatprep.subr.bf16.mxu1 %v6338_v38 }
 0x210   :  { %v4741_v43 = vld [vmem:[%s6331_s0 + $0x3c4] ss:$8 sps:$4 sm:$0xff]  }
 0x211   :  { %v5507_v35 = vpop.f32.mrf.mxu0  ;;  %1420 = vmatmul.mubr.bf16.gmra.mxu0 %v4733_v26 }
 0x212   :  { %1427 = vmatprep.mubr.bf16.mxu0 %v4738_v49 }
 0x213   :  { %v1231_v44 = vpop.f32.mrf.mxu0 }
 0x215   :  { %v5519_v15 = vpop.f32.mrf.mxu0 }
 0x217   :  { %v1234_v26 = vpop.f32.mrf.mxu0 }
 0x219   :  { %v5524_v49 = vpop.f32.mrf.mxu0  ;;  %1428 = vmatmul.mubr.bf16.gmra.mxu0 %v4736_v20  ;;  %v4742_v20 = vld [vmem:[%s6331_s0 + $0x3d0] ss:$8 sps:$4 sm:$0xff]  }
 0x21a   :  { %1435 = vmatprep.mubr.bf16.mxu0 %v4741_v43  ;;  %v4747_v43 = vld [vmem:[%s6331_s0 + $0x3e4] ss:$8 sps:$4 sm:$0xff]  }
 0x21b   :  { %v1239_v44 = vpop.f32.mrf.mxu0 }
 0x21d   :  { %v5532_v17 = vpop.f32.mrf.mxu0 }
 0x21f   :  { %v1242_v26 = vpop.f32.mrf.mxu0 }
 0x221   :  { %v5534_v31 = vpop.f32.mrf.mxu0  ;;  %1436 = vmatmul.mubr.bf16.gmra.mxu0 %v4739_v47  ;;  %v4750_v47 = vld [vmem:[%s6331_s0 + $0x3f4] ss:$8 sps:$4 sm:$0xff]  }
 0x222   :  { %1443 = vmatprep.mubr.bf16.mxu0 %v4744_v13 }
 0x223   :  { %v1247_v38 = vpop.f32.mrf.mxu0 }
 0x224   :  { %v4745_v38 = vld [vmem:[%s6331_s0 + $0x3e0] ss:$8 sps:$4 sm:$0xff]  }
 0x225   :  { %v5542_v44 = vpop.f32.mrf.mxu0 }
 0x227   :  { %v1250_v11 = vpop.f32.mrf.mxu0 }
 0x229   :  { %v5544_v61 = vpop.f32.mrf.mxu0  ;;  %1444 = vmatmul.mubr.bf16.gmra.mxu0 %v4742_v20  ;;  %v4748_v20 = vld [vmem:[%s6331_s0 + $0x3f0] ss:$8 sps:$4 sm:$0xff]  }
 0x22a   :  { %1451 = vmatprep.mubr.bf16.mxu0 %v4747_v43 }
 0x22b   :  { %v1255_v26 = vpop.f32.mrf.mxu0 }
 0x22d   :  { %v5552_v13 = vpop.f32.mrf.mxu0 }
 0x22f   :  { %v1258_v8 = vpop.f32.mrf.mxu0 }
 0x231   :  { %v5554_v51 = vpop.f32.mrf.mxu0  ;;  %1452 = vmatmul.mubr.bf16.gmra.mxu0 %v4745_v38 }
 0x232   :  { %1459 = vmatprep.mubr.bf16.mxu0 %v4750_v47 }
 0x233   :  { %v1263_v11 = vpop.f32.mrf.mxu0 }
 0x235   :  { %v5559_v43 = vpop.f32.mrf.mxu0 }
 0x237   :  { %v1266_v26 = vpop.f32.mrf.mxu0 }
 0x239   :  { %v5561_v2 = vpop.f32.mrf.mxu0  ;;  %1460 = vmatmul.mubr.bf16.gmra.mxu0 %v4748_v20 }
 0x23b   :  { %v1271_v32 = vpop.f32.mrf.mxu0 }
 0x23d   :  { %v5563_v0 = vpop.f32.mrf.mxu0 }
 0x23f   :  { %v1274_v21 = vpop.f32.mrf.mxu0 }
 0x241   :  { %v5565_v8 = vpop.f32.mrf.mxu0 }
 0x242   :  { %6370 = vst [vmem:[#allocation32_spill] sm:$0xff] %v5565_v8 }
 0x243   :  { %v1279_v60 = vpop.f32.mrf.mxu0 }
 0x245   :  { %v5567_v38 = vpop.f32.mrf.mxu0 }
 0x246   :  { %6371 = vst [vmem:[#allocation33_spill] sm:$0xff] %v5567_v38 }
 0x247   :  { %v1282_v47 = vpop.f32.mrf.mxu0 }
 0x249   :  { %v5569_v11 = vpop.f32.mrf.mxu0 }
 0x24a   :  { %6372 = vst [vmem:[#allocation34_spill] sm:$0xff] %v5569_v11 }
 0x24b   :  { %v1287_v3 = vpop.f32.mrf.mxu0 }
 0x24d   :  { %v5571_v58 = vpop.f32.mrf.mxu0 }
 0x24e   :  { %6373 = vst [vmem:[#allocation35_spill] sm:$0xff] %v5571_v58 }
 0x24f   :  { %v1290_v59 = vpop.f32.mrf.mxu0 }
 0x251   :  { %v5573_v26 = vpop.f32.mrf.mxu0 }
 0x252   :  { %6374 = vst [vmem:[#allocation36_spill] sm:$0xff] %v5573_v26 }
 0x253   :  { %v1295_v54 = vpop.f32.mrf.mxu0 }
 0x255   :  { %v5575_v20 = vpop.f32.mrf.mxu0 }
 0x256   :  { %6375 = vst [vmem:[#allocation37_spill] sm:$0xff] %v5575_v20 }
 0x257   :  { %v1298_v32 = vpop.f32.mrf.mxu0 }
 0x259   :  { %v5577_v45 = vpop.f32.mrf.mxu0 }
 0x25a   :  { %6376 = vst [vmem:[#allocation38_spill] sm:$0xff] %v5577_v45 }
 0x25b   :  { %v1303_v21 = vpop.f32.mrf.mxu0 }
 0x25d   :  { %v5579_v8 = vpop.f32.mrf.mxu0 }
 0x25e   :  { %6377 = vst [vmem:[#allocation39_spill] sm:$0xff] %v5579_v8 }
 0x25f   :  { %v1306_v60 = vpop.f32.mrf.mxu0 }
 0x261   :  { %v5581_v38 = vpop.f32.mrf.mxu0 }
 0x262   :  { %6378 = vst [vmem:[#allocation40_spill] sm:$0xff] %v5581_v38 }
 0x263   :  { %v1311_v47 = vpop.f32.mrf.mxu0 }
 0x265   :  { %v5583_v11 = vpop.f32.mrf.mxu0 }
 0x266   :  { %6379 = vst [vmem:[#allocation41_spill] sm:$0xff] %v5583_v11 }
 0x267   :  { %v1314_v3 = vpop.f32.mrf.mxu0 }
 0x268   :  { %v1468_v3 = vmax.f32 %v5139_v4, %v5299_v53  ;;  %v1470_v53 = vmax.f32 %v5149_v10, %v5309_v62 }
 0x269   :  { %v5585_v58 = vpop.f32.mrf.mxu0 }
 0x26a   :  { %6380 = vst [vmem:[#allocation42_spill] sm:$0xff] %v5585_v58 }
 0x26b   :  { %v1319_v59 = vpop.f32.mrf.mxu0 }
 0x26d   :  { %v5587_v26 = vpop.f32.mrf.mxu0 }
 0x26e   :  { %6381 = vst [vmem:[#allocation43_spill] sm:$0xff] %v5587_v26 }
 0x26f   :  { %v1322_v54 = vpop.f32.mrf.mxu0 }
 0x271   :  { %v5589_v20 = vpop.f32.mrf.mxu0 }
 0x272   :  { %6382 = vst [vmem:[#allocation44_spill] sm:$0xff] %v5589_v20 }
 0x273   :  { %v1327_v32 = vpop.f32.mrf.mxu0 }
 0x274   :  { %v5603_v32 = vld [vmem:[%s6333_s2] ss:$0 sm:$0xff] }
 0x275   :  { %v5591_v45 = vpop.f32.mrf.mxu0 }
 0x276   :  { %6383 = vst [vmem:[#allocation45_spill] sm:$0xff] %v5591_v45 }
 0x277   :  { %v1330_v21 = vpop.f32.mrf.mxu0 }
 0x279   :  { %v5593_v8 = vpop.f32.mrf.mxu0 }
 0x27a   :  { %6384 = vst [vmem:[#allocation46_spill] sm:$0xff] %v5593_v8 }
 0x27b   :  { %v1335_v60 = vpop.f32.mrf.mxu0 }
 0x27c   :  { %v1469_v60 = vmax.f32 %v5141_v6, %v5301_v56  ;;  %v1471_v6 = vmax.f32 %v5151_v12, %v5311_v1 }
 0x27d   :  { %v5595_v38 = vpop.f32.mrf.mxu0 }
 0x27e   :  { %6385 = vst [vmem:[#allocation47_spill] sm:$0xff] %v5595_v38 }
 0x27f   :  { %v1338_v47 = vpop.f32.mrf.mxu0 }
 0x281   :  { %v1341_v11 = vpop.f32.mrf.mxu0 }
 0x282   :  { %v1500_v59 = vmax.f32 %v5471_v57, %v1341_v11 }
 0x283   :  { %v1343_v26 = vpop.f32.mrf.mxu0 }
 0x284   :  { %v1532_v54 = vmax.f32 %v1468_v3, %v1500_v59 }
 0x285   :  { %v1344_v21 = vpop.f32.mrf.mxu0 }
 0x286   :  { %v1501_v38 = vmax.f32 %v5483_v33, %v1344_v21  ;;  %v1571_v8 = vadd.f32 %v5603_v32, %v1532_v54 }
 0x287   :  { %v1346_v47 = vpop.f32.mrf.mxu0 }
 0x288   :  { %v1533_v45 = vmax.f32 %v1469_v60, %v1501_v38  ;;  %v1603_v3 = vmax.f32 %v1571_v8, 0.0 }
 0x289   :  { %v1349_v4 = vpop.f32.mrf.mxu0 }
 0x28a   :  { %v1572_v57 = vadd.f32 %v5603_v32, %v1533_v45  ;;  %v1502_v11 = vmax.f32 %v5489_v7, %v1349_v4  ;;  %v1472_v45 = vmax.f32 %v5159_v16, %v5319_v9 }
 0x28b   :  { %v1351_v26 = vpop.f32.mrf.mxu0 }
 0x28c   :  { %v1604_v59 = vmax.f32 %v1572_v57, 0.0  ;;  %v1534_v20 = vmax.f32 %v1470_v53, %v1502_v11  ;;  %v4760_v57 = vld [vmem:[%s6332_s3 + $0x30] sm:$0xff]   ;;  %v6386_v11 = vmov 0.0  }
 0x28d   :  { %v1352_v58 = vpop.f32.mrf.mxu0 }
 0x28e   :  { %v5615_v56 = vpack.c.bf16 %v1604_v59, %v1603_v3  ;;  %v1503_v33 = vmax.f32 %v5501_v29, %v1352_v58  ;;  %v1573_v54 = vadd.f32 %v5603_v32, %v1534_v20  ;;  %v4759_v58 = vld [vmem:[%s6332_s3 + $0x38] sm:$0xff]   ;;  %v1473_v29 = vmax.f32 %v5161_v18, %v5321_v14 }
 0x28f   :  { %v1354_v38 = vpop.f32.mrf.mxu0  ;;  %v1474_v18 = vmax.f32 %v5169_v22, %v5329_v23 }
 0x290   :  { %v1535_v10 = vmax.f32 %v1471_v6, %v1503_v33  ;;  %v1605_v60 = vmax.f32 %v1573_v54, 0.0  ;;  %v4761_v38 = vld [vmem:[%s6332_s3 + $0x28] sm:$0xff]   ;;  %v1475_v54 = vmax.f32 %v5171_v24, %v5331_v27 }
 0x291   :  { %v1357_v62 = vpop.f32.mrf.mxu0 }
 0x292   :  { %v1574_v7 = vadd.f32 %v5603_v32, %v1535_v10  ;;  %v1504_v8 = vmax.f32 %v5507_v35, %v1357_v62 }
 0x293   :  { %v1359_v21 = vpop.f32.mrf.mxu0 }
 0x294   :  { %v1606_v47 = vmax.f32 %v1574_v7, 0.0  ;;  %v1536_v12 = vmax.f32 %v1472_v45, %v1504_v8  ;;  %v4762_v7 = vld [vmem:[%s6332_s3 + $0x20] sm:$0xff]   ;;  %v1476_v8 = vmax.f32 %v5179_v28, %v5339_v37 }
 0x295   :  { %v1360_v1 = vpop.f32.mrf.mxu0 }
 0x296   :  { %v1505_v20 = vmax.f32 %v5519_v15, %v1360_v1  ;;  %v1636_v4 = vpack.c.bf16 %v1606_v47, %v1605_v60  ;;  %v1575_v9 = vadd.f32 %v5603_v32, %v1536_v12  ;;  %v4763_v1 = vld [vmem:[%s6332_s3 + $0x18] sm:$0xff]  }
 0x297   :  { %v1362_v16 = vpop.f32.mrf.mxu0 }
 0x298   :  { %v1537_v53 = vmax.f32 %v1473_v29, %v1505_v20  ;;  %4217 = vmatmul.mubr.bf16.vlgmr.msra.gmra.mxu1 %v1636_v4  ;;  %v1607_v3 = vmax.f32 %v1575_v9, 0.0  ;;  %v4764_v16 = vld [vmem:[%s6332_s3 + $0x10] sm:$0xff]   ;;  %v1478_v9 = vmax.f32 %v5189_v34, %v5349_v50 }
 0x299   :  { %4221 = vmatpush3.bf16.msra.mxu1 %v4759_v58  ;;  %v1365_v35 = vpop.f32.mrf.mxu0  ;;  %4236 = vmatprep.mubr.msk.bf16.mxu1 %vm4897_vm0, %v6386_v11  ;;  %v1477_v58 = vmax.f32 %v5181_v30, %v5341_v41 }
 0x29a   :  { %v1576_v14 = vadd.f32 %v5603_v32, %v1537_v53  ;;  %v1506_v15 = vmax.f32 %v5524_v49, %v1365_v35  ;;  %4222 = vmatprep.subr.bf16.mxu1 %v6386_v11 }
 0x29b   :  { %v1367_v26 = vpop.f32.mrf.mxu0 }
 0x29c   :  { %v1608_v59 = vmax.f32 %v1576_v14, 0.0  ;;  %v1538_v6 = vmax.f32 %v1474_v18, %v1506_v15  ;;  %v4765_v14 = vld [vmem:[%s6332_s3 + $0x8] sm:$0xff]   ;;  %v1479_v15 = vmax.f32 %v5191_v36, %v5351_v55 }
 0x29d   :  { %4223 = vmatpush3.bf16.msra.mxu1 %v4760_v57  ;;  %v1368_v33 = vpop.f32.mrf.mxu0 }
 0x29e   :  { %v5645_v22 = vpack.c.bf16 %v1608_v59, %v1607_v3  ;;  %v1507_v23 = vmax.f32 %v5532_v17, %v1368_v33  ;;  %4224 = vmatprep.subr.bf16.mxu1 %v6386_v11  ;;  %v1577_v10 = vadd.f32 %v5603_v32, %v1538_v6  ;;  %v4766_v6 = vld [vmem:[%s6332_s3] sm:$0xff]   ;;  %v1480_v33 = vmax.f32 %v5199_v40, %v5359_v63 }
 0x29f   :  { %v1370_v49 = vpop.f32.mrf.mxu0 }
 0x2a0   :  { %v1539_v62 = vmax.f32 %v1475_v54, %v1507_v23  ;;  %v1609_v21 = vmax.f32 %v1577_v10, 0.0  ;;  %v4767_v10 = vld [vmem:[%s6332_s3 + $0xb8] sm:$0xff]  }
 0x2a1   :  { %4225 = vmatpush3.bf16.msra.mxu1 %v4761_v38  ;;  %v1373_v45 = vpop.f32.mrf.mxu0 }
 0x2a2   :  { %v1578_v24 = vadd.f32 %v5603_v32, %v1539_v62  ;;  %v1508_v27 = vmax.f32 %v5534_v31, %v1373_v45  ;;  %4226 = vmatprep.subr.bf16.mxu1 %v6386_v11  ;;  %v1481_v62 = vmax.f32 %v5201_v42, %v5361_v5  ;;  %v1482_v42 = vmax.f32 %v5209_v46, %v5369_v19 }
 0x2a3   :  { %v1375_v17 = vpop.f32.mrf.mxu0 }
 0x2a4   :  { %v1610_v60 = vmax.f32 %v1578_v24, 0.0  ;;  %v1540_v47 = vmax.f32 %v1476_v8, %v1508_v27  ;;  %v4768_v24 = vld [vmem:[%s6332_s3 + $0xb0] sm:$0xff]  }
 0x2a5   :  { %4227 = vmatpush3.bf16.msra.mxu1 %v4762_v7  ;;  %v1376_v12 = vpop.f32.mrf.mxu0 }
 0x2a6   :  { %v5663_v28 = vpack.c.bf16 %v1610_v60, %v1609_v21  ;;  %v1509_v37 = vmax.f32 %v5542_v44, %v1376_v12  ;;  %4228 = vmatprep.subr.bf16.mxu1 %v6386_v11  ;;  %v1579_v29 = vadd.f32 %v5603_v32, %v1540_v47  ;;  %v4769_v47 = vld [vmem:[%s6332_s3 + $0xa8] sm:$0xff]   ;;  %v1483_v12 = vmax.f32 %v5211_v48, %v5371_v25  ;;  %v6387_v25 = vld [vmem:[#allocation32_spill] sm:$0xff] }
 0x2a7   :  { %v1378_v31 = vpop.f32.mrf.mxu0 }
 0x2a8   :  { %v1541_v20 = vmax.f32 %v1477_v58, %v1509_v37  ;;  %v1611_v53 = vmax.f32 %v1579_v29, 0.0  ;;  %v4770_v31 = vld [vmem:[%s6332_s3 + $0xa0] sm:$0xff]   ;;  %v1484_v29 = vmax.f32 %v5219_v52, %v5379_v39  ;;  %v6390_v39 = vld [vmem:[#allocation33_spill] sm:$0xff] }
 0x2a9   :  { %4229 = vmatpush3.bf16.msra.mxu1 %v4763_v1  ;;  %v1381_v4 = vpop.f32.mrf.mxu0 }
 0x2aa   :  { %v1580_v30 = vadd.f32 %v5603_v32, %v1541_v20  ;;  %v1510_v41 = vmax.f32 %v5544_v61, %v1381_v4  ;;  %4230 = vmatprep.subr.bf16.mxu1 %v6386_v11 }
 0x2ab   :  { %v1383_v44 = vpop.f32.mrf.mxu0 }
 0x2ac   :  { %v1612_v35 = vmax.f32 %v1580_v30, 0.0  ;;  %v1542_v57 = vmax.f32 %v1478_v9, %v1510_v41  ;;  %v4771_v41 = vld [vmem:[%s6332_s3 + $0x98] sm:$0xff]  }
 0x2ad   :  { %4231 = vmatpush3.bf16.msra.mxu1 %v4764_v16  ;;  %v1384_v18 = vpop.f32.mrf.mxu0  ;;  %v6388_v44 = vld [vmem:[#allocation17_spill] sm:$0xff] }
 0x2ae   :  { %v5681_v34 = vpack.c.bf16 %v1612_v35, %v1611_v53  ;;  %v1511_v50 = vmax.f32 %v5552_v13, %v1384_v18  ;;  %4232 = vmatprep.subr.bf16.mxu1 %v6386_v11  ;;  %v1581_v26 = vadd.f32 %v5603_v32, %v1542_v57  ;;  %v6389_v53 = vld [vmem:[#allocation2_spill] sm:$0xff] }
 0x2af   :  { %v1386_v61 = vpop.f32.mrf.mxu0  ;;  %v1485_v35 = vmax.f32 %v6389_v53, %v6388_v44  ;;  %v6403_v44 = vld [vmem:[#allocation22_spill] sm:$0xff]  ;;  %v6404_v53 = vld [vmem:[#allocation7_spill] sm:$0xff] }
 0x2b0   :  { %v1543_v3 = vmax.f32 %v1479_v15, %v1511_v50  ;;  %v1613_v38 = vmax.f32 %v1581_v26, 0.0  ;;  %v4772_v61 = vld [vmem:[%s6332_s3 + $0x90] sm:$0xff]   ;;  %v6391_v26 = vld [vmem:[#allocation18_spill] sm:$0xff] }
 0x2b1   :  { %4233 = vmatpush3.bf16.msra.mxu1 %v4765_v14  ;;  %v1389_v59 = vpop.f32.mrf.mxu0 }
 0x2b2   :  { %v1582_v36 = vadd.f32 %v5603_v32, %v1543_v3  ;;  %v1512_v55 = vmax.f32 %v5554_v51, %v1389_v59  ;;  %4234 = vmatprep.subr.bf16.mxu1 %v6386_v11  ;;  %v6392_v3 = vld [vmem:[#allocation3_spill] sm:$0xff] }
 0x2b3   :  { %v1391_v13 = vpop.f32.mrf.mxu0  ;;  %v1486_v59 = vmax.f32 %v6392_v3, %v6391_v26  ;;  %v4777_v26 = vld [vmem:[%s6332_s3 + $0xe8] sm:$0xff]  }
 0x2b4   :  { %v1614_v54 = vmax.f32 %v1582_v36, 0.0  ;;  %v1544_v23 = vmax.f32 %v1480_v33, %v1512_v55  ;;  %v6393_v33 = vld [vmem:[#allocation34_spill] sm:$0xff]  ;;  %v6406_v3 = vld [vmem:[#allocation23_spill] sm:$0xff] }
 0x2b5   :  { %4235 = vmatpush3.bf16.msra.mxu1 %v4766_v6  ;;  %v1392_v49 = vpop.f32.mrf.mxu0 }
 0x2b6   :  { %v5699_v40 = vpack.c.bf16 %v1614_v54, %v1613_v38  ;;  %v1513_v63 = vmax.f32 %v5559_v43, %v1392_v49  ;;  %4240 = vmatprep.subr.bf16.mxu1 %v6386_v11  ;;  %v1583_v45 = vadd.f32 %v5603_v32, %v1544_v23  ;;  %v4773_v49 = vld [vmem:[%s6332_s3 + $0x88] sm:$0xff]  }
 0x2b7   :  { %v1394_v51 = vpop.f32.mrf.mxu0 }
 0x2b8   :  { %v1545_v7 = vmax.f32 %v1481_v62, %v1513_v63  ;;  %4237 = vmatmul.mubr.bf16.vlgmr.msra.gmra.mxu1 %v5615_v56  ;;  %v1615_v56 = vmax.f32 %v1583_v45, 0.0  ;;  %v6395_v62 = vld [vmem:[#allocation4_spill] sm:$0xff]  ;;  %v6396_v45 = vld [vmem:[#allocation35_spill] sm:$0xff] }
 0x2b9   :  { %4241 = vmatpush3.bf16.msra.mxu1 %v4767_v10  ;;  %v1397_v8 = vpop.f32.mrf.mxu0  ;;  %4256 = vmatprep.mubr.msk.bf16.mxu1 %vm4897_vm0, %v6386_v11  ;;  %v6394_v10 = vld [vmem:[#allocation19_spill] sm:$0xff] }
 0x2ba   :  { %v1584_v5 = vadd.f32 %v5603_v32, %v1545_v7  ;;  %v1514_v43 = vmax.f32 %v5561_v2, %v1397_v8  ;;  %4242 = vmatprep.subr.bf16.mxu1 %v6386_v11  ;;  %v1487_v63 = vmax.f32 %v6395_v62, %v6394_v10  ;;  %v6409_v10 = vld [vmem:[#allocation24_spill] sm:$0xff]  ;;  %v6410_v62 = vld [vmem:[#allocation9_spill] sm:$0xff] }
 0x2bb   :  { %v1399_v27 = vpop.f32.mrf.mxu0 }
 0x2bc   :  { %v1616_v17 = vmax.f32 %v1584_v5, 0.0  ;;  %v1546_v21 = vmax.f32 %v1482_v42, %v1514_v43  ;;  %v4774_v43 = vld [vmem:[%s6332_s3 + $0x80] sm:$0xff]   ;;  %v6397_v27 = vld [vmem:[#allocation20_spill] sm:$0xff] }
 0x2bd   :  { %4243 = vmatpush3.bf16.msra.mxu1 %v4768_v24  ;;  %v1400_v60 = vpop.f32.mrf.mxu0 }
 0x2be   :  { %v5720_v46 = vpack.c.bf16 %v1616_v17, %v1615_v56  ;;  %v1515_v19 = vmax.f32 %v5563_v0, %v1400_v60  ;;  %4244 = vmatprep.subr.bf16.mxu1 %v6386_v11  ;;  %v1585_v1 = vadd.f32 %v5603_v32, %v1546_v21  ;;  %v6398_v56 = vld [vmem:[#allocation5_spill] sm:$0xff]  ;;  %v6399_v60 = vld [vmem:[#allocation36_spill] sm:$0xff] }
 0x2bf   :  { %v1402_v2 = vpop.f32.mrf.mxu0  ;;  %v1488_v17 = vmax.f32 %v6398_v56, %v6397_v27  ;;  %v4779_v56 = vld [vmem:[%s6332_s3 + $0xd8] sm:$0xff]  }
 0x2c0   :  { %v1547_v58 = vmax.f32 %v1483_v12, %v1515_v19  ;;  %v1617_v4 = vmax.f32 %v1585_v1, 0.0 }
 0x2c1   :  { %4245 = vmatpush3.bf16.msra.mxu1 %v4769_v47  ;;  %v1405_v37 = vpop.f32.mrf.mxu0 }
 0x2c2   :  { %v1586_v48 = vadd.f32 %v5603_v32, %v1547_v58  ;;  %v1516_v20 = vmax.f32 %v6387_v25, %v1405_v37  ;;  %4246 = vmatprep.subr.bf16.mxu1 %v6386_v11  ;;  %v4775_v37 = vld [vmem:[%s6332_s3 + $0xf8] sm:$0xff]  }
 0x2c3   :  { %v1407_v0 = vpop.f32.mrf.mxu0 }
 0x2c4   :  { %v1618_v16 = vmax.f32 %v1586_v48, 0.0  ;;  %v1548_v9 = vmax.f32 %v1484_v29, %v1516_v20  ;;  %v6401_v29 = vld [vmem:[#allocation6_spill] sm:$0xff]  ;;  %v6402_v20 = vld [vmem:[#allocation37_spill] sm:$0xff] }
 0x2c5   :  { %4247 = vmatpush3.bf16.msra.mxu1 %v4770_v31  ;;  %v1408_v30 = vpop.f32.mrf.mxu0  ;;  %v6400_v31 = vld [vmem:[#allocation21_spill] sm:$0xff] }
 0x2c6   :  { %v5738_v52 = vpack.c.bf16 %v1618_v16, %v1617_v4  ;;  %v1517_v57 = vmax.f32 %v6390_v39, %v1408_v30  ;;  %4248 = vmatprep.subr.bf16.mxu1 %v6386_v11  ;;  %v1587_v14 = vadd.f32 %v5603_v32, %v1548_v9  ;;  %v1489_v48 = vmax.f32 %v6401_v29, %v6400_v31  ;;  %v4780_v31 = vld [vmem:[%s6332_s3 + $0xd0] sm:$0xff]   ;;  %v6415_v29 = vld [vmem:[#allocation26_spill] sm:$0xff] }
 0x2c7   :  { %v1410_v18 = vpop.f32.mrf.mxu0 }
 0x2c8   :  { %v1549_v15 = vmax.f32 %v1485_v35, %v1517_v57  ;;  %v1619_v13 = vmax.f32 %v1587_v14, 0.0  ;;  %v1490_v35 = vmax.f32 %v6404_v53, %v6403_v44  ;;  %v6405_v57 = vld [vmem:[#allocation38_spill] sm:$0xff] }
 0x2c9   :  { %4249 = vmatpush3.bf16.msra.mxu1 %v4771_v41  ;;  %v1413_v50 = vpop.f32.mrf.mxu0  ;;  %v4776_v41 = vld [vmem:[%s6332_s3 + $0xf0] sm:$0xff]  }
 0x2ca   :  { %v1588_v6 = vadd.f32 %v5603_v32, %v1549_v15  ;;  %v1518_v36 = vmax.f32 %v6393_v33, %v1413_v50  ;;  %4250 = vmatprep.subr.bf16.mxu1 %v6386_v11 }
 0x2cb   :  { %v1415_v55 = vpop.f32.mrf.mxu0 }
 0x2cc   :  { %v1620_v38 = vmax.f32 %v1588_v6, 0.0  ;;  %v1550_v54 = vmax.f32 %v1486_v59, %v1518_v36  ;;  %v6407_v59 = vld [vmem:[#allocation8_spill] sm:$0xff]  ;;  %v6408_v36 = vld [vmem:[#allocation39_spill] sm:$0xff] }
 0x2cd   :  { %4251 = vmatpush3.bf16.msra.mxu1 %v4772_v61  ;;  %v1416_v23 = vpop.f32.mrf.mxu0  ;;  %v1491_v6 = vmax.f32 %v6407_v59, %v6406_v3  ;;  %v4782_v59 = vld [vmem:[%s6332_s3 + $0xc0] sm:$0xff]  }
 0x2ce   :  { %v5756_v51 = vpack.c.bf16 %v1620_v38, %v1619_v13  ;;  %v1519_v7 = vmax.f32 %v6396_v45, %v1416_v23  ;;  %4252 = vmatprep.subr.bf16.mxu1 %v6386_v11  ;;  %v1589_v24 = vadd.f32 %v5603_v32, %v1550_v54 }
 0x2cf   :  { %v1418_v8 = vpop.f32.mrf.mxu0 }
 0x2d0   :  { %v1551_v42 = vmax.f32 %v1487_v63, %v1519_v7  ;;  %v1621_v19 = vmax.f32 %v1589_v24, 0.0  ;;  %v1492_v63 = vmax.f32 %v6410_v62, %v6409_v10  ;;  %v6411_v7 = vld [vmem:[#allocation40_spill] sm:$0xff] }
 0x2d1   :  { %4253 = vmatpush3.bf16.msra.mxu1 %v4773_v49  ;;  %v1421_v5 = vpop.f32.mrf.mxu0  ;;  %v4778_v49 = vld [vmem:[%s6332_s3 + $0xe0] sm:$0xff]  }
 0x2d2   :  { %v1590_v21 = vadd.f32 %v5603_v32, %v1551_v42  ;;  %v1520_v47 = vmax.f32 %v6399_v60, %v1421_v5  ;;  %4254 = vmatprep.subr.bf16.mxu1 %v6386_v11 }
 0x2d3   :  { %v1423_v12 = vpop.f32.mrf.mxu0 }
 0x2d4   :  { %v1622_v2 = vmax.f32 %v1590_v21, 0.0  ;;  %v1552_v1 = vmax.f32 %v1488_v17, %v1520_v47  ;;  %v6412_v17 = vld [vmem:[#allocation25_spill] sm:$0xff]  ;;  %v6413_v21 = vld [vmem:[#allocation10_spill] sm:$0xff] }
 0x2d5   :  { %4255 = vmatpush3.bf16.msra.mxu1 %v4774_v43  ;;  %v1424_v58 = vpop.f32.mrf.mxu0  ;;  %v1493_v60 = vmax.f32 %v6413_v21, %v6412_v17  ;;  %v6414_v12 = vld [vmem:[#allocation41_spill] sm:$0xff] }
 0x2d6   :  { %v5774_v25 = vpack.c.bf16 %v1622_v2, %v1621_v19  ;;  %v1521_v0 = vmax.f32 %v6402_v20, %v1424_v58  ;;  %4260 = vmatprep.subr.bf16.mxu1 %v6386_v11  ;;  %v1591_v16 = vadd.f32 %v5603_v32, %v1552_v1 }
 0x2d7   :  { %v1426_v4 = vpop.f32.mrf.mxu0 }
 0x2d8   :  { %v1553_v9 = vmax.f32 %v1489_v48, %v1521_v0  ;;  %4257 = vmatmul.mubr.bf16.vlgmr.msra.gmra.mxu1 %v5645_v22  ;;  %v1623_v22 = vmax.f32 %v1591_v16, 0.0  ;;  %v6416_v48 = vld [vmem:[#allocation11_spill] sm:$0xff]  ;;  %v6417_v4 = vld [vmem:[#allocation42_spill] sm:$0xff] }
 0x2d9   :  { %4261 = vmatpush3.bf16.msra.mxu1 %v4775_v37  ;;  %v1429_v30 = vpop.f32.mrf.mxu0  ;;  %4276 = vmatprep.mubr.msk.bf16.mxu1 %vm4897_vm0, %v6386_v11  ;;  %v1494_v20 = vmax.f32 %v6416_v48, %v6415_v29 }
 0x2da   :  { %v1592_v39 = vadd.f32 %v5603_v32, %v1553_v9  ;;  %v1522_v18 = vmax.f32 %v6405_v57, %v1429_v30  ;;  %4262 = vmatprep.subr.bf16.mxu1 %v6386_v11  ;;  %v6419_v57 = vld [vmem:[#allocation12_spill] sm:$0xff] }
 0x2db   :  { %v1431_v14 = vpop.f32.mrf.mxu0 }
 0x2dc   :  { %v1624_v15 = vmax.f32 %v1592_v39, 0.0  ;;  %v1554_v50 = vmax.f32 %v1490_v35, %v1522_v18  ;;  %v4781_v35 = vld [vmem:[%s6332_s3 + $0xc8] sm:$0xff]  }
 0x2dd   :  { %4263 = vmatpush3.bf16.msra.mxu1 %v4776_v41  ;;  %v1432_v61 = vpop.f32.mrf.mxu0  ;;  %v6418_v39 = vld [vmem:[#allocation27_spill] sm:$0xff] }
 0x2de   :  { %v5795_v33 = vpack.c.bf16 %v1624_v15, %v1623_v22  ;;  %v1523_v55 = vmax.f32 %v6408_v36, %v1432_v61  ;;  %4264 = vmatprep.subr.bf16.mxu1 %v6386_v11  ;;  %v1593_v38 = vadd.f32 %v5603_v32, %v1554_v50  ;;  %v1495_v18 = vmax.f32 %v6419_v57, %v6418_v39  ;;  %v6420_v22 = vld [vmem:[#allocation43_spill] sm:$0xff]  ;;  %v6422_v36 = vld [vmem:[#allocation13_spill] sm:$0xff]  ;;  %v4786_v57 = vld [vmem:[%s6332_s3 + $0x120] sm:$0xff]  }
 0x2df   :  { %v1434_v13 = vpop.f32.mrf.mxu0 }
 0x2e0   :  { %v1555_v54 = vmax.f32 %v1491_v6, %v1523_v55  ;;  %v1625_v42 = vmax.f32 %v1593_v38, 0.0  ;;  %v6421_v6 = vld [vmem:[#allocation28_spill] sm:$0xff] }
 0x2e1   :  { %4265 = vmatpush3.bf16.msra.mxu1 %v4777_v26  ;;  %v1437_v23 = vpop.f32.mrf.mxu0  ;;  %v1496_v55 = vmax.f32 %v6422_v36, %v6421_v6  ;;  %v6423_v38 = vld [vmem:[#allocation44_spill] sm:$0xff]  ;;  %v4793_v36 = vld [vmem:[%s6332_s3 + $0x168] sm:$0xff]  }
 0x2e2   :  { %v1594_v45 = vadd.f32 %v5603_v32, %v1555_v54  ;;  %v1524_v8 = vmax.f32 %v6411_v7, %v1437_v23  ;;  %4266 = vmatprep.subr.bf16.mxu1 %v6386_v11  ;;  %v6424_v7 = vld [vmem:[#allocation29_spill] sm:$0xff]  ;;  %v4792_v6 = vld [vmem:[%s6332_s3 + $0x170] sm:$0xff]  }
 0x2e3   :  { %v1439_v24 = vpop.f32.mrf.mxu0 }
 0x2e4   :  { %v1626_v5 = vmax.f32 %v1594_v45, 0.0  ;;  %v1556_v43 = vmax.f32 %v1492_v63, %v1524_v8  ;;  %v4783_v45 = vld [vmem:[%s6332_s3 + $0x138] sm:$0xff]   ;;  %v6425_v8 = vld [vmem:[#allocation14_spill] sm:$0xff] }
 0x2e5   :  { %4267 = vmatpush3.bf16.msra.mxu1 %v4778_v49  ;;  %v1440_v27 = vpop.f32.mrf.mxu0  ;;  %v1497_v24 = vmax.f32 %v6425_v8, %v6424_v7  ;;  %v4806_v7 = vld [vmem:[%s6332_s3 + $0x180] sm:$0xff]   ;;  %v4807_v8 = vld [vmem:[%s6332_s3 + $0x1f8] sm:$0xff]  }
 0x2e6   :  { %v5813_v47 = vpack.c.bf16 %v1626_v5, %v1625_v42  ;;  %v1525_v19 = vmax.f32 %v6414_v12, %v1440_v27  ;;  %4268 = vmatprep.subr.bf16.mxu1 %v6386_v11  ;;  %v1595_v1 = vadd.f32 %v5603_v32, %v1556_v43  ;;  %v6426_v5 = vld [vmem:[#allocation45_spill] sm:$0xff]  ;;  %v6427_v12 = vld [vmem:[#allocation30_spill] sm:$0xff] }
 0x2e7   :  { %v1442_v2 = vpop.f32.mrf.mxu0 }
 0x2e8   :  { %v1557_v58 = vmax.f32 %v1493_v60, %v1525_v19  ;;  %v1627_v30 = vmax.f32 %v1595_v1, 0.0  ;;  %v4784_v60 = vld [vmem:[%s6332_s3 + $0x130] sm:$0xff]   ;;  %v6428_v19 = vld [vmem:[#allocation15_spill] sm:$0xff] }
 0x2e9   :  { %4269 = vmatpush3.bf16.msra.mxu1 %v4779_v56  ;;  %v1445_v37 = vpop.f32.mrf.mxu0  ;;  %v1498_v2 = vmax.f32 %v6428_v19, %v6427_v12  ;;  %v4813_v12 = vld [vmem:[%s6332_s3 + $0x1c8] sm:$0xff]   ;;  %v4814_v19 = vld [vmem:[%s6332_s3 + $0x1c0] sm:$0xff]  }
 0x2ea   :  { %v1596_v0 = vadd.f32 %v5603_v32, %v1557_v58  ;;  %v1526_v16 = vmax.f32 %v6417_v4, %v1445_v37  ;;  %4270 = vmatprep.subr.bf16.mxu1 %v6386_v11  ;;  %v6429_v58 = vld [vmem:[#allocation46_spill] sm:$0xff]  ;;  %v6430_v4 = vld [vmem:[#allocation31_spill] sm:$0xff] }
 0x2eb   :  { %v1447_v9 = vpop.f32.mrf.mxu0 }
 0x2ec   :  { %v1628_v41 = vmax.f32 %v1596_v0, 0.0  ;;  %v1558_v44 = vmax.f32 %v1494_v20, %v1526_v16  ;;  %v4785_v0 = vld [vmem:[%s6332_s3 + $0x128] sm:$0xff]   ;;  %v6431_v16 = vld [vmem:[#allocation16_spill] sm:$0xff] }
 0x2ed   :  { %4271 = vmatpush3.bf16.msra.mxu1 %v4780_v31  ;;  %v1448_v53 = vpop.f32.mrf.mxu0  ;;  %v1499_v9 = vmax.f32 %v6431_v16, %v6430_v4  ;;  %v4820_v4 = vld [vmem:[%s6332_s3 + $0x210] sm:$0xff]   ;;  %v4821_v16 = vld [vmem:[%s6332_s3 + $0x208] sm:$0xff]  }
 0x2ee   :  { %v5831_v14 = vpack.c.bf16 %v1628_v41, %v1627_v30  ;;  %v1527_v15 = vmax.f32 %v6420_v22, %v1448_v53  ;;  %4272 = vmatprep.subr.bf16.mxu1 %v6386_v11  ;;  %v1597_v61 = vadd.f32 %v5603_v32, %v1558_v44  ;;  %v6432_v41 = vld [vmem:[#allocation47_spill] sm:$0xff] }
 0x2ef   :  { %v1450_v50 = vpop.f32.mrf.mxu0 }
 0x2f0   :  { %v1559_v26 = vmax.f32 %v1495_v18, %v1527_v15  ;;  %v1629_v49 = vmax.f32 %v1597_v61, 0.0  ;;  %v4787_v50 = vld [vmem:[%s6332_s3 + $0x118] sm:$0xff]  }
 0x2f1   :  { %4273 = vmatpush3.bf16.msra.mxu1 %v4781_v35  ;;  %v1453_v3 = vpop.f32.mrf.mxu0 }
 0x2f2   :  { %v1598_v13 = vadd.f32 %v5603_v32, %v1559_v26  ;;  %v1528_v54 = vmax.f32 %v6423_v38, %v1453_v3  ;;  %4274 = vmatprep.subr.bf16.mxu1 %v6386_v11  ;;  %v4788_v26 = vld [vmem:[%s6332_s3 + $0x110] sm:$0xff]   ;;  %v4790_v3 = vld [vmem:[%s6332_s3 + $0x100] sm:$0xff]   ;;  %v4797_v38 = vld [vmem:[%s6332_s3 + $0x148] sm:$0xff]  }
 0x2f3   :  { %v1455_v23 = vpop.f32.mrf.mxu0 }
 0x2f4   :  { %v1630_v10 = vmax.f32 %v1598_v13, 0.0  ;;  %v1560_v62 = vmax.f32 %v1496_v55, %v1528_v54  ;;  %v4795_v55 = vld [vmem:[%s6332_s3 + $0x158] sm:$0xff]   ;;  %v4796_v13 = vld [vmem:[%s6332_s3 + $0x150] sm:$0xff]   ;;  %v4798_v54 = vld [vmem:[%s6332_s3 + $0x140] sm:$0xff]  }
 0x2f5   :  { %4275 = vmatpush3.bf16.msra.mxu1 %v4782_v59  ;;  %v1456_v63 = vpop.f32.mrf.mxu0  ;;  %v4791_v59 = vld [vmem:[%s6332_s3 + $0x178] sm:$0xff]  }
 0x2f6   :  { %v5849_v42 = vpack.c.bf16 %v1630_v10, %v1629_v49  ;;  %v1529_v43 = vmax.f32 %v6426_v5, %v1456_v63  ;;  %4280 = vmatprep.subr.bf16.mxu1 %v6386_v11  ;;  %v1599_v56 = vadd.f32 %v5603_v32, %v1560_v62  ;;  %v4799_v23 = vld [vmem:[%s6332_s3 + $0x1b8] sm:$0xff]   ;;  %v4800_v49 = vld [vmem:[%s6332_s3 + $0x1b0] sm:$0xff]   ;;  %v4801_v10 = vld [vmem:[%s6332_s3 + $0x1a8] sm:$0xff]  }
 0x2f7   :  { %v1458_v27 = vpop.f32.mrf.mxu0  ;;  %v4803_v62 = vld [vmem:[%s6332_s3 + $0x198] sm:$0xff]   ;;  %v4804_v63 = vld [vmem:[%s6332_s3 + $0x190] sm:$0xff]  }
 0x2f8   :  { %v1561_v17 = vmax.f32 %v1497_v24, %v1529_v43  ;;  %4277 = vmatmul.mubr.bf16.vlgmr.msra.gmra.mxu1 %v5663_v28  ;;  %v1631_v28 = vmax.f32 %v1599_v56, 0.0  ;;  %v4808_v5 = vld [vmem:[%s6332_s3 + $0x1f0] sm:$0xff]   ;;  %v4809_v56 = vld [vmem:[%s6332_s3 + $0x1e8] sm:$0xff]  }
 0x2f9   :  { %4281 = vmatpush3.bf16.msra.mxu1 %v4783_v45  ;;  %v1461_v21 = vpop.f32.mrf.mxu0  ;;  %4296 = vmatprep.mubr.msk.bf16.mxu1 %vm4897_vm0, %v6386_v11  ;;  %v4805_v45 = vld [vmem:[%s6332_s3 + $0x188] sm:$0xff]  }
 0x2fa   :  { %v1600_v1 = vadd.f32 %v5603_v32, %v1561_v17  ;;  %v1530_v37 = vmax.f32 %v6429_v58, %v1461_v21  ;;  %4282 = vmatprep.subr.bf16.mxu1 %v6386_v11  ;;  %v4811_v21 = vld [vmem:[%s6332_s3 + $0x1d8] sm:$0xff]  }
 0x2fb   :  { %v1463_v31 = vpop.f32.mrf.mxu0 }
 0x2fc   :  { %v1632_v29 = vmax.f32 %v1600_v1, 0.0  ;;  %v1562_v48 = vmax.f32 %v1498_v2, %v1530_v37  ;;  %v4815_v2 = vld [vmem:[%s6332_s3 + $0x238] sm:$0xff]   ;;  %v4816_v37 = vld [vmem:[%s6332_s3 + $0x230] sm:$0xff]  }
 0x2fd   :  { %4283 = vmatpush3.bf16.msra.mxu1 %v4784_v60  ;;  %v1464_v20 = vpop.f32.mrf.mxu0  ;;  %v4812_v60 = vld [vmem:[%s6332_s3 + $0x1d0] sm:$0xff]  }
 0x2fe   :  { %v5870_v30 = vpack.c.bf16 %v1632_v29, %v1631_v28  ;;  %v1531_v44 = vmax.f32 %v6432_v41, %v1464_v20  ;;  %4284 = vmatprep.subr.bf16.mxu1 %v6386_v11  ;;  %v1601_v35 = vadd.f32 %v5603_v32, %v1562_v48  ;;  %v4817_v48 = vld [vmem:[%s6332_s3 + $0x228] sm:$0xff]   ;;  %v4818_v20 = vld [vmem:[%s6332_s3 + $0x220] sm:$0xff]   ;;  %v4823_v41 = vld [vmem:[%s6332_s3 + $0x278] sm:$0xff]  }
 0x2ff   :  { %v1466_v53 = vpop.f32.mrf.mxu0 }
 0x300   :  { %v1563_v39 = vmax.f32 %v1499_v9, %v1531_v44  ;;  %v1633_v22 = vmax.f32 %v1601_v35, 0.0  ;;  %v4822_v9 = vld [vmem:[%s6332_s3 + $0x200] sm:$0xff]   ;;  %v4824_v35 = vld [vmem:[%s6332_s3 + $0x270] sm:$0xff]  }
 0x301   :  { %4285 = vmatpush3.bf16.msra.mxu1 %v4785_v0  ;;  %v4819_v0 = vld [vmem:[%s6332_s3 + $0x218] sm:$0xff]  }
 0x302   :  { %v1602_v18 = vadd.f32 %v5603_v32, %v1563_v39  ;;  %4286 = vmatprep.subr.bf16.mxu1 %v6386_v11  ;;  %v4789_v32 = vld [vmem:[%s6332_s3 + $0x108] sm:$0xff]  }
 0x304   :  { %v1634_v15 = vmax.f32 %v1602_v18, 0.0 }
 0x305   :  { %4287 = vmatpush3.bf16.msra.mxu1 %v4786_v57 }
 0x306   :  { %v5883_v61 = vpack.c.bf16 %v1634_v15, %v1633_v22  ;;  %4288 = vmatprep.subr.bf16.mxu1 %v6386_v11  ;;  %v4825_v22 = vld [vmem:[%s6332_s3 + $0x268] sm:$0xff]   ;;  %v4826_v15 = vld [vmem:[%s6332_s3 + $0x260] sm:$0xff]  }
 0x309   :  { %4289 = vmatpush3.bf16.msra.mxu1 %v4787_v50  ;;  %v4827_v50 = vld [vmem:[%s6332_s3 + $0x258] sm:$0xff]  }
 0x30a   :  { %4290 = vmatprep.subr.bf16.mxu1 %v6386_v11 }
 0x30d   :  { %4291 = vmatpush3.bf16.msra.mxu1 %v4788_v26  ;;  %v4828_v26 = vld [vmem:[%s6332_s3 + $0x250] sm:$0xff]  }
 0x30e   :  { %4292 = vmatprep.subr.bf16.mxu1 %v6386_v11 }
 0x311   :  { %4293 = vmatpush3.bf16.msra.mxu1 %v4789_v32  ;;  %v4829_v32 = vld [vmem:[%s6332_s3 + $0x248] sm:$0xff]  }
 0x312   :  { %4294 = vmatprep.subr.bf16.mxu1 %v6386_v11 }
 0x315   :  { %4295 = vmatpush3.bf16.msra.mxu1 %v4790_v3  ;;  %v4830_v3 = vld [vmem:[%s6332_s3 + $0x240] sm:$0xff]  }
 0x316   :  { %4300 = vmatprep.subr.bf16.mxu1 %v6386_v11 }
 0x318   :  { %4297 = vmatmul.mubr.bf16.vlgmr.msra.gmra.mxu1 %v5681_v34  ;;  %v4794_v34 = vld [vmem:[%s6332_s3 + $0x160] sm:$0xff]  }
 0x319   :  { %4301 = vmatpush3.bf16.msra.mxu1 %v4791_v59  ;;  %4316 = vmatprep.mubr.msk.bf16.mxu1 %vm4897_vm0, %v6386_v11  ;;  %v4831_v59 = vld [vmem:[%s6332_s3 + $0x2b8] sm:$0xff]  }
 0x31a   :  { %4302 = vmatprep.subr.bf16.mxu1 %v6386_v11 }
 0x31d   :  { %4303 = vmatpush3.bf16.msra.mxu1 %v4792_v6 }
 0x31e   :  { %4304 = vmatprep.subr.bf16.mxu1 %v6386_v11 }
 0x321   :  { %4305 = vmatpush3.bf16.msra.mxu1 %v4793_v36 }
 0x322   :  { %4306 = vmatprep.subr.bf16.mxu1 %v6386_v11 }
 0x325   :  { %4307 = vmatpush3.bf16.msra.mxu1 %v4794_v34  ;;  %v4832_v34 = vld [vmem:[%s6332_s3 + $0x2b0] sm:$0xff]  }
 0x326   :  { %4308 = vmatprep.subr.bf16.mxu1 %v6386_v11 }
 0x329   :  { %4309 = vmatpush3.bf16.msra.mxu1 %v4795_v55 }
 0x32a   :  { %4310 = vmatprep.subr.bf16.mxu1 %v6386_v11 }
 0x32d   :  { %4311 = vmatpush3.bf16.msra.mxu1 %v4796_v13 }
 0x32e   :  { %4312 = vmatprep.subr.bf16.mxu1 %v6386_v11 }
 0x331   :  { %4313 = vmatpush3.bf16.msra.mxu1 %v4797_v38 }
 0x332   :  { %4314 = vmatprep.subr.bf16.mxu1 %v6386_v11 }
 0x335   :  { %4315 = vmatpush3.bf16.msra.mxu1 %v4798_v54  ;;  %v4833_v54 = vld [vmem:[%s6332_s3 + $0x2a8] sm:$0xff]  }
 0x336   :  { %4320 = vmatprep.subr.bf16.mxu1 %v6386_v11 }
 0x338   :  { %4317 = vmatmul.mubr.bf16.vlgmr.msra.gmra.mxu1 %v5699_v40  ;;  %v4802_v40 = vld [vmem:[%s6332_s3 + $0x1a0] sm:$0xff]  }
 0x339   :  { %4321 = vmatpush3.bf16.msra.mxu1 %v4799_v23  ;;  %4336 = vmatprep.mubr.msk.bf16.mxu1 %vm4897_vm0, %v6386_v11  ;;  %v4834_v23 = vld [vmem:[%s6332_s3 + $0x2a0] sm:$0xff]  }
 0x33a   :  { %4322 = vmatprep.subr.bf16.mxu1 %v6386_v11 }
 0x33d   :  { %4323 = vmatpush3.bf16.msra.mxu1 %v4800_v49  ;;  %v4835_v49 = vld [vmem:[%s6332_s3 + $0x298] sm:$0xff]  }
 0x33e   :  { %4324 = vmatprep.subr.bf16.mxu1 %v6386_v11 }
 0x341   :  { %4325 = vmatpush3.bf16.msra.mxu1 %v4801_v10  ;;  %v4836_v10 = vld [vmem:[%s6332_s3 + $0x290] sm:$0xff]  }
 0x342   :  { %4326 = vmatprep.subr.bf16.mxu1 %v6386_v11 }
 0x345   :  { %4327 = vmatpush3.bf16.msra.mxu1 %v4802_v40  ;;  %v4837_v40 = vld [vmem:[%s6332_s3 + $0x288] sm:$0xff]  }
 0x346   :  { %4328 = vmatprep.subr.bf16.mxu1 %v6386_v11 }
 0x349   :  { %4329 = vmatpush3.bf16.msra.mxu1 %v4803_v62  ;;  %v4838_v62 = vld [vmem:[%s6332_s3 + $0x280] sm:$0xff]  }
 0x34a   :  { %4330 = vmatprep.subr.bf16.mxu1 %v6386_v11 }
 0x34d   :  { %4331 = vmatpush3.bf16.msra.mxu1 %v4804_v63  ;;  %v4839_v63 = vld [vmem:[%s6332_s3 + $0x2f8] sm:$0xff]  }
 0x34e   :  { %4332 = vmatprep.subr.bf16.mxu1 %v6386_v11 }
 0x351   :  { %4333 = vmatpush3.bf16.msra.mxu1 %v4805_v45 }
 0x352   :  { %4334 = vmatprep.subr.bf16.mxu1 %v6386_v11 }
 0x355   :  { %4335 = vmatpush3.bf16.msra.mxu1 %v4806_v7 }
 0x356   :  { %4340 = vmatprep.subr.bf16.mxu1 %v6386_v11 }
 0x358   :  { %4337 = vmatmul.mubr.bf16.vlgmr.msra.gmra.mxu1 %v5720_v46  ;;  %v1766_v24 = vpop.f32.mrf.mxu1  ;;  %v4810_v46 = vld [vmem:[%s6332_s3 + $0x1e0] sm:$0xff]  }
 0x359   :  { %4341 = vmatpush3.bf16.msra.mxu1 %v4807_v8  ;;  %4356 = vmatprep.mubr.msk.bf16.mxu1 %vm4897_vm0, %v6386_v11  ;;  %v4840_v8 = vld [vmem:[%s6332_s3 + $0x2f0] sm:$0xff]  }
 0x35a   :  { %v4218_v43 = vpop.f32.mrf.mxu1  ;;  %4342 = vmatprep.subr.bf16.mxu1 %v6386_v11 }
 0x35c   :  { %v1769_v27 = vpop.f32.mrf.mxu1 }
 0x35d   :  { %4343 = vmatpush3.bf16.msra.mxu1 %v4808_v5 }
 0x35e   :  { %v4219_v17 = vpop.f32.mrf.mxu1  ;;  %4344 = vmatprep.subr.bf16.mxu1 %v6386_v11 }
 0x35f   :  { %v4843_v17 = vld [vmem:[%s6332_s3 + $0x2d8] sm:$0xff]  }
 0x361   :  { %4345 = vmatpush3.bf16.msra.mxu1 %v4809_v56  ;;  %v4842_v56 = vld [vmem:[%s6332_s3 + $0x2e0] sm:$0xff]  }
 0x362   :  { %4346 = vmatprep.subr.bf16.mxu1 %v6386_v11 }
 0x365   :  { %4347 = vmatpush3.bf16.msra.mxu1 %v4810_v46  ;;  %v4844_v46 = vld [vmem:[%s6332_s3 + $0x2d0] sm:$0xff]  }
 0x366   :  { %4348 = vmatprep.subr.bf16.mxu1 %v6386_v11 }
 0x369   :  { %4349 = vmatpush3.bf16.msra.mxu1 %v4811_v21  ;;  %v4845_v21 = vld [vmem:[%s6332_s3 + $0x2c8] sm:$0xff]  }
 0x36a   :  { %4350 = vmatprep.subr.bf16.mxu1 %v6386_v11 }
 0x36d   :  { %4351 = vmatpush3.bf16.msra.mxu1 %v4812_v60  ;;  %v4846_v60 = vld [vmem:[%s6332_s3 + $0x2c0] sm:$0xff]  }
 0x36e   :  { %4352 = vmatprep.subr.bf16.mxu1 %v6386_v11 }
 0x371   :  { %4353 = vmatpush3.bf16.msra.mxu1 %v4813_v12  ;;  %v4847_v12 = vld [vmem:[%s6332_s3 + $0x338] sm:$0xff]  }
 0x372   :  { %4354 = vmatprep.subr.bf16.mxu1 %v6386_v11 }
 0x375   :  { %4355 = vmatpush3.bf16.msra.mxu1 %v4814_v19 }
 0x376   :  { %4360 = vmatprep.subr.bf16.mxu1 %v6386_v11 }
 0x378   :  { %v1855_v1 = vpop.f32.mrf.mxu1  ;;  %4357 = vmatmul.mubr.bf16.vlgmr.msra.gmra.mxu1 %v5738_v52 }
 0x379   :  { %v1856_v58 = vadd.f32 %v1855_v1, %v1766_v24  ;;  %4361 = vmatpush3.bf16.msra.mxu1 %v4815_v2  ;;  %4376 = vmatprep.mubr.msk.bf16.mxu1 %vm4897_vm0, %v6386_v11  ;;  %v4848_v1 = vld [vmem:[%s6332_s3 + $0x330] sm:$0xff]  }
 0x37a   :  { %v4238_v31 = vpop.f32.mrf.mxu1  ;;  %4362 = vmatprep.subr.bf16.mxu1 %v6386_v11 }
 0x37c   :  { %v1858_v28 = vpop.f32.mrf.mxu1 }
 0x37d   :  { %v1859_v29 = vadd.f32 %v1858_v28, %v1769_v27  ;;  %4363 = vmatpush3.bf16.msra.mxu1 %v4816_v37  ;;  %v4841_v27 = vld [vmem:[%s6332_s3 + $0x2e8] sm:$0xff]  }
 0x37e   :  { %v4239_v52 = vpop.f32.mrf.mxu1  ;;  %4364 = vmatprep.subr.bf16.mxu1 %v6386_v11  ;;  %v4849_v28 = vld [vmem:[%s6332_s3 + $0x328] sm:$0xff]  }
 0x37f   :  { %v4852_v52 = vld [vmem:[%s6332_s3 + $0x310] sm:$0xff]  }
 0x381   :  { %4365 = vmatpush3.bf16.msra.mxu1 %v4817_v48  ;;  %v4851_v48 = vld [vmem:[%s6332_s3 + $0x318] sm:$0xff]  }
 0x382   :  { %4366 = vmatprep.subr.bf16.mxu1 %v6386_v11 }
 0x385   :  { %4367 = vmatpush3.bf16.msra.mxu1 %v4818_v20  ;;  %v4853_v20 = vld [vmem:[%s6332_s3 + $0x308] sm:$0xff]  }
 0x386   :  { %4368 = vmatprep.subr.bf16.mxu1 %v6386_v11 }
 0x389   :  { %4369 = vmatpush3.bf16.msra.mxu1 %v4819_v0  ;;  %v4854_v0 = vld [vmem:[%s6332_s3 + $0x300] sm:$0xff]  }
 0x38a   :  { %4370 = vmatprep.subr.bf16.mxu1 %v6386_v11 }
 0x38d   :  { %4371 = vmatpush3.bf16.msra.mxu1 %v4820_v4  ;;  %v4855_v4 = vld [vmem:[%s6332_s3 + $0x378] sm:$0xff]  }
 0x38e   :  { %4372 = vmatprep.subr.bf16.mxu1 %v6386_v11 }
 0x391   :  { %4373 = vmatpush3.bf16.msra.mxu1 %v4821_v16 }
 0x392   :  { %4374 = vmatprep.subr.bf16.mxu1 %v6386_v11 }
 0x395   :  { %4375 = vmatpush3.bf16.msra.mxu1 %v4822_v9 }
 0x396   :  { %4380 = vmatprep.subr.bf16.mxu1 %v6386_v11 }
 0x398   :  { %v1961_v44 = vpop.f32.mrf.mxu1  ;;  %4377 = vmatmul.mubr.bf16.vlgmr.msra.gmra.mxu1 %v5756_v51 }
 0x399   :  { %v1968_v53 = vadd.f32 %v1961_v44, %v1856_v58  ;;  %4381 = vmatpush3.bf16.msra.mxu1 %v4823_v41  ;;  %4396 = vmatprep.mubr.msk.bf16.mxu1 %vm4897_vm0, %v6386_v11  ;;  %v4856_v41 = vld [vmem:[%s6332_s3 + $0x370] sm:$0xff]  }
 0x39a   :  { %v4258_v39 = vpop.f32.mrf.mxu1  ;;  %4382 = vmatprep.subr.bf16.mxu1 %v6386_v11 }
 0x39b   :  { %v4857_v39 = vld [vmem:[%s6332_s3 + $0x368] sm:$0xff]  }
 0x39c   :  { %v1964_v57 = vpop.f32.mrf.mxu1 }
 0x39d   :  { %v1969_v18 = vadd.f32 %v1964_v57, %v1859_v29  ;;  %4383 = vmatpush3.bf16.msra.mxu1 %v4824_v35  ;;  %v4850_v29 = vld [vmem:[%s6332_s3 + $0x320] sm:$0xff]  }
 0x39e   :  { %v4259_v51 = vpop.f32.mrf.mxu1  ;;  %4384 = vmatprep.subr.bf16.mxu1 %v6386_v11  ;;  %v4858_v57 = vld [vmem:[%s6332_s3 + $0x360] sm:$0xff]  }
 0x39f   :  { %v4861_v51 = vld [vmem:[%s6332_s3 + $0x348] sm:$0xff]  }
 0x3a1   :  { %4385 = vmatpush3.bf16.msra.mxu1 %v4825_v22  ;;  %v4860_v22 = vld [vmem:[%s6332_s3 + $0x350] sm:$0xff]  }
 0x3a2   :  { %4386 = vmatprep.subr.bf16.mxu1 %v6386_v11 }
 0x3a5   :  { %4387 = vmatpush3.bf16.msra.mxu1 %v4826_v15  ;;  %v4862_v15 = vld [vmem:[%s6332_s3 + $0x340] sm:$0xff]  }
 0x3a6   :  { %4388 = vmatprep.subr.bf16.mxu1 %v6386_v11 }
 0x3a9   :  { %4389 = vmatpush3.bf16.msra.mxu1 %v4827_v50  ;;  %v4863_v50 = vld [vmem:[%s6332_s3 + $0x3b8] sm:$0xff]  }
 0x3aa   :  { %4390 = vmatprep.subr.bf16.mxu1 %v6386_v11 }
 0x3ad   :  { %4391 = vmatpush3.bf16.msra.mxu1 %v4828_v26 }
 0x3ae   :  { %4392 = vmatprep.subr.bf16.mxu1 %v6386_v11 }
 0x3b1   :  { %4393 = vmatpush3.bf16.msra.mxu1 %v4829_v32 }
 0x3b2   :  { %4394 = vmatprep.subr.bf16.mxu1 %v6386_v11 }
 0x3b5   :  { %4395 = vmatpush3.bf16.msra.mxu1 %v4830_v3  ;;  %v4864_v3 = vld [vmem:[%s6332_s3 + $0x3b0] sm:$0xff]  }
 0x3b6   :  { %4400 = vmatprep.subr.bf16.mxu1 %v6386_v11 }
 0x3b8   :  { %v2069_v6 = vpop.f32.mrf.mxu1  ;;  %4397 = vmatmul.mubr.bf16.vlgmr.msra.gmra.mxu1 %v5774_v25 }
 0x3b9   :  { %v2076_v36 = vadd.f32 %v2069_v6, %v1968_v53  ;;  %4401 = vmatpush3.bf16.msra.mxu1 %v4831_v59  ;;  %4416 = vmatprep.mubr.msk.bf16.mxu1 %vm4897_vm0, %v6386_v11 }
 0x3ba   :  { %v4278_v55 = vpop.f32.mrf.mxu1  ;;  %4402 = vmatprep.subr.bf16.mxu1 %v6386_v11 }
 0x3bb   :  { %v4866_v55 = vld [vmem:[%s6332_s3 + $0x3a0] sm:$0xff]  }
 0x3bc   :  { %v2072_v13 = vpop.f32.mrf.mxu1 }
 0x3bd   :  { %v2077_v38 = vadd.f32 %v2072_v13, %v1969_v18  ;;  %4403 = vmatpush3.bf16.msra.mxu1 %v4832_v34  ;;  %v4859_v18 = vld [vmem:[%s6332_s3 + $0x358] sm:$0xff]   ;;  %v4865_v34 = vld [vmem:[%s6332_s3 + $0x3a8] sm:$0xff]  }
 0x3be   :  { %v4279_v25 = vpop.f32.mrf.mxu1  ;;  %4404 = vmatprep.subr.bf16.mxu1 %v6386_v11  ;;  %v4867_v13 = vld [vmem:[%s6332_s3 + $0x398] sm:$0xff]  }
 0x3bf   :  { %v4870_v25 = vld [vmem:[%s6332_s3 + $0x380] sm:$0xff]  }
 0x3c1   :  { %4405 = vmatpush3.bf16.msra.mxu1 %v4833_v54  ;;  %v4869_v54 = vld [vmem:[%s6332_s3 + $0x388] sm:$0xff]  }
 0x3c2   :  { %4406 = vmatprep.subr.bf16.mxu1 %v6386_v11 }
 0x3c5   :  { %4407 = vmatpush3.bf16.msra.mxu1 %v4834_v23  ;;  %v4871_v23 = vld [vmem:[%s6332_s3 + $0x3f8] sm:$0xff]  }
 0x3c6   :  { %4408 = vmatprep.subr.bf16.mxu1 %v6386_v11 }
 0x3c9   :  { %4409 = vmatpush3.bf16.msra.mxu1 %v4835_v49 }
 0x3ca   :  { %4410 = vmatprep.subr.bf16.mxu1 %v6386_v11 }
 0x3cd   :  { %4411 = vmatpush3.bf16.msra.mxu1 %v4836_v10 }
 0x3ce   :  { %4412 = vmatprep.subr.bf16.mxu1 %v6386_v11 }
 0x3d1   :  { %4413 = vmatpush3.bf16.msra.mxu1 %v4837_v40  ;;  %v4872_v40 = vld [vmem:[%s6332_s3 + $0x3f0] sm:$0xff]  }
 0x3d2   :  { %4414 = vmatprep.subr.bf16.mxu1 %v6386_v11 }
 0x3d5   :  { %4415 = vmatpush3.bf16.msra.mxu1 %v4838_v62 }
 0x3d6   :  { %4420 = vmatprep.subr.bf16.mxu1 %v6386_v11 }
 0x3d8   :  { %v2177_v45 = vpop.f32.mrf.mxu1  ;;  %4417 = vmatmul.mubr.bf16.vlgmr.msra.gmra.mxu1 %v5795_v33 }
 0x3d9   :  { %v2184_v7 = vadd.f32 %v2177_v45, %v2076_v36  ;;  %4421 = vmatpush3.bf16.msra.mxu1 %v4839_v63  ;;  %4436 = vmatprep.mubr.msk.bf16.mxu1 %vm4897_vm0, %v6386_v11 }
 0x3da   :  { %v4298_v24 = vpop.f32.mrf.mxu1  ;;  %4422 = vmatprep.subr.bf16.mxu1 %v6386_v11 }
 0x3db   :  { %v4875_v24 = vld [vmem:[%s6332_s3 + $0x3d8] sm:$0xff]  }
 0x3dc   :  { %v2180_v5 = vpop.f32.mrf.mxu1 }
 0x3dd   :  { %v2185_v43 = vadd.f32 %v2180_v5, %v2077_v38  ;;  %4423 = vmatpush3.bf16.msra.mxu1 %v4840_v8  ;;  %v4868_v38 = vld [vmem:[%s6332_s3 + $0x390] sm:$0xff]   ;;  %v4874_v8 = vld [vmem:[%s6332_s3 + $0x3e0] sm:$0xff]  }
 0x3de   :  { %v4299_v33 = vpop.f32.mrf.mxu1  ;;  %4424 = vmatprep.subr.bf16.mxu1 %v6386_v11  ;;  %v4876_v5 = vld [vmem:[%s6332_s3 + $0x3d0] sm:$0xff]  }
 0x3e1   :  { %4425 = vmatpush3.bf16.msra.mxu1 %v4841_v27  ;;  %v4878_v27 = vld [vmem:[%s6332_s3 + $0x3c0] sm:$0xff]  }
 0x3e2   :  { %4426 = vmatprep.subr.bf16.mxu1 %v6386_v11 }
 0x3e5   :  { %4427 = vmatpush3.bf16.msra.mxu1 %v4842_v56 }
 0x3e6   :  { %4428 = vmatprep.subr.bf16.mxu1 %v6386_v11 }
 0x3e9   :  { %4429 = vmatpush3.bf16.msra.mxu1 %v4843_v17 }
 0x3ea   :  { %4430 = vmatprep.subr.bf16.mxu1 %v6386_v11 }
 0x3ed   :  { %4431 = vmatpush3.bf16.msra.mxu1 %v4844_v46 }
 0x3ee   :  { %4432 = vmatprep.subr.bf16.mxu1 %v6386_v11 }
 0x3f1   :  { %4433 = vmatpush3.bf16.msra.mxu1 %v4845_v21 }
 0x3f2   :  { %4434 = vmatprep.subr.bf16.mxu1 %v6386_v11 }
 0x3f5   :  { %4435 = vmatpush3.bf16.msra.mxu1 %v4846_v60 }
 0x3f6   :  { %4440 = vmatprep.subr.bf16.mxu1 %v6386_v11 }
 0x3f8   :  { %v2285_v19 = vpop.f32.mrf.mxu1  ;;  %4437 = vmatmul.mubr.bf16.vlgmr.msra.gmra.mxu1 %v5813_v47 }
 0x3f9   :  { %v2292_v2 = vadd.f32 %v2285_v19, %v2184_v7  ;;  %4441 = vmatpush3.bf16.msra.mxu1 %v4847_v12  ;;  %4456 = vmatprep.mubr.msk.bf16.mxu1 %vm4897_vm0, %v6386_v11  ;;  %v4873_v7 = vld [vmem:[%s6332_s3 + $0x3e8] sm:$0xff]  }
 0x3fa   :  { %v4318_v58 = vpop.f32.mrf.mxu1  ;;  %4442 = vmatprep.subr.bf16.mxu1 %v6386_v11 }
 0x3fc   :  { %v2288_v37 = vpop.f32.mrf.mxu1 }
 0x3fd   :  { %v2293_v31 = vadd.f32 %v2288_v37, %v2185_v43  ;;  %4443 = vmatpush3.bf16.msra.mxu1 %v4848_v1  ;;  %v4877_v43 = vld [vmem:[%s6332_s3 + $0x3c8] sm:$0xff]  }
 0x3fe   :  { %v4319_v47 = vpop.f32.mrf.mxu1  ;;  %4444 = vmatprep.subr.bf16.mxu1 %v6386_v11 }
 0x3ff   :  { %v4882_v47 = vld [vmem:[%s6334_s5 + $0x20] sm:$0xff]  }
 0x401   :  { %4445 = vmatpush3.bf16.msra.mxu1 %v4849_v28  ;;  %v4881_v28 = vld [vmem:[%s6334_s5 + $0x28] sm:$0xff]  }
 0x402   :  { %4446 = vmatprep.subr.bf16.mxu1 %v6386_v11 }
 0x405   :  { %4447 = vmatpush3.bf16.msra.mxu1 %v4850_v29  ;;  %v4883_v29 = vld [vmem:[%s6334_s5 + $0x18] sm:$0xff]  }
 0x406   :  { %4448 = vmatprep.subr.bf16.mxu1 %v6386_v11 }
 0x409   :  { %4449 = vmatpush3.bf16.msra.mxu1 %v4851_v48 }
 0x40a   :  { %4450 = vmatprep.subr.bf16.mxu1 %v6386_v11 }
 0x40d   :  { %4451 = vmatpush3.bf16.msra.mxu1 %v4852_v52  ;;  %v4884_v52 = vld [vmem:[%s6334_s5 + $0x10] sm:$0xff]  }
 0x40e   :  { %4452 = vmatprep.subr.bf16.mxu1 %v6386_v11 }
 0x411   :  { %4453 = vmatpush3.bf16.msra.mxu1 %v4853_v20 }
 0x412   :  { %4454 = vmatprep.subr.bf16.mxu1 %v6386_v11 }
 0x415   :  { %4455 = vmatpush3.bf16.msra.mxu1 %v4854_v0 }
 0x416   :  { %4460 = vmatprep.subr.bf16.mxu1 %v6386_v11 }
 0x418   :  { %v2393_v16 = vpop.f32.mrf.mxu1  ;;  %4457 = vmatmul.mubr.bf16.vlgmr.msra.gmra.mxu1 %v5831_v14 }
 0x419   :  { %v2400_v9 = vadd.f32 %v2393_v16, %v2292_v2  ;;  %4461 = vmatpush3.bf16.msra.mxu1 %v4855_v4  ;;  %4476 = vmatprep.mubr.msk.bf16.mxu1 %vm4897_vm0, %v6386_v11  ;;  %v4885_v16 = vld [vmem:[%s6334_s5 + $0x8] sm:$0xff]  }
 0x41a   :  { %v4338_v44 = vpop.f32.mrf.mxu1  ;;  %4462 = vmatprep.subr.bf16.mxu1 %v6386_v11 }
 0x41b   :  { %v4886_v44 = vld [vmem:[%s6334_s5] sm:$0xff]  }
 0x41c   :  { %v2396_v53 = vpop.f32.mrf.mxu1 }
 0x41d   :  { %v2401_v35 = vadd.f32 %v2396_v53, %v2293_v31  ;;  %4463 = vmatpush3.bf16.msra.mxu1 %v4856_v41  ;;  %v4879_v31 = vld [vmem:[%s6334_s5 + $0x38] sm:$0xff]  }
 0x41e   :  { %v4339_v14 = vpop.f32.mrf.mxu1  ;;  %4464 = vmatprep.subr.bf16.mxu1 %v6386_v11 }
 0x421   :  { %4465 = vmatpush3.bf16.msra.mxu1 %v4857_v39 }
 0x422   :  { %4466 = vmatprep.subr.bf16.mxu1 %v6386_v11 }
 0x425   :  { %4467 = vmatpush3.bf16.msra.mxu1 %v4858_v57 }
 0x426   :  { %4468 = vmatprep.subr.bf16.mxu1 %v6386_v11 }
 0x429   :  { %4469 = vmatpush3.bf16.msra.mxu1 %v4859_v18 }
 0x42a   :  { %4470 = vmatprep.subr.bf16.mxu1 %v6386_v11 }
 0x42d   :  { %4471 = vmatpush3.bf16.msra.mxu1 %v4860_v22 }
 0x42e   :  { %4472 = vmatprep.subr.bf16.mxu1 %v6386_v11 }
 0x431   :  { %4473 = vmatpush3.bf16.msra.mxu1 %v4861_v51 }
 0x432   :  { %4474 = vmatprep.subr.bf16.mxu1 %v6386_v11 }
 0x435   :  { %4475 = vmatpush3.bf16.msra.mxu1 %v4862_v15 }
 0x436   :  { %4480 = vmatprep.subr.bf16.mxu1 %v6386_v11 }
 0x438   :  { %v2501_v26 = vpop.f32.mrf.mxu1  ;;  %4477 = vmatmul.mubr.bf16.vlgmr.msra.gmra.mxu1 %v5849_v42 }
 0x439   :  { %v2508_v32 = vadd.f32 %v2501_v26, %v2400_v9  ;;  %4481 = vmatpush3.bf16.msra.mxu1 %v4863_v50  ;;  %4496 = vmatprep.mubr.msk.bf16.mxu1 %vm4897_vm0, %v6386_v11 }
 0x43a   :  { %v4358_v59 = vpop.f32.mrf.mxu1  ;;  %4482 = vmatprep.subr.bf16.mxu1 %v6386_v11 }
 0x43c   :  { %v2504_v6 = vpop.f32.mrf.mxu1 }
 0x43d   :  { %v2509_v36 = vadd.f32 %v2504_v6, %v2401_v35  ;;  %4483 = vmatpush3.bf16.msra.mxu1 %v4864_v3 }
 0x43e   :  { %v4359_v42 = vpop.f32.mrf.mxu1  ;;  %4484 = vmatprep.subr.bf16.mxu1 %v6386_v11 }
 0x441   :  { %4485 = vmatpush3.bf16.msra.mxu1 %v4865_v34 }
 0x442   :  { %4486 = vmatprep.subr.bf16.mxu1 %v6386_v11 }
 0x445   :  { %4487 = vmatpush3.bf16.msra.mxu1 %v4866_v55  ;;  %v4037_v55 = vld [vmem:[%s6335_s4] ss:$0 sm:$0xff] }
 0x446   :  { %4488 = vmatprep.subr.bf16.mxu1 %v6386_v11 }
 0x449   :  { %4489 = vmatpush3.bf16.msra.mxu1 %v4867_v13 }
 0x44a   :  { %4490 = vmatprep.subr.bf16.mxu1 %v6386_v11 }
 0x44d   :  { %4491 = vmatpush3.bf16.msra.mxu1 %v4868_v38 }
 0x44e   :  { %4492 = vmatprep.subr.bf16.mxu1 %v6386_v11 }
 0x451   :  { %4493 = vmatpush3.bf16.msra.mxu1 %v4869_v54 }
 0x452   :  { %4494 = vmatprep.subr.bf16.mxu1 %v6386_v11 }
 0x455   :  { %4495 = vmatpush3.bf16.msra.mxu1 %v4870_v25 }
 0x456   :  { %4500 = vmatprep.subr.bf16.mxu1 %v6386_v11 }
 0x458   :  { %v2609_v49 = vpop.f32.mrf.mxu1  ;;  %4497 = vmatmul.mubr.bf16.vlgmr.msra.gmra.mxu1 %v5870_v30 }
 0x459   :  { %v2616_v10 = vadd.f32 %v2609_v49, %v2508_v32  ;;  %4501 = vmatpush3.bf16.msra.mxu1 %v4871_v23  ;;  %4516 = vmatprep.mubr.msk.bf16.mxu1 %vm4897_vm0, %v6386_v11 }
 0x45a   :  { %v4378_v62 = vpop.f32.mrf.mxu1  ;;  %4502 = vmatprep.subr.bf16.mxu1 %v6386_v11 }
 0x45c   :  { %v2612_v63 = vpop.f32.mrf.mxu1 }
 0x45d   :  { %v2617_v45 = vadd.f32 %v2612_v63, %v2509_v36  ;;  %4503 = vmatpush3.bf16.msra.mxu1 %v4872_v40 }
 0x45e   :  { %v4379_v30 = vpop.f32.mrf.mxu1  ;;  %4504 = vmatprep.subr.bf16.mxu1 %v6386_v11 }
 0x461   :  { %4505 = vmatpush3.bf16.msra.mxu1 %v4873_v7 }
 0x462   :  { %4506 = vmatprep.subr.bf16.mxu1 %v6386_v11 }
 0x465   :  { %4507 = vmatpush3.bf16.msra.mxu1 %v4874_v8 }
 0x466   :  { %4508 = vmatprep.subr.bf16.mxu1 %v6386_v11 }
 0x469   :  { %4509 = vmatpush3.bf16.msra.mxu1 %v4875_v24 }
 0x46a   :  { %4510 = vmatprep.subr.bf16.mxu1 %v6386_v11 }
 0x46d   :  { %4511 = vmatpush3.bf16.msra.mxu1 %v4876_v5 }
 0x46e   :  { %4512 = vmatprep.subr.bf16.mxu1 %v6386_v11 }
 0x471   :  { %4513 = vmatpush3.bf16.msra.mxu1 %v4877_v43 }
 0x472   :  { %4514 = vmatprep.subr.bf16.mxu1 %v6386_v11 }
 0x475   :  { %4515 = vmatpush3.bf16.msra.mxu1 %v4878_v27 }
 0x476   :  { %4520 = vmatprep.subr.bf16.mxu1 %v6386_v11 }
 0x478   :  { %v2717_v33 = vpop.f32.mrf.mxu1  ;;  %4517 = vmatmul.mubr.bf16.vlgmr.msra.gmra.mxu1 %v5883_v61  ;;  %v4880_v61 = vld [vmem:[%s6334_s5 + $0x30] sm:$0xff]  }
 0x479   :  { %v2724_v56 = vadd.f32 %v2717_v33, %v2616_v10  ;;  %4536 = vmatprep.mubr.msk.bf16.mxu1 %vm4897_vm0, %v6386_v11  ;;  %4521 = vmatpush3.bf16.msra.mxu1 %v4879_v31 }
 0x47a   :  { %v4398_v17 = vpop.f32.mrf.mxu1  ;;  %4522 = vmatprep.subr.bf16.mxu1 %v6386_v11 }
 0x47c   :  { %v2720_v46 = vpop.f32.mrf.mxu1 }
 0x47d   :  { %v2725_v21 = vadd.f32 %v2720_v46, %v2617_v45  ;;  %4523 = vmatpush3.bf16.msra.mxu1 %v4880_v61  ;;  %v4038_v45 = vld [vmem:[%s6336_s6] ss:$0 sm:$0xff] }
 0x47e   :  { %v4399_v60 = vpop.f32.mrf.mxu1  ;;  %4524 = vmatprep.subr.bf16.mxu1 %v6386_v11 }
 0x481   :  { %4525 = vmatpush3.bf16.msra.mxu1 %v4881_v28 }
 0x482   :  { %4526 = vmatprep.subr.bf16.mxu1 %v6386_v11 }
 0x485   :  { %4527 = vmatpush3.bf16.msra.mxu1 %v4882_v47 }
 0x486   :  { %4528 = vmatprep.subr.bf16.mxu1 %v6386_v11 }
 0x489   :  { %4529 = vmatpush3.bf16.msra.mxu1 %v4883_v29 }
 0x48a   :  { %4530 = vmatprep.subr.bf16.mxu1 %v6386_v11 }
 0x48d   :  { %4531 = vmatpush3.bf16.msra.mxu1 %v4884_v52 }
 0x48e   :  { %4532 = vmatprep.subr.bf16.mxu1 %v6386_v11 }
 0x491   :  { %4533 = vmatpush3.bf16.msra.mxu1 %v4885_v16 }
 0x492   :  { %4534 = vmatprep.subr.bf16.mxu1 %v6386_v11 }
 0x495   :  { %4535 = vmatpush3.bf16.msra.mxu1 %v4886_v44 }
 0x498   :  { %v2825_v12 = vpop.f32.mrf.mxu1 }
 0x499   :  { %v2832_v19 = vadd.f32 %v2825_v12, %v2724_v56 }
 0x49a   :  { %v4418_v2 = vpop.f32.mrf.mxu1 }
 0x49c   :  { %v2828_v1 = vpop.f32.mrf.mxu1 }
 0x49d   :  { %v2833_v58 = vadd.f32 %v2828_v1, %v2725_v21 }
 0x49e   :  { %v4419_v37 = vpop.f32.mrf.mxu1 }
 0x4b8   :  { %v2933_v48 = vpop.f32.mrf.mxu1 }
 0x4b9   :  { %v2940_v20 = vadd.f32 %v2933_v48, %v2832_v19 }
 0x4ba   :  { %v4438_v0 = vpop.f32.mrf.mxu1 }
 0x4bc   :  { %v2936_v4 = vpop.f32.mrf.mxu1 }
 0x4bd   :  { %v2941_v9 = vadd.f32 %v2936_v4, %v2833_v58 }
 0x4be   :  { %v4439_v41 = vpop.f32.mrf.mxu1 }
 0x4d8   :  { %v3041_v53 = vpop.f32.mrf.mxu1 }
 0x4d9   :  { %v3048_v35 = vadd.f32 %v3041_v53, %v2940_v20 }
 0x4da   :  { %v4458_v39 = vpop.f32.mrf.mxu1 }
 0x4dc   :  { %v3044_v14 = vpop.f32.mrf.mxu1 }
 0x4dd   :  { %v3049_v57 = vadd.f32 %v3044_v14, %v2941_v9 }
 0x4de   :  { %v4459_v18 = vpop.f32.mrf.mxu1 }
 0x4f8   :  { %v3149_v22 = vpop.f32.mrf.mxu1 }
 0x4f9   :  { %v3156_v51 = vadd.f32 %v3149_v22, %v3048_v35 }
 0x4fa   :  { %v4478_v15 = vpop.f32.mrf.mxu1 }
 0x4fc   :  { %v3152_v50 = vpop.f32.mrf.mxu1 }
 0x4fd   :  { %v3157_v34 = vadd.f32 %v3152_v50, %v3049_v57 }
 0x4fe   :  { %v4479_v26 = vpop.f32.mrf.mxu1 }
 0x518   :  { %v3257_v32 = vpop.f32.mrf.mxu1 }
 0x519   :  { %v3264_v6 = vadd.f32 %v3257_v32, %v3156_v51 }
 0x51a   :  { %v4498_v3 = vpop.f32.mrf.mxu1 }
 0x51c   :  { %v3260_v59 = vpop.f32.mrf.mxu1 }
 0x51d   :  { %v3265_v38 = vadd.f32 %v3260_v59, %v3157_v34 }
 0x51e   :  { %v4499_v11 = vpop.f32.mrf.mxu1 }
 0x538   :  { %v3365_v36 = vpop.f32.mrf.mxu1 }
 0x539   :  { %v3372_v42 = vadd.f32 %v3365_v36, %v3264_v6 }
 0x53a   :  { %v4518_v13 = vpop.f32.mrf.mxu1 }
 0x53b   :  { %v3381_v25 = vadd.f32 %v4037_v55, %v3372_v42 }
 0x53c   :  { %v3368_v54 = vpop.f32.mrf.mxu1 }
 0x53d   :  { %v3373_v23 = vadd.f32 %v3368_v54, %v3265_v38  ;;  %v3383_v40 = vmax.f32 %v3381_v25, 0.0 }
 0x53e   :  { %v4519_v49 = vpop.f32.mrf.mxu1 }
 0x53f   :  { %v3382_v10 = vadd.f32 %v4037_v55, %v3373_v23 }
 0x541   :  { %v3384_v62 = vmax.f32 %v3382_v10, 0.0 }
 0x543   :  { %v3385_v63 = vpack.c.bf16 %v3384_v62, %v3383_v40 }
 0x545   :  { %4537 = vmatmul.mubr.bf16.vlgmr.msra.gmra.mxu1 %v3385_v63 }
 0x605   :  { %v3491_v7 = vpop.f32.mrf.mxu1 }
 0x606   :  { %v3492_v30 = vadd.f32 %v4038_v45, %v3491_v7 }
 0x607   :  { %v4538_v8 = vpop.f32.mrf.mxu1 }
 0x608   :  { %3498 = vmax.xlane.f32.xlu0 %v3492_v30 }
 0x609   :  { %v3494_v24 = vpop.f32.mrf.mxu1 }
 0x60a   :  { %v3495_v5 = vadd.f32 %v4038_v45, %v3494_v24 }
 0x60b   :  { %v4539_v43 = vpop.f32.mrf.mxu1 }
 0x60c   :  { %3500 = vmax.xlane.f32.xlu0 %v3495_v5 }
 0x691   :  { %v3499_v27 = vpop.xlane.xlu0 %3498 }
 0x692   :  { %v3502_v33 = vsub.f32 %v3492_v30, %v3499_v27 }
 0x694   :  { %v3504_v56 = vmul.f32 1.442695, %v3502_v33 }
 0x695   :  { %v3501_v17 = vpop.xlane.xlu0 %3500 }
 0x696   :  { %v3503_v46 = vsub.f32 %v3495_v5, %v3501_v17  ;;  %4887 = vpow2.f32 %v3504_v56 }
 0x698   :  { %v3506_v21 = vmul.f32 1.442695, %v3503_v46 }
 0x69a   :  { %4889 = vpow2.f32 %v3506_v21 }
 0x6a3   :  { %v4888_v60 = vpop.eup %4887 }
 0x6a4   :  { %3508 = vadd.xlane.f32.xlu1 %v4888_v60 }
 0x6a7   :  { %v4890_v12 = vpop.eup %4889 }
 0x6a8   :  { %3510 = vadd.xlane.f32.xlu1 %v4890_v12 }
 0x72d   :  { %v3509_v19 = vpop.xlane.xlu1 %3508 }
 0x72e   :  { %4891 = vlog2.f32 %v3509_v19 }
 0x731   :  { %v3511_v2 = vpop.xlane.xlu1 %3510 }
 0x732   :  { %4893 = vlog2.f32 %v3511_v2 }
 0x73b   :  { %v4892_v1 = vpop.eup %4891 }
 0x73c   :  { %v3513_v58 = vmul.f32 0.6931472, %v4892_v1 }
 0x73e   :  { %v3516_v37 = vsub.f32 %v3502_v33, %v3513_v58 }
 0x73f   :  { %v4894_v31 = vpop.eup %4893 }
 0x740   :  { %3518 = vst [vmem:[%s6337_s7] sm:$0xff] %v3516_v37  ;;  %v3515_v61 = vmul.f32 0.6931472, %v4894_v31 }
 0x742   :  { %v3517_v28 = vsub.f32 %v3503_v46, %v3515_v61 }
 0x744   :  { %3519 = vst [vmem:[%s6337_s7 + $0x8] sm:$0xff] %v3517_v28 }

</bundles_post_ra>
